<compile_context>
chip_gen: v6e
topology: v6e:2x2x1
jax: 0.10.0
libtpu: 0.0.40
codegen_flags: <defaults>
</compile_context>

<pallas_src>
import functools

import jax
import jax.numpy as jnp
from jax.experimental import pallas as pl
from jax.experimental.pallas import tpu as pltpu

# ---- model hyperparameters (scaled down from EMBED_SIZE=510, BLOCK_SIZE=128) ----
EMBED_SIZE = 64          # C  (num_heads * head_size == EMBED_SIZE, as in the module)
NUM_HEADS = 4            # H
HEAD_SIZE = 16           # hd
BLOCK_SIZE = 16          # max sequence length (causal mask size)


# --------------------------------------------------------------------------- #
# Fused kernel: single grid step, whole batch at once.                         #
#   x_ref  : (B*T, C)       flattened activation slab                          #
#   wq/wk/wv_ref : (H, C, hd) per-head projection weights                      #
#                  (query weight already pre-scaled by C**-0.5)                #
#   wp_ref : (H, hd, C)     output projection, pre-sliced per head             #
#   bp_ref : (1, C)         output projection bias                             #
#   o_ref  : (B*T, C)       final projected output (lane-dense stores)         #
# --------------------------------------------------------------------------- #
def _fused_mha_kernel(x_ref, wq_ref, wk_ref, wv_ref, wp_ref, bp_ref, o_ref,
                      *, batch, seq, num_heads, head_size):
    B, T, H, hd = batch, seq, num_heads, head_size
    C = x_ref.shape[-1]

    x2 = x_ref[...]                                            # (B*T, C)

    # Causal mask, built once (shared by every head / batch element).
    row = jax.lax.broadcasted_iota(jnp.int32, (T, T), 0)
    col = jax.lax.broadcasted_iota(jnp.int32, (T, T), 1)
    causal = col <= row

    bias = bp_ref[...]                                         # (1, C)
    # Per-batch f32 accumulators, initialised with the projection bias.
    acc = [jnp.broadcast_to(bias, (T, C)) for _ in range(B)]

    for h in range(H):                         # static unrolled head loop
        # Head-major projections: leading-axis weight indexing (free), no lane slices.
        qh = jnp.dot(x2, wq_ref[h], preferred_element_type=jnp.float32)  # (B*T, hd), pre-scaled
        kh = jnp.dot(x2, wk_ref[h], preferred_element_type=jnp.float32)
        vh = jnp.dot(x2, wv_ref[h], preferred_element_type=jnp.float32)
        wp_h = wp_ref[h]                                        # (hd, C)

        for b in range(B):                     # static; sublane-aligned slices (T % 8 == 0)
            tok = slice(b * T, (b + 1) * T)
            qb, kb, vb = qh[tok], kh[tok], vh[tok]              # (T, hd) each

            # scores: contract hd of qb with hd of kb (no explicit transpose).
            s = jax.lax.dot_general(qb, kb, (((1,), (1,)), ((), ())),
                                    preferred_element_type=jnp.float32)  # (T, T)
            # Scale C**-0.5 already folded into wq.
            s = jnp.where(causal, s, -jnp.inf)  # every row keeps its diagonal -> no NaN
            s = s - jnp.max(s, axis=-1, keepdims=True)
            p = jnp.exp(s)
            p = p / jnp.sum(p, axis=-1, keepdims=True)          # exact normalisation

            ob = jnp.dot(p, vb, preferred_element_type=jnp.float32)      # (T, hd)
            # Output projection distributed over heads (replaces lane-axis concat).
            acc[b] = acc[b] + jnp.dot(ob, wp_h, preferred_element_type=jnp.float32)

    for b in range(B):                          # lane-dense (T, C) stores
        o_ref[b * T:(b + 1) * T, :] = acc[b].astype(o_ref.dtype)


# ----------------------------- parameter prep -------------------------------- #
def prepare_params(wq, wk, wv, w_proj, b_proj):
    """One-time layout fixes (done at load time, NOT per forward call).

    wq/wk/wv: (H, C, hd) per-head weights (already x@w layout).
    w_proj:   (C, C) torch layout (out, in).  b_proj: (C,).
    Returns kernel-layout params: pre-scaled wq, per-head-sliced w_proj, 2-D bias.
    """
    H, C, hd = wq.shape
    scale = float(C) ** -0.5          # module scales scores by C**-0.5 (embed size)

    wq_scaled = wq * scale            # fold score scale into the query projection
    # concat @ w_proj.T  ==  sum_h out_h @ (w_proj.T)[h*hd:(h+1)*hd, :]
    wp = jnp.transpose(w_proj).reshape(H, hd, C)   # (H, hd, C), leading-axis indexable
    bp = b_proj.reshape(1, C)
    return wq_scaled, wk, wv, wp, bp


# ------------------------------- wrapper ------------------------------------- #
def multi_head_attention_pallas(x, wq, wk, wv, wp, bp, *, num_heads, head_size):
    """x: (B, T, C).  Remaining args come from prepare_params().  Returns (B, T, C)."""
    B, T, C = x.shape
    x2 = x.reshape(B * T, C)          # flatten batch for the per-token matmuls
    kernel = functools.partial(_fused_mha_kernel, batch=B, seq=T,
                               num_heads=num_heads, head_size=head_size)
    out2 = pl.pallas_call(
        kernel,
        out_shape=jax.ShapeDtypeStruct((B * T, C), x.dtype),
        grid_spec=pltpu.PrefetchScalarGridSpec(
            num_scalar_prefetch=0,
            grid=(1,),                # single step: no per-batch pipeline overhead
            in_specs=[
                pl.BlockSpec((B * T, C), lambda i: (0, 0)),
                pl.BlockSpec(wq.shape, lambda i: (0, 0, 0)),
                pl.BlockSpec(wk.shape, lambda i: (0, 0, 0)),
                pl.BlockSpec(wv.shape, lambda i: (0, 0, 0)),
                pl.BlockSpec(wp.shape, lambda i: (0, 0, 0)),
                pl.BlockSpec(bp.shape, lambda i: (0, 0)),
            ],
            out_specs=pl.BlockSpec((B * T, C), lambda i: (0, 0)),
        ),
        compiler_params=pltpu.CompilerParams(
            dimension_semantics=("arbitrary",)),
    )(x2, wq, wk, wv, wp, bp)
    return out2.reshape(B, T, C)


# ------------------------------- reference ----------------------------------- #
def multi_head_attention_ref(x, wq, wk, wv, w_proj, b_proj):
    B, T, C = x.shape
    H, _, hd = wq.shape
    outs = []
    for h in range(H):
        q = x @ wq[h]
        k = x @ wk[h]
        v = x @ wv[h]
        s = (q @ jnp.swapaxes(k, 1, 2)) * (float(C) ** -0.5)
        mask = jnp.tril(jnp.ones((T, T), dtype=bool))
        s = jnp.where(mask, s, -jnp.inf)
        p = jax.nn.softmax(s, axis=-1)
        outs.append(p @ v)
    concat = jnp.concatenate(outs, axis=-1)
    return concat @ w_proj.T + b_proj


if __name__ == "__main__":
    # Pin f32 matmuls to full precision so kernel and reference agree tightly.
    jax.config.update("jax_default_matmul_precision", "highest")

    B, T, C, H, hd = 2, BLOCK_SIZE, EMBED_SIZE, NUM_HEADS, HEAD_SIZE

    key = jax.random.PRNGKey(0)
    kx, kq, kk, kv, kp, kb = jax.random.split(key, 6)

    x = jax.random.normal(kx, (B, T, C), dtype=jnp.float32)
    # nn.Linear(C, hd, bias=False) weight is (hd, C); stored transposed as (C, hd), stacked per head.
    wq = jax.random.normal(kq, (H, C, hd), dtype=jnp.float32) * (C ** -0.5)
    wk = jax.random.normal(kk, (H, C, hd), dtype=jnp.float32) * (C ** -0.5)
    wv = jax.random.normal(kv, (H, C, hd), dtype=jnp.float32) * (C ** -0.5)
    # nn.Linear(C, C) weight (out, in) + bias
    w_proj = jax.random.normal(kp, (C, C), dtype=jnp.float32) * (C ** -0.5)
    b_proj = jax.random.normal(kb, (C,), dtype=jnp.float32) * 0.02

    # One-time layout prep (fold scale, slice projection weight per head, 2-D bias).
    wq_s, wk_s, wv_s, wp, bp = prepare_params(wq, wk, wv, w_proj, b_proj)

    out = multi_head_attention_pallas(x, wq_s, wk_s, wv_s, wp, bp,
                                      num_heads=H, head_size=hd)
    out = jax.block_until_ready(out)

    ref = multi_head_attention_ref(x, wq, wk, wv, w_proj, b_proj)
    assert out.shape == (B, T, C)
    assert jnp.allclose(out, ref, atol=2e-3, rtol=2e-3), "mismatch vs reference"

    print("KERNEL_OK")
</pallas_src>

<mosaic_0001>
module attributes {stable_mosaic.version = 11 : i64} {
  func.func @_fused_mha_kernel(%arg0: i32, %arg1: memref<32x64xf32, #tpu.memory_space<vmem>>, %arg2: memref<4x64x16xf32, #tpu.memory_space<vmem>>, %arg3: memref<4x64x16xf32, #tpu.memory_space<vmem>>, %arg4: memref<4x64x16xf32, #tpu.memory_space<vmem>>, %arg5: memref<4x16x64xf32, #tpu.memory_space<vmem>>, %arg6: memref<1x64xf32, #tpu.memory_space<vmem>>, %arg7: memref<32x64xf32, #tpu.memory_space<vmem>>) attributes {dimension_semantics = [#tpu.dimension_semantics<arbitrary>], iteration_bounds = array<i64: 1>, scalar_prefetch = 0 : i64, scratch_operands = 0 : i64, tpu.core_type = #tpu.core_type<tc>, window_params = [{pipeline_mode = #tpu.pipeline_mode<synchronous>, transform_indices = @transform_0, window_bounds = array<i64: 32, 64>}, {pipeline_mode = #tpu.pipeline_mode<synchronous>, transform_indices = @transform_1, window_bounds = array<i64: 4, 64, 16>}, {pipeline_mode = #tpu.pipeline_mode<synchronous>, transform_indices = @transform_2, window_bounds = array<i64: 4, 64, 16>}, {pipeline_mode = #tpu.pipeline_mode<synchronous>, transform_indices = @transform_3, window_bounds = array<i64: 4, 64, 16>}, {pipeline_mode = #tpu.pipeline_mode<synchronous>, transform_indices = @transform_4, window_bounds = array<i64: 4, 16, 64>}, {pipeline_mode = #tpu.pipeline_mode<synchronous>, transform_indices = @transform_5, window_bounds = array<i64: 1, 64>}, {pipeline_mode = #tpu.pipeline_mode<synchronous>, transform_indices = @transform_6, window_bounds = array<i64: 32, 64>}]} {
    %c0 = arith.constant 0 : index
    %c0_0 = arith.constant 0 : index
    %0 = vector.load %arg1[%c0, %c0_0] : memref<32x64xf32, #tpu.memory_space<vmem>>, vector<32x64xf32>
    %1 = tpu.iota {dimensions = array<i32: 0>} : vector<16x16xi32>
    %2 = tpu.iota {dimensions = array<i32: 1>} : vector<16x16xi32>
    %3 = arith.cmpi sle, %2, %1 : vector<16x16xi32>
    %c0_1 = arith.constant 0 : index
    %c0_2 = arith.constant 0 : index
    %4 = vector.load %arg6[%c0_1, %c0_2] : memref<1x64xf32, #tpu.memory_space<vmem>>, vector<1x64xf32>
    %5 = vector.shape_cast %4 : vector<1x64xf32> to vector<1x64xf32>
    %6 = vector.broadcast %5 : vector<1x64xf32> to vector<16x64xf32>
    %7 = vector.shape_cast %4 : vector<1x64xf32> to vector<1x64xf32>
    %8 = vector.broadcast %7 : vector<1x64xf32> to vector<16x64xf32>
    %c0_3 = arith.constant 0 : index
    %c0_4 = arith.constant 0 : index
    %c0_5 = arith.constant 0 : index
    %9 = vector.load %arg2[%c0_3, %c0_4, %c0_5] : memref<4x64x16xf32, #tpu.memory_space<vmem>>, vector<1x64x16xf32>
    %10 = vector.shape_cast %9 : vector<1x64x16xf32> to vector<64x16xf32>
    %cst = arith.constant dense<0.000000e+00> : vector<32x16xf32>
    %11 = tpu.matmul %0, %10, %cst {dimension_numbers = #tpu.dot_dimension_numbers<[1], [0], [0], [1], [0, 0, 1, 1], [], []>, precision = #tpu.contract_precision<fp32>} : vector<32x64xf32>, vector<64x16xf32>, vector<32x16xf32> -> vector<32x16xf32>
    %c0_6 = arith.constant 0 : index
    %c0_7 = arith.constant 0 : index
    %c0_8 = arith.constant 0 : index
    %12 = vector.load %arg3[%c0_6, %c0_7, %c0_8] : memref<4x64x16xf32, #tpu.memory_space<vmem>>, vector<1x64x16xf32>
    %13 = vector.shape_cast %12 : vector<1x64x16xf32> to vector<64x16xf32>
    %cst_9 = arith.constant dense<0.000000e+00> : vector<32x16xf32>
    %14 = tpu.matmul %0, %13, %cst_9 {dimension_numbers = #tpu.dot_dimension_numbers<[1], [0], [0], [1], [0, 0, 1, 1], [], []>, precision = #tpu.contract_precision<fp32>} : vector<32x64xf32>, vector<64x16xf32>, vector<32x16xf32> -> vector<32x16xf32>
    %c0_10 = arith.constant 0 : index
    %c0_11 = arith.constant 0 : index
    %c0_12 = arith.constant 0 : index
    %15 = vector.load %arg4[%c0_10, %c0_11, %c0_12] : memref<4x64x16xf32, #tpu.memory_space<vmem>>, vector<1x64x16xf32>
    %16 = vector.shape_cast %15 : vector<1x64x16xf32> to vector<64x16xf32>
    %cst_13 = arith.constant dense<0.000000e+00> : vector<32x16xf32>
    %17 = tpu.matmul %0, %16, %cst_13 {dimension_numbers = #tpu.dot_dimension_numbers<[1], [0], [0], [1], [0, 0, 1, 1], [], []>, precision = #tpu.contract_precision<fp32>} : vector<32x64xf32>, vector<64x16xf32>, vector<32x16xf32> -> vector<32x16xf32>
    %c0_14 = arith.constant 0 : index
    %c0_15 = arith.constant 0 : index
    %c0_16 = arith.constant 0 : index
    %18 = vector.load %arg5[%c0_14, %c0_15, %c0_16] : memref<4x16x64xf32, #tpu.memory_space<vmem>>, vector<1x16x64xf32>
    %19 = vector.shape_cast %18 : vector<1x16x64xf32> to vector<16x64xf32>
    %20 = vector.extract_strided_slice %11 {offsets = [0, 0], sizes = [16, 16], strides = [1, 1]} : vector<32x16xf32> to vector<16x16xf32>
    %21 = vector.extract_strided_slice %14 {offsets = [0, 0], sizes = [16, 16], strides = [1, 1]} : vector<32x16xf32> to vector<16x16xf32>
    %22 = vector.extract_strided_slice %17 {offsets = [0, 0], sizes = [16, 16], strides = [1, 1]} : vector<32x16xf32> to vector<16x16xf32>
    %cst_17 = arith.constant dense<0.000000e+00> : vector<16x16xf32>
    %23 = tpu.matmul %20, %21, %cst_17 {dimension_numbers = #tpu.dot_dimension_numbers<[1], [1], [0], [0], [0, 0, 1, 0], [], []>, precision = #tpu.contract_precision<fp32>} : vector<16x16xf32>, vector<16x16xf32>, vector<16x16xf32> -> vector<16x16xf32>
    %cst_18 = arith.constant 0xFF800000 : f32
    %24 = vector.broadcast %cst_18 : f32 to vector<16x16xf32>
    %25 = arith.select %3, %23, %24 : vector<16x16xi1>, vector<16x16xf32>
    %cst_19 = arith.constant dense<0xFF800000> : vector<16xf32>
    %26 = vector.multi_reduction <maximumf>, %25, %cst_19 [1] : vector<16x16xf32> to vector<16xf32>
    %27 = vector.shape_cast %26 : vector<16xf32> to vector<16x1xf32>
    %28 = vector.broadcast %27 : vector<16x1xf32> to vector<16x16xf32>
    %29 = arith.subf %25, %28 : vector<16x16xf32>
    %30 = math.exp %29 : vector<16x16xf32>
    %cst_20 = arith.constant dense<0.000000e+00> : vector<16xf32>
    %31 = vector.multi_reduction <add>, %30, %cst_20 [1] : vector<16x16xf32> to vector<16xf32>
    %32 = vector.shape_cast %31 : vector<16xf32> to vector<16x1xf32>
    %33 = vector.broadcast %32 : vector<16x1xf32> to vector<16x16xf32>
    %34 = arith.divf %30, %33 : vector<16x16xf32>
    %cst_21 = arith.constant dense<0.000000e+00> : vector<16x16xf32>
    %35 = tpu.matmul %34, %22, %cst_21 {dimension_numbers = #tpu.dot_dimension_numbers<[1], [0], [0], [1], [0, 0, 1, 1], [], []>, precision = #tpu.contract_precision<fp32>} : vector<16x16xf32>, vector<16x16xf32>, vector<16x16xf32> -> vector<16x16xf32>
    %cst_22 = arith.constant dense<0.000000e+00> : vector<16x64xf32>
    %36 = tpu.matmul %35, %19, %cst_22 {dimension_numbers = #tpu.dot_dimension_numbers<[1], [0], [0], [1], [0, 0, 1, 1], [], []>, precision = #tpu.contract_precision<fp32>} : vector<16x16xf32>, vector<16x64xf32>, vector<16x64xf32> -> vector<16x64xf32>
    %37 = arith.addf %6, %36 : vector<16x64xf32>
    %38 = vector.extract_strided_slice %11 {offsets = [16, 0], sizes = [16, 16], strides = [1, 1]} : vector<32x16xf32> to vector<16x16xf32>
    %39 = vector.extract_strided_slice %14 {offsets = [16, 0], sizes = [16, 16], strides = [1, 1]} : vector<32x16xf32> to vector<16x16xf32>
    %40 = vector.extract_strided_slice %17 {offsets = [16, 0], sizes = [16, 16], strides = [1, 1]} : vector<32x16xf32> to vector<16x16xf32>
    %cst_23 = arith.constant dense<0.000000e+00> : vector<16x16xf32>
    %41 = tpu.matmul %38, %39, %cst_23 {dimension_numbers = #tpu.dot_dimension_numbers<[1], [1], [0], [0], [0, 0, 1, 0], [], []>, precision = #tpu.contract_precision<fp32>} : vector<16x16xf32>, vector<16x16xf32>, vector<16x16xf32> -> vector<16x16xf32>
    %cst_24 = arith.constant 0xFF800000 : f32
    %42 = vector.broadcast %cst_24 : f32 to vector<16x16xf32>
    %43 = arith.select %3, %41, %42 : vector<16x16xi1>, vector<16x16xf32>
    %cst_25 = arith.constant dense<0xFF800000> : vector<16xf32>
    %44 = vector.multi_reduction <maximumf>, %43, %cst_25 [1] : vector<16x16xf32> to vector<16xf32>
    %45 = vector.shape_cast %44 : vector<16xf32> to vector<16x1xf32>
    %46 = vector.broadcast %45 : vector<16x1xf32> to vector<16x16xf32>
    %47 = arith.subf %43, %46 : vector<16x16xf32>
    %48 = math.exp %47 : vector<16x16xf32>
    %cst_26 = arith.constant dense<0.000000e+00> : vector<16xf32>
    %49 = vector.multi_reduction <add>, %48, %cst_26 [1] : vector<16x16xf32> to vector<16xf32>
    %50 = vector.shape_cast %49 : vector<16xf32> to vector<16x1xf32>
    %51 = vector.broadcast %50 : vector<16x1xf32> to vector<16x16xf32>
    %52 = arith.divf %48, %51 : vector<16x16xf32>
    %cst_27 = arith.constant dense<0.000000e+00> : vector<16x16xf32>
    %53 = tpu.matmul %52, %40, %cst_27 {dimension_numbers = #tpu.dot_dimension_numbers<[1], [0], [0], [1], [0, 0, 1, 1], [], []>, precision = #tpu.contract_precision<fp32>} : vector<16x16xf32>, vector<16x16xf32>, vector<16x16xf32> -> vector<16x16xf32>
    %cst_28 = arith.constant dense<0.000000e+00> : vector<16x64xf32>
    %54 = tpu.matmul %53, %19, %cst_28 {dimension_numbers = #tpu.dot_dimension_numbers<[1], [0], [0], [1], [0, 0, 1, 1], [], []>, precision = #tpu.contract_precision<fp32>} : vector<16x16xf32>, vector<16x64xf32>, vector<16x64xf32> -> vector<16x64xf32>
    %55 = arith.addf %8, %54 : vector<16x64xf32>
    %c1 = arith.constant 1 : index
    %c0_29 = arith.constant 0 : index
    %c0_30 = arith.constant 0 : index
    %56 = vector.load %arg2[%c1, %c0_29, %c0_30] : memref<4x64x16xf32, #tpu.memory_space<vmem>>, vector<1x64x16xf32>
    %57 = vector.shape_cast %56 : vector<1x64x16xf32> to vector<64x16xf32>
    %cst_31 = arith.constant dense<0.000000e+00> : vector<32x16xf32>
    %58 = tpu.matmul %0, %57, %cst_31 {dimension_numbers = #tpu.dot_dimension_numbers<[1], [0], [0], [1], [0, 0, 1, 1], [], []>, precision = #tpu.contract_precision<fp32>} : vector<32x64xf32>, vector<64x16xf32>, vector<32x16xf32> -> vector<32x16xf32>
    %c1_32 = arith.constant 1 : index
    %c0_33 = arith.constant 0 : index
    %c0_34 = arith.constant 0 : index
    %59 = vector.load %arg3[%c1_32, %c0_33, %c0_34] : memref<4x64x16xf32, #tpu.memory_space<vmem>>, vector<1x64x16xf32>
    %60 = vector.shape_cast %59 : vector<1x64x16xf32> to vector<64x16xf32>
    %cst_35 = arith.constant dense<0.000000e+00> : vector<32x16xf32>
    %61 = tpu.matmul %0, %60, %cst_35 {dimension_numbers = #tpu.dot_dimension_numbers<[1], [0], [0], [1], [0, 0, 1, 1], [], []>, precision = #tpu.contract_precision<fp32>} : vector<32x64xf32>, vector<64x16xf32>, vector<32x16xf32> -> vector<32x16xf32>
    %c1_36 = arith.constant 1 : index
    %c0_37 = arith.constant 0 : index
    %c0_38 = arith.constant 0 : index
    %62 = vector.load %arg4[%c1_36, %c0_37, %c0_38] : memref<4x64x16xf32, #tpu.memory_space<vmem>>, vector<1x64x16xf32>
    %63 = vector.shape_cast %62 : vector<1x64x16xf32> to vector<64x16xf32>
    %cst_39 = arith.constant dense<0.000000e+00> : vector<32x16xf32>
    %64 = tpu.matmul %0, %63, %cst_39 {dimension_numbers = #tpu.dot_dimension_numbers<[1], [0], [0], [1], [0, 0, 1, 1], [], []>, precision = #tpu.contract_precision<fp32>} : vector<32x64xf32>, vector<64x16xf32>, vector<32x16xf32> -> vector<32x16xf32>
    %c1_40 = arith.constant 1 : index
    %c0_41 = arith.constant 0 : index
    %c0_42 = arith.constant 0 : index
    %65 = vector.load %arg5[%c1_40, %c0_41, %c0_42] : memref<4x16x64xf32, #tpu.memory_space<vmem>>, vector<1x16x64xf32>
    %66 = vector.shape_cast %65 : vector<1x16x64xf32> to vector<16x64xf32>
    %67 = vector.extract_strided_slice %58 {offsets = [0, 0], sizes = [16, 16], strides = [1, 1]} : vector<32x16xf32> to vector<16x16xf32>
    %68 = vector.extract_strided_slice %61 {offsets = [0, 0], sizes = [16, 16], strides = [1, 1]} : vector<32x16xf32> to vector<16x16xf32>
    %69 = vector.extract_strided_slice %64 {offsets = [0, 0], sizes = [16, 16], strides = [1, 1]} : vector<32x16xf32> to vector<16x16xf32>
    %cst_43 = arith.constant dense<0.000000e+00> : vector<16x16xf32>
    %70 = tpu.matmul %67, %68, %cst_43 {dimension_numbers = #tpu.dot_dimension_numbers<[1], [1], [0], [0], [0, 0, 1, 0], [], []>, precision = #tpu.contract_precision<fp32>} : vector<16x16xf32>, vector<16x16xf32>, vector<16x16xf32> -> vector<16x16xf32>
    %cst_44 = arith.constant 0xFF800000 : f32
    %71 = vector.broadcast %cst_44 : f32 to vector<16x16xf32>
    %72 = arith.select %3, %70, %71 : vector<16x16xi1>, vector<16x16xf32>
    %cst_45 = arith.constant dense<0xFF800000> : vector<16xf32>
    %73 = vector.multi_reduction <maximumf>, %72, %cst_45 [1] : vector<16x16xf32> to vector<16xf32>
    %74 = vector.shape_cast %73 : vector<16xf32> to vector<16x1xf32>
    %75 = vector.broadcast %74 : vector<16x1xf32> to vector<16x16xf32>
    %76 = arith.subf %72, %75 : vector<16x16xf32>
    %77 = math.exp %76 : vector<16x16xf32>
    %cst_46 = arith.constant dense<0.000000e+00> : vector<16xf32>
    %78 = vector.multi_reduction <add>, %77, %cst_46 [1] : vector<16x16xf32> to vector<16xf32>
    %79 = vector.shape_cast %78 : vector<16xf32> to vector<16x1xf32>
    %80 = vector.broadcast %79 : vector<16x1xf32> to vector<16x16xf32>
    %81 = arith.divf %77, %80 : vector<16x16xf32>
    %cst_47 = arith.constant dense<0.000000e+00> : vector<16x16xf32>
    %82 = tpu.matmul %81, %69, %cst_47 {dimension_numbers = #tpu.dot_dimension_numbers<[1], [0], [0], [1], [0, 0, 1, 1], [], []>, precision = #tpu.contract_precision<fp32>} : vector<16x16xf32>, vector<16x16xf32>, vector<16x16xf32> -> vector<16x16xf32>
    %cst_48 = arith.constant dense<0.000000e+00> : vector<16x64xf32>
    %83 = tpu.matmul %82, %66, %cst_48 {dimension_numbers = #tpu.dot_dimension_numbers<[1], [0], [0], [1], [0, 0, 1, 1], [], []>, precision = #tpu.contract_precision<fp32>} : vector<16x16xf32>, vector<16x64xf32>, vector<16x64xf32> -> vector<16x64xf32>
    %84 = arith.addf %37, %83 : vector<16x64xf32>
    %85 = vector.extract_strided_slice %58 {offsets = [16, 0], sizes = [16, 16], strides = [1, 1]} : vector<32x16xf32> to vector<16x16xf32>
    %86 = vector.extract_strided_slice %61 {offsets = [16, 0], sizes = [16, 16], strides = [1, 1]} : vector<32x16xf32> to vector<16x16xf32>
    %87 = vector.extract_strided_slice %64 {offsets = [16, 0], sizes = [16, 16], strides = [1, 1]} : vector<32x16xf32> to vector<16x16xf32>
    %cst_49 = arith.constant dense<0.000000e+00> : vector<16x16xf32>
    %88 = tpu.matmul %85, %86, %cst_49 {dimension_numbers = #tpu.dot_dimension_numbers<[1], [1], [0], [0], [0, 0, 1, 0], [], []>, precision = #tpu.contract_precision<fp32>} : vector<16x16xf32>, vector<16x16xf32>, vector<16x16xf32> -> vector<16x16xf32>
    %cst_50 = arith.constant 0xFF800000 : f32
    %89 = vector.broadcast %cst_50 : f32 to vector<16x16xf32>
    %90 = arith.select %3, %88, %89 : vector<16x16xi1>, vector<16x16xf32>
    %cst_51 = arith.constant dense<0xFF800000> : vector<16xf32>
    %91 = vector.multi_reduction <maximumf>, %90, %cst_51 [1] : vector<16x16xf32> to vector<16xf32>
    %92 = vector.shape_cast %91 : vector<16xf32> to vector<16x1xf32>
    %93 = vector.broadcast %92 : vector<16x1xf32> to vector<16x16xf32>
    %94 = arith.subf %90, %93 : vector<16x16xf32>
    %95 = math.exp %94 : vector<16x16xf32>
    %cst_52 = arith.constant dense<0.000000e+00> : vector<16xf32>
    %96 = vector.multi_reduction <add>, %95, %cst_52 [1] : vector<16x16xf32> to vector<16xf32>
    %97 = vector.shape_cast %96 : vector<16xf32> to vector<16x1xf32>
    %98 = vector.broadcast %97 : vector<16x1xf32> to vector<16x16xf32>
    %99 = arith.divf %95, %98 : vector<16x16xf32>
    %cst_53 = arith.constant dense<0.000000e+00> : vector<16x16xf32>
    %100 = tpu.matmul %99, %87, %cst_53 {dimension_numbers = #tpu.dot_dimension_numbers<[1], [0], [0], [1], [0, 0, 1, 1], [], []>, precision = #tpu.contract_precision<fp32>} : vector<16x16xf32>, vector<16x16xf32>, vector<16x16xf32> -> vector<16x16xf32>
    %cst_54 = arith.constant dense<0.000000e+00> : vector<16x64xf32>
    %101 = tpu.matmul %100, %66, %cst_54 {dimension_numbers = #tpu.dot_dimension_numbers<[1], [0], [0], [1], [0, 0, 1, 1], [], []>, precision = #tpu.contract_precision<fp32>} : vector<16x16xf32>, vector<16x64xf32>, vector<16x64xf32> -> vector<16x64xf32>
    %102 = arith.addf %55, %101 : vector<16x64xf32>
    %c2 = arith.constant 2 : index
    %c0_55 = arith.constant 0 : index
    %c0_56 = arith.constant 0 : index
    %103 = vector.load %arg2[%c2, %c0_55, %c0_56] : memref<4x64x16xf32, #tpu.memory_space<vmem>>, vector<1x64x16xf32>
    %104 = vector.shape_cast %103 : vector<1x64x16xf32> to vector<64x16xf32>
    %cst_57 = arith.constant dense<0.000000e+00> : vector<32x16xf32>
    %105 = tpu.matmul %0, %104, %cst_57 {dimension_numbers = #tpu.dot_dimension_numbers<[1], [0], [0], [1], [0, 0, 1, 1], [], []>, precision = #tpu.contract_precision<fp32>} : vector<32x64xf32>, vector<64x16xf32>, vector<32x16xf32> -> vector<32x16xf32>
    %c2_58 = arith.constant 2 : index
    %c0_59 = arith.constant 0 : index
    %c0_60 = arith.constant 0 : index
    %106 = vector.load %arg3[%c2_58, %c0_59, %c0_60] : memref<4x64x16xf32, #tpu.memory_space<vmem>>, vector<1x64x16xf32>
    %107 = vector.shape_cast %106 : vector<1x64x16xf32> to vector<64x16xf32>
    %cst_61 = arith.constant dense<0.000000e+00> : vector<32x16xf32>
    %108 = tpu.matmul %0, %107, %cst_61 {dimension_numbers = #tpu.dot_dimension_numbers<[1], [0], [0], [1], [0, 0, 1, 1], [], []>, precision = #tpu.contract_precision<fp32>} : vector<32x64xf32>, vector<64x16xf32>, vector<32x16xf32> -> vector<32x16xf32>
    %c2_62 = arith.constant 2 : index
    %c0_63 = arith.constant 0 : index
    %c0_64 = arith.constant 0 : index
    %109 = vector.load %arg4[%c2_62, %c0_63, %c0_64] : memref<4x64x16xf32, #tpu.memory_space<vmem>>, vector<1x64x16xf32>
    %110 = vector.shape_cast %109 : vector<1x64x16xf32> to vector<64x16xf32>
    %cst_65 = arith.constant dense<0.000000e+00> : vector<32x16xf32>
    %111 = tpu.matmul %0, %110, %cst_65 {dimension_numbers = #tpu.dot_dimension_numbers<[1], [0], [0], [1], [0, 0, 1, 1], [], []>, precision = #tpu.contract_precision<fp32>} : vector<32x64xf32>, vector<64x16xf32>, vector<32x16xf32> -> vector<32x16xf32>
    %c2_66 = arith.constant 2 : index
    %c0_67 = arith.constant 0 : index
    %c0_68 = arith.constant 0 : index
    %112 = vector.load %arg5[%c2_66, %c0_67, %c0_68] : memref<4x16x64xf32, #tpu.memory_space<vmem>>, vector<1x16x64xf32>
    %113 = vector.shape_cast %112 : vector<1x16x64xf32> to vector<16x64xf32>
    %114 = vector.extract_strided_slice %105 {offsets = [0, 0], sizes = [16, 16], strides = [1, 1]} : vector<32x16xf32> to vector<16x16xf32>
    %115 = vector.extract_strided_slice %108 {offsets = [0, 0], sizes = [16, 16], strides = [1, 1]} : vector<32x16xf32> to vector<16x16xf32>
    %116 = vector.extract_strided_slice %111 {offsets = [0, 0], sizes = [16, 16], strides = [1, 1]} : vector<32x16xf32> to vector<16x16xf32>
    %cst_69 = arith.constant dense<0.000000e+00> : vector<16x16xf32>
    %117 = tpu.matmul %114, %115, %cst_69 {dimension_numbers = #tpu.dot_dimension_numbers<[1], [1], [0], [0], [0, 0, 1, 0], [], []>, precision = #tpu.contract_precision<fp32>} : vector<16x16xf32>, vector<16x16xf32>, vector<16x16xf32> -> vector<16x16xf32>
    %cst_70 = arith.constant 0xFF800000 : f32
    %118 = vector.broadcast %cst_70 : f32 to vector<16x16xf32>
    %119 = arith.select %3, %117, %118 : vector<16x16xi1>, vector<16x16xf32>
    %cst_71 = arith.constant dense<0xFF800000> : vector<16xf32>
    %120 = vector.multi_reduction <maximumf>, %119, %cst_71 [1] : vector<16x16xf32> to vector<16xf32>
    %121 = vector.shape_cast %120 : vector<16xf32> to vector<16x1xf32>
    %122 = vector.broadcast %121 : vector<16x1xf32> to vector<16x16xf32>
    %123 = arith.subf %119, %122 : vector<16x16xf32>
    %124 = math.exp %123 : vector<16x16xf32>
    %cst_72 = arith.constant dense<0.000000e+00> : vector<16xf32>
    %125 = vector.multi_reduction <add>, %124, %cst_72 [1] : vector<16x16xf32> to vector<16xf32>
    %126 = vector.shape_cast %125 : vector<16xf32> to vector<16x1xf32>
    %127 = vector.broadcast %126 : vector<16x1xf32> to vector<16x16xf32>
    %128 = arith.divf %124, %127 : vector<16x16xf32>
    %cst_73 = arith.constant dense<0.000000e+00> : vector<16x16xf32>
    %129 = tpu.matmul %128, %116, %cst_73 {dimension_numbers = #tpu.dot_dimension_numbers<[1], [0], [0], [1], [0, 0, 1, 1], [], []>, precision = #tpu.contract_precision<fp32>} : vector<16x16xf32>, vector<16x16xf32>, vector<16x16xf32> -> vector<16x16xf32>
    %cst_74 = arith.constant dense<0.000000e+00> : vector<16x64xf32>
    %130 = tpu.matmul %129, %113, %cst_74 {dimension_numbers = #tpu.dot_dimension_numbers<[1], [0], [0], [1], [0, 0, 1, 1], [], []>, precision = #tpu.contract_precision<fp32>} : vector<16x16xf32>, vector<16x64xf32>, vector<16x64xf32> -> vector<16x64xf32>
    %131 = arith.addf %84, %130 : vector<16x64xf32>
    %132 = vector.extract_strided_slice %105 {offsets = [16, 0], sizes = [16, 16], strides = [1, 1]} : vector<32x16xf32> to vector<16x16xf32>
    %133 = vector.extract_strided_slice %108 {offsets = [16, 0], sizes = [16, 16], strides = [1, 1]} : vector<32x16xf32> to vector<16x16xf32>
    %134 = vector.extract_strided_slice %111 {offsets = [16, 0], sizes = [16, 16], strides = [1, 1]} : vector<32x16xf32> to vector<16x16xf32>
    %cst_75 = arith.constant dense<0.000000e+00> : vector<16x16xf32>
    %135 = tpu.matmul %132, %133, %cst_75 {dimension_numbers = #tpu.dot_dimension_numbers<[1], [1], [0], [0], [0, 0, 1, 0], [], []>, precision = #tpu.contract_precision<fp32>} : vector<16x16xf32>, vector<16x16xf32>, vector<16x16xf32> -> vector<16x16xf32>
    %cst_76 = arith.constant 0xFF800000 : f32
    %136 = vector.broadcast %cst_76 : f32 to vector<16x16xf32>
    %137 = arith.select %3, %135, %136 : vector<16x16xi1>, vector<16x16xf32>
    %cst_77 = arith.constant dense<0xFF800000> : vector<16xf32>
    %138 = vector.multi_reduction <maximumf>, %137, %cst_77 [1] : vector<16x16xf32> to vector<16xf32>
    %139 = vector.shape_cast %138 : vector<16xf32> to vector<16x1xf32>
    %140 = vector.broadcast %139 : vector<16x1xf32> to vector<16x16xf32>
    %141 = arith.subf %137, %140 : vector<16x16xf32>
    %142 = math.exp %141 : vector<16x16xf32>
    %cst_78 = arith.constant dense<0.000000e+00> : vector<16xf32>
    %143 = vector.multi_reduction <add>, %142, %cst_78 [1] : vector<16x16xf32> to vector<16xf32>
    %144 = vector.shape_cast %143 : vector<16xf32> to vector<16x1xf32>
    %145 = vector.broadcast %144 : vector<16x1xf32> to vector<16x16xf32>
    %146 = arith.divf %142, %145 : vector<16x16xf32>
    %cst_79 = arith.constant dense<0.000000e+00> : vector<16x16xf32>
    %147 = tpu.matmul %146, %134, %cst_79 {dimension_numbers = #tpu.dot_dimension_numbers<[1], [0], [0], [1], [0, 0, 1, 1], [], []>, precision = #tpu.contract_precision<fp32>} : vector<16x16xf32>, vector<16x16xf32>, vector<16x16xf32> -> vector<16x16xf32>
    %cst_80 = arith.constant dense<0.000000e+00> : vector<16x64xf32>
    %148 = tpu.matmul %147, %113, %cst_80 {dimension_numbers = #tpu.dot_dimension_numbers<[1], [0], [0], [1], [0, 0, 1, 1], [], []>, precision = #tpu.contract_precision<fp32>} : vector<16x16xf32>, vector<16x64xf32>, vector<16x64xf32> -> vector<16x64xf32>
    %149 = arith.addf %102, %148 : vector<16x64xf32>
    %c3 = arith.constant 3 : index
    %c0_81 = arith.constant 0 : index
    %c0_82 = arith.constant 0 : index
    %150 = vector.load %arg2[%c3, %c0_81, %c0_82] : memref<4x64x16xf32, #tpu.memory_space<vmem>>, vector<1x64x16xf32>
    %151 = vector.shape_cast %150 : vector<1x64x16xf32> to vector<64x16xf32>
    %cst_83 = arith.constant dense<0.000000e+00> : vector<32x16xf32>
    %152 = tpu.matmul %0, %151, %cst_83 {dimension_numbers = #tpu.dot_dimension_numbers<[1], [0], [0], [1], [0, 0, 1, 1], [], []>, precision = #tpu.contract_precision<fp32>} : vector<32x64xf32>, vector<64x16xf32>, vector<32x16xf32> -> vector<32x16xf32>
    %c3_84 = arith.constant 3 : index
    %c0_85 = arith.constant 0 : index
    %c0_86 = arith.constant 0 : index
    %153 = vector.load %arg3[%c3_84, %c0_85, %c0_86] : memref<4x64x16xf32, #tpu.memory_space<vmem>>, vector<1x64x16xf32>
    %154 = vector.shape_cast %153 : vector<1x64x16xf32> to vector<64x16xf32>
    %cst_87 = arith.constant dense<0.000000e+00> : vector<32x16xf32>
    %155 = tpu.matmul %0, %154, %cst_87 {dimension_numbers = #tpu.dot_dimension_numbers<[1], [0], [0], [1], [0, 0, 1, 1], [], []>, precision = #tpu.contract_precision<fp32>} : vector<32x64xf32>, vector<64x16xf32>, vector<32x16xf32> -> vector<32x16xf32>
    %c3_88 = arith.constant 3 : index
    %c0_89 = arith.constant 0 : index
    %c0_90 = arith.constant 0 : index
    %156 = vector.load %arg4[%c3_88, %c0_89, %c0_90] : memref<4x64x16xf32, #tpu.memory_space<vmem>>, vector<1x64x16xf32>
    %157 = vector.shape_cast %156 : vector<1x64x16xf32> to vector<64x16xf32>
    %cst_91 = arith.constant dense<0.000000e+00> : vector<32x16xf32>
    %158 = tpu.matmul %0, %157, %cst_91 {dimension_numbers = #tpu.dot_dimension_numbers<[1], [0], [0], [1], [0, 0, 1, 1], [], []>, precision = #tpu.contract_precision<fp32>} : vector<32x64xf32>, vector<64x16xf32>, vector<32x16xf32> -> vector<32x16xf32>
    %c3_92 = arith.constant 3 : index
    %c0_93 = arith.constant 0 : index
    %c0_94 = arith.constant 0 : index
    %159 = vector.load %arg5[%c3_92, %c0_93, %c0_94] : memref<4x16x64xf32, #tpu.memory_space<vmem>>, vector<1x16x64xf32>
    %160 = vector.shape_cast %159 : vector<1x16x64xf32> to vector<16x64xf32>
    %161 = vector.extract_strided_slice %152 {offsets = [0, 0], sizes = [16, 16], strides = [1, 1]} : vector<32x16xf32> to vector<16x16xf32>
    %162 = vector.extract_strided_slice %155 {offsets = [0, 0], sizes = [16, 16], strides = [1, 1]} : vector<32x16xf32> to vector<16x16xf32>
    %163 = vector.extract_strided_slice %158 {offsets = [0, 0], sizes = [16, 16], strides = [1, 1]} : vector<32x16xf32> to vector<16x16xf32>
    %cst_95 = arith.constant dense<0.000000e+00> : vector<16x16xf32>
    %164 = tpu.matmul %161, %162, %cst_95 {dimension_numbers = #tpu.dot_dimension_numbers<[1], [1], [0], [0], [0, 0, 1, 0], [], []>, precision = #tpu.contract_precision<fp32>} : vector<16x16xf32>, vector<16x16xf32>, vector<16x16xf32> -> vector<16x16xf32>
    %cst_96 = arith.constant 0xFF800000 : f32
    %165 = vector.broadcast %cst_96 : f32 to vector<16x16xf32>
    %166 = arith.select %3, %164, %165 : vector<16x16xi1>, vector<16x16xf32>
    %cst_97 = arith.constant dense<0xFF800000> : vector<16xf32>
    %167 = vector.multi_reduction <maximumf>, %166, %cst_97 [1] : vector<16x16xf32> to vector<16xf32>
    %168 = vector.shape_cast %167 : vector<16xf32> to vector<16x1xf32>
    %169 = vector.broadcast %168 : vector<16x1xf32> to vector<16x16xf32>
    %170 = arith.subf %166, %169 : vector<16x16xf32>
    %171 = math.exp %170 : vector<16x16xf32>
    %cst_98 = arith.constant dense<0.000000e+00> : vector<16xf32>
    %172 = vector.multi_reduction <add>, %171, %cst_98 [1] : vector<16x16xf32> to vector<16xf32>
    %173 = vector.shape_cast %172 : vector<16xf32> to vector<16x1xf32>
    %174 = vector.broadcast %173 : vector<16x1xf32> to vector<16x16xf32>
    %175 = arith.divf %171, %174 : vector<16x16xf32>
    %cst_99 = arith.constant dense<0.000000e+00> : vector<16x16xf32>
    %176 = tpu.matmul %175, %163, %cst_99 {dimension_numbers = #tpu.dot_dimension_numbers<[1], [0], [0], [1], [0, 0, 1, 1], [], []>, precision = #tpu.contract_precision<fp32>} : vector<16x16xf32>, vector<16x16xf32>, vector<16x16xf32> -> vector<16x16xf32>
    %cst_100 = arith.constant dense<0.000000e+00> : vector<16x64xf32>
    %177 = tpu.matmul %176, %160, %cst_100 {dimension_numbers = #tpu.dot_dimension_numbers<[1], [0], [0], [1], [0, 0, 1, 1], [], []>, precision = #tpu.contract_precision<fp32>} : vector<16x16xf32>, vector<16x64xf32>, vector<16x64xf32> -> vector<16x64xf32>
    %178 = arith.addf %131, %177 : vector<16x64xf32>
    %179 = vector.extract_strided_slice %152 {offsets = [16, 0], sizes = [16, 16], strides = [1, 1]} : vector<32x16xf32> to vector<16x16xf32>
    %180 = vector.extract_strided_slice %155 {offsets = [16, 0], sizes = [16, 16], strides = [1, 1]} : vector<32x16xf32> to vector<16x16xf32>
    %181 = vector.extract_strided_slice %158 {offsets = [16, 0], sizes = [16, 16], strides = [1, 1]} : vector<32x16xf32> to vector<16x16xf32>
    %cst_101 = arith.constant dense<0.000000e+00> : vector<16x16xf32>
    %182 = tpu.matmul %179, %180, %cst_101 {dimension_numbers = #tpu.dot_dimension_numbers<[1], [1], [0], [0], [0, 0, 1, 0], [], []>, precision = #tpu.contract_precision<fp32>} : vector<16x16xf32>, vector<16x16xf32>, vector<16x16xf32> -> vector<16x16xf32>
    %cst_102 = arith.constant 0xFF800000 : f32
    %183 = vector.broadcast %cst_102 : f32 to vector<16x16xf32>
    %184 = arith.select %3, %182, %183 : vector<16x16xi1>, vector<16x16xf32>
    %cst_103 = arith.constant dense<0xFF800000> : vector<16xf32>
    %185 = vector.multi_reduction <maximumf>, %184, %cst_103 [1] : vector<16x16xf32> to vector<16xf32>
    %186 = vector.shape_cast %185 : vector<16xf32> to vector<16x1xf32>
    %187 = vector.broadcast %186 : vector<16x1xf32> to vector<16x16xf32>
    %188 = arith.subf %184, %187 : vector<16x16xf32>
    %189 = math.exp %188 : vector<16x16xf32>
    %cst_104 = arith.constant dense<0.000000e+00> : vector<16xf32>
    %190 = vector.multi_reduction <add>, %189, %cst_104 [1] : vector<16x16xf32> to vector<16xf32>
    %191 = vector.shape_cast %190 : vector<16xf32> to vector<16x1xf32>
    %192 = vector.broadcast %191 : vector<16x1xf32> to vector<16x16xf32>
    %193 = arith.divf %189, %192 : vector<16x16xf32>
    %cst_105 = arith.constant dense<0.000000e+00> : vector<16x16xf32>
    %194 = tpu.matmul %193, %181, %cst_105 {dimension_numbers = #tpu.dot_dimension_numbers<[1], [0], [0], [1], [0, 0, 1, 1], [], []>, precision = #tpu.contract_precision<fp32>} : vector<16x16xf32>, vector<16x16xf32>, vector<16x16xf32> -> vector<16x16xf32>
    %cst_106 = arith.constant dense<0.000000e+00> : vector<16x64xf32>
    %195 = tpu.matmul %194, %160, %cst_106 {dimension_numbers = #tpu.dot_dimension_numbers<[1], [0], [0], [1], [0, 0, 1, 1], [], []>, precision = #tpu.contract_precision<fp32>} : vector<16x16xf32>, vector<16x64xf32>, vector<16x64xf32> -> vector<16x64xf32>
    %196 = arith.addf %149, %195 : vector<16x64xf32>
    %c0_107 = arith.constant 0 : index
    %c0_108 = arith.constant 0 : index
    %197 = vector.load %arg7[%c0_107, %c0_108] : memref<32x64xf32, #tpu.memory_space<vmem>>, vector<16x64xf32>
    tpu.vector_store %arg7[%c0_107, %c0_108], %178 {strides = array<i32>} : memref<32x64xf32, #tpu.memory_space<vmem>>, vector<16x64xf32>,
    %c16 = arith.constant 16 : index
    %c0_109 = arith.constant 0 : index
    %198 = vector.load %arg7[%c16, %c0_109] : memref<32x64xf32, #tpu.memory_space<vmem>>, vector<16x64xf32>
    tpu.vector_store %arg7[%c16, %c0_109], %196 {strides = array<i32>} : memref<32x64xf32, #tpu.memory_space<vmem>>, vector<16x64xf32>,
    return
  }
  func.func @transform_0(%arg0: i32) -> (i32, i32) {
    %c0_i32 = arith.constant 0 : i32
    %c0_i32_0 = arith.constant 0 : i32
    %c0_i32_1 = arith.constant 0 : i32
    return %c0_i32, %c0_i32_0 : i32, i32
  }
  func.func @transform_1(%arg0: i32) -> (i32, i32, i32) {
    %c0_i32 = arith.constant 0 : i32
    %c0_i32_0 = arith.constant 0 : i32
    %c0_i32_1 = arith.constant 0 : i32
    %c0_i32_2 = arith.constant 0 : i32
    return %c0_i32, %c0_i32_0, %c0_i32_1 : i32, i32, i32
  }
  func.func @transform_2(%arg0: i32) -> (i32, i32, i32) {
    %c0_i32 = arith.constant 0 : i32
    %c0_i32_0 = arith.constant 0 : i32
    %c0_i32_1 = arith.constant 0 : i32
    %c0_i32_2 = arith.constant 0 : i32
    return %c0_i32, %c0_i32_0, %c0_i32_1 : i32, i32, i32
  }
  func.func @transform_3(%arg0: i32) -> (i32, i32, i32) {
    %c0_i32 = arith.constant 0 : i32
    %c0_i32_0 = arith.constant 0 : i32
    %c0_i32_1 = arith.constant 0 : i32
    %c0_i32_2 = arith.constant 0 : i32
    return %c0_i32, %c0_i32_0, %c0_i32_1 : i32, i32, i32
  }
  func.func @transform_4(%arg0: i32) -> (i32, i32, i32) {
    %c0_i32 = arith.constant 0 : i32
    %c0_i32_0 = arith.constant 0 : i32
    %c0_i32_1 = arith.constant 0 : i32
    %c0_i32_2 = arith.constant 0 : i32
    return %c0_i32, %c0_i32_0, %c0_i32_1 : i32, i32, i32
  }
  func.func @transform_5(%arg0: i32) -> (i32, i32) {
    %c0_i32 = arith.constant 0 : i32
    %c0_i32_0 = arith.constant 0 : i32
    %c0_i32_1 = arith.constant 0 : i32
    return %c0_i32, %c0_i32_0 : i32, i32
  }
  func.func @transform_6(%arg0: i32) -> (i32, i32) {
    %c0_i32 = arith.constant 0 : i32
    %c0_i32_0 = arith.constant 0 : i32
    %c0_i32_1 = arith.constant 0 : i32
    return %c0_i32, %c0_i32_0 : i32, i32
  }
}

</mosaic_0001>

<bundles_post_ra>
// kernel: tpu_custom_call.1
= control target key start
LH: loop header
LB: loop body
LE: loop exit
PB: predicated region body
PF: predicated region fallthrough
CT: control target
= control target key end

     0   :  { %vm50_vm0 = vcmask 523264   ;;  %s28867_s0 = inlined_call_operand.vmem [shape: f32[32,64], index: 0, kind: input, shape index: {}]   ;;  %s28868_s1 = inlined_call_operand.vmem [shape: f32[4,64,16], index: 1, kind: input, shape index: {}]   ;;  %s28869_s2 = inlined_call_operand.vmem [shape: f32[4,64,16], index: 2, kind: input, shape index: {}]   ;;  %s28870_s3 = inlined_call_operand.vmem [shape: f32[4,64,16], index: 3, kind: input, shape index: {}]   ;;  %s28871_s4 = inlined_call_operand.vmem [shape: f32[4,16,64], index: 4, kind: input, shape index: {}]   ;;  %s28872_s5 = inlined_call_operand.vmem [shape: f32[1,64], index: 5, kind: input, shape index: {}]   ;;  %s28873_s6 = inlined_call_operand.hbm [shape: f32[32,64], index: 6, kind: output, shape index: {}]  }
   0x1   :  { %v49_v0 = vld [vmem:[%s28868_s1 + $0x38] sm:$0xff]  ;;  %v48_v1 = vld [vmem:[%s28868_s1 + $0x30] sm:$0xff]  ;;  %v47_v2 = vld [vmem:[%s28868_s1 + $0x28] sm:$0xff] }
   0x2   :  { %v24881_v3 = vand.u32 4294901760, %v49_v0  ;;  %v24883_v4 = vand.u32 4294901760, %v48_v1  ;;  %v24885_v5 = vand.u32 4294901760, %v47_v2  ;;  %v46_v6 = vld [vmem:[%s28868_s1 + $0x20] sm:$0xff]  ;;  %v45_v7 = vld [vmem:[%s28868_s1 + $0x18] sm:$0xff]  ;;  %v44_v8 = vld [vmem:[%s28868_s1 + $0x10] sm:$0xff] }
   0x3   :  { %v24896_v9 = vand.u32 4294901760, %v46_v6  ;;  %v24898_v10 = vand.u32 4294901760, %v45_v7  ;;  %v24900_v11 = vand.u32 4294901760, %v44_v8  ;;  %v43_v12 = vld [vmem:[%s28868_s1 + $0x8] sm:$0xff]  ;;  %v42_v13 = vld [vmem:[%s28868_s1] sm:$0xff]  ;;  %v26_v37 = vld [vmem:[%s28867_s0 + $0x10] sm:$0xff] }
   0x4   :  { %v24_v14 = vld [vmem:[%s28867_s0] sm:$0xff]  ;;  %22151 = vmatprep.subr.mxu0 %v24881_v3  ;;  %v24913_v15 = vsub.f32 %v49_v0, %v24881_v3  ;;  %v24916_v16 = vsub.f32 %v48_v1, %v24883_v4  ;;  %v24918_v17 = vand.u32 4294901760, %v43_v12  ;;  %v24921_v18 = vsub.f32 %v47_v2, %v24885_v5  ;;  %v25_v19 = vld [vmem:[%s28867_s0 + $0x8] sm:$0xff] }
   0x5   :  { %22152 = vmatpush3.msra.mxu0 %v24881_v3  ;;  %v24927_v20 = vand.u32 4294901760, %v42_v13  ;;  %v24930_v21 = vsub.f32 %v46_v6, %v24896_v9  ;;  %v52_v22 = vsel %vm50_vm0, %v24_v14, 0  ;;  %v24934_v23 = vsub.f32 %v45_v7, %v24898_v10 }
   0x6   :  { %22153 = vmatprep.subr.mxu0 %v24883_v4  ;;  %v24938_v24 = vand.u32 4294901760, %v24913_v15  ;;  %v24941_v25 = vand.u32 4294901760, %v24916_v16  ;;  %v24944_v26 = vand.u32 4294901760, %v24921_v18  ;;  %v24946_v27 = vand.u32 4294901760, %v52_v22 }
   0x7   :  { %22154 = vmatpush3.msra.mxu0 %v24883_v4  ;;  %v24950_v28 = vand.u32 4294901760, %v24930_v21  ;;  %v24953_v29 = vand.u32 4294901760, %v24934_v23  ;;  %v55_v30 = vsel %vm50_vm0, %v25_v19, 0  ;;  %v24957_v31 = vsub.f32 %v44_v8, %v24900_v11 }
   0x8   :  { %22155 = vmatprep.subr.mxu0 %v24885_v5  ;;  %v196_v32 = vsub.f32 %v24913_v15, %v24938_v24  ;;  %v203_v33 = vsub.f32 %v24916_v16, %v24941_v25  ;;  %v210_v34 = vsub.f32 %v24921_v18, %v24944_v26  ;;  %v24967_v35 = vsub.f32 %v52_v22, %v24946_v27 }
   0x9   :  { %22156 = vmatpush3.msra.mxu0 %v24885_v5  ;;  %v24970_v36 = vand.u32 4294901760, %v55_v30  ;;  %22189 = vmatprep.mubr.f32.mxu1 %v24946_v27 }
   0xa   :  { %11 = vsyncpa [#allocation3], 0  ;;  %22157 = vmatprep.subr.mxu0 %v24896_v9  ;;  %v197_v38 = vand.u32 4294901760, %v196_v32  ;;  %v204_v39 = vand.u32 4294901760, %v203_v33  ;;  %v217_v40 = vsub.f32 %v24930_v21, %v24950_v28  ;;  %v24980_v41 = vand.u32 4294901760, %v24967_v35  ;;  %v27_v42 = vld [vmem:[%s28867_s0 + $0x18] sm:$0xff] }
   0xb   :  { %22158 = vmatpush3.msra.mxu0 %v24896_v9  ;;  %v211_v43 = vand.u32 4294901760, %v210_v34  ;;  %v224_v44 = vsub.f32 %v24934_v23, %v24953_v29  ;;  %v24989_v45 = vsub.f32 %v55_v30, %v24970_v36  ;;  %v24992_v46 = vand.u32 4294901760, %v24957_v31  ;;  %v731_v30 = vld [vmem:[%s28869_s2 + $0x10] sm:$0xff]  ;;  %v730_v33 = vld [vmem:[%s28869_s2 + $0x8] sm:$0xff] }
   0xc   :  { %22159 = vmatprep.subr.mxu0 %v24898_v10  ;;  %22173 = vmatprep.subr.mxu1 %v197_v38  ;;  %v139_v47 = vsub.f32 %v24967_v35, %v24980_v41  ;;  %v24998_v48 = vsub.f32 %v43_v12, %v24918_v17  ;;  %v25001_v49 = vsub.f32 %v42_v13, %v24927_v20  ;;  %v58_v50 = vsel %vm50_vm0, %v26_v37, 0 }
   0xd   :  { %22160 = vmatpush3.msra.mxu0 %v24898_v10  ;;  %22174 = vmatpush3.msra.mxu1 %v197_v38  ;;  %v25006_v51 = vand.u32 4294901760, %v24989_v45  ;;  %v25008_v52 = vand.u32 4294901760, %v58_v50  ;;  %v61_v53 = vsel %vm50_vm0, %v27_v42, 0  ;;  %v218_v54 = vand.u32 4294901760, %v217_v40  ;;  %v729_v38 = vld [vmem:[%s28869_s2] sm:$0xff] }
   0xe   :  { %22161 = vmatprep.subr.mxu0 %v24900_v11  ;;  %22175 = vmatprep.subr.mxu1 %v204_v39  ;;  %v25013_v55 = vand.u32 4294901760, %v24998_v48  ;;  %v25015_v56 = vand.u32 4294901760, %v61_v53  ;;  %v231_v58 = vsub.f32 %v24957_v31, %v24992_v46  ;;  %v25023_v59 = vand.u32 4294901760, %v25001_v49 }
   0xf   :  { %22162 = vmatpush3.msra.mxu0 %v24900_v11  ;;  %22176 = vmatpush3.msra.mxu1 %v204_v39  ;;  %v149_v57 = vsub.f32 %v24989_v45, %v25006_v51  ;;  %v25026_v60 = vand.u32 4294901760, %v139_v47  ;;  %v225_v61 = vand.u32 4294901760, %v224_v44  ;;  %v25029_v62 = vsub.f32 %v58_v50, %v25008_v52 }
  0x10   :  { %22163 = vmatprep.subr.mxu0 %v24918_v17  ;;  %22177 = vmatprep.subr.mxu1 %v211_v43  ;;  %v238_v0 = vsub.f32 %v24998_v48, %v25013_v55  ;;  %v25038_v1 = vsub.f32 %v61_v53, %v25015_v56  ;;  %v232_v2 = vand.u32 4294901760, %v231_v58  ;;  %v245_v6 = vsub.f32 %v25001_v49, %v25023_v59 }
  0x11   :  { %28891 = vst [vmem:[#allocation5_spill] sm:$0xff] %v25029_v62  ;;  %22164 = vmatpush3.msra.mxu0 %v24918_v17  ;;  %22178 = vmatpush3.msra.mxu1 %v211_v43  ;;  %v25032_v63 = vand.u32 4294901760, %v149_v57  ;;  %v25045_v7 = vand.u32 4294901760, %v25029_v62  ;;  %v25181_v34 = vand.u32 4294901760, %v731_v30  ;;  %v25195_v39 = vand.u32 4294901760, %v730_v33 }
  0x12   :  { %22165 = vmatprep.subr.mxu0 %v24927_v20  ;;  %22179 = vmatprep.subr.mxu1 %v218_v54  ;;  %28892 = vst [vmem:[#allocation6_spill] sm:$0xff] %v25038_v1  ;;  %v239_v8 = vand.u32 4294901760, %v238_v0  ;;  %v25051_v12 = vand.u32 4294901760, %v25038_v1  ;;  %v246_v13 = vand.u32 4294901760, %v245_v6  ;;  %vm2079_vm1 = vcmask 130048  }
  0x13   :  { %22166 = vmatpush3.msra.mxu0 %v24927_v20  ;;  %22180 = vmatpush3.msra.mxu1 %v218_v54  ;;  %28893 = vst [vmem:[#allocation7_spill] sm:$0xff] %v25045_v7  ;;  %v159_v14 = vsub.f32 %v25029_v62, %v25045_v7 }
  0x14   :  { %22167 = vmatprep.mubr.f32.mxu0 %v25026_v60  ;;  %22181 = vmatprep.subr.mxu1 %v225_v61  ;;  %28894 = vst [vmem:[#allocation8_spill] sm:$0xff] %v25051_v12 }
  0x15   :  { %22195 = vmatprep.subr.mxu0 %v24913_v15  ;;  %22168 = vmatmul.mubr.f32.vlgmr.msra.gmra.mxu0 %v25032_v63  ;;  %v25063_v19 = vand.u32 4294901760, %v159_v14 }
  0x16   :  { %22182 = vmatpush3.msra.mxu1 %v225_v61  ;;  %22196 = vmatpush3.msra.mxu0 %v24913_v15  ;;  %v169_v15 = vsub.f32 %v25038_v1, %v25051_v12 }
  0x17   :  { %22183 = vmatprep.subr.mxu1 %v232_v2  ;;  %22197 = vmatprep.subr.mxu0 %v24916_v16 }
  0x18   :  { %22184 = vmatpush3.msra.mxu1 %v232_v2  ;;  %22198 = vmatpush3.msra.mxu0 %v24916_v16  ;;  %v25069_v16 = vand.u32 4294901760, %v169_v15 }
  0x19   :  { %22185 = vmatprep.subr.mxu1 %v239_v8  ;;  %22199 = vmatprep.subr.mxu0 %v24921_v18 }
  0x1a   :  { %22186 = vmatpush3.msra.mxu1 %v239_v8  ;;  %22200 = vmatpush3.msra.mxu0 %v24921_v18  ;;  %v736_v18 = vld [vmem:[%s28869_s2 + $0x38] sm:$0xff] }
  0x1b   :  { %22187 = vmatprep.subr.mxu1 %v246_v13  ;;  %22201 = vmatprep.subr.mxu0 %v24930_v21  ;;  %v25119_v22 = vand.u32 4294901760, %v736_v18 }
  0x1c   :  { %22188 = vmatpush3.msra.mxu1 %v246_v13  ;;  %22202 = vmatpush3.msra.mxu0 %v24930_v21  ;;  %v735_v21 = vld [vmem:[%s28869_s2 + $0x30] sm:$0xff] }
  0x1d   :  { %22190 = vmatmul.mubr.f32.vlgmr.msra.gmra.mxu1 %v24970_v36  ;;  %22203 = vmatprep.subr.mxu0 %v24934_v23 }
  0x1e   :  { %22217 = vmatprep.subr.mxu1 %v24881_v3  ;;  %22204 = vmatpush3.msra.mxu0 %v24934_v23  ;;  %v25125_v23 = vand.u32 4294901760, %v735_v21 }
  0x1f   :  { %22218 = vmatpush3.msra.mxu1 %v24881_v3  ;;  %22205 = vmatprep.subr.mxu0 %v24957_v31 }
  0x20   :  { %22219 = vmatprep.subr.mxu1 %v24883_v4  ;;  %22170 = vmatprep.mubr.f32.mxu0 %v25063_v19 }
  0x21   :  { %22206 = vmatpush3.msra.mxu0 %v24957_v31  ;;  %22220 = vmatpush3.msra.mxu1 %v24883_v4 }
  0x22   :  { %22171 = vmatmul.mubr.f32.gmra.mxu0 %v25069_v16  ;;  %22207 = vmatprep.subr.mxu0 %v24998_v48 }
  0x23   :  { %22221 = vmatprep.subr.mxu1 %v24885_v5  ;;  %22208 = vmatpush3.msra.mxu0 %v24998_v48 }
  0x24   :  { %22222 = vmatpush3.msra.mxu1 %v24885_v5  ;;  %22209 = vmatprep.subr.mxu0 %v25001_v49 }
  0x25   :  { %22223 = vmatprep.subr.mxu1 %v24896_v9  ;;  %22210 = vmatpush3.msra.mxu0 %v25001_v49  ;;  %v25227_v49 = vsub.f32 %v730_v33, %v25195_v39 }
  0x26   :  { %22211 = vmatprep.mubr.f32.mxu0 %v24967_v35  ;;  %22224 = vmatpush3.msra.mxu1 %v24896_v9 }
  0x27   :  { %22192 = vmatprep.mubr.f32.mxu1 %v25008_v52  ;;  %22212 = vmatmul.mubr.f32.vlgmr.msra.gmra.mxu0 %v24989_v45  ;;  %v25246_v58 = vand.u32 4294901760, %v25227_v49 }
  0x28   :  { %22225 = vmatprep.subr.mxu1 %v24898_v10  ;;  %22239 = vmatprep.subr.mxu0 %v24938_v24 }
  0x29   :  { %22193 = vmatmul.mubr.f32.gmra.mxu1 %v25015_v56  ;;  %22240 = vmatpush3.msra.mxu0 %v24938_v24  ;;  %v734_v24 = vld [vmem:[%s28869_s2 + $0x28] sm:$0xff]  ;;  %v912_v6 = vsub.f32 %v25227_v49, %v25246_v58 }
  0x2a   :  { %22226 = vmatpush3.msra.mxu1 %v24898_v10  ;;  %22241 = vmatprep.subr.mxu0 %v24941_v25 }
  0x2b   :  { %22227 = vmatprep.subr.mxu1 %v24900_v11  ;;  %22214 = vmatprep.mubr.f32.mxu0 %v25029_v62  ;;  %v913_v14 = vand.u32 4294901760, %v912_v6 }
  0x2c   :  { %22228 = vmatpush3.msra.mxu1 %v24900_v11  ;;  %22242 = vmatpush3.msra.mxu0 %v24941_v25  ;;  %v25138_v25 = vsub.f32 %v736_v18, %v25119_v22  ;;  %v1410_v18 = vld [vmem:[%s28870_s3 + $0x38] sm:$0xff] }
  0x2d   :  { %22215 = vmatmul.mubr.f32.gmra.mxu0 %v25038_v1  ;;  %22229 = vmatprep.subr.mxu1 %v24918_v17 }
  0x2e   :  { %22243 = vmatprep.subr.mxu0 %v24944_v26  ;;  %22230 = vmatpush3.msra.mxu1 %v24918_v17 }
  0x2f   :  { %22244 = vmatpush3.msra.mxu0 %v24944_v26  ;;  %22231 = vmatprep.subr.mxu1 %v24927_v20  ;;  %v25142_v26 = vand.u32 4294901760, %v734_v24 }
  0x30   :  { %22245 = vmatprep.subr.mxu0 %v24950_v28  ;;  %22232 = vmatpush3.msra.mxu1 %v24927_v20 }
  0x31   :  { %22233 = vmatprep.mubr.f32.mxu1 %v24980_v41  ;;  %22246 = vmatpush3.msra.mxu0 %v24950_v28  ;;  %v25150_v28 = vsub.f32 %v735_v21, %v25125_v23  ;;  %v25169_v32 = vsub.f32 %v734_v24, %v25142_v26  ;;  %v1409_v21 = vld [vmem:[%s28870_s3 + $0x30] sm:$0xff]  ;;  %v25321_v24 = vand.u32 4294901760, %v1410_v18 }
  0x32   :  { %22234 = vmatmul.mubr.f32.vlgmr.msra.gmra.mxu1 %v25006_v51  ;;  %22247 = vmatprep.subr.mxu0 %v24953_v29 }
  0x33   :  { %22261 = vmatprep.subr.mxu1 %v24881_v3  ;;  %22248 = vmatpush3.msra.mxu0 %v24953_v29  ;;  %v25198_v40 = vand.u32 4294901760, %v25169_v32 }
  0x34   :  { %22262 = vmatpush3.msra.mxu1 %v24881_v3  ;;  %22249 = vmatprep.subr.mxu0 %v24992_v46  ;;  %v733_v3 = vld [vmem:[%s28869_s2 + $0x20] sm:$0xff] }
  0x35   :  { %22263 = vmatprep.subr.mxu1 %v24883_v4  ;;  %22236 = vmatprep.mubr.f32.mxu1 %v25045_v7  ;;  %v25154_v29 = vand.u32 4294901760, %v733_v3 }
  0x36   :  { %22250 = vmatpush3.msra.mxu0 %v24992_v46  ;;  %22264 = vmatpush3.msra.mxu1 %v24883_v4  ;;  %v732_v4 = vld [vmem:[%s28869_s2 + $0x18] sm:$0xff]  ;;  %v25215_v46 = vsub.f32 %v731_v30, %v25181_v34 }
  0x37   :  { %22237 = vmatmul.mubr.f32.gmra.mxu1 %v25051_v12  ;;  %22251 = vmatprep.subr.mxu0 %v25013_v55  ;;  %v25166_v31 = vand.u32 4294901760, %v732_v4  ;;  %v25184_v37 = vsub.f32 %v733_v3, %v25154_v29  ;;  %v1408_v3 = vld [vmem:[%s28870_s3 + $0x28] sm:$0xff]  ;;  %v1406_v30 = vld [vmem:[%s28870_s3 + $0x18] sm:$0xff] }
  0x38   :  { %22265 = vmatprep.subr.mxu1 %v24885_v5  ;;  %22252 = vmatpush3.msra.mxu0 %v25013_v55  ;;  %v25236_v53 = vand.u32 4294901760, %v25215_v46 }
  0x39   :  { %22266 = vmatpush3.msra.mxu1 %v24885_v5  ;;  %22253 = vmatprep.subr.mxu0 %v25023_v59  ;;  %v25159_v5 = vand.u32 4294901760, %v25138_v25  ;;  %v25201_v42 = vsub.f32 %v732_v4, %v25166_v31  ;;  %v25212_v44 = vand.u32 4294901760, %v25184_v37  ;;  %v1407_v4 = vld [vmem:[%s28870_s3 + $0x20] sm:$0xff] }
  0x3a   :  { %22267 = vmatprep.subr.mxu1 %v24896_v9  ;;  %22254 = vmatpush3.msra.mxu0 %v25023_v59  ;;  %v905_v61 = vsub.f32 %v25215_v46, %v25236_v53 }
  0x3b   :  { %22255 = vmatprep.mubr.f32.mxu0 %v24946_v27  ;;  %22268 = vmatpush3.msra.mxu1 %v24896_v9  ;;  %v25174_v9 = vand.u32 4294901760, %v25150_v28  ;;  %v25224_v48 = vand.u32 4294901760, %v25201_v42 }
  0x3c   :  { %22256 = vmatmul.mubr.f32.vlgmr.msra.gmra.mxu0 %v24970_v36  ;;  %22269 = vmatprep.subr.mxu1 %v24898_v10  ;;  %v906_v8 = vand.u32 4294901760, %v905_v61 }
  0x3d   :  { %22283 = vmatprep.subr.mxu0 %v25119_v22  ;;  %22270 = vmatpush3.msra.mxu1 %v24898_v10  ;;  %v870_v10 = vsub.f32 %v25138_v25, %v25159_v5  ;;  %v877_v43 = vsub.f32 %v25150_v28, %v25174_v9  ;;  %v898_v57 = vsub.f32 %v25201_v42, %v25224_v48 }
  0x3e   :  { %22284 = vmatpush3.msra.mxu0 %v25119_v22  ;;  %22271 = vmatprep.subr.mxu1 %v24900_v11 }
  0x3f   :  { %22285 = vmatprep.subr.mxu0 %v25125_v23  ;;  %22258 = vmatprep.mubr.f32.mxu0 %v25008_v52  ;;  %v871_v47 = vand.u32 4294901760, %v870_v10  ;;  %v878_v50 = vand.u32 4294901760, %v877_v43  ;;  %v899_v2 = vand.u32 4294901760, %v898_v57  ;;  %v1404_v10 = vld [vmem:[%s28870_s3 + $0x8] sm:$0xff] }
  0x40   :  { %22272 = vmatpush3.msra.mxu1 %v24900_v11  ;;  %22286 = vmatpush3.msra.mxu0 %v25125_v23  ;;  %v25209_v11 = vand.u32 4294901760, %v729_v38 }
  0x41   :  { %22259 = vmatmul.mubr.f32.gmra.mxu0 %v25015_v56  ;;  %22273 = vmatprep.subr.mxu1 %v24918_v17 }
  0x42   :  { %22287 = vmatprep.subr.mxu0 %v25142_v26  ;;  %22274 = vmatpush3.msra.mxu1 %v24918_v17  ;;  %v884_v17 = vsub.f32 %v25169_v32, %v25198_v40  ;;  %v25239_v54 = vsub.f32 %v729_v38, %v25209_v11 }
  0x43   :  { %22288 = vmatpush3.msra.mxu0 %v25142_v26  ;;  %22275 = vmatprep.subr.mxu1 %v24927_v20 }
  0x44   :  { %22289 = vmatprep.subr.mxu0 %v25154_v29  ;;  %22276 = vmatpush3.msra.mxu1 %v24927_v20  ;;  %v891_v20 = vsub.f32 %v25184_v37, %v25212_v44  ;;  %v885_v55 = vand.u32 4294901760, %v884_v17  ;;  %v25253_v0 = vand.u32 4294901760, %v25239_v54 }
  0x45   :  { %22277 = vmatprep.mubr.f32.mxu1 %v24946_v27  ;;  %22290 = vmatpush3.msra.mxu0 %v25154_v29 }
  0x46   :  { %22278 = vmatmul.mubr.f32.vlgmr.msra.gmra.mxu1 %v24970_v36  ;;  %22291 = vmatprep.subr.mxu0 %v25166_v31  ;;  %v892_v59 = vand.u32 4294901760, %v891_v20  ;;  %v919_v13 = vsub.f32 %v25239_v54, %v25253_v0 }
  0x47   :  { %22305 = vmatprep.subr.mxu1 %v871_v47  ;;  %22292 = vmatpush3.msra.mxu0 %v25166_v31 }
  0x48   :  { %22306 = vmatpush3.msra.mxu1 %v871_v47  ;;  %22293 = vmatprep.subr.mxu0 %v25181_v34  ;;  %v920_v15 = vand.u32 4294901760, %v919_v13  ;;  %v25401_v47 = vand.u32 4294901760, %v1404_v10 }
  0x49   :  { %22307 = vmatprep.subr.mxu1 %v878_v50  ;;  %22280 = vmatprep.mubr.f32.mxu1 %v25008_v52 }
  0x4a   :  { %22294 = vmatpush3.msra.mxu0 %v25181_v34  ;;  %22308 = vmatpush3.msra.mxu1 %v878_v50 }
  0x4b   :  { %22281 = vmatmul.mubr.f32.gmra.mxu1 %v25015_v56  ;;  %22295 = vmatprep.subr.mxu0 %v25195_v39 }
  0x4c   :  { %22309 = vmatprep.subr.mxu1 %v885_v55  ;;  %22296 = vmatpush3.msra.mxu0 %v25195_v39 }
  0x4d   :  { %22310 = vmatpush3.msra.mxu1 %v885_v55  ;;  %22297 = vmatprep.subr.mxu0 %v25209_v11 }
  0x4e   :  { %22311 = vmatprep.subr.mxu1 %v892_v59  ;;  %22298 = vmatpush3.msra.mxu0 %v25209_v11 }
  0x4f   :  { %22312 = vmatpush3.msra.mxu1 %v892_v59  ;;  %22299 = vmatprep.mubr.f32.mxu0 %v25026_v60 }
  0x50   :  { %22313 = vmatprep.subr.mxu1 %v899_v2  ;;  %22327 = vmatprep.subr.mxu0 %v25138_v25 }
  0x51   :  { %22300 = vmatmul.mubr.f32.vlgmr.msra.gmra.mxu0 %v25032_v63  ;;  %22314 = vmatpush3.msra.mxu1 %v899_v2 }
  0x52   :  { %22328 = vmatpush3.msra.mxu0 %v25138_v25  ;;  %22315 = vmatprep.subr.mxu1 %v906_v8  ;;  %v25330_v25 = vand.u32 4294901760, %v1409_v21 }
  0x53   :  { %22329 = vmatprep.subr.mxu0 %v25150_v28  ;;  %22316 = vmatpush3.msra.mxu1 %v906_v8 }
  0x54   :  { %22330 = vmatpush3.msra.mxu0 %v25150_v28  ;;  %22317 = vmatprep.subr.mxu1 %v913_v14  ;;  %v25340_v28 = vsub.f32 %v1410_v18, %v25321_v24 }
  0x55   :  { %22331 = vmatprep.subr.mxu0 %v25169_v32  ;;  %22318 = vmatpush3.msra.mxu1 %v913_v14 }
  0x56   :  { %22332 = vmatpush3.msra.mxu0 %v25169_v32  ;;  %22319 = vmatprep.subr.mxu1 %v920_v15  ;;  %v25354_v32 = vand.u32 4294901760, %v1407_v4  ;;  %v25364_v33 = vand.u32 4294901760, %v25340_v28 }
  0x57   :  { %22333 = vmatprep.subr.mxu0 %v25184_v37  ;;  %22320 = vmatpush3.msra.mxu1 %v920_v15 }
  0x58   :  { %22321 = vmatprep.mubr.f32.mxu1 %v24946_v27  ;;  %22334 = vmatpush3.msra.mxu0 %v25184_v37  ;;  %v25369_v37 = vand.u32 4294901760, %v1406_v30  ;;  %v1544_v43 = vsub.f32 %v25340_v28, %v25364_v33 }
  0x59   :  { %22322 = vmatmul.mubr.f32.vlgmr.msra.gmra.mxu1 %v24970_v36  ;;  %22335 = vmatprep.subr.mxu0 %v25201_v42 }
  0x5a   :  { %22349 = vmatprep.subr.mxu1 %v25119_v22  ;;  %22336 = vmatpush3.msra.mxu0 %v25201_v42 }
  0x5b   :  { %22350 = vmatpush3.msra.mxu1 %v25119_v22  ;;  %22337 = vmatprep.subr.mxu0 %v25215_v46 }
  0x5c   :  { %22351 = vmatprep.subr.mxu1 %v25125_v23  ;;  %22302 = vmatprep.mubr.f32.mxu0 %v25063_v19 }
  0x5d   :  { %22338 = vmatpush3.msra.mxu0 %v25215_v46  ;;  %22352 = vmatpush3.msra.mxu1 %v25125_v23  ;;  %v25399_v46 = vsub.f32 %v1406_v30, %v25369_v37 }
  0x5e   :  { %22303 = vmatmul.mubr.f32.gmra.mxu0 %v25069_v16  ;;  %22339 = vmatprep.subr.mxu0 %v25227_v49 }
  0x5f   :  { %22353 = vmatprep.subr.mxu1 %v25142_v26  ;;  %22340 = vmatpush3.msra.mxu0 %v25227_v49  ;;  %v25424_v20 = vand.u32 4294901760, %v25399_v46 }
  0x60   :  { %22354 = vmatpush3.msra.mxu1 %v25142_v26  ;;  %22341 = vmatprep.subr.mxu0 %v25239_v54 }
  0x61   :  { %22355 = vmatprep.subr.mxu1 %v25154_v29  ;;  %22342 = vmatpush3.msra.mxu0 %v25239_v54 }
  0x62   :  { %22343 = vmatprep.mubr.f32.mxu0 %v24967_v35  ;;  %22356 = vmatpush3.msra.mxu1 %v25154_v29 }
  0x63   :  { %22324 = vmatprep.mubr.f32.mxu1 %v25008_v52  ;;  %22344 = vmatmul.mubr.f32.vlgmr.msra.gmra.mxu0 %v24989_v45 }
  0x64   :  { %22357 = vmatprep.subr.mxu1 %v25166_v31  ;;  %22371 = vmatprep.subr.mxu0 %v25159_v5 }
  0x65   :  { %22325 = vmatmul.mubr.f32.gmra.mxu1 %v25015_v56  ;;  %22372 = vmatpush3.msra.mxu0 %v25159_v5  ;;  %v25342_v5 = vand.u32 4294901760, %v1408_v3 }
  0x66   :  { %22358 = vmatpush3.msra.mxu1 %v25166_v31  ;;  %22373 = vmatprep.subr.mxu0 %v25174_v9 }
  0x67   :  { %22359 = vmatprep.subr.mxu1 %v25181_v34  ;;  %22346 = vmatprep.mubr.f32.mxu0 %v25029_v62 }
  0x68   :  { %22360 = vmatpush3.msra.mxu1 %v25181_v34  ;;  %22374 = vmatpush3.msra.mxu0 %v25174_v9  ;;  %v1405_v9 = vld [vmem:[%s28870_s3 + $0x10] sm:$0xff] }
  0x69   :  { %22347 = vmatmul.mubr.f32.gmra.mxu0 %v25038_v1  ;;  %22361 = vmatprep.subr.mxu1 %v25195_v39  ;;  %v25384_v42 = vand.u32 4294901760, %v1405_v9 }
  0x6a   :  { %22375 = vmatprep.subr.mxu0 %v25198_v40  ;;  %22362 = vmatpush3.msra.mxu1 %v25195_v39 }
  0x6b   :  { %22376 = vmatpush3.msra.mxu0 %v25198_v40  ;;  %22363 = vmatprep.subr.mxu1 %v25209_v11  ;;  %v25382_v40 = vsub.f32 %v1407_v4, %v25354_v32 }
  0x6c   :  { %22377 = vmatprep.subr.mxu0 %v25212_v44  ;;  %22364 = vmatpush3.msra.mxu1 %v25209_v11 }
  0x6d   :  { %22365 = vmatprep.mubr.f32.mxu1 %v24980_v41  ;;  %22378 = vmatpush3.msra.mxu0 %v25212_v44  ;;  %v25410_v17 = vand.u32 4294901760, %v25382_v40 }
  0x6e   :  { %22366 = vmatmul.mubr.f32.vlgmr.msra.gmra.mxu1 %v25006_v51  ;;  %22379 = vmatprep.subr.mxu0 %v25224_v48 }
  0x6f   :  { %22393 = vmatprep.subr.mxu1 %v25119_v22  ;;  %22380 = vmatpush3.msra.mxu0 %v25224_v48  ;;  %v25413_v48 = vsub.f32 %v1405_v9, %v25384_v42  ;;  %v1565_v54 = vsub.f32 %v25382_v40, %v25410_v17 }
  0x70   :  { %22394 = vmatpush3.msra.mxu1 %v25119_v22  ;;  %22381 = vmatprep.subr.mxu0 %v25236_v53  ;;  %v25352_v22 = vsub.f32 %v1409_v21, %v25330_v25 }
  0x71   :  { %22395 = vmatprep.subr.mxu1 %v25125_v23  ;;  %22368 = vmatprep.mubr.f32.mxu1 %v25045_v7  ;;  %v25436_v55 = vand.u32 4294901760, %v25413_v48  ;;  %v1566_v61 = vand.u32 4294901760, %v1565_v54 }
  0x72   :  { %22382 = vmatpush3.msra.mxu0 %v25236_v53  ;;  %22396 = vmatpush3.msra.mxu1 %v25125_v23  ;;  %v25367_v23 = vsub.f32 %v1408_v3, %v25342_v5  ;;  %v25379_v38 = vand.u32 4294901760, %v25352_v22  ;;  %v25427_v53 = vsub.f32 %v1404_v10, %v25401_v47 }
  0x73   :  { %22369 = vmatmul.mubr.f32.gmra.mxu1 %v25051_v12  ;;  %22383 = vmatprep.subr.mxu0 %v25246_v58 }
  0x74   :  { %22397 = vmatprep.subr.mxu1 %v25142_v26  ;;  %22384 = vmatpush3.msra.mxu0 %v25246_v58  ;;  %v25396_v44 = vand.u32 4294901760, %v25367_v23  ;;  %v1572_v58 = vsub.f32 %v25399_v46, %v25424_v20  ;;  %v25447_v59 = vand.u32 4294901760, %v25427_v53 }
  0x75   :  { %22398 = vmatpush3.msra.mxu1 %v25142_v26  ;;  %22385 = vmatprep.subr.mxu0 %v25253_v0  ;;  %v1403_v26 = vld [vmem:[%s28870_s3] sm:$0xff] }
  0x76   :  { %22399 = vmatprep.subr.mxu1 %v25154_v29  ;;  %22386 = vmatpush3.msra.mxu0 %v25253_v0  ;;  %v25415_v49 = vand.u32 4294901760, %v1403_v26  ;;  %v1558_v50 = vsub.f32 %v25367_v23, %v25396_v44  ;;  %v1573_v2 = vand.u32 4294901760, %v1572_v58  ;;  %v1586_v6 = vsub.f32 %v25427_v53, %v25447_v59 }
  0x77   :  { %22387 = vmatprep.mubr.f32.mxu0 %v24946_v27  ;;  %22400 = vmatpush3.msra.mxu1 %v25154_v29  ;;  %v1551_v29 = vsub.f32 %v25352_v22, %v25379_v38 }
  0x78   :  { %22388 = vmatmul.mubr.f32.vlgmr.msra.gmra.mxu0 %v24970_v36  ;;  %22401 = vmatprep.subr.mxu1 %v25166_v31  ;;  %v25439_v57 = vsub.f32 %v1403_v26, %v25415_v49  ;;  %v1587_v14 = vand.u32 4294901760, %v1586_v6 }
  0x79   :  { %22402 = vmatpush3.msra.mxu1 %v25166_v31  ;;  %22390 = vmatprep.mubr.f32.mxu0 %v25008_v52  ;;  %v1545_v31 = vand.u32 4294901760, %v1544_v43 }
  0x7a   :  { %22403 = vmatprep.subr.mxu1 %v25181_v34  ;;  %22409 = vmatprep.mubr.f32.mxu1 %v24946_v27  ;;  %v25454_v0 = vand.u32 4294901760, %v25439_v57 }
  0x7b   :  { %22404 = vmatpush3.msra.mxu1 %v25181_v34  ;;  %22415 = vmatprep.subr.mxu0 %v25321_v24  ;;  %v1552_v34 = vand.u32 4294901760, %v1551_v29 }
  0x7c   :  { %22391 = vmatmul.mubr.f32.gmra.mxu0 %v25015_v56  ;;  %22405 = vmatprep.subr.mxu1 %v25195_v39  ;;  %v1593_v13 = vsub.f32 %v25439_v57, %v25454_v0 }
  0x7d   :  { %22406 = vmatpush3.msra.mxu1 %v25195_v39  ;;  %22416 = vmatpush3.msra.mxu0 %v25321_v24  ;;  %v1559_v39 = vand.u32 4294901760, %v1558_v50 }
  0x7e   :  { %22407 = vmatprep.subr.mxu1 %v25209_v11  ;;  %22417 = vmatprep.subr.mxu0 %v25330_v25  ;;  %v1594_v15 = vand.u32 4294901760, %v1593_v13 }
  0x7f   :  { %22408 = vmatpush3.msra.mxu1 %v25209_v11  ;;  %22418 = vmatpush3.msra.mxu0 %v25330_v25  ;;  %v1579_v11 = vsub.f32 %v25413_v48, %v25436_v55 }
  0x80   :  { %22410 = vmatmul.mubr.f32.vlgmr.msra.gmra.mxu1 %v24970_v36  ;;  %22437 = vmatprep.subr.mxu1 %v1545_v31 }
  0x81   :  { %22412 = vmatprep.mubr.f32.mxu1 %v25008_v52  ;;  %22438 = vmatpush3.msra.mxu1 %v1545_v31  ;;  %v1580_v8 = vand.u32 4294901760, %v1579_v11 }
  0x82   :  { %22439 = vmatprep.subr.mxu1 %v1552_v34  ;;  %22419 = vmatprep.subr.mxu0 %v25342_v5 }
  0x83   :  { %22440 = vmatpush3.msra.mxu1 %v1552_v34  ;;  %22420 = vmatpush3.msra.mxu0 %v25342_v5 }
  0x84   :  { %22413 = vmatmul.mubr.f32.gmra.mxu1 %v25015_v56  ;;  %22441 = vmatprep.subr.mxu1 %v1559_v39 }
  0x85   :  { %22442 = vmatpush3.msra.mxu1 %v1559_v39  ;;  %22421 = vmatprep.subr.mxu0 %v25354_v32 }
  0x86   :  { %22443 = vmatprep.subr.mxu1 %v1566_v61  ;;  %22422 = vmatpush3.msra.mxu0 %v25354_v32 }
  0x87   :  { %22444 = vmatpush3.msra.mxu1 %v1566_v61  ;;  %22423 = vmatprep.subr.mxu0 %v25369_v37 }
  0x88   :  { %22445 = vmatprep.subr.mxu1 %v1573_v2  ;;  %22453 = vmatprep.mubr.f32.mxu1 %v24946_v27 }
  0x89   :  { %22446 = vmatpush3.msra.mxu1 %v1573_v2  ;;  %22424 = vmatpush3.msra.mxu0 %v25369_v37 }
  0x8a   :  { %22447 = vmatprep.subr.mxu1 %v1580_v8  ;;  %22425 = vmatprep.subr.mxu0 %v25384_v42 }
  0x8b   :  { %22448 = vmatpush3.msra.mxu1 %v1580_v8  ;;  %22426 = vmatpush3.msra.mxu0 %v25384_v42 }
  0x8c   :  { %22449 = vmatprep.subr.mxu1 %v1587_v14  ;;  %22427 = vmatprep.subr.mxu0 %v25401_v47 }
  0x8d   :  { %22450 = vmatpush3.msra.mxu1 %v1587_v14  ;;  %22428 = vmatpush3.msra.mxu0 %v25401_v47 }
  0x8e   :  { %22451 = vmatprep.subr.mxu1 %v1594_v15  ;;  %22429 = vmatprep.subr.mxu0 %v25415_v49 }
  0x8f   :  { %22452 = vmatpush3.msra.mxu1 %v1594_v15  ;;  %22430 = vmatpush3.msra.mxu0 %v25415_v49 }
  0x90   :  { %22481 = vmatprep.subr.mxu1 %v25321_v24  ;;  %22454 = vmatmul.mubr.f32.vlgmr.msra.gmra.mxu1 %v24970_v36 }
  0x91   :  { %22482 = vmatpush3.msra.mxu1 %v25321_v24  ;;  %22431 = vmatprep.mubr.f32.mxu0 %v25026_v60 }
  0x92   :  { %22483 = vmatprep.subr.mxu1 %v25330_v25  ;;  %22459 = vmatprep.subr.mxu0 %v25340_v28 }
  0x93   :  { %22484 = vmatpush3.msra.mxu1 %v25330_v25  ;;  %22432 = vmatmul.mubr.f32.vlgmr.msra.gmra.mxu0 %v25032_v63 }
  0x94   :  { %22485 = vmatprep.subr.mxu1 %v25342_v5  ;;  %22460 = vmatpush3.msra.mxu0 %v25340_v28 }
  0x95   :  { %22486 = vmatpush3.msra.mxu1 %v25342_v5  ;;  %22461 = vmatprep.subr.mxu0 %v25352_v22 }
  0x96   :  { %22487 = vmatprep.subr.mxu1 %v25354_v32  ;;  %22462 = vmatpush3.msra.mxu0 %v25352_v22 }
  0x97   :  { %22488 = vmatpush3.msra.mxu1 %v25354_v32  ;;  %22456 = vmatprep.mubr.f32.mxu1 %v25008_v52 }
  0x98   :  { %22489 = vmatprep.subr.mxu1 %v25369_v37  ;;  %22463 = vmatprep.subr.mxu0 %v25367_v23 }
  0x99   :  { %22490 = vmatpush3.msra.mxu1 %v25369_v37  ;;  %22464 = vmatpush3.msra.mxu0 %v25367_v23 }
  0x9a   :  { %22491 = vmatprep.subr.mxu1 %v25384_v42  ;;  %22457 = vmatmul.mubr.f32.gmra.mxu1 %v25015_v56 }
  0x9b   :  { %22492 = vmatpush3.msra.mxu1 %v25384_v42  ;;  %22465 = vmatprep.subr.mxu0 %v25382_v40 }
  0x9c   :  { %22493 = vmatprep.subr.mxu1 %v25401_v47  ;;  %22466 = vmatpush3.msra.mxu0 %v25382_v40 }
  0x9d   :  { %22494 = vmatpush3.msra.mxu1 %v25401_v47  ;;  %22467 = vmatprep.subr.mxu0 %v25399_v46 }
  0x9e   :  { %22495 = vmatprep.subr.mxu1 %v25415_v49  ;;  %22497 = vmatprep.mubr.f32.mxu1 %v24980_v41 }
  0x9f   :  { %22496 = vmatpush3.msra.mxu1 %v25415_v49  ;;  %22468 = vmatpush3.msra.mxu0 %v25399_v46 }
  0xa0   :  { %22525 = vmatprep.subr.mxu1 %v25321_v24  ;;  %22498 = vmatmul.mubr.f32.vlgmr.msra.gmra.mxu1 %v25006_v51 }
  0xa1   :  { %22526 = vmatpush3.msra.mxu1 %v25321_v24  ;;  %22469 = vmatprep.subr.mxu0 %v25413_v48 }
  0xa2   :  { %22527 = vmatprep.subr.mxu1 %v25330_v25  ;;  %22470 = vmatpush3.msra.mxu0 %v25413_v48 }
  0xa3   :  { %22528 = vmatpush3.msra.mxu1 %v25330_v25  ;;  %22434 = vmatprep.mubr.f32.mxu0 %v25063_v19 }
  0xa4   :  { %22471 = vmatprep.subr.mxu0 %v25427_v53  ;;  %22529 = vmatprep.subr.mxu1 %v25342_v5 }
  0xa5   :  { %22435 = vmatmul.mubr.f32.gmra.mxu0 %v25069_v16  ;;  %22530 = vmatpush3.msra.mxu1 %v25342_v5 }
  0xa6   :  { %22472 = vmatpush3.msra.mxu0 %v25427_v53  ;;  %22531 = vmatprep.subr.mxu1 %v25354_v32 }
  0xa7   :  { %22473 = vmatprep.subr.mxu0 %v25439_v57  ;;  %22532 = vmatpush3.msra.mxu1 %v25354_v32 }
  0xa8   :  { %22474 = vmatpush3.msra.mxu0 %v25439_v57  ;;  %22475 = vmatprep.mubr.f32.mxu0 %v24967_v35 }
  0xa9   :  { %22503 = vmatprep.subr.mxu0 %v25364_v33  ;;  %22533 = vmatprep.subr.mxu1 %v25369_v37 }
  0xaa   :  { %22476 = vmatmul.mubr.f32.vlgmr.msra.gmra.mxu0 %v24989_v45  ;;  %22534 = vmatpush3.msra.mxu1 %v25369_v37 }
  0xab   :  { %22504 = vmatpush3.msra.mxu0 %v25364_v33  ;;  %22535 = vmatprep.subr.mxu1 %v25384_v42 }
  0xac   :  { %22505 = vmatprep.subr.mxu0 %v25379_v38  ;;  %22500 = vmatprep.mubr.f32.mxu1 %v25045_v7 }
  0xad   :  { %22506 = vmatpush3.msra.mxu0 %v25379_v38  ;;  %22536 = vmatpush3.msra.mxu1 %v25384_v42 }
  0xae   :  { %22501 = vmatmul.mubr.f32.gmra.mxu1 %v25051_v12  ;;  %22507 = vmatprep.subr.mxu0 %v25396_v44 }
  0xaf   :  { %22537 = vmatprep.subr.mxu1 %v25401_v47  ;;  %22508 = vmatpush3.msra.mxu0 %v25396_v44 }
  0xb0   :  { %22538 = vmatpush3.msra.mxu1 %v25401_v47  ;;  %22509 = vmatprep.subr.mxu0 %v25410_v17 }
  0xb1   :  { %22539 = vmatprep.subr.mxu1 %v25415_v49  ;;  %22510 = vmatpush3.msra.mxu0 %v25410_v17 }
  0xb2   :  { %22540 = vmatpush3.msra.mxu1 %v25415_v49  ;;  %22541 = vmatprep.mubr.f32.mxu1 %v24946_v27 }
  0xb3   :  { %22511 = vmatprep.subr.mxu0 %v25424_v20  ;;  %22542 = vmatmul.mubr.f32.vlgmr.msra.gmra.mxu1 %v24970_v36 }
  0xb4   :  { %22512 = vmatpush3.msra.mxu0 %v25424_v20  ;;  %22478 = vmatprep.mubr.f32.mxu0 %v25029_v62 }
  0xb5   :  { %22513 = vmatprep.subr.mxu0 %v25436_v55  ;;  %22544 = vmatprep.mubr.f32.mxu1 %v25008_v52 }
  0xb6   :  { %22514 = vmatpush3.msra.mxu0 %v25436_v55 }
  0xb7   :  { %22479 = vmatmul.mubr.f32.gmra.mxu0 %v25038_v1  ;;  %22515 = vmatprep.subr.mxu0 %v25447_v59 }
  0xb8   :  { %22545 = vmatmul.mubr.f32.gmra.mxu1 %v25015_v56  ;;  %22516 = vmatpush3.msra.mxu0 %v25447_v59 }
  0xb9   :  { %22517 = vmatprep.subr.mxu0 %v25454_v0  ;;  %22519 = vmatprep.mubr.f32.mxu0 %v24946_v27 }
  0xba   :  { %22518 = vmatpush3.msra.mxu0 %v25454_v0 }
  0xbb   :  { %22520 = vmatmul.mubr.f32.vlgmr.msra.gmra.mxu0 %v24970_v36 }
  0xbc   :  { %22522 = vmatprep.mubr.f32.mxu0 %v25008_v52 }
  0xbf   :  { %22523 = vmatmul.mubr.f32.gmra.mxu0 %v25015_v56 }
  0xd5   :  { %v22169_v18 = vpop.f32.mrf.mxu0 }
  0xd7   :  { %v142_v3 = vpop.f32.mrf.mxu0 }
  0xdd   :  { %v22191_v21 = vpop.f32.mrf.mxu1 }
  0xde   :  { %v290_v24 = vadd.f32 %v22191_v21, %v22169_v18 }
  0xdf   :  { %v283_v28 = vpop.f32.mrf.mxu1 }
  0xe0   :  { %v284_v44 = vadd.f32 %v283_v28, %v142_v3 }
  0xe2   :  { %v22172_v25 = vpop.f32.mrf.mxu0 }
  0xe4   :  { %v25560_v4 = vpop.f32.mrf.mxu0 }
  0xe7   :  { %v22213_v5 = vpop.f32.mrf.mxu0 }
  0xe9   :  { %v22194_v30 = vpop.f32.mrf.mxu1  ;;  %v389_v22 = vpop.f32.mrf.mxu0 }
  0xea   :  { %v302_v32 = vadd.f32 %v22194_v30, %v22172_v25  ;;  %v390_v29 = vadd.f32 %v389_v22, %v284_v44 }
  0xeb   :  { %v25562_v23 = vpop.f32.mrf.mxu1 }
  0xed   :  { %v22216_v9 = vpop.f32.mrf.mxu0 }
  0xee   :  { %v411_v33 = vadd.f32 %v22216_v9, %v302_v32  ;;  %v397_v32 = vadd.f32 %v22213_v5, %v290_v24 }
  0xef   :  { %v25564_v42 = vpop.f32.mrf.mxu0 }
  0xf2   :  { %v22235_v37 = vpop.f32.mrf.mxu1 }
  0xf4   :  { %v491_v10 = vpop.f32.mrf.mxu1 }
  0xf5   :  { %v492_v48 = vadd.f32 %v491_v10, %v390_v29 }
  0xf7   :  { %v22238_v38 = vpop.f32.mrf.mxu1 }
  0xf8   :  { %v516_v40 = vadd.f32 %v22238_v38, %v411_v33  ;;  %v500_v33 = vadd.f32 %v22235_v37, %v397_v32 }
  0xf9   :  { %v25566_v17 = vpop.f32.mrf.mxu1 }
  0xfc   :  { %v22257_v26 = vpop.f32.mrf.mxu0 }
  0xfd   :  { %v617_v10 = vadd.f32 %v22257_v26, %v500_v33 }
  0xfe   :  { %v610_v43 = vpop.f32.mrf.mxu0 }
  0xff   :  { %v611_v31 = vadd.f32 %v610_v43, %v492_v48 }
 0x101   :  { %v22260_v46 = vpop.f32.mrf.mxu0 }
 0x102   :  { %v629_v47 = vadd.f32 %v22260_v46, %v516_v40 }
 0x103   :  { %v25581_v61 = vpop.f32.mrf.mxu0 }
 0x106   :  { %v22279_v49 = vpop.f32.mrf.mxu1 }
 0x107   :  { %v714_v43 = vadd.f32 %v22279_v49, %v617_v10 }
 0x108   :  { %v707_v50 = vpop.f32.mrf.mxu1 }
 0x109   :  { %v708_v20 = vadd.f32 %v707_v50, %v611_v31 }
 0x10b   :  { %v2081_v53 = vsel %vm2079_vm1, %v708_v20, 0  ;;  %v22282_v34 = vpop.f32.mrf.mxu1 }
 0x10c   :  { %v25569_v54 = vand.u32 4294901760, %v2081_v53  ;;  %v25571_v55 = vadd.f32 %v22282_v34, %v629_v47  ;;  %v2084_v47 = vsel %vm2079_vm1, %v714_v43, 0 }
 0x10d   :  { %v25583_v2 = vpop.f32.mrf.mxu1  ;;  %v25592_v20 = vand.u32 4294901760, %v2084_v47 }
 0x10e   :  { %v25574_v57 = vsub.f32 %v2081_v53, %v25569_v54  ;;  %22558 = vmatprep.mubr.f32.mxu1 %v25569_v54 }
 0x10f   :  { %v2170_v49 = vsub.f32 %v2084_v47, %v25592_v20 }
 0x110   :  { %v2161_v39 = vand.u32 4294901760, %v25574_v57 }
 0x111   :  { %v22301_v11 = vpop.f32.mrf.mxu0 }
 0x112   :  { %v2162_v58 = vsub.f32 %v25574_v57, %v2161_v39 }
 0x113   :  { %v816_v0 = vpop.f32.mrf.mxu0 }
 0x114   :  { %v2163_v59 = vand.u32 4294901760, %v2162_v58 }
 0x116   :  { %22551 = vmatprep.mubr.f32.mxu0 %v2163_v59 }
 0x119   :  { %v22323_v8 = vpop.f32.mrf.mxu1 }
 0x11a   :  { %v964_v29 = vadd.f32 %v22323_v8, %v22301_v11  ;;  %v2171_v8 = vand.u32 4294901760, %v2170_v49 }
 0x11b   :  { %v957_v14 = vpop.f32.mrf.mxu1 }
 0x11c   :  { %v958_v31 = vadd.f32 %v957_v14, %v816_v0  ;;  %v2172_v32 = vsub.f32 %v2170_v49, %v2171_v8 }
 0x11e   :  { %v22304_v6 = vpop.f32.mrf.mxu0 }
 0x120   :  { %v25585_v13 = vpop.f32.mrf.mxu0 }
 0x123   :  { %v22345_v15 = vpop.f32.mrf.mxu0 }
 0x124   :  { %v1071_v50 = vadd.f32 %v22345_v15, %v964_v29 }
 0x125   :  { %v22326_v18 = vpop.f32.mrf.mxu1  ;;  %v1063_v21 = vpop.f32.mrf.mxu0 }
 0x126   :  { %v976_v3 = vadd.f32 %v22326_v18, %v22304_v6  ;;  %v1064_v34 = vadd.f32 %v1063_v21, %v958_v31 }
 0x127   :  { %v25587_v30 = vpop.f32.mrf.mxu1 }
 0x129   :  { %v22348_v25 = vpop.f32.mrf.mxu0 }
 0x12a   :  { %v1085_v28 = vadd.f32 %v22348_v25, %v976_v3 }
 0x12b   :  { %v25589_v44 = vpop.f32.mrf.mxu0 }
 0x12e   :  { %v22367_v22 = vpop.f32.mrf.mxu1 }
 0x12f   :  { %v1174_v24 = vadd.f32 %v22367_v22, %v1071_v50 }
 0x130   :  { %v1165_v9 = vpop.f32.mrf.mxu1 }
 0x131   :  { %v1166_v26 = vadd.f32 %v1165_v9, %v1064_v34 }
 0x133   :  { %v22370_v38 = vpop.f32.mrf.mxu1 }
 0x134   :  { %v1190_v40 = vadd.f32 %v22370_v38, %v1085_v28 }
 0x135   :  { %v25594_v37 = vpop.f32.mrf.mxu1 }
 0x138   :  { %v22389_v46 = vpop.f32.mrf.mxu0 }
 0x139   :  { %v1291_v58 = vadd.f32 %v22389_v46, %v1174_v24 }
 0x13a   :  { %v1284_v48 = vpop.f32.mrf.mxu0 }
 0x13b   :  { %v1285_v6 = vadd.f32 %v1284_v48, %v1166_v26 }
 0x13c   :  { %v22392_v53 = vpop.f32.mrf.mxu0 }
 0x13d   :  { %v1303_v5 = vadd.f32 %v22392_v53, %v1190_v40  ;;  %v2173_v40 = vand.u32 4294901760, %v2172_v32 }
 0x13e   :  { %v25608_v31 = vpop.f32.mrf.mxu0 }
 0x140   :  { %v22411_v59 = vpop.f32.mrf.mxu1 }
 0x141   :  { %v1388_v18 = vadd.f32 %v22411_v59, %v1291_v58 }
 0x142   :  { %v1381_v3 = vpop.f32.mrf.mxu1 }
 0x143   :  { %v2090_v11 = vsel %vm2079_vm1, %v1388_v18, 0  ;;  %v1382_v0 = vadd.f32 %v1381_v3, %v1285_v6 }
 0x144   :  { %v2121_v14 = vand.u32 4294901760, %v2090_v11  ;;  %v22414_v15 = vpop.f32.mrf.mxu1 }
 0x145   :  { %v2087_v21 = vsel %vm2079_vm1, %v1382_v0, 0  ;;  %v25599_v25 = vadd.f32 %v22414_v15, %v1303_v5 }
 0x146   :  { %v2209_v28 = vsub.f32 %v2090_v11, %v2121_v14  ;;  %v2124_v22 = vand.u32 4294901760, %v2087_v21  ;;  %22547 = vmatprep.subr.mxu0 %v2121_v14  ;;  %v25603_v29 = vpop.f32.mrf.mxu1 }
 0x147   :  { %22548 = vmatpush3.xpose.msra.mxu0 %v2121_v14 }
 0x148   :  { %v2216_v9 = vsub.f32 %v2087_v21, %v2124_v22  ;;  %22549 = vmatprep.subr.mxu0 %v2124_v22  ;;  %v2210_v33 = vand.u32 4294901760, %v2209_v28 }
 0x14a   :  { %v2211_v10 = vsub.f32 %v2209_v28, %v2210_v33  ;;  %v2217_v38 = vand.u32 4294901760, %v2216_v9 }
 0x14b   :  { %22550 = vmatpush3.xpose.msra.mxu0 %v2124_v22 }
 0x14c   :  { %22561 = vmatprep.subr.mxu0 %v2209_v28  ;;  %v2212_v43 = vand.u32 4294901760, %v2211_v10  ;;  %v2218_v46 = vsub.f32 %v2216_v9, %v2217_v38 }
 0x14e   :  { %22552 = vmatmul.mubr.f32.vlgmr.msra.gmra.mxu0 %v2173_v40  ;;  %22554 = vmatprep.subr.mxu1 %v2212_v43  ;;  %v2219_v47 = vand.u32 4294901760, %v2218_v46 }
 0x14f   :  { %22555 = vmatpush3.xpose.msra.mxu1 %v2212_v43  ;;  %22562 = vmatpush3.xpose.msra.mxu0 %v2209_v28 }
 0x150   :  { %22565 = vmatprep.mubr.f32.mxu0 %v25574_v57  ;;  %22556 = vmatprep.subr.mxu1 %v2219_v47  ;;  %v22455_v48 = vpop.f32.mrf.mxu1 }
 0x151   :  { %22563 = vmatprep.subr.mxu0 %v2216_v9 }
 0x152   :  { %v1631_v53 = vpop.f32.mrf.mxu1 }
 0x153   :  { %22557 = vmatpush3.xpose.msra.mxu1 %v2219_v47  ;;  %22564 = vmatpush3.xpose.msra.mxu0 %v2216_v9  ;;  %v22433_v50 = vpop.f32.mrf.mxu0 }
 0x154   :  { %22568 = vmatprep.subr.mxu1 %v2121_v14  ;;  %22575 = vmatprep.subr.mxu0 %v2210_v33  ;;  %v1638_v6 = vadd.f32 %v22455_v48, %v22433_v50 }
 0x155   :  { %v1490_v57 = vpop.f32.mrf.mxu0 }
 0x156   :  { %22559 = vmatmul.mubr.f32.vlgmr.msra.gmra.mxu1 %v25592_v20  ;;  %22566 = vmatmul.mubr.f32.vlgmr.msra.gmra.mxu0 %v2170_v49  ;;  %v1632_v3 = vadd.f32 %v1631_v53, %v1490_v57 }
 0x157   :  { %22569 = vmatpush3.xpose.msra.mxu1 %v2121_v14  ;;  %22572 = vmatprep.mubr.f32.mxu1 %v2161_v39 }
 0x158   :  { %22576 = vmatpush3.xpose.msra.mxu0 %v2210_v33  ;;  %22579 = vmatprep.mubr.f32.mxu0 %v25569_v54 }
 0x159   :  { %22570 = vmatprep.subr.mxu1 %v2124_v22  ;;  %22577 = vmatprep.subr.mxu0 %v2217_v38 }
 0x15a   :  { %v22458_v39 = vpop.f32.mrf.mxu1 }
 0x15b   :  { %22571 = vmatpush3.xpose.msra.mxu1 %v2124_v22 }
 0x15c   :  { %22578 = vmatpush3.xpose.msra.mxu0 %v2217_v38  ;;  %22582 = vmatprep.subr.mxu1 %v2121_v14  ;;  %v25612_v24 = vpop.f32.mrf.mxu1 }
 0x15e   :  { %22573 = vmatmul.mubr.f32.vlgmr.msra.gmra.mxu1 %v2171_v8 }
 0x15f   :  { %22580 = vmatmul.mubr.f32.vlgmr.msra.gmra.mxu0 %v25592_v20  ;;  %22583 = vmatpush3.xpose.msra.mxu1 %v2121_v14 }
 0x160   :  { %22586 = vmatprep.mubr.f32.mxu1 %v25569_v54  ;;  %22584 = vmatprep.subr.mxu1 %v2124_v22  ;;  %v22499_v26 = vpop.f32.mrf.mxu1 }
 0x162   :  { %v1839_v49 = vpop.f32.mrf.mxu1 }
 0x163   :  { %22585 = vmatpush3.xpose.msra.mxu1 %v2124_v22 }
 0x165   :  { %v22436_v34 = vpop.f32.mrf.mxu0 }
 0x166   :  { %22587 = vmatmul.mubr.f32.vlgmr.msra.gmra.mxu1 %v25592_v20  ;;  %v1650_v5 = vadd.f32 %v22458_v39, %v22436_v34 }
 0x167   :  { %v25615_v58 = vpop.f32.mrf.mxu0 }
 0x16a   :  { %v22477_v59 = vpop.f32.mrf.mxu0 }
 0x16b   :  { %v1745_v54 = vadd.f32 %v22477_v59, %v1638_v6 }
 0x16c   :  { %v1737_v11 = vpop.f32.mrf.mxu0 }
 0x16d   :  { %v1738_v8 = vadd.f32 %v1737_v11, %v1632_v3  ;;  %v1848_v15 = vadd.f32 %v22499_v26, %v1745_v54 }
 0x16e   :  { %v22502_v18 = vpop.f32.mrf.mxu1 }
 0x16f   :  { %v1840_v22 = vadd.f32 %v1839_v49, %v1738_v8 }
 0x170   :  { %v25617_v0 = vpop.f32.mrf.mxu1 }
 0x173   :  { %v22543_v20 = vpop.f32.mrf.mxu1 }
 0x175   :  { %v2055_v38 = vpop.f32.mrf.mxu1 }
 0x177   :  { %v22480_v14 = vpop.f32.mrf.mxu0 }
 0x178   :  { %v1759_v21 = vadd.f32 %v22480_v14, %v1650_v5  ;;  %v22546_v53 = vpop.f32.mrf.mxu1 }
 0x179   :  { %v25619_v28 = vpop.f32.mrf.mxu0 }
 0x17a   :  { %v1864_v32 = vadd.f32 %v22502_v18, %v1759_v21  ;;  %v25651_v54 = vpop.f32.mrf.mxu1 }
 0x17b   :  { %v22521_v9 = vpop.f32.mrf.mxu0 }
 0x17c   :  { %v1965_v33 = vadd.f32 %v22521_v9, %v1848_v15 }
 0x17d   :  { %v1958_v10 = vpop.f32.mrf.mxu0 }
 0x17e   :  { %v1959_v40 = vadd.f32 %v1958_v10, %v1840_v22  ;;  %v2062_v43 = vadd.f32 %v22543_v20, %v1965_v33  ;;  %v28_v33 = vlaneseq }
 0x17f   :  { %v22524_v46 = vpop.f32.mrf.mxu0 }
 0x180   :  { %v25621_v47 = vand.u32 4294901760, %v2062_v43  ;;  %v2056_v48 = vadd.f32 %v2055_v38, %v1959_v40  ;;  %v1977_v50 = vadd.f32 %v22524_v46, %v1864_v32 }
 0x181   :  { %v25649_v11 = vpop.f32.mrf.mxu0 }
 0x182   :  { %v25624_v57 = vsub.f32 %v2062_v43, %v25621_v47  ;;  %v25626_v39 = vand.u32 4294901760, %v2056_v48  ;;  %22589 = vmatprep.subr.mxu0 %v25621_v47  ;;  %v25629_v34 = vadd.f32 %v22546_v53, %v1977_v50 }
 0x183   :  { %22590 = vmatpush3.msra.mxu0 %v25621_v47 }
 0x184   :  { %v25633_v5 = vsub.f32 %v2056_v48, %v25626_v39  ;;  %v25636_v26 = vand.u32 4294901760, %v25624_v57  ;;  %22591 = vmatprep.subr.mxu0 %v25626_v39  ;;  %v29_v48 = vshrl.u32 %v28_v33, 7 }
 0x185   :  { %22592 = vmatpush3.msra.mxu0 %v25626_v39 }
 0x186   :  { %v2743_v49 = vsub.f32 %v25624_v57, %v25636_v26  ;;  %v25643_v59 = vand.u32 4294901760, %v25633_v5  ;;  %22603 = vmatprep.subr.mxu0 %v25624_v57 }
 0x188   :  { %v2744_v6 = vand.u32 4294901760, %v2743_v49  ;;  %v2750_v18 = vsub.f32 %v25633_v5, %v25643_v59 }
 0x18a   :  { %22596 = vmatprep.subr.mxu1 %v2744_v6  ;;  %v2751_v3 = vand.u32 4294901760, %v2750_v18  ;;  %v32_v18 = vand.u32 127, %v28_v33 }
 0x18b   :  { %22597 = vmatpush3.msra.mxu1 %v2744_v6 }
 0x18c   :  { %22598 = vmatprep.subr.mxu1 %v2751_v3  ;;  %vm25653_vm2 = vcmp.le.s32.totalorder %v32_v18, %v29_v48 }
 0x18d   :  { %22599 = vmatpush3.msra.mxu1 %v2751_v3  ;;  %v30_v3 = vadd.s32 8, %v29_v48 }
 0x18e   :  { %22610 = vmatprep.subr.mxu1 %v25621_v47 }
 0x18f   :  { %vm25657_vm3 = vcmp.le.s32.totalorder %v32_v18, %v30_v3 }
 0x20e   :  { %v22553_v8 = vpop.f32.mrf.mxu0 }
 0x210   :  { %v2165_v15 = vpop.f32.mrf.mxu0 }
 0x216   :  { %v22560_v14 = vpop.f32.mrf.mxu1  ;;  %v22567_v20 = vpop.f32.mrf.mxu0 }
 0x217   :  { %v2263_v22 = vadd.f32 %v22560_v14, %v22553_v8 }
 0x218   :  { %v2256_v21 = vpop.f32.mrf.mxu1  ;;  %v2338_v10 = vpop.f32.mrf.mxu0 }
 0x219   :  { %v2257_v32 = vadd.f32 %v2256_v21, %v2165_v15  ;;  %v2346_v40 = vadd.f32 %v22567_v20, %v2263_v22 }
 0x21b   :  { %v2339_v43 = vadd.f32 %v2338_v10, %v2257_v32 }
 0x21e   :  { %v22574_v9 = vpop.f32.mrf.mxu1 }
 0x21f   :  { %v22581_v46 = vpop.f32.mrf.mxu0  ;;  %v2429_v50 = vadd.f32 %v22574_v9, %v2346_v40 }
 0x220   :  { %v2420_v38 = vpop.f32.mrf.mxu1 }
 0x221   :  { %v2421_v53 = vadd.f32 %v2420_v38, %v2339_v43  ;;  %v2505_v49 = vpop.f32.mrf.mxu0  ;;  %v2512_v12 = vadd.f32 %v22581_v46, %v2429_v50 }
 0x223   :  { %v2506_v7 = vadd.f32 %v2505_v49, %v2421_v53 }
 0x226   :  { %v22588_v6 = vpop.f32.mrf.mxu1 }
 0x227   :  { %v2591_v14 = vadd.f32 %v22588_v6, %v2512_v12 }
 0x228   :  { %v2584_v1 = vpop.f32.mrf.mxu1 }
 0x229   :  { %v2585_v15 = vadd.f32 %v2584_v1, %v2506_v7  ;;  %v2595_v32 = vsel %vm25657_vm3, %v2591_v14, -inf }
 0x22a   :  { %v2599_v9 = vsel %vm2079_vm1, %v2595_v32, -inf }
 0x22b   :  { %v2594_v20 = vsel %vm25653_vm2, %v2585_v15, -inf }
 0x22c   :  { %v2596_v22 = vsel %vm2079_vm1, %v2594_v20, -inf }
 0x22d   :  { %2597 = vmax.xlane.f32.xlu0 %v2596_v22 }
 0x231   :  { %2600 = vmax.xlane.f32.xlu0 %v2599_v9 }
 0x2b6   :  { %v2598_v33 = vpop.xlane.xlu0 %2597 }
 0x2b7   :  { %v2602_v10 = vsub.f32 %v2594_v20, %v2598_v33 }
 0x2b9   :  { %v2604_v12 = vmul.f32 1.442695, %v2602_v10 }
 0x2ba   :  { %v2601_v1 = vpop.xlane.xlu0 %2600 }
 0x2bb   :  { %24746 = vpow2.f32 %v2604_v12  ;;  %v2603_v7 = vsub.f32 %v2595_v32, %v2601_v1 }
 0x2bd   :  { %v2606_v38 = vmul.f32 1.442695, %v2603_v7 }
 0x2bf   :  { %24748 = vpow2.f32 %v2606_v38 }
 0x2c8   :  { %v24747_v40 = vpop.eup %24746 }
 0x2c9   :  { %v2608_v43 = vsel %vm2079_vm1, %v24747_v40, 0.0 }
 0x2ca   :  { %2609 = vadd.xlane.f32.xlu1 %v2608_v43 }
 0x2cc   :  { %v24749_v46 = vpop.eup %24748 }
 0x2cd   :  { %v2611_v48 = vsel %vm2079_vm1, %v24749_v46, 0.0 }
 0x2ce   :  { %2612 = vadd.xlane.f32.xlu1 %v2611_v48 }
 0x353   :  { %v2610_v50 = vpop.xlane.xlu1 %2609 }
 0x354   :  { %24750 = vrcp.f32 %v2610_v50 }
 0x357   :  { %v2613_v53 = vpop.xlane.xlu1 %2612 }
 0x358   :  { %24752 = vrcp.f32 %v2613_v53 }
 0x361   :  { %v24751_v49 = vpop.eup %24750 }
 0x362   :  { %v2615_v6 = vmul.f32 %v24751_v49, %v24747_v40 }
 0x364   :  { %v2619_v18 = vsel %vm2079_vm1, %v2615_v6, 0  ;;  %v970_v6 = vadd.f32 %v25587_v30, %v25585_v13  ;;  %v3646_v30 = vsel %vm2079_vm1, %v25599_v25, 0 }
 0x365   :  { %v24753_v3 = vpop.eup %24752  ;;  %v2691_v14 = vand.u32 4294901760, %v2619_v18 }
 0x366   :  { %v2617_v15 = vmul.f32 %v24753_v3, %v24749_v46  ;;  %v1078_v3 = vadd.f32 %v25589_v44, %v970_v6 }
 0x367   :  { %22600 = vmatprep.mubr.f32.mxu1 %v2691_v14  ;;  %v2692_v20 = vsub.f32 %v2619_v18, %v2691_v14 }
 0x368   :  { %v2622_v22 = vsel %vm2079_vm1, %v2617_v15, 0 }
 0x369   :  { %v2701_v32 = vand.u32 4294901760, %v2622_v22  ;;  %v2693_v9 = vand.u32 4294901760, %v2692_v20 }
 0x36b   :  { %v2702_v33 = vsub.f32 %v2622_v22, %v2701_v32  ;;  %22601 = vmatmul.mubr.f32.vlgmr.msra.gmra.mxu1 %v2701_v32  ;;  %v2694_v10 = vsub.f32 %v2692_v20, %v2693_v9 }
 0x36c   :  { %22611 = vmatpush3.msra.mxu1 %v25621_v47  ;;  %22614 = vmatprep.mubr.f32.mxu1 %v2693_v9 }
 0x36d   :  { %22612 = vmatprep.subr.mxu1 %v25626_v39  ;;  %v2695_v12 = vand.u32 4294901760, %v2694_v10  ;;  %v2703_v1 = vand.u32 4294901760, %v2702_v33 }
 0x36e   :  { %22613 = vmatpush3.msra.mxu1 %v25626_v39 }
 0x36f   :  { %22624 = vmatprep.subr.mxu1 %v25621_v47  ;;  %22593 = vmatprep.mubr.f32.mxu0 %v2695_v12  ;;  %v2704_v7 = vsub.f32 %v2702_v33, %v2703_v1 }
 0x370   :  { %22615 = vmatmul.mubr.f32.vlgmr.msra.gmra.mxu1 %v2703_v1 }
 0x371   :  { %22625 = vmatpush3.msra.mxu1 %v25621_v47  ;;  %22628 = vmatprep.mubr.f32.mxu1 %v2691_v14  ;;  %v2705_v38 = vand.u32 4294901760, %v2704_v7  ;;  %v2078_v47 = vld [vmem:[%s28871_s4 + $0x8] sm:$0xff] }
 0x372   :  { %22626 = vmatprep.subr.mxu1 %v25626_v39 }
 0x373   :  { %22627 = vmatpush3.msra.mxu1 %v25626_v39  ;;  %22594 = vmatmul.mubr.f32.vlgmr.msra.gmra.mxu0 %v2705_v38  ;;  %v2077_v39 = vld [vmem:[%s28871_s4] sm:$0xff] }
 0x374   :  { %22604 = vmatpush3.msra.mxu0 %v25624_v57  ;;  %22629 = vmatmul.mubr.f32.vlgmr.msra.gmra.mxu1 %v2701_v32  ;;  %v25688_v57 = vand.u32 4294901760, %v2078_v47 }
 0x375   :  { %22605 = vmatprep.subr.mxu0 %v25633_v5  ;;  %22607 = vmatprep.mubr.f32.mxu0 %v2692_v20  ;;  %v1182_v20 = vadd.f32 %v25594_v37, %v1078_v3 }
 0x376   :  { %22606 = vmatpush3.msra.mxu0 %v25633_v5  ;;  %v25694_v5 = vsub.f32 %v2078_v47, %v25688_v57 }
 0x377   :  { %22617 = vmatprep.subr.mxu0 %v25636_v26  ;;  %22608 = vmatmul.mubr.f32.vlgmr.msra.gmra.mxu0 %v2702_v33  ;;  %v296_v33 = vadd.f32 %v25562_v23, %v25560_v4 }
 0x378   :  { %22618 = vmatpush3.msra.mxu0 %v25636_v26  ;;  %22621 = vmatprep.mubr.f32.mxu0 %v2691_v14  ;;  %v25696_v26 = vand.u32 4294901760, %v2077_v39 }
 0x379   :  { %22619 = vmatprep.subr.mxu0 %v25643_v59  ;;  %v404_v37 = vadd.f32 %v25564_v42, %v296_v33 }
 0x37a   :  { %22620 = vmatpush3.msra.mxu0 %v25643_v59  ;;  %v25701_v59 = vand.u32 4294901760, %v25694_v5  ;;  %v25704_v40 = vsub.f32 %v2077_v39, %v25696_v26 }
 0x37b   :  { %22622 = vmatmul.mubr.f32.vlgmr.msra.gmra.mxu0 %v2701_v32  ;;  %22631 = vmatprep.subr.mxu0 %v25688_v57  ;;  %v1297_v32 = vadd.f32 %v25608_v31, %v1182_v20 }
 0x37c   :  { %22632 = vmatpush3.msra.mxu0 %v25688_v57  ;;  %v3251_v43 = vsub.f32 %v25694_v5, %v25701_v59  ;;  %v25711_v46 = vand.u32 4294901760, %v25704_v40 }
 0x37d   :  { %22633 = vmatprep.subr.mxu0 %v25696_v26  ;;  %v1394_v1 = vadd.f32 %v25603_v29, %v1297_v32  ;;  %v508_v29 = vadd.f32 %v25566_v17, %v404_v37  ;;  %v3640_v37 = vsel %vm2079_vm1, %v25571_v55, 0 }
 0x37e   :  { %22634 = vmatpush3.msra.mxu0 %v25696_v26  ;;  %v25714_v48 = vand.u32 4294901760, %v3251_v43  ;;  %v3258_v50 = vsub.f32 %v25704_v40, %v25711_v46  ;;  %v25736_v43 = vand.u32 4294901760, %v3646_v30 }
 0x37f   :  { %22645 = vmatprep.subr.mxu0 %v25694_v5  ;;  %v3643_v4 = vsel %vm2079_vm1, %v1394_v1, 0  ;;  %v623_v25 = vadd.f32 %v25581_v61, %v508_v29  ;;  %v25783_v29 = vand.u32 4294901760, %v3640_v37 }
 0x380   :  { %22638 = vmatprep.subr.mxu1 %v25714_v48  ;;  %v25719_v53 = vand.u32 4294901760, %v3258_v50  ;;  %v25741_v3 = vand.u32 4294901760, %v3643_v4  ;;  %v25744_v42 = vsub.f32 %v3646_v30, %v25736_v43 }
 0x381   :  { %22639 = vmatpush3.msra.mxu1 %v25714_v48 }
 0x382   :  { %22640 = vmatprep.subr.mxu1 %v25719_v53 }
 0x383   :  { %22641 = vmatpush3.msra.mxu1 %v25719_v53 }
 0x384   :  { %22652 = vmatprep.subr.mxu1 %v25688_v57 }
 0x42b   :  { %v22602_v49 = vpop.f32.mrf.mxu1 }
 0x42d   :  { %v2788_v18 = vpop.f32.mrf.mxu1 }
 0x430   :  { %v22616_v14 = vpop.f32.mrf.mxu1 }
 0x432   :  { %v2952_v10 = vpop.f32.mrf.mxu1 }
 0x433   :  { %v22595_v15 = vpop.f32.mrf.mxu0 }
 0x434   :  { %v2795_v9 = vadd.f32 %v22602_v49, %v22595_v15  ;;  %v22630_v39 = vpop.f32.mrf.mxu1 }
 0x435   :  { %v2697_v22 = vpop.f32.mrf.mxu0 }
 0x436   :  { %v2789_v7 = vadd.f32 %v2788_v18, %v2697_v22  ;;  %v720_v22 = vadd.f32 %v25583_v2, %v623_v25 }
 0x437   :  { %v22609_v12 = vpop.f32.mrf.mxu0 }
 0x438   :  { %v2878_v13 = vadd.f32 %v22609_v12, %v2795_v9  ;;  %v25752_v9 = vsub.f32 %v3643_v4, %v25741_v3  ;;  %v25758_v12 = vand.u32 4294901760, %v25744_v42  ;;  %v3637_v1 = vsel %vm2079_vm1, %v720_v22, 0 }
 0x439   :  { %v2870_v44 = vpop.f32.mrf.mxu0 }
 0x43a   :  { %v2871_v38 = vadd.f32 %v2870_v44, %v2789_v7  ;;  %v2961_v47 = vadd.f32 %v22616_v14, %v2878_v13  ;;  %v3116_v14 = vpop.f32.mrf.mxu1  ;;  %v25764_v30 = vand.u32 4294901760, %v25752_v9  ;;  %v25766_v44 = vand.u32 4294901760, %v3637_v1 }
 0x43b   :  { %v22623_v31 = vpop.f32.mrf.mxu0 }
 0x43c   :  { %v3044_v23 = vadd.f32 %v22623_v31, %v2961_v47  ;;  %v2953_v50 = vadd.f32 %v2952_v10, %v2871_v38  ;;  %v1644_v10 = vadd.f32 %v25612_v24, %v25615_v58  ;;  %v3767_v58 = vsub.f32 %v25744_v42, %v25758_v12 }
 0x43d   :  { %v3037_v49 = vpop.f32.mrf.mxu0  ;;  %v3716_v31 = vsub.f32 %v3637_v1, %v25766_v44 }
 0x43e   :  { %v3123_v6 = vadd.f32 %v22630_v39, %v3044_v23  ;;  %v3038_v18 = vadd.f32 %v3037_v49, %v2953_v50  ;;  %v1752_v24 = vadd.f32 %v25619_v28, %v1644_v10  ;;  %v3774_v39 = vsub.f32 %v25752_v9, %v25764_v30 }
 0x43f   :  { %v3768_v23 = vand.u32 4294901760, %v3767_v58 }
 0x440   :  { %v3130_v15 = vsel %vm2079_vm1, %v3123_v6, 0  ;;  %v3117_v20 = vadd.f32 %v3116_v14, %v3038_v18  ;;  %v1856_v4 = vadd.f32 %v25617_v0, %v1752_v24  ;;  %v3775_v55 = vand.u32 4294901760, %v3774_v39 }
 0x441   :  { %v25748_v32 = vand.u32 4294901760, %v3130_v15  ;;  %v3717_v0 = vand.u32 4294901760, %v3716_v31  ;;  %v3726_v6 = vsub.f32 %v3640_v37, %v25783_v29  ;;  %v25793_v18 = vand.u32 4294901760, %v25629_v34 }
 0x442   :  { %v3127_v17 = vsel %vm2079_vm1, %v3117_v20, 0  ;;  %v1971_v49 = vadd.f32 %v25649_v11, %v1856_v4 }
 0x443   :  { %v3210_v61 = vsub.f32 %v3130_v15, %v25748_v32  ;;  %v3199_v33 = vand.u32 4294901760, %v3127_v17  ;;  %v3718_v25 = vsub.f32 %v3716_v31, %v3717_v0  ;;  %v3727_v14 = vand.u32 4294901760, %v3726_v6 }
 0x444   :  { %v2068_v11 = vadd.f32 %v25651_v54, %v1971_v49  ;;  %v25803_v15 = vsub.f32 %v25629_v34, %v25793_v18 }
 0x445   :  { %v3200_v7 = vsub.f32 %v3127_v17, %v3199_v33  ;;  %22642 = vmatprep.mubr.f32.mxu1 %v3199_v33  ;;  %v3211_v2 = vand.u32 4294901760, %v3210_v61  ;;  %v3719_v20 = vand.u32 4294901760, %v3718_v25  ;;  %v3728_v22 = vsub.f32 %v3726_v6, %v3727_v14 }
 0x446   :  { %22643 = vmatmul.mubr.f32.vlgmr.msra.gmra.mxu1 %v25748_v32  ;;  %v25807_v54 = vand.u32 4294901760, %v2068_v11  ;;  %v25815_v34 = vand.u32 4294901760, %v25803_v15 }
 0x447   :  { %22653 = vmatpush3.msra.mxu1 %v25688_v57  ;;  %v3201_v13 = vand.u32 4294901760, %v3200_v7  ;;  %v3212_v38 = vsub.f32 %v3210_v61, %v3211_v2 }
 0x448   :  { %22654 = vmatprep.subr.mxu1 %v25696_v26  ;;  %v25818_v17 = vsub.f32 %v2068_v11, %v25807_v54 }
 0x449   :  { %22655 = vmatpush3.msra.mxu1 %v25696_v26  ;;  %22656 = vmatprep.mubr.f32.mxu1 %v3201_v13  ;;  %v3202_v47 = vsub.f32 %v3200_v7, %v3201_v13  ;;  %v3213_v50 = vand.u32 4294901760, %v3212_v38 }
 0x44a   :  { %22666 = vmatprep.subr.mxu1 %v25688_v57  ;;  %22657 = vmatmul.mubr.f32.vlgmr.msra.gmra.mxu1 %v3211_v2 }
 0x44b   :  { %22667 = vmatpush3.msra.mxu1 %v25688_v57  ;;  %22670 = vmatprep.mubr.f32.mxu1 %v3199_v33  ;;  %v3203_v28 = vand.u32 4294901760, %v3202_v47 }
 0x44c   :  { %22668 = vmatprep.subr.mxu1 %v25696_v26 }
 0x44d   :  { %22669 = vmatpush3.msra.mxu1 %v25696_v26  ;;  %22635 = vmatprep.mubr.f32.mxu0 %v3203_v28 }
 0x44e   :  { %22680 = vmatprep.subr.mxu1 %v3768_v23  ;;  %22636 = vmatmul.mubr.f32.vlgmr.msra.gmra.mxu0 %v3213_v50 }
 0x44f   :  { %22646 = vmatpush3.msra.mxu0 %v25694_v5  ;;  %22671 = vmatmul.mubr.f32.vlgmr.msra.gmra.mxu1 %v25748_v32 }
 0x450   :  { %22681 = vmatpush3.xpose.msra.mxu1 %v3768_v23  ;;  %22647 = vmatprep.subr.mxu0 %v25704_v40 }
 0x451   :  { %22649 = vmatprep.mubr.f32.mxu0 %v3200_v7  ;;  %22682 = vmatprep.subr.mxu1 %v3775_v55 }
 0x452   :  { %22684 = vmatprep.mubr.f32.mxu1 %v25766_v44  ;;  %22648 = vmatpush3.msra.mxu0 %v25704_v40 }
 0x453   :  { %22659 = vmatprep.subr.mxu0 %v25701_v59  ;;  %22650 = vmatmul.mubr.f32.vlgmr.msra.gmra.mxu0 %v3210_v61  ;;  %v4299_v61 = vsub.f32 %v25803_v15, %v25815_v34 }
 0x454   :  { %22660 = vmatpush3.msra.mxu0 %v25701_v59  ;;  %22683 = vmatpush3.xpose.msra.mxu1 %v3775_v55 }
 0x455   :  { %22661 = vmatprep.subr.mxu0 %v25711_v46  ;;  %22663 = vmatprep.mubr.f32.mxu0 %v3199_v33  ;;  %v25828_v33 = vand.u32 4294901760, %v25818_v17  ;;  %v4300_v10 = vand.u32 4294901760, %v4299_v61 }
 0x456   :  { %22694 = vmatprep.subr.mxu1 %v25736_v43  ;;  %22662 = vmatpush3.msra.mxu0 %v25711_v46 }
 0x457   :  { %22673 = vmatprep.subr.mxu0 %v25736_v43  ;;  %22685 = vmatmul.mubr.f32.vlgmr.msra.gmra.mxu1 %v25783_v29  ;;  %v4306_v1 = vsub.f32 %v25818_v17, %v25828_v33 }
 0x458   :  { %22664 = vmatmul.mubr.f32.vlgmr.msra.gmra.mxu0 %v25748_v32  ;;  %22695 = vmatpush3.xpose.msra.mxu1 %v25736_v43  ;;  %v3729_v32 = vand.u32 4294901760, %v3728_v22 }
 0x459   :  { %22674 = vmatpush3.xpose.msra.mxu0 %v25736_v43  ;;  %22698 = vmatprep.mubr.f32.mxu1 %v3717_v0 }
 0x45a   :  { %22675 = vmatprep.subr.mxu0 %v25741_v3  ;;  %22677 = vmatprep.mubr.f32.mxu0 %v3719_v20 }
 0x45b   :  { %22696 = vmatprep.subr.mxu1 %v25741_v3 }
 0x45c   :  { %22697 = vmatpush3.xpose.msra.mxu1 %v25741_v3 }
 0x45d   :  { %22676 = vmatpush3.xpose.msra.mxu0 %v25741_v3  ;;  %22708 = vmatprep.subr.mxu1 %v25736_v43 }
 0x45e   :  { %22687 = vmatprep.subr.mxu0 %v25744_v42 }
 0x45f   :  { %22699 = vmatmul.mubr.f32.vlgmr.msra.gmra.mxu1 %v3727_v14 }
 0x460   :  { %22678 = vmatmul.mubr.f32.vlgmr.msra.gmra.mxu0 %v3729_v32  ;;  %22709 = vmatpush3.xpose.msra.mxu1 %v25736_v43  ;;  %v4307_v43 = vand.u32 4294901760, %v4306_v1 }
 0x461   :  { %22688 = vmatpush3.xpose.msra.mxu0 %v25744_v42  ;;  %22691 = vmatprep.mubr.f32.mxu0 %v3716_v31 }
 0x462   :  { %22712 = vmatprep.mubr.f32.mxu1 %v25766_v44  ;;  %22689 = vmatprep.subr.mxu0 %v25752_v9 }
 0x463   :  { %22710 = vmatprep.subr.mxu1 %v25741_v3 }
 0x464   :  { %22711 = vmatpush3.xpose.msra.mxu1 %v25741_v3 }
 0x465   :  { %22690 = vmatpush3.xpose.msra.mxu0 %v25752_v9  ;;  %22722 = vmatprep.subr.mxu1 %v4300_v10 }
 0x466   :  { %22701 = vmatprep.subr.mxu0 %v25758_v12 }
 0x467   :  { %22713 = vmatmul.mubr.f32.vlgmr.msra.gmra.mxu1 %v25783_v29 }
 0x468   :  { %22692 = vmatmul.mubr.f32.vlgmr.msra.gmra.mxu0 %v3726_v6  ;;  %22723 = vmatpush3.msra.mxu1 %v4300_v10 }
 0x469   :  { %22702 = vmatpush3.xpose.msra.mxu0 %v25758_v12  ;;  %22705 = vmatprep.mubr.f32.mxu0 %v25766_v44 }
 0x46a   :  { %22703 = vmatprep.subr.mxu0 %v25764_v30  ;;  %22724 = vmatprep.subr.mxu1 %v4307_v43 }
 0x46b   :  { %22725 = vmatpush3.msra.mxu1 %v4307_v43 }
 0x46c   :  { %22736 = vmatprep.subr.mxu1 %v25793_v18 }
 0x46d   :  { %22704 = vmatpush3.xpose.msra.mxu0 %v25764_v30 }
 0x46e   :  { %22715 = vmatprep.subr.mxu0 %v25793_v18 }
 0x470   :  { %22706 = vmatmul.mubr.f32.vlgmr.msra.gmra.mxu0 %v25783_v29 }
 0x471   :  { %22716 = vmatpush3.msra.mxu0 %v25793_v18 }
 0x472   :  { %22717 = vmatprep.subr.mxu0 %v25807_v54 }
 0x473   :  { %22718 = vmatpush3.msra.mxu0 %v25807_v54 }
 0x474   :  { %22729 = vmatprep.subr.mxu0 %v25803_v15 }
 0x506   :  { %v22644_v3 = vpop.f32.mrf.mxu1 }
 0x508   :  { %v25851_v42 = vpop.f32.mrf.mxu1 }
 0x509   :  { %28899 = vst [vmem:[#allocation9_spill] sm:$0xff] %v25851_v42 }
 0x50a   :  { %v22658_v2 = vpop.f32.mrf.mxu1 }
 0x50c   :  { %v25857_v24 = vpop.f32.mrf.mxu1 }
 0x50d   :  { %28902 = vst [vmem:[#allocation12_spill] sm:$0xff] %v25857_v24 }
 0x50e   :  { %v22637_v9 = vpop.f32.mrf.mxu0 }
 0x50f   :  { %v3303_v12 = vadd.f32 %v22644_v3, %v22637_v9  ;;  %v22672_v37 = vpop.f32.mrf.mxu1 }
 0x510   :  { %v25853_v7 = vpop.f32.mrf.mxu0 }
 0x511   :  { %28900 = vst [vmem:[#allocation10_spill] sm:$0xff] %v25853_v7  ;;  %v25863_v31 = vpop.f32.mrf.mxu1 }
 0x512   :  { %28904 = vst [vmem:[#allocation14_spill] sm:$0xff] %v25863_v31 }
 0x513   :  { %v22651_v13 = vpop.f32.mrf.mxu0 }
 0x514   :  { %v3386_v30 = vadd.f32 %v22651_v13, %v3303_v12 }
 0x515   :  { %v25855_v44 = vpop.f32.mrf.mxu0 }
 0x516   :  { %28901 = vst [vmem:[#allocation11_spill] sm:$0xff] %v25855_v44  ;;  %v3469_v58 = vadd.f32 %v22658_v2, %v3386_v30 }
 0x517   :  { %v22686_v23 = vpop.f32.mrf.mxu1 }
 0x518   :  { %v22665_v38 = vpop.f32.mrf.mxu0 }
 0x519   :  { %v3552_v47 = vadd.f32 %v22665_v38, %v3469_v58  ;;  %v3812_v29 = vpop.f32.mrf.mxu1 }
 0x51a   :  { %v25861_v39 = vpop.f32.mrf.mxu0 }
 0x51b   :  { %v25859_v28 = vadd.f32 %v22672_v37, %v3552_v47  ;;  %28903 = vst [vmem:[#allocation13_spill] sm:$0xff] %v25861_v39 }
 0x51f   :  { %v22700_v0 = vpop.f32.mrf.mxu1 }
 0x520   :  { %v22679_v4 = vpop.f32.mrf.mxu0 }
 0x521   :  { %v3819_v49 = vadd.f32 %v22686_v23, %v22679_v4  ;;  %v3976_v20 = vpop.f32.mrf.mxu1 }
 0x522   :  { %v3721_v50 = vpop.f32.mrf.mxu0 }
 0x523   :  { %v3813_v11 = vadd.f32 %v3812_v29, %v3721_v50 }
 0x527   :  { %v22714_v32 = vpop.f32.mrf.mxu1 }
 0x528   :  { %v22693_v55 = vpop.f32.mrf.mxu0 }
 0x529   :  { %v3902_v25 = vadd.f32 %v22693_v55, %v3819_v49  ;;  %v4140_v12 = vpop.f32.mrf.mxu1 }
 0x52a   :  { %v3894_v6 = vpop.f32.mrf.mxu0 }
 0x52b   :  { %v3895_v14 = vadd.f32 %v3894_v6, %v3813_v11  ;;  %v3985_v22 = vadd.f32 %v22700_v0, %v3902_v25 }
 0x52d   :  { %v3977_v1 = vadd.f32 %v3976_v20, %v3895_v14 }
 0x530   :  { %v22707_v61 = vpop.f32.mrf.mxu0 }
 0x531   :  { %v4068_v10 = vadd.f32 %v22707_v61, %v3985_v22 }
 0x532   :  { %v4061_v43 = vpop.f32.mrf.mxu0 }
 0x533   :  { %v4147_v3 = vadd.f32 %v22714_v32, %v4068_v10  ;;  %v4062_v9 = vadd.f32 %v4061_v43, %v3977_v1 }
 0x535   :  { %v4151_v2 = vsel %vm25657_vm3, %v4147_v3, -inf  ;;  %v4141_v13 = vadd.f32 %v4140_v12, %v4062_v9 }
 0x536   :  { %v4155_v30 = vsel %vm2079_vm1, %v4151_v2, -inf }
 0x537   :  { %4156 = vmax.xlane.f32.xlu1 %v4155_v30  ;;  %v4150_v58 = vsel %vm25653_vm2, %v4141_v13, -inf }
 0x538   :  { %v4152_v38 = vsel %vm2079_vm1, %v4150_v58, -inf }
 0x539   :  { %4153 = vmax.xlane.f32.xlu0 %v4152_v38 }
 0x5c0   :  { %v4157_v47 = vpop.xlane.xlu1 %4156 }
 0x5c1   :  { %v4159_v37 = vsub.f32 %v4151_v2, %v4157_v47 }
 0x5c2   :  { %v4154_v4 = vpop.xlane.xlu0 %4153 }
 0x5c3   :  { %v4162_v23 = vmul.f32 1.442695, %v4159_v37  ;;  %v4158_v50 = vsub.f32 %v4150_v58, %v4154_v4 }
 0x5c5   :  { %24754 = vpow2.f32 %v4162_v23  ;;  %v4160_v29 = vmul.f32 1.442695, %v4158_v50  ;;  %v20640_v23 = vld [vmem:[%s28868_s1 + $0x78] sm:$0xff] }
 0x5c7   :  { %24756 = vpow2.f32 %v4160_v29 }
 0x5d2   :  { %v24755_v55 = vpop.eup %24754 }
 0x5d3   :  { %v4167_v49 = vsel %vm2079_vm1, %v24755_v55, 0.0 }
 0x5d4   :  { %v24757_v0 = vpop.eup %24756  ;;  %4168 = vadd.xlane.f32.xlu1 %v4167_v49 }
 0x5d5   :  { %v4164_v6 = vsel %vm2079_vm1, %v24757_v0, 0.0 }
 0x5d6   :  { %4165 = vadd.xlane.f32.xlu0 %v4164_v6 }
 0x65d   :  { %v4169_v11 = vpop.xlane.xlu1 %4168 }
 0x65e   :  { %24758 = vrcp.f32 %v4169_v11  ;;  %v25902_v11 = vand.u32 4294901760, %v20640_v23 }
 0x65f   :  { %v4166_v25 = vpop.xlane.xlu0 %4165 }
 0x660   :  { %24760 = vrcp.f32 %v4166_v25 }
 0x66b   :  { %v24759_v14 = vpop.eup %24758 }
 0x66c   :  { %v4173_v20 = vmul.f32 %v24759_v14, %v24755_v55  ;;  %v20639_v14 = vld [vmem:[%s28868_s1 + $0x70] sm:$0xff] }
 0x66d   :  { %v24761_v22 = vpop.eup %24760 }
 0x66e   :  { %v4171_v32 = vmul.f32 %v24761_v22, %v24757_v0  ;;  %v4178_v61 = vsel %vm2079_vm1, %v4173_v20, 0 }
 0x66f   :  { %v4257_v10 = vand.u32 4294901760, %v4178_v61 }
 0x670   :  { %v4175_v1 = vsel %vm2079_vm1, %v4171_v32, 0 }
 0x671   :  { %v4247_v43 = vand.u32 4294901760, %v4175_v1  ;;  %v4258_v3 = vsub.f32 %v4178_v61, %v4257_v10 }
 0x673   :  { %22726 = vmatprep.mubr.f32.mxu1 %v4247_v43  ;;  %v4248_v9 = vsub.f32 %v4175_v1, %v4247_v43  ;;  %v4259_v12 = vand.u32 4294901760, %v4258_v3  ;;  %v25909_v1 = vsub.f32 %v20640_v23, %v25902_v11 }
 0x674   :  { %22727 = vmatmul.mubr.f32.vlgmr.msra.gmra.mxu1 %v4257_v10 }
 0x675   :  { %22737 = vmatpush3.msra.mxu1 %v25793_v18  ;;  %v4249_v2 = vand.u32 4294901760, %v4248_v9  ;;  %v4260_v13 = vsub.f32 %v4258_v3, %v4259_v12 }
 0x676   :  { %22738 = vmatprep.subr.mxu1 %v25807_v54 }
 0x677   :  { %22739 = vmatpush3.msra.mxu1 %v25807_v54  ;;  %22740 = vmatprep.mubr.f32.mxu1 %v4249_v2  ;;  %v4250_v30 = vsub.f32 %v4248_v9, %v4249_v2  ;;  %v4261_v38 = vand.u32 4294901760, %v4260_v13  ;;  %v20637_v2 = vld [vmem:[%s28868_s1 + $0x60] sm:$0xff] }
 0x678   :  { %22750 = vmatprep.subr.mxu1 %v25793_v18  ;;  %22741 = vmatmul.mubr.f32.vlgmr.msra.gmra.mxu1 %v4259_v12 }
 0x679   :  { %22751 = vmatpush3.msra.mxu1 %v25793_v18  ;;  %22754 = vmatprep.mubr.f32.mxu1 %v4247_v43  ;;  %v4251_v58 = vand.u32 4294901760, %v4250_v30 }
 0x67a   :  { %22752 = vmatprep.subr.mxu1 %v25807_v54 }
 0x67b   :  { %22753 = vmatpush3.msra.mxu1 %v25807_v54  ;;  %22719 = vmatprep.mubr.f32.mxu0 %v4251_v58 }
 0x67c   :  { %22720 = vmatmul.mubr.f32.vlgmr.msra.gmra.mxu0 %v4261_v38  ;;  %22755 = vmatmul.mubr.f32.vlgmr.msra.gmra.mxu1 %v4257_v10  ;;  %v25926_v38 = vand.u32 4294901760, %v25909_v1 }
 0x67d   :  { %22730 = vmatpush3.msra.mxu0 %v25803_v15  ;;  %22733 = vmatprep.mubr.f32.mxu0 %v4248_v9 }
 0x67e   :  { %22731 = vmatprep.subr.mxu0 %v25818_v17  ;;  %22764 = vmatprep.subr.mxu1 %v25714_v48 }
 0x67f   :  { %22732 = vmatpush3.msra.mxu0 %v25818_v17  ;;  %22765 = vmatpush3.msra.mxu1 %v25714_v48 }
 0x680   :  { %22743 = vmatprep.subr.mxu0 %v25815_v34  ;;  %22734 = vmatmul.mubr.f32.vlgmr.msra.gmra.mxu0 %v4258_v3  ;;  %v20638_v3 = vld [vmem:[%s28868_s1 + $0x68] sm:$0xff] }
 0x681   :  { %22744 = vmatpush3.msra.mxu0 %v25815_v34  ;;  %22747 = vmatprep.mubr.f32.mxu0 %v4247_v43  ;;  %v25911_v43 = vand.u32 4294901760, %v20639_v14  ;;  %v25923_v58 = vand.u32 4294901760, %v20638_v3 }
 0x682   :  { %22745 = vmatprep.subr.mxu0 %v25828_v33  ;;  %22766 = vmatprep.subr.mxu1 %v25719_v53 }
 0x683   :  { %22746 = vmatpush3.msra.mxu0 %v25828_v33  ;;  %22767 = vmatpush3.msra.mxu1 %v25719_v53 }
 0x684   :  { %22748 = vmatmul.mubr.f32.vlgmr.msra.gmra.mxu0 %v4257_v10  ;;  %22778 = vmatprep.subr.mxu1 %v25688_v57 }
 0x685   :  { %22757 = vmatprep.subr.mxu0 %v25688_v57 }
 0x686   :  { %22758 = vmatpush3.msra.mxu0 %v25688_v57 }
 0x687   :  { %22759 = vmatprep.subr.mxu0 %v25696_v26 }
 0x688   :  { %22760 = vmatpush3.msra.mxu0 %v25696_v26 }
 0x689   :  { %22771 = vmatprep.subr.mxu0 %v25694_v5 }
 0x734   :  { %v22728_v48 = vpop.f32.mrf.mxu1 }
 0x736   :  { %v4344_v18 = vpop.f32.mrf.mxu1 }
 0x738   :  { %v22742_v15 = vpop.f32.mrf.mxu1 }
 0x73a   :  { %v4508_v53 = vpop.f32.mrf.mxu1 }
 0x73c   :  { %v22721_v54 = vpop.f32.mrf.mxu0  ;;  %v22756_v55 = vpop.f32.mrf.mxu1 }
 0x73d   :  { %v4351_v17 = vadd.f32 %v22728_v48, %v22721_v54  ;;  %v25929_v48 = vsub.f32 %v20639_v14, %v25911_v43 }
 0x73e   :  { %v4253_v34 = vpop.f32.mrf.mxu0  ;;  %v4672_v32 = vpop.f32.mrf.mxu1 }
 0x73f   :  { %v4345_v47 = vadd.f32 %v4344_v18, %v4253_v34  ;;  %v20636_v18 = vld [vmem:[%s28868_s1 + $0x58] sm:$0xff]  ;;  %v25934_v34 = vand.u32 4294901760, %v20637_v2  ;;  %v25950_v23 = vand.u32 4294901760, %v25929_v48 }
 0x740   :  { %v22735_v33 = vpop.f32.mrf.mxu0 }
 0x741   :  { %v4434_v37 = vadd.f32 %v22735_v33, %v4351_v17  ;;  %v20635_v17 = vld [vmem:[%s28868_s1 + $0x50] sm:$0xff]  ;;  %v25942_v33 = vsub.f32 %v20638_v3, %v25923_v58 }
 0x742   :  { %v4426_v4 = vpop.f32.mrf.mxu0 }
 0x743   :  { %v4427_v50 = vadd.f32 %v4426_v4, %v4345_v47  ;;  %v4517_v29 = vadd.f32 %v22742_v15, %v4434_v37  ;;  %v25944_v47 = vand.u32 4294901760, %v20636_v18  ;;  %v5334_v4 = vsub.f32 %v25909_v1, %v25926_v38 }
 0x744   :  { %v22749_v49 = vpop.f32.mrf.mxu0 }
 0x745   :  { %v4600_v0 = vadd.f32 %v22749_v49, %v4517_v29  ;;  %v4509_v6 = vadd.f32 %v4508_v53, %v4427_v50  ;;  %v20634_v50 = vld [vmem:[%s28868_s1 + $0x48] sm:$0xff]  ;;  %v25959_v49 = vand.u32 4294901760, %v20635_v17  ;;  %v25970_v14 = vsub.f32 %v20636_v18, %v25944_v47 }
 0x746   :  { %v4593_v25 = vpop.f32.mrf.mxu0 }
 0x747   :  { %v4679_v20 = vadd.f32 %v22756_v55, %v4600_v0  ;;  %v4594_v22 = vadd.f32 %v4593_v25, %v4509_v6  ;;  %v25957_v55 = vsub.f32 %v20637_v2, %v25934_v34  ;;  %v20633_v0 = vld [vmem:[%s28868_s1 + $0x40] sm:$0xff]  ;;  %v25967_v25 = vand.u32 4294901760, %v25942_v33 }
 0x748   :  { %v25984_v3 = vand.u32 4294901760, %v20633_v0  ;;  %v25991_v2 = vand.u32 4294901760, %v25970_v14 }
 0x749   :  { %v4686_v61 = vsel %vm2079_vm1, %v4679_v20, 0  ;;  %v4673_v10 = vadd.f32 %v4672_v32, %v4594_v22  ;;  %v25972_v20 = vand.u32 4294901760, %v20634_v50  ;;  %v5335_v32 = vand.u32 4294901760, %v5334_v4 }
 0x74a   :  { %v25916_v9 = vand.u32 4294901760, %v4686_v61 }
 0x74b   :  { %v4683_v12 = vsel %vm2079_vm1, %v4673_v10, 0  ;;  %v25982_v10 = vsub.f32 %v20635_v17, %v25959_v49 }
 0x74c   :  { %v4766_v13 = vsub.f32 %v4686_v61, %v25916_v9  ;;  %v4755_v30 = vand.u32 4294901760, %v4683_v12  ;;  %v5341_v61 = vsub.f32 %v25929_v48, %v25950_v23 }
 0x74e   :  { %v4756_v15 = vsub.f32 %v4683_v12, %v4755_v30  ;;  %22768 = vmatprep.mubr.f32.mxu1 %v4755_v30  ;;  %v4767_v54 = vand.u32 4294901760, %v4766_v13  ;;  %v5348_v12 = vsub.f32 %v25942_v33, %v25967_v25  ;;  %v5342_v18 = vand.u32 4294901760, %v5341_v61  ;;  %v20644_v61 = vld [vmem:[%s28869_s2 + $0x58] sm:$0xff] }
 0x74f   :  { %22769 = vmatmul.mubr.f32.vlgmr.msra.gmra.mxu1 %v25916_v9 }
 0x750   :  { %22779 = vmatpush3.msra.mxu1 %v25688_v57  ;;  %v4757_v53 = vand.u32 4294901760, %v4756_v15  ;;  %v4768_v37 = vsub.f32 %v4766_v13, %v4767_v54  ;;  %v5349_v17 = vand.u32 4294901760, %v5348_v12 }
 0x751   :  { %22780 = vmatprep.subr.mxu1 %v25696_v26 }
 0x752   :  { %22781 = vmatpush3.msra.mxu1 %v25696_v26  ;;  %22782 = vmatprep.mubr.f32.mxu1 %v4757_v53  ;;  %v4758_v29 = vsub.f32 %v4756_v15, %v4757_v53  ;;  %v4769_v22 = vand.u32 4294901760, %v4768_v37 }
 0x753   :  { %22783 = vmatmul.mubr.f32.vlgmr.msra.gmra.mxu1 %v4767_v54  ;;  %22792 = vmatprep.subr.mxu1 %v25688_v57  ;;  %v26004_v54 = vsub.f32 %v20633_v0, %v25984_v3  ;;  %v20646_v0 = vld [vmem:[%s28869_s2 + $0x68] sm:$0xff] }
 0x754   :  { %22793 = vmatpush3.msra.mxu1 %v25688_v57  ;;  %22796 = vmatprep.mubr.f32.mxu1 %v4755_v30  ;;  %v4759_v6 = vand.u32 4294901760, %v4758_v29  ;;  %v25979_v57 = vand.u32 4294901760, %v25957_v55 }
 0x755   :  { %22794 = vmatprep.subr.mxu1 %v25696_v26 }
 0x756   :  { %22761 = vmatprep.mubr.f32.mxu0 %v4759_v6  ;;  %22795 = vmatpush3.msra.mxu1 %v25696_v26  ;;  %v25994_v26 = vsub.f32 %v20634_v50, %v25972_v20  ;;  %v28906_v6 = vld [vmem:[#allocation7_spill] sm:$0xff] }
 0x757   :  { %22762 = vmatmul.mubr.f32.vlgmr.msra.gmra.mxu0 %v4769_v22  ;;  %22797 = vmatmul.mubr.f32.vlgmr.msra.gmra.mxu1 %v25916_v9  ;;  %v20645_v22 = vld [vmem:[%s28869_s2 + $0x60] sm:$0xff] }
 0x758   :  { %22772 = vmatpush3.msra.mxu0 %v25694_v5  ;;  %22775 = vmatprep.mubr.f32.mxu0 %v4756_v15  ;;  %v5355_v5 = vsub.f32 %v25957_v55, %v25979_v57  ;;  %v26001_v15 = vand.u32 4294901760, %v25982_v10  ;;  %v26011_v53 = vand.u32 4294901760, %v25994_v26 }
 0x759   :  { %22773 = vmatprep.subr.mxu0 %v25704_v40  ;;  %22821 = vmatprep.subr.mxu1 %v5335_v32 }
 0x75a   :  { %22774 = vmatpush3.msra.mxu0 %v25704_v40  ;;  %22822 = vmatpush3.msra.mxu1 %v5335_v32  ;;  %v5362_v40 = vsub.f32 %v25970_v14, %v25991_v2  ;;  %v5356_v37 = vand.u32 4294901760, %v5355_v5  ;;  %v5376_v4 = vsub.f32 %v25994_v26, %v26011_v53  ;;  %v20641_v5 = vld [vmem:[%s28869_s2 + $0x40] sm:$0xff] }
 0x75b   :  { %22785 = vmatprep.subr.mxu0 %v25701_v59  ;;  %22776 = vmatmul.mubr.f32.vlgmr.msra.gmra.mxu0 %v4766_v13  ;;  %v5369_v13 = vsub.f32 %v25982_v10, %v26001_v15 }
 0x75c   :  { %22786 = vmatpush3.msra.mxu0 %v25701_v59  ;;  %22789 = vmatprep.mubr.f32.mxu0 %v4755_v30  ;;  %v26018_v59 = vand.u32 4294901760, %v26004_v54  ;;  %v5363_v30 = vand.u32 4294901760, %v5362_v40 }
 0x75d   :  { %22787 = vmatprep.subr.mxu0 %v25711_v46  ;;  %22823 = vmatprep.subr.mxu1 %v5342_v18 }
 0x75e   :  { %22788 = vmatpush3.msra.mxu0 %v25711_v46  ;;  %22824 = vmatpush3.msra.mxu1 %v5342_v18  ;;  %v5370_v46 = vand.u32 4294901760, %v5369_v13  ;;  %v5383_v50 = vsub.f32 %v26004_v54, %v26018_v59 }
 0x75f   :  { %22799 = vmatprep.subr.mxu0 %v25902_v11  ;;  %22790 = vmatmul.mubr.f32.vlgmr.msra.gmra.mxu0 %v25916_v9  ;;  %v5377_v9 = vand.u32 4294901760, %v5376_v4 }
 0x760   :  { %22800 = vmatpush3.msra.mxu0 %v25902_v11  ;;  %22825 = vmatprep.subr.mxu1 %v5349_v17  ;;  %v5384_v29 = vand.u32 4294901760, %v5383_v50 }
 0x761   :  { %22801 = vmatprep.subr.mxu0 %v25911_v43  ;;  %22826 = vmatpush3.msra.mxu1 %v5349_v17 }
 0x762   :  { %22802 = vmatpush3.msra.mxu0 %v25911_v43  ;;  %22827 = vmatprep.subr.mxu1 %v5356_v37 }
 0x763   :  { %22803 = vmatprep.subr.mxu0 %v25923_v58  ;;  %22828 = vmatpush3.msra.mxu1 %v5356_v37  ;;  %v26192_v37 = vand.u32 4294901760, %v20641_v5 }
 0x764   :  { %22804 = vmatpush3.msra.mxu0 %v25923_v58  ;;  %22829 = vmatprep.subr.mxu1 %v5363_v30 }
 0x765   :  { %22805 = vmatprep.subr.mxu0 %v25934_v34  ;;  %22830 = vmatpush3.msra.mxu1 %v5363_v30 }
 0x766   :  { %22806 = vmatpush3.msra.mxu0 %v25934_v34  ;;  %22831 = vmatprep.subr.mxu1 %v5370_v46 }
 0x767   :  { %22807 = vmatprep.subr.mxu0 %v25944_v47  ;;  %22832 = vmatpush3.msra.mxu1 %v5370_v46  ;;  %v26215_v46 = vsub.f32 %v20641_v5, %v26192_v37 }
 0x768   :  { %22808 = vmatpush3.msra.mxu0 %v25944_v47  ;;  %22833 = vmatprep.subr.mxu1 %v5377_v9 }
 0x769   :  { %22809 = vmatprep.subr.mxu0 %v25959_v49  ;;  %22834 = vmatpush3.msra.mxu1 %v5377_v9 }
 0x76a   :  { %22810 = vmatpush3.msra.mxu0 %v25959_v49  ;;  %22835 = vmatprep.subr.mxu1 %v5384_v29 }
 0x76b   :  { %22811 = vmatprep.subr.mxu0 %v25972_v20  ;;  %22815 = vmatprep.mubr.f32.mxu0 %v25026_v60 }
 0x76c   :  { %22812 = vmatpush3.msra.mxu0 %v25972_v20  ;;  %22836 = vmatpush3.msra.mxu1 %v5384_v29 }
 0x76d   :  { %22813 = vmatprep.subr.mxu0 %v25984_v3  ;;  %22837 = vmatprep.mubr.f32.mxu1 %v24946_v27 }
 0x76e   :  { %22814 = vmatpush3.msra.mxu0 %v25984_v3  ;;  %22838 = vmatmul.mubr.f32.vlgmr.msra.gmra.mxu1 %v24970_v36 }
 0x76f   :  { %22816 = vmatmul.mubr.f32.vlgmr.msra.gmra.mxu0 %v25032_v63  ;;  %22843 = vmatprep.subr.mxu0 %v25909_v1 }
 0x770   :  { %22865 = vmatprep.subr.mxu1 %v25902_v11  ;;  %22844 = vmatpush3.msra.mxu0 %v25909_v1  ;;  %v20648_v1 = vld [vmem:[%s28869_s2 + $0x78] sm:$0xff] }
 0x771   :  { %22866 = vmatpush3.msra.mxu1 %v25902_v11  ;;  %22845 = vmatprep.subr.mxu0 %v25929_v48 }
 0x772   :  { %22867 = vmatprep.subr.mxu1 %v25911_v43  ;;  %22846 = vmatpush3.msra.mxu0 %v25929_v48  ;;  %v26089_v48 = vand.u32 4294901760, %v20648_v1 }
 0x773   :  { %22868 = vmatpush3.msra.mxu1 %v25911_v43  ;;  %22847 = vmatprep.subr.mxu0 %v25942_v33 }
 0x774   :  { %22869 = vmatprep.subr.mxu1 %v25923_v58  ;;  %22848 = vmatpush3.msra.mxu0 %v25942_v33  ;;  %v20647_v33 = vld [vmem:[%s28869_s2 + $0x70] sm:$0xff] }
 0x775   :  { %22870 = vmatpush3.msra.mxu1 %v25923_v58  ;;  %22849 = vmatprep.subr.mxu0 %v25957_v55 }
 0x776   :  { %22871 = vmatprep.subr.mxu1 %v25934_v34  ;;  %22850 = vmatpush3.msra.mxu0 %v25957_v55  ;;  %v26100_v55 = vand.u32 4294901760, %v20647_v33 }
 0x777   :  { %22872 = vmatpush3.msra.mxu1 %v25934_v34  ;;  %22851 = vmatprep.subr.mxu0 %v25970_v14 }
 0x778   :  { %22873 = vmatprep.subr.mxu1 %v25944_v47  ;;  %22852 = vmatpush3.msra.mxu0 %v25970_v14  ;;  %v26114_v14 = vand.u32 4294901760, %v20646_v0 }
 0x779   :  { %22874 = vmatpush3.msra.mxu1 %v25944_v47  ;;  %22818 = vmatprep.mubr.f32.mxu0 %v25063_v19 }
 0x77a   :  { %22840 = vmatprep.mubr.f32.mxu1 %v25008_v52  ;;  %22853 = vmatprep.subr.mxu0 %v25982_v10 }
 0x77b   :  { %22875 = vmatprep.subr.mxu1 %v25959_v49  ;;  %22819 = vmatmul.mubr.f32.gmra.mxu0 %v25069_v16 }
 0x77c   :  { %22841 = vmatmul.mubr.f32.gmra.mxu1 %v25015_v56  ;;  %22854 = vmatpush3.msra.mxu0 %v25982_v10  ;;  %v20643_v10 = vld [vmem:[%s28869_s2 + $0x50] sm:$0xff] }
 0x77d   :  { %22876 = vmatpush3.msra.mxu1 %v25959_v49  ;;  %22855 = vmatprep.subr.mxu0 %v25994_v26  ;;  %v26163_v18 = vand.u32 4294901760, %v20643_v10 }
 0x77e   :  { %22877 = vmatprep.subr.mxu1 %v25972_v20  ;;  %22856 = vmatpush3.msra.mxu0 %v25994_v26  ;;  %v20642_v26 = vld [vmem:[%s28869_s2 + $0x48] sm:$0xff] }
 0x77f   :  { %22878 = vmatpush3.msra.mxu1 %v25972_v20  ;;  %22857 = vmatprep.subr.mxu0 %v26004_v54 }
 0x780   :  { %22879 = vmatprep.subr.mxu1 %v25984_v3  ;;  %22858 = vmatpush3.msra.mxu0 %v26004_v54 }
 0x781   :  { %22859 = vmatprep.mubr.f32.mxu0 %v24967_v35  ;;  %22880 = vmatpush3.msra.mxu1 %v25984_v3 }
 0x782   :  { %22860 = vmatmul.mubr.f32.vlgmr.msra.gmra.mxu0 %v24989_v45  ;;  %22881 = vmatprep.mubr.f32.mxu1 %v24980_v41 }
 0x783   :  { %22887 = vmatprep.subr.mxu0 %v25926_v38  ;;  %22909 = vmatprep.subr.mxu1 %v25902_v11 }
 0x784   :  { %22882 = vmatmul.mubr.f32.vlgmr.msra.gmra.mxu1 %v25006_v51  ;;  %22888 = vmatpush3.msra.mxu0 %v25926_v38  ;;  %v26108_v38 = vsub.f32 %v20648_v1, %v26089_v48 }
 0x785   :  { %22910 = vmatpush3.msra.mxu1 %v25902_v11  ;;  %22889 = vmatprep.subr.mxu0 %v25950_v23  ;;  %v28905_v11 = vld [vmem:[#allocation6_spill] sm:$0xff] }
 0x786   :  { %22911 = vmatprep.subr.mxu1 %v25911_v43  ;;  %22862 = vmatprep.mubr.f32.mxu0 %v25029_v62  ;;  %v26127_v32 = vand.u32 4294901760, %v26108_v38 }
 0x787   :  { %22890 = vmatpush3.msra.mxu0 %v25950_v23  ;;  %22912 = vmatpush3.msra.mxu1 %v25911_v43  ;;  %v26122_v43 = vsub.f32 %v20647_v33, %v26100_v55  ;;  %v28907_v23 = vld [vmem:[#allocation8_spill] sm:$0xff] }
 0x788   :  { %22863 = vmatmul.mubr.f32.gmra.mxu0 %v28905_v11  ;;  %22891 = vmatprep.subr.mxu0 %v25967_v25 }
 0x789   :  { %22913 = vmatprep.subr.mxu1 %v25923_v58  ;;  %22884 = vmatprep.mubr.f32.mxu1 %v28906_v6  ;;  %v26147_v12 = vand.u32 4294901760, %v26122_v43 }
 0x78a   :  { %22892 = vmatpush3.msra.mxu0 %v25967_v25  ;;  %22914 = vmatpush3.msra.mxu1 %v25923_v58  ;;  %v26134_v25 = vand.u32 4294901760, %v20645_v22  ;;  %v26139_v58 = vsub.f32 %v20646_v0, %v26114_v14  ;;  %v26230_v0 = vand.u32 4294901760, %v26215_v46 }
 0x78b   :  { %22885 = vmatmul.mubr.f32.gmra.mxu1 %v28907_v23  ;;  %22893 = vmatprep.subr.mxu0 %v25979_v57 }
 0x78c   :  { %22915 = vmatprep.subr.mxu1 %v25934_v34  ;;  %22894 = vmatpush3.msra.mxu0 %v25979_v57  ;;  %v26149_v57 = vand.u32 4294901760, %v20644_v61 }
 0x78d   :  { %22916 = vmatpush3.msra.mxu1 %v25934_v34  ;;  %22895 = vmatprep.subr.mxu0 %v25991_v2  ;;  %v6009_v34 = vsub.f32 %v26108_v38, %v26127_v32 }
 0x78e   :  { %22917 = vmatprep.subr.mxu1 %v25944_v47  ;;  %22896 = vmatpush3.msra.mxu0 %v25991_v2  ;;  %v26161_v2 = vsub.f32 %v20645_v22, %v26134_v25  ;;  %v26178_v54 = vsub.f32 %v20644_v61, %v26149_v57 }
 0x78f   :  { %22918 = vmatpush3.msra.mxu1 %v25944_v47  ;;  %22897 = vmatprep.subr.mxu0 %v26001_v15  ;;  %v26168_v47 = vand.u32 4294901760, %v26139_v58  ;;  %v6010_v17 = vand.u32 4294901760, %v6009_v34  ;;  %v6058_v34 = vsub.f32 %v26215_v46, %v26230_v0 }
 0x790   :  { %22919 = vmatprep.subr.mxu1 %v25959_v49  ;;  %22898 = vmatpush3.msra.mxu0 %v26001_v15  ;;  %v6016_v15 = vsub.f32 %v26122_v43, %v26147_v12  ;;  %v26187_v40 = vand.u32 4294901760, %v26161_v2 }
 0x791   :  { %22920 = vmatpush3.msra.mxu1 %v25959_v49  ;;  %22899 = vmatprep.subr.mxu0 %v26011_v53  ;;  %v26180_v49 = vand.u32 4294901760, %v20642_v26  ;;  %v6059_v5 = vand.u32 4294901760, %v6058_v34 }
 0x792   :  { %22921 = vmatprep.subr.mxu1 %v25972_v20  ;;  %22900 = vmatpush3.msra.mxu0 %v26011_v53  ;;  %v26190_v53 = vsub.f32 %v20643_v10, %v26163_v18  ;;  %v6017_v13 = vand.u32 4294901760, %v6016_v15  ;;  %v20654_v15 = vld [vmem:[%s28870_s3 + $0x68] sm:$0xff] }
 0x793   :  { %22922 = vmatpush3.msra.mxu1 %v25972_v20  ;;  %22901 = vmatprep.subr.mxu0 %v26018_v59  ;;  %v6023_v20 = vsub.f32 %v26139_v58, %v26168_v47  ;;  %v26204_v30 = vsub.f32 %v20642_v26, %v26180_v49 }
 0x794   :  { %22923 = vmatprep.subr.mxu1 %v25984_v3  ;;  %22902 = vmatpush3.msra.mxu0 %v26018_v59  ;;  %v26201_v59 = vand.u32 4294901760, %v26178_v54  ;;  %v26212_v4 = vand.u32 4294901760, %v26190_v53 }
 0x795   :  { %22903 = vmatprep.mubr.f32.mxu0 %v24946_v27  ;;  %22924 = vmatpush3.msra.mxu1 %v25984_v3  ;;  %v6030_v3 = vsub.f32 %v26161_v2, %v26187_v40  ;;  %v6024_v50 = vand.u32 4294901760, %v6023_v20  ;;  %v26222_v29 = vand.u32 4294901760, %v26204_v30 }
 0x796   :  { %22904 = vmatmul.mubr.f32.vlgmr.msra.gmra.mxu0 %v24970_v36  ;;  %22925 = vmatprep.mubr.f32.mxu1 %v24946_v27  ;;  %v6037_v9 = vsub.f32 %v26178_v54, %v26201_v59  ;;  %v6044_v33 = vsub.f32 %v26190_v53, %v26212_v4 }
 0x797   :  { %22931 = vmatprep.subr.mxu0 %v26089_v48  ;;  %22953 = vmatprep.subr.mxu1 %v6010_v17  ;;  %v6031_v1 = vand.u32 4294901760, %v6030_v3  ;;  %v6051_v61 = vsub.f32 %v26204_v30, %v26222_v29  ;;  %v20649_v3 = vld [vmem:[%s28870_s3 + $0x40] sm:$0xff] }
 0x798   :  { %22926 = vmatmul.mubr.f32.vlgmr.msra.gmra.mxu1 %v24970_v36  ;;  %22932 = vmatpush3.msra.mxu0 %v26089_v48  ;;  %v6038_v22 = vand.u32 4294901760, %v6037_v9  ;;  %v6045_v10 = vand.u32 4294901760, %v6044_v33 }
 0x799   :  { %22954 = vmatpush3.msra.mxu1 %v6010_v17  ;;  %22933 = vmatprep.subr.mxu0 %v26100_v55  ;;  %v6052_v26 = vand.u32 4294901760, %v6051_v61 }
 0x79a   :  { %22955 = vmatprep.subr.mxu1 %v6017_v13  ;;  %22906 = vmatprep.mubr.f32.mxu0 %v25008_v52 }
 0x79b   :  { %22934 = vmatpush3.msra.mxu0 %v26100_v55  ;;  %22956 = vmatpush3.msra.mxu1 %v6017_v13  ;;  %v20650_v13 = vld [vmem:[%s28870_s3 + $0x48] sm:$0xff] }
 0x79c   :  { %22907 = vmatmul.mubr.f32.gmra.mxu0 %v25015_v56  ;;  %22935 = vmatprep.subr.mxu0 %v26114_v14 }
 0x79d   :  { %22957 = vmatprep.subr.mxu1 %v6024_v50  ;;  %22928 = vmatprep.mubr.f32.mxu1 %v25008_v52 }
 0x79e   :  { %22936 = vmatpush3.msra.mxu0 %v26114_v14  ;;  %22958 = vmatpush3.msra.mxu1 %v6024_v50  ;;  %v26384_v50 = vand.u32 4294901760, %v20650_v13 }
 0x79f   :  { %22929 = vmatmul.mubr.f32.gmra.mxu1 %v25015_v56  ;;  %22937 = vmatprep.subr.mxu0 %v26134_v25 }
 0x7a0   :  { %22959 = vmatprep.subr.mxu1 %v6031_v1  ;;  %22938 = vmatpush3.msra.mxu0 %v26134_v25 }
 0x7a1   :  { %22960 = vmatpush3.msra.mxu1 %v6031_v1  ;;  %22939 = vmatprep.subr.mxu0 %v26149_v57  ;;  %v26398_v1 = vand.u32 4294901760, %v20649_v3 }
 0x7a2   :  { %22961 = vmatprep.subr.mxu1 %v6038_v22  ;;  %22940 = vmatpush3.msra.mxu0 %v26149_v57 }
 0x7a3   :  { %22962 = vmatpush3.msra.mxu1 %v6038_v22  ;;  %22941 = vmatprep.subr.mxu0 %v26163_v18  ;;  %v26410_v22 = vsub.f32 %v20650_v13, %v26384_v50 }
 0x7a4   :  { %22963 = vmatprep.subr.mxu1 %v6045_v10  ;;  %22942 = vmatpush3.msra.mxu0 %v26163_v18 }
 0x7a5   :  { %22964 = vmatpush3.msra.mxu1 %v6045_v10  ;;  %22943 = vmatprep.subr.mxu0 %v26180_v49  ;;  %v26422_v10 = vsub.f32 %v20649_v3, %v26398_v1 }
 0x7a6   :  { %22965 = vmatprep.subr.mxu1 %v6052_v26  ;;  %22944 = vmatpush3.msra.mxu0 %v26180_v49 }
 0x7a7   :  { %22966 = vmatpush3.msra.mxu1 %v6052_v26  ;;  %22945 = vmatprep.subr.mxu0 %v26192_v37 }
 0x7a8   :  { %22967 = vmatprep.subr.mxu1 %v6059_v5  ;;  %22946 = vmatpush3.msra.mxu0 %v26192_v37 }
 0x7a9   :  { %22947 = vmatprep.mubr.f32.mxu0 %v25026_v60  ;;  %22968 = vmatpush3.msra.mxu1 %v6059_v5  ;;  %v26429_v5 = vand.u32 4294901760, %v26410_v22 }
 0x7aa   :  { %22969 = vmatprep.mubr.f32.mxu1 %v24946_v27  ;;  %22948 = vmatmul.mubr.f32.vlgmr.msra.gmra.mxu0 %v25032_v63 }
 0x7ab   :  { %22970 = vmatmul.mubr.f32.vlgmr.msra.gmra.mxu1 %v24970_v36  ;;  %22975 = vmatprep.subr.mxu0 %v26108_v38 }
 0x7ac   :  { %22997 = vmatprep.subr.mxu1 %v26089_v48  ;;  %22976 = vmatpush3.msra.mxu0 %v26108_v38  ;;  %v20656_v38 = vld [vmem:[%s28870_s3 + $0x78] sm:$0xff] }
 0x7ad   :  { %22998 = vmatpush3.msra.mxu1 %v26089_v48  ;;  %22977 = vmatprep.subr.mxu0 %v26122_v43 }
 0x7ae   :  { %22999 = vmatprep.subr.mxu1 %v26100_v55  ;;  %22978 = vmatpush3.msra.mxu0 %v26122_v43  ;;  %v20655_v43 = vld [vmem:[%s28870_s3 + $0x70] sm:$0xff] }
 0x7af   :  { %23000 = vmatpush3.msra.mxu1 %v26100_v55  ;;  %22979 = vmatprep.subr.mxu0 %v26139_v58 }
 0x7b0   :  { %23001 = vmatprep.subr.mxu1 %v26114_v14  ;;  %22980 = vmatpush3.msra.mxu0 %v26139_v58  ;;  %v26302_v58 = vand.u32 4294901760, %v20656_v38 }
 0x7b1   :  { %23002 = vmatpush3.msra.mxu1 %v26114_v14  ;;  %22981 = vmatprep.subr.mxu0 %v26161_v2 }
 0x7b2   :  { %23003 = vmatprep.subr.mxu1 %v26134_v25  ;;  %22982 = vmatpush3.msra.mxu0 %v26161_v2  ;;  %v26308_v2 = vand.u32 4294901760, %v20655_v43 }
 0x7b3   :  { %23004 = vmatpush3.msra.mxu1 %v26134_v25  ;;  %22983 = vmatprep.subr.mxu0 %v26178_v54 }
 0x7b4   :  { %23005 = vmatprep.subr.mxu1 %v26149_v57  ;;  %22984 = vmatpush3.msra.mxu0 %v26178_v54  ;;  %v26325_v54 = vand.u32 4294901760, %v20654_v15 }
 0x7b5   :  { %23006 = vmatpush3.msra.mxu1 %v26149_v57  ;;  %22950 = vmatprep.mubr.f32.mxu0 %v25063_v19 }
 0x7b6   :  { %22972 = vmatprep.mubr.f32.mxu1 %v25008_v52  ;;  %22985 = vmatprep.subr.mxu0 %v26190_v53 }
 0x7b7   :  { %23007 = vmatprep.subr.mxu1 %v26163_v18  ;;  %22951 = vmatmul.mubr.f32.gmra.mxu0 %v25069_v16 }
 0x7b8   :  { %22973 = vmatmul.mubr.f32.gmra.mxu1 %v25015_v56  ;;  %22986 = vmatpush3.msra.mxu0 %v26190_v53  ;;  %v26350_v53 = vsub.f32 %v20654_v15, %v26325_v54  ;;  %v26437_v15 = vand.u32 4294901760, %v26422_v10 }
 0x7b9   :  { %23008 = vmatpush3.msra.mxu1 %v26163_v18  ;;  %22987 = vmatprep.subr.mxu0 %v26204_v30 }
 0x7ba   :  { %23009 = vmatprep.subr.mxu1 %v26180_v49  ;;  %22988 = vmatpush3.msra.mxu0 %v26204_v30  ;;  %v6733_v13 = vsub.f32 %v26422_v10, %v26437_v15 }
 0x7bb   :  { %23010 = vmatpush3.msra.mxu1 %v26180_v49  ;;  %22989 = vmatprep.subr.mxu0 %v26215_v46 }
 0x7bc   :  { %23011 = vmatprep.subr.mxu1 %v26192_v37  ;;  %22990 = vmatpush3.msra.mxu0 %v26215_v46  ;;  %v6734_v3 = vand.u32 4294901760, %v6733_v13 }
 0x7bd   :  { %22991 = vmatprep.mubr.f32.mxu0 %v24967_v35  ;;  %23012 = vmatpush3.msra.mxu1 %v26192_v37 }
 0x7be   :  { %22992 = vmatmul.mubr.f32.vlgmr.msra.gmra.mxu0 %v24989_v45  ;;  %23013 = vmatprep.mubr.f32.mxu1 %v24980_v41 }
 0x7bf   :  { %23019 = vmatprep.subr.mxu0 %v26127_v32  ;;  %23041 = vmatprep.subr.mxu1 %v26089_v48 }
 0x7c0   :  { %23014 = vmatmul.mubr.f32.vlgmr.msra.gmra.mxu1 %v25006_v51  ;;  %23020 = vmatpush3.msra.mxu0 %v26127_v32  ;;  %v20653_v32 = vld [vmem:[%s28870_s3 + $0x60] sm:$0xff] }
 0x7c1   :  { %23042 = vmatpush3.msra.mxu1 %v26089_v48  ;;  %23021 = vmatprep.subr.mxu0 %v26147_v12  ;;  %v26318_v48 = vsub.f32 %v20656_v38, %v26302_v58  ;;  %v26337_v17 = vand.u32 4294901760, %v20653_v32 }
 0x7c2   :  { %23043 = vmatprep.subr.mxu1 %v26100_v55  ;;  %22994 = vmatprep.mubr.f32.mxu0 %v25029_v62 }
 0x7c3   :  { %23022 = vmatpush3.msra.mxu0 %v26147_v12  ;;  %23044 = vmatpush3.msra.mxu1 %v26100_v55  ;;  %v26330_v55 = vsub.f32 %v20655_v43, %v26308_v2  ;;  %v20652_v12 = vld [vmem:[%s28870_s3 + $0x58] sm:$0xff] }
 0x7c4   :  { %22995 = vmatmul.mubr.f32.gmra.mxu0 %v28905_v11  ;;  %23023 = vmatprep.subr.mxu0 %v26168_v47  ;;  %v26352_v20 = vand.u32 4294901760, %v20652_v12 }
 0x7c5   :  { %23045 = vmatprep.subr.mxu1 %v26114_v14  ;;  %23016 = vmatprep.mubr.f32.mxu1 %v28906_v6 }
 0x7c6   :  { %23024 = vmatpush3.msra.mxu0 %v26168_v47  ;;  %23046 = vmatpush3.msra.mxu1 %v26114_v14  ;;  %v26342_v47 = vand.u32 4294901760, %v26318_v48  ;;  %v20651_v14 = vld [vmem:[%s28870_s3 + $0x50] sm:$0xff]  ;;  %v26382_v46 = vsub.f32 %v20652_v12, %v26352_v20  ;;  %v6726_v12 = vsub.f32 %v26410_v22, %v26429_v5 }
 0x7c7   :  { %23017 = vmatmul.mubr.f32.gmra.mxu1 %v28907_v23  ;;  %23025 = vmatprep.subr.mxu0 %v26187_v40  ;;  %v26367_v30 = vand.u32 4294901760, %v20651_v14 }
 0x7c8   :  { %23047 = vmatprep.subr.mxu1 %v26134_v25  ;;  %23026 = vmatpush3.msra.mxu0 %v26187_v40  ;;  %v26357_v40 = vand.u32 4294901760, %v26330_v55  ;;  %v26407_v33 = vand.u32 4294901760, %v26382_v46 }
 0x7c9   :  { %23048 = vmatpush3.msra.mxu1 %v26134_v25  ;;  %23027 = vmatprep.subr.mxu0 %v26201_v59  ;;  %v26365_v25 = vsub.f32 %v20653_v32, %v26337_v17  ;;  %v26396_v9 = vsub.f32 %v20651_v14, %v26367_v30 }
 0x7ca   :  { %23049 = vmatprep.subr.mxu1 %v26149_v57  ;;  %23028 = vmatpush3.msra.mxu0 %v26201_v59  ;;  %v6684_v59 = vsub.f32 %v26318_v48, %v26342_v47  ;;  %v6712_v26 = vsub.f32 %v26382_v46, %v26407_v33 }
 0x7cb   :  { %23050 = vmatpush3.msra.mxu1 %v26149_v57  ;;  %23029 = vmatprep.subr.mxu0 %v26212_v4  ;;  %v26379_v57 = vand.u32 4294901760, %v26350_v53 }
 0x7cc   :  { %23051 = vmatprep.subr.mxu1 %v26163_v18  ;;  %23030 = vmatpush3.msra.mxu0 %v26212_v4  ;;  %v6691_v4 = vsub.f32 %v26330_v55, %v26357_v40  ;;  %v6713_v32 = vand.u32 4294901760, %v6712_v26 }
 0x7cd   :  { %23052 = vmatpush3.msra.mxu1 %v26163_v18  ;;  %23031 = vmatprep.subr.mxu0 %v26222_v29  ;;  %v26393_v18 = vand.u32 4294901760, %v26365_v25 }
 0x7ce   :  { %23053 = vmatprep.subr.mxu1 %v26180_v49  ;;  %23032 = vmatpush3.msra.mxu0 %v26222_v29  ;;  %v6685_v29 = vand.u32 4294901760, %v6684_v59  ;;  %v6692_v61 = vand.u32 4294901760, %v6691_v4  ;;  %v6727_v59 = vand.u32 4294901760, %v6726_v12 }
 0x7cf   :  { %23054 = vmatpush3.msra.mxu1 %v26180_v49  ;;  %23033 = vmatprep.subr.mxu0 %v26230_v0  ;;  %v6698_v49 = vsub.f32 %v26350_v53, %v26379_v57 }
 0x7d0   :  { %23055 = vmatprep.subr.mxu1 %v26192_v37  ;;  %23034 = vmatpush3.msra.mxu0 %v26230_v0  ;;  %v26419_v0 = vand.u32 4294901760, %v26396_v9 }
 0x7d1   :  { %23035 = vmatprep.mubr.f32.mxu0 %v24946_v27  ;;  %23056 = vmatpush3.msra.mxu1 %v26192_v37  ;;  %v6705_v37 = vsub.f32 %v26365_v25, %v26393_v18  ;;  %v6699_v34 = vand.u32 4294901760, %v6698_v49 }
 0x7d2   :  { %23057 = vmatprep.mubr.f32.mxu1 %v24946_v27  ;;  %23036 = vmatmul.mubr.f32.vlgmr.msra.gmra.mxu0 %v24970_v36  ;;  %v6719_v43 = vsub.f32 %v26396_v9, %v26419_v0 }
 0x7d3   :  { %23058 = vmatmul.mubr.f32.vlgmr.msra.gmra.mxu1 %v24970_v36  ;;  %23038 = vmatprep.mubr.f32.mxu0 %v25008_v52  ;;  %v6706_v38 = vand.u32 4294901760, %v6705_v37 }
 0x7d4   :  { %23060 = vmatprep.mubr.f32.mxu1 %v25008_v52  ;;  %23085 = vmatprep.subr.mxu1 %v6685_v29  ;;  %v6720_v14 = vand.u32 4294901760, %v6719_v43 }
 0x7d5   :  { %23086 = vmatpush3.msra.mxu1 %v6685_v29  ;;  %23063 = vmatprep.subr.mxu0 %v26302_v58 }
 0x7d6   :  { %23039 = vmatmul.mubr.f32.gmra.mxu0 %v25015_v56  ;;  %23087 = vmatprep.subr.mxu1 %v6692_v61 }
 0x7d7   :  { %23061 = vmatmul.mubr.f32.gmra.mxu1 %v25015_v56  ;;  %23064 = vmatpush3.msra.mxu0 %v26302_v58 }
 0x7d8   :  { %23088 = vmatpush3.msra.mxu1 %v6692_v61  ;;  %23065 = vmatprep.subr.mxu0 %v26308_v2 }
 0x7d9   :  { %23089 = vmatprep.subr.mxu1 %v6699_v34  ;;  %23066 = vmatpush3.msra.mxu0 %v26308_v2 }
 0x7da   :  { %23090 = vmatpush3.msra.mxu1 %v6699_v34  ;;  %23067 = vmatprep.subr.mxu0 %v26325_v54 }
 0x7db   :  { %23091 = vmatprep.subr.mxu1 %v6706_v38  ;;  %23068 = vmatpush3.msra.mxu0 %v26325_v54 }
 0x7dc   :  { %23092 = vmatpush3.msra.mxu1 %v6706_v38  ;;  %23069 = vmatprep.subr.mxu0 %v26337_v17 }
 0x7dd   :  { %23093 = vmatprep.subr.mxu1 %v6713_v32  ;;  %23070 = vmatpush3.msra.mxu0 %v26337_v17 }
 0x7de   :  { %23094 = vmatpush3.msra.mxu1 %v6713_v32  ;;  %23071 = vmatprep.subr.mxu0 %v26352_v20 }
 0x7df   :  { %23095 = vmatprep.subr.mxu1 %v6720_v14  ;;  %23101 = vmatprep.mubr.f32.mxu1 %v24946_v27 }
 0x7e0   :  { %23096 = vmatpush3.msra.mxu1 %v6720_v14  ;;  %23072 = vmatpush3.msra.mxu0 %v26352_v20 }
 0x7e1   :  { %23097 = vmatprep.subr.mxu1 %v6727_v59  ;;  %23073 = vmatprep.subr.mxu0 %v26367_v30 }
 0x7e2   :  { %23098 = vmatpush3.msra.mxu1 %v6727_v59  ;;  %23074 = vmatpush3.msra.mxu0 %v26367_v30 }
 0x7e3   :  { %23099 = vmatprep.subr.mxu1 %v6734_v3  ;;  %23075 = vmatprep.subr.mxu0 %v26384_v50 }
 0x7e4   :  { %23100 = vmatpush3.msra.mxu1 %v6734_v3  ;;  %23076 = vmatpush3.msra.mxu0 %v26384_v50 }
 0x7e5   :  { %23129 = vmatprep.subr.mxu1 %v26302_v58  ;;  %23102 = vmatmul.mubr.f32.vlgmr.msra.gmra.mxu1 %v24970_v36 }
 0x7e6   :  { %23130 = vmatpush3.msra.mxu1 %v26302_v58  ;;  %23077 = vmatprep.subr.mxu0 %v26398_v1 }
 0x7e7   :  { %23131 = vmatprep.subr.mxu1 %v26308_v2  ;;  %23078 = vmatpush3.msra.mxu0 %v26398_v1 }
 0x7e8   :  { %23132 = vmatpush3.msra.mxu1 %v26308_v2  ;;  %23079 = vmatprep.mubr.f32.mxu0 %v25026_v60 }
 0x7e9   :  { %23133 = vmatprep.subr.mxu1 %v26325_v54  ;;  %23107 = vmatprep.subr.mxu0 %v26318_v48 }
 0x7ea   :  { %23134 = vmatpush3.msra.mxu1 %v26325_v54  ;;  %23080 = vmatmul.mubr.f32.vlgmr.msra.gmra.mxu0 %v25032_v63 }
 0x7eb   :  { %23135 = vmatprep.subr.mxu1 %v26337_v17  ;;  %23108 = vmatpush3.msra.mxu0 %v26318_v48 }
 0x7ec   :  { %23136 = vmatpush3.msra.mxu1 %v26337_v17  ;;  %23109 = vmatprep.subr.mxu0 %v26330_v55 }
 0x7ed   :  { %23137 = vmatprep.subr.mxu1 %v26352_v20  ;;  %23110 = vmatpush3.msra.mxu0 %v26330_v55 }
 0x7ee   :  { %23138 = vmatpush3.msra.mxu1 %v26352_v20  ;;  %23104 = vmatprep.mubr.f32.mxu1 %v25008_v52 }
 0x7ef   :  { %23139 = vmatprep.subr.mxu1 %v26367_v30  ;;  %23111 = vmatprep.subr.mxu0 %v26350_v53 }
 0x7f0   :  { %23140 = vmatpush3.msra.mxu1 %v26367_v30  ;;  %23112 = vmatpush3.msra.mxu0 %v26350_v53 }
 0x7f1   :  { %23141 = vmatprep.subr.mxu1 %v26384_v50  ;;  %23105 = vmatmul.mubr.f32.gmra.mxu1 %v25015_v56 }
 0x7f2   :  { %23142 = vmatpush3.msra.mxu1 %v26384_v50  ;;  %23113 = vmatprep.subr.mxu0 %v26365_v25 }
 0x7f3   :  { %23143 = vmatprep.subr.mxu1 %v26398_v1  ;;  %23114 = vmatpush3.msra.mxu0 %v26365_v25 }
 0x7f4   :  { %23144 = vmatpush3.msra.mxu1 %v26398_v1  ;;  %23115 = vmatprep.subr.mxu0 %v26382_v46 }
 0x7f5   :  { %23145 = vmatprep.mubr.f32.mxu1 %v24980_v41  ;;  %23173 = vmatprep.subr.mxu1 %v26302_v58 }
 0x7f6   :  { %23116 = vmatpush3.msra.mxu0 %v26382_v46  ;;  %23146 = vmatmul.mubr.f32.vlgmr.msra.gmra.mxu1 %v25006_v51 }
 0x7f7   :  { %23174 = vmatpush3.msra.mxu1 %v26302_v58  ;;  %23117 = vmatprep.subr.mxu0 %v26396_v9 }
 0x7f8   :  { %23175 = vmatprep.subr.mxu1 %v26308_v2  ;;  %23118 = vmatpush3.msra.mxu0 %v26396_v9 }
 0x7f9   :  { %23176 = vmatpush3.msra.mxu1 %v26308_v2  ;;  %23082 = vmatprep.mubr.f32.mxu0 %v25063_v19 }
 0x7fa   :  { %23119 = vmatprep.subr.mxu0 %v26410_v22  ;;  %23177 = vmatprep.subr.mxu1 %v26325_v54 }
 0x7fb   :  { %23083 = vmatmul.mubr.f32.gmra.mxu0 %v25069_v16  ;;  %23178 = vmatpush3.msra.mxu1 %v26325_v54 }
 0x7fc   :  { %23120 = vmatpush3.msra.mxu0 %v26410_v22  ;;  %23179 = vmatprep.subr.mxu1 %v26337_v17 }
 0x7fd   :  { %23121 = vmatprep.subr.mxu0 %v26422_v10  ;;  %23180 = vmatpush3.msra.mxu1 %v26337_v17 }
 0x7fe   :  { %23122 = vmatpush3.msra.mxu0 %v26422_v10  ;;  %23123 = vmatprep.mubr.f32.mxu0 %v24967_v35 }
 0x7ff   :  { %23151 = vmatprep.subr.mxu0 %v26342_v47  ;;  %23181 = vmatprep.subr.mxu1 %v26352_v20 }
 0x800   :  { %23124 = vmatmul.mubr.f32.vlgmr.msra.gmra.mxu0 %v24989_v45  ;;  %23182 = vmatpush3.msra.mxu1 %v26352_v20 }
 0x801   :  { %23152 = vmatpush3.msra.mxu0 %v26342_v47  ;;  %23183 = vmatprep.subr.mxu1 %v26367_v30 }
 0x802   :  { %23153 = vmatprep.subr.mxu0 %v26357_v40  ;;  %23148 = vmatprep.mubr.f32.mxu1 %v28906_v6 }
 0x803   :  { %23154 = vmatpush3.msra.mxu0 %v26357_v40  ;;  %23184 = vmatpush3.msra.mxu1 %v26367_v30 }
 0x804   :  { %23149 = vmatmul.mubr.f32.gmra.mxu1 %v28907_v23  ;;  %23155 = vmatprep.subr.mxu0 %v26379_v57 }
 0x805   :  { %23185 = vmatprep.subr.mxu1 %v26384_v50  ;;  %23156 = vmatpush3.msra.mxu0 %v26379_v57 }
 0x806   :  { %23186 = vmatpush3.msra.mxu1 %v26384_v50  ;;  %23157 = vmatprep.subr.mxu0 %v26393_v18 }
 0x807   :  { %23187 = vmatprep.subr.mxu1 %v26398_v1  ;;  %23158 = vmatpush3.msra.mxu0 %v26393_v18 }
 0x808   :  { %23188 = vmatpush3.msra.mxu1 %v26398_v1  ;;  %23189 = vmatprep.mubr.f32.mxu1 %v24946_v27 }
 0x809   :  { %23159 = vmatprep.subr.mxu0 %v26407_v33  ;;  %23190 = vmatmul.mubr.f32.vlgmr.msra.gmra.mxu1 %v24970_v36 }
 0x80a   :  { %23160 = vmatpush3.msra.mxu0 %v26407_v33  ;;  %23126 = vmatprep.mubr.f32.mxu0 %v25029_v62 }
 0x80b   :  { %23161 = vmatprep.subr.mxu0 %v26419_v0  ;;  %23192 = vmatprep.mubr.f32.mxu1 %v25008_v52 }
 0x80c   :  { %23162 = vmatpush3.msra.mxu0 %v26419_v0 }
 0x80d   :  { %23127 = vmatmul.mubr.f32.gmra.mxu0 %v28905_v11  ;;  %23163 = vmatprep.subr.mxu0 %v26429_v5 }
 0x80e   :  { %23193 = vmatmul.mubr.f32.gmra.mxu1 %v25015_v56  ;;  %23164 = vmatpush3.msra.mxu0 %v26429_v5 }
 0x80f   :  { %23165 = vmatprep.subr.mxu0 %v26437_v15  ;;  %23167 = vmatprep.mubr.f32.mxu0 %v24946_v27  ;;  %v22770_v58 = vpop.f32.mrf.mxu1 }
 0x810   :  { %23166 = vmatpush3.msra.mxu0 %v26437_v15 }
 0x811   :  { %23168 = vmatmul.mubr.f32.vlgmr.msra.gmra.mxu0 %v24970_v36  ;;  %v26544_v2 = vpop.f32.mrf.mxu1 }
 0x812   :  { %23170 = vmatprep.mubr.f32.mxu0 %v25008_v52  ;;  %28908 = vst [vmem:[#allocation15_spill] sm:$0xff] %v26544_v2 }
 0x813   :  { %v22784_v55 = vpop.f32.mrf.mxu1 }
 0x815   :  { %23171 = vmatmul.mubr.f32.gmra.mxu0 %v25015_v56  ;;  %v26549_v20 = vpop.f32.mrf.mxu1 }
 0x816   :  { %28910 = vst [vmem:[#allocation17_spill] sm:$0xff] %v26549_v20 }
 0x817   :  { %v22763_v48 = vpop.f32.mrf.mxu0  ;;  %v22798_v46 = vpop.f32.mrf.mxu1 }
 0x818   :  { %v4859_v54 = vadd.f32 %v22770_v58, %v22763_v48 }
 0x819   :  { %v26547_v17 = vpop.f32.mrf.mxu0  ;;  %v26555_v4 = vpop.f32.mrf.mxu1 }
 0x81a   :  { %28909 = vst [vmem:[#allocation16_spill] sm:$0xff] %v26547_v17  ;;  %28913 = vst [vmem:[#allocation20_spill] sm:$0xff] %v26555_v4 }
 0x81b   :  { %v22777_v47 = vpop.f32.mrf.mxu0 }
 0x81c   :  { %v4942_v53 = vadd.f32 %v22777_v47, %v4859_v54 }
 0x81d   :  { %v26551_v40 = vpop.f32.mrf.mxu0 }
 0x81e   :  { %28911 = vst [vmem:[#allocation18_spill] sm:$0xff] %v26551_v40  ;;  %v5025_v25 = vadd.f32 %v22784_v55, %v4942_v53 }
 0x81f   :  { %v22791_v30 = vpop.f32.mrf.mxu0 }
 0x820   :  { %v5108_v57 = vadd.f32 %v22791_v30, %v5025_v25 }
 0x821   :  { %v26557_v18 = vpop.f32.mrf.mxu0 }
 0x822   :  { %v26553_v50 = vadd.f32 %v22798_v46, %v5108_v57  ;;  %28914 = vst [vmem:[#allocation21_spill] sm:$0xff] %v26557_v18 }
 0x824   :  { %28912 = vst [vmem:[#allocation19_spill] sm:$0xff] %v26553_v50 }
 0x82e   :  { %v22839_v9 = vpop.f32.mrf.mxu1 }
 0x82f   :  { %v22817_v1 = vpop.f32.mrf.mxu0 }
 0x830   :  { %v5428_v29 = vadd.f32 %v22839_v9, %v22817_v1  ;;  %v5421_v33 = vpop.f32.mrf.mxu1 }
 0x831   :  { %v5280_v49 = vpop.f32.mrf.mxu0 }
 0x832   :  { %v5422_v59 = vadd.f32 %v5421_v33, %v5280_v49 }
 0x83b   :  { %v22820_v22 = vpop.f32.mrf.mxu0 }
 0x83c   :  { %v22842_v61 = vpop.f32.mrf.mxu1 }
 0x83d   :  { %v5440_v37 = vadd.f32 %v22842_v61, %v22820_v22  ;;  %v26559_v0 = vpop.f32.mrf.mxu0 }
 0x83e   :  { %v26561_v10 = vpop.f32.mrf.mxu1 }
 0x842   :  { %v22861_v34 = vpop.f32.mrf.mxu0 }
 0x843   :  { %v5535_v26 = vadd.f32 %v22861_v34, %v5428_v29 }
 0x844   :  { %v22883_v5 = vpop.f32.mrf.mxu1  ;;  %v5527_v38 = vpop.f32.mrf.mxu0 }
 0x845   :  { %v5638_v43 = vadd.f32 %v22883_v5, %v5535_v26  ;;  %v5528_v3 = vadd.f32 %v5527_v38, %v5422_v59 }
 0x846   :  { %v5629_v15 = vpop.f32.mrf.mxu1 }
 0x847   :  { %v5630_v55 = vadd.f32 %v5629_v15, %v5528_v3 }
 0x848   :  { %v22864_v32 = vpop.f32.mrf.mxu0 }
 0x849   :  { %v5549_v12 = vadd.f32 %v22864_v32, %v5440_v37 }
 0x84a   :  { %v26563_v58 = vpop.f32.mrf.mxu0 }
 0x84b   :  { %v22886_v14 = vpop.f32.mrf.mxu1 }
 0x84c   :  { %v5654_v13 = vadd.f32 %v22886_v14, %v5549_v12 }
 0x84d   :  { %v26565_v48 = vpop.f32.mrf.mxu1 }
 0x856   :  { %v22905_v54 = vpop.f32.mrf.mxu0 }
 0x858   :  { %v22927_v47 = vpop.f32.mrf.mxu1  ;;  %v5748_v53 = vpop.f32.mrf.mxu0 }
 0x859   :  { %v5749_v25 = vadd.f32 %v5748_v53, %v5630_v55 }
 0x85a   :  { %v5845_v30 = vpop.f32.mrf.mxu1 }
 0x85b   :  { %v5846_v57 = vadd.f32 %v5845_v30, %v5749_v25 }
 0x85c   :  { %v22908_v46 = vpop.f32.mrf.mxu0 }
 0x85d   :  { %v7221_v9 = vsel %vm2079_vm1, %v5846_v57, 0  ;;  %v5767_v1 = vadd.f32 %v22908_v46, %v5654_v13 }
 0x85e   :  { %v26568_v29 = vand.u32 4294901760, %v7221_v9  ;;  %v26580_v26 = vpop.f32.mrf.mxu0 }
 0x85f   :  { %v22930_v22 = vpop.f32.mrf.mxu1 }
 0x860   :  { %v26571_v49 = vsub.f32 %v7221_v9, %v26568_v29  ;;  %v26573_v33 = vadd.f32 %v22930_v22, %v5767_v1  ;;  %23206 = vmatprep.mubr.f32.mxu1 %v26568_v29  ;;  %v5755_v9 = vadd.f32 %v22905_v54, %v5638_v43 }
 0x861   :  { %v26582_v5 = vpop.f32.mrf.mxu1 }
 0x862   :  { %v28880_v61 = vand.u32 4294901760, %v26571_v49 }
 0x864   :  { %v7302_v37 = vsub.f32 %v26571_v49, %v28880_v61 }
 0x866   :  { %v7303_v34 = vand.u32 4294901760, %v7302_v37 }
 0x868   :  { %23199 = vmatprep.mubr.f32.mxu0 %v7303_v34  ;;  %v5852_v34 = vadd.f32 %v22927_v47, %v5755_v9 }
 0x86a   :  { %v22949_v38 = vpop.f32.mrf.mxu0  ;;  %v7224_v4 = vsel %vm2079_vm1, %v5852_v34, 0 }
 0x86b   :  { %v22971_v15 = vpop.f32.mrf.mxu1 }
 0x86c   :  { %v5955_v32 = vpop.f32.mrf.mxu0  ;;  %v6103_v61 = vadd.f32 %v22971_v15, %v22949_v38 }
 0x86d   :  { %v6096_v12 = vpop.f32.mrf.mxu1 }
 0x86e   :  { %v6097_v18 = vadd.f32 %v6096_v12, %v5955_v32 }
 0x877   :  { %v22952_v14 = vpop.f32.mrf.mxu0 }
 0x878   :  { %v22974_v13 = vpop.f32.mrf.mxu1 }
 0x879   :  { %v6115_v59 = vadd.f32 %v22974_v13, %v22952_v14  ;;  %v26584_v3 = vpop.f32.mrf.mxu0  ;;  %v26589_v13 = vand.u32 4294901760, %v7224_v4 }
 0x87a   :  { %v26586_v55 = vpop.f32.mrf.mxu1 }
 0x87e   :  { %v22993_v53 = vpop.f32.mrf.mxu0 }
 0x87f   :  { %v6210_v20 = vadd.f32 %v22993_v53, %v6103_v61 }
 0x880   :  { %v23015_v25 = vpop.f32.mrf.mxu1  ;;  %v6202_v30 = vpop.f32.mrf.mxu0 }
 0x881   :  { %v6203_v14 = vadd.f32 %v6202_v30, %v6097_v18  ;;  %v6313_v2 = vadd.f32 %v23015_v25, %v6210_v20 }
 0x882   :  { %v6304_v57 = vpop.f32.mrf.mxu1 }
 0x883   :  { %v6305_v39 = vadd.f32 %v6304_v57, %v6203_v14 }
 0x884   :  { %v22996_v46 = vpop.f32.mrf.mxu0 }
 0x885   :  { %v6224_v1 = vadd.f32 %v22996_v46, %v6115_v59  ;;  %v7310_v59 = vsub.f32 %v7224_v4, %v26589_v13 }
 0x886   :  { %v26591_v40 = vpop.f32.mrf.mxu0 }
 0x887   :  { %v23018_v22 = vpop.f32.mrf.mxu1  ;;  %v7311_v30 = vand.u32 4294901760, %v7310_v59 }
 0x888   :  { %v6329_v37 = vadd.f32 %v23018_v22, %v6224_v1 }
 0x889   :  { %v26593_v17 = vpop.f32.mrf.mxu1  ;;  %v7312_v4 = vsub.f32 %v7310_v59, %v7311_v30 }
 0x88b   :  { %v7313_v34 = vand.u32 4294901760, %v7312_v4 }
 0x892   :  { %v23037_v31 = vpop.f32.mrf.mxu0 }
 0x893   :  { %v6430_v43 = vadd.f32 %v23037_v31, %v6313_v2  ;;  %v23059_v54 = vpop.f32.mrf.mxu1 }
 0x894   :  { %v6423_v47 = vpop.f32.mrf.mxu0 }
 0x895   :  { %v6527_v38 = vadd.f32 %v23059_v54, %v6430_v43  ;;  %v6424_v15 = vadd.f32 %v6423_v47, %v6305_v39  ;;  %v6520_v46 = vpop.f32.mrf.mxu1  ;;  %v28915_v54 = vand.u32 4294901760, %v26571_v49 }
 0x896   :  { %v23040_v32 = vpop.f32.mrf.mxu0 }
 0x897   :  { %v7230_v18 = vsel %vm2079_vm1, %v6527_v38, 0  ;;  %v6521_v61 = vadd.f32 %v6520_v46, %v6424_v15  ;;  %v6442_v12 = vadd.f32 %v23040_v32, %v6329_v37  ;;  %v23062_v53 = vpop.f32.mrf.mxu1 }
 0x898   :  { %v7261_v20 = vand.u32 4294901760, %v7230_v18  ;;  %v26607_v15 = vpop.f32.mrf.mxu0 }
 0x899   :  { %v7227_v25 = vsel %vm2079_vm1, %v6521_v61, 0  ;;  %v26598_v9 = vadd.f32 %v23062_v53, %v6442_v12  ;;  %v26605_v47 = vpop.f32.mrf.mxu1 }
 0x89a   :  { %v7349_v31 = vsub.f32 %v7230_v18, %v7261_v20  ;;  %v7264_v2 = vand.u32 4294901760, %v7227_v25  ;;  %23195 = vmatprep.subr.mxu0 %v7261_v20 }
 0x89b   :  { %23196 = vmatpush3.xpose.msra.mxu0 %v7261_v20 }
 0x89c   :  { %v7356_v57 = vsub.f32 %v7227_v25, %v7264_v2  ;;  %23197 = vmatprep.subr.mxu0 %v7264_v2  ;;  %v7350_v39 = vand.u32 4294901760, %v7349_v31 }
 0x89e   :  { %v7351_v1 = vsub.f32 %v7349_v31, %v7350_v39  ;;  %v7357_v22 = vand.u32 4294901760, %v7356_v57 }
 0x89f   :  { %23198 = vmatpush3.xpose.msra.mxu0 %v7264_v2 }
 0x8a0   :  { %23209 = vmatprep.subr.mxu0 %v7349_v31  ;;  %v7352_v37 = vand.u32 4294901760, %v7351_v1  ;;  %v7358_v14 = vsub.f32 %v7356_v57, %v7357_v22 }
 0x8a2   :  { %23200 = vmatmul.mubr.f32.vlgmr.msra.gmra.mxu0 %v7313_v34  ;;  %23202 = vmatprep.subr.mxu1 %v7352_v37  ;;  %v7359_v43 = vand.u32 4294901760, %v7358_v14 }
 0x8a3   :  { %23203 = vmatpush3.xpose.msra.mxu1 %v7352_v37  ;;  %23210 = vmatpush3.xpose.msra.mxu0 %v7349_v31 }
 0x8a4   :  { %23213 = vmatprep.mubr.f32.mxu0 %v26571_v49  ;;  %23204 = vmatprep.subr.mxu1 %v7359_v43 }
 0x8a5   :  { %23211 = vmatprep.subr.mxu0 %v7356_v57  ;;  %v23103_v38 = vpop.f32.mrf.mxu1 }
 0x8a7   :  { %23205 = vmatpush3.xpose.msra.mxu1 %v7359_v43  ;;  %23212 = vmatpush3.xpose.msra.mxu0 %v7356_v57  ;;  %v6771_v49 = vpop.f32.mrf.mxu1 }
 0x8a8   :  { %23216 = vmatprep.subr.mxu1 %v7261_v20  ;;  %23223 = vmatprep.subr.mxu0 %v7350_v39 }
 0x8aa   :  { %23207 = vmatmul.mubr.f32.vlgmr.msra.gmra.mxu1 %v26589_v13  ;;  %23214 = vmatmul.mubr.f32.vlgmr.msra.gmra.mxu0 %v7310_v59  ;;  %v23081_v59 = vpop.f32.mrf.mxu0 }
 0x8ab   :  { %23217 = vmatpush3.xpose.msra.mxu1 %v7261_v20  ;;  %23220 = vmatprep.mubr.f32.mxu1 %v28915_v54 }
 0x8ac   :  { %23224 = vmatpush3.xpose.msra.mxu0 %v7350_v39  ;;  %23227 = vmatprep.mubr.f32.mxu0 %v26568_v29  ;;  %v6630_v46 = vpop.f32.mrf.mxu0 }
 0x8ad   :  { %23218 = vmatprep.subr.mxu1 %v7264_v2  ;;  %23225 = vmatprep.subr.mxu0 %v7357_v22  ;;  %v6772_v57 = vadd.f32 %v6771_v49, %v6630_v46 }
 0x8af   :  { %23219 = vmatpush3.xpose.msra.mxu1 %v7264_v2 }
 0x8b0   :  { %23226 = vmatpush3.xpose.msra.mxu0 %v7357_v22  ;;  %23230 = vmatprep.subr.mxu1 %v7261_v20 }
 0x8b1   :  { %v23106_v32 = vpop.f32.mrf.mxu1 }
 0x8b2   :  { %23221 = vmatmul.mubr.f32.vlgmr.msra.gmra.mxu1 %v7311_v30 }
 0x8b3   :  { %23228 = vmatmul.mubr.f32.vlgmr.msra.gmra.mxu0 %v26589_v13  ;;  %23231 = vmatpush3.xpose.msra.mxu1 %v7261_v20  ;;  %v26612_v61 = vpop.f32.mrf.mxu1  ;;  %v6778_v20 = vadd.f32 %v23103_v38, %v23081_v59 }
 0x8b4   :  { %23234 = vmatprep.mubr.f32.mxu1 %v26568_v29  ;;  %23232 = vmatprep.subr.mxu1 %v7264_v2 }
 0x8b6   :  { %v23147_v53 = vpop.f32.mrf.mxu1 }
 0x8b7   :  { %23233 = vmatpush3.xpose.msra.mxu1 %v7264_v2 }
 0x8b8   :  { %v6979_v30 = vpop.f32.mrf.mxu1 }
 0x8ba   :  { %23235 = vmatmul.mubr.f32.vlgmr.msra.gmra.mxu1 %v26589_v13 }
 0x8bb   :  { %v23084_v18 = vpop.f32.mrf.mxu0 }
 0x8bc   :  { %v6790_v12 = vadd.f32 %v23106_v32, %v23084_v18 }
 0x8bd   :  { %v26614_v25 = vpop.f32.mrf.mxu0 }
 0x8c0   :  { %v23125_v31 = vpop.f32.mrf.mxu0 }
 0x8c1   :  { %v6885_v29 = vadd.f32 %v23125_v31, %v6778_v20 }
 0x8c2   :  { %v6877_v39 = vpop.f32.mrf.mxu0 }
 0x8c3   :  { %v6878_v2 = vadd.f32 %v6877_v39, %v6772_v57  ;;  %v6988_v34 = vadd.f32 %v23147_v53, %v6885_v29 }
 0x8c4   :  { %v23150_v4 = vpop.f32.mrf.mxu1 }
 0x8c5   :  { %v6980_v43 = vadd.f32 %v6979_v30, %v6878_v2 }
 0x8c6   :  { %v26616_v1 = vpop.f32.mrf.mxu1 }
 0x8c9   :  { %v23191_v14 = vpop.f32.mrf.mxu1 }
 0x8cb   :  { %v7195_v44 = vpop.f32.mrf.mxu1 }
 0x8cd   :  { %v23128_v22 = vpop.f32.mrf.mxu0 }
 0x8ce   :  { %v6899_v13 = vadd.f32 %v23128_v22, %v6790_v12  ;;  %v23194_v57 = vpop.f32.mrf.mxu1 }
 0x8cf   :  { %v26618_v37 = vpop.f32.mrf.mxu0 }
 0x8d0   :  { %v7004_v54 = vadd.f32 %v23150_v4, %v6899_v13  ;;  %v26650_v13 = vpop.f32.mrf.mxu1 }
 0x8d1   :  { %v23169_v32 = vpop.f32.mrf.mxu0 }
 0x8d2   :  { %v7105_v18 = vadd.f32 %v23169_v32, %v6988_v34 }
 0x8d3   :  { %v7098_v24 = vpop.f32.mrf.mxu0 }
 0x8d4   :  { %v7099_v38 = vadd.f32 %v7098_v24, %v6980_v43  ;;  %v7202_v59 = vadd.f32 %v23191_v14, %v7105_v18 }
 0x8d5   :  { %v23172_v49 = vpop.f32.mrf.mxu0 }
 0x8d6   :  { %v26620_v46 = vand.u32 4294901760, %v7202_v59  ;;  %v7196_v31 = vadd.f32 %v7195_v44, %v7099_v38  ;;  %v7117_v20 = vadd.f32 %v23172_v49, %v7004_v54 }
 0x8d7   :  { %v26648_v34 = vpop.f32.mrf.mxu0 }
 0x8d8   :  { %v26623_v53 = vsub.f32 %v7202_v59, %v26620_v46  ;;  %v26625_v12 = vand.u32 4294901760, %v7196_v31  ;;  %23237 = vmatprep.subr.mxu0 %v26620_v46  ;;  %v26628_v30 = vadd.f32 %v23194_v57, %v7117_v20 }
 0x8d9   :  { %23238 = vmatpush3.msra.mxu0 %v26620_v46 }
 0x8da   :  { %v26632_v24 = vsub.f32 %v7196_v31, %v26625_v12  ;;  %v26635_v4 = vand.u32 4294901760, %v26623_v53  ;;  %23239 = vmatprep.subr.mxu0 %v26625_v12 }
 0x8db   :  { %23240 = vmatpush3.msra.mxu0 %v26625_v12 }
 0x8dc   :  { %v7883_v44 = vsub.f32 %v26623_v53, %v26635_v4  ;;  %v26642_v39 = vand.u32 4294901760, %v26632_v24  ;;  %23251 = vmatprep.subr.mxu0 %v26623_v53 }
 0x8de   :  { %v7884_v29 = vand.u32 4294901760, %v7883_v44  ;;  %v7890_v2 = vsub.f32 %v26632_v24, %v26642_v39 }
 0x8e0   :  { %23244 = vmatprep.subr.mxu1 %v7884_v29  ;;  %v7891_v22 = vand.u32 4294901760, %v7890_v2 }
 0x8e1   :  { %23245 = vmatpush3.msra.mxu1 %v7884_v29 }
 0x8e2   :  { %23246 = vmatprep.subr.mxu1 %v7891_v22 }
 0x8e3   :  { %23247 = vmatpush3.msra.mxu1 %v7891_v22 }
 0x8e4   :  { %23258 = vmatprep.subr.mxu1 %v26620_v46 }
 0x962   :  { %v23201_v14 = vpop.f32.mrf.mxu0 }
 0x964   :  { %v7305_v54 = vpop.f32.mrf.mxu0 }
 0x96a   :  { %v23208_v43 = vpop.f32.mrf.mxu1  ;;  %v23215_v38 = vpop.f32.mrf.mxu0 }
 0x96b   :  { %v7403_v18 = vadd.f32 %v23208_v43, %v23201_v14 }
 0x96c   :  { %v7396_v32 = vpop.f32.mrf.mxu1  ;;  %v7478_v20 = vpop.f32.mrf.mxu0 }
 0x96d   :  { %v7397_v59 = vadd.f32 %v7396_v32, %v7305_v54  ;;  %v7486_v31 = vadd.f32 %v23215_v38, %v7403_v18 }
 0x96f   :  { %v7479_v44 = vadd.f32 %v7478_v20, %v7397_v59 }
 0x972   :  { %v23222_v49 = vpop.f32.mrf.mxu1 }
 0x973   :  { %v7569_v29 = vadd.f32 %v23222_v49, %v7486_v31  ;;  %v23229_v2 = vpop.f32.mrf.mxu0 }
 0x974   :  { %v7560_v57 = vpop.f32.mrf.mxu1 }
 0x975   :  { %v7561_v22 = vadd.f32 %v7560_v57, %v7479_v44  ;;  %v7652_v42 = vadd.f32 %v23229_v2, %v7569_v29  ;;  %v7645_v7 = vpop.f32.mrf.mxu0 }
 0x977   :  { %v7646_v23 = vadd.f32 %v7645_v7, %v7561_v22 }
 0x97a   :  { %v23236_v50 = vpop.f32.mrf.mxu1 }
 0x97b   :  { %v7731_v6 = vadd.f32 %v23236_v50, %v7652_v42 }
 0x97c   :  { %v7724_v11 = vpop.f32.mrf.mxu1 }
 0x97d   :  { %v7725_v62 = vadd.f32 %v7724_v11, %v7646_v23  ;;  %v7735_v14 = vsel %vm25657_vm3, %v7731_v6, -inf }
 0x97e   :  { %v7739_v43 = vsel %vm2079_vm1, %v7735_v14, -inf }
 0x97f   :  { %7740 = vmax.xlane.f32.xlu1 %v7739_v43  ;;  %v7734_v54 = vsel %vm25653_vm2, %v7725_v62, -inf }
 0x980   :  { %v7736_v32 = vsel %vm2079_vm1, %v7734_v54, -inf }
 0x981   :  { %7737 = vmax.xlane.f32.xlu0 %v7736_v32 }
 0xa08   :  { %v7741_v18 = vpop.xlane.xlu1 %7740 }
 0xa09   :  { %v7743_v38 = vsub.f32 %v7735_v14, %v7741_v18 }
 0xa0a   :  { %v7738_v59 = vpop.xlane.xlu0 %7737 }
 0xa0b   :  { %v7746_v49 = vmul.f32 1.442695, %v7743_v38  ;;  %v7742_v7 = vsub.f32 %v7734_v54, %v7738_v59 }
 0xa0d   :  { %24762 = vpow2.f32 %v7746_v49  ;;  %v7744_v42 = vmul.f32 1.442695, %v7742_v7 }
 0xa0f   :  { %24764 = vpow2.f32 %v7744_v42 }
 0xa1a   :  { %v24763_v11 = vpop.eup %24762 }
 0xa1b   :  { %v7751_v6 = vsel %vm2079_vm1, %v24763_v11, 0.0 }
 0xa1c   :  { %v24765_v23 = vpop.eup %24764  ;;  %7752 = vadd.xlane.f32.xlu1 %v7751_v6 }
 0xa1d   :  { %v7748_v50 = vsel %vm2079_vm1, %v24765_v23, 0.0 }
 0xa1e   :  { %7749 = vadd.xlane.f32.xlu0 %v7748_v50 }
 0xaa5   :  { %v7753_v62 = vpop.xlane.xlu1 %7752 }
 0xaa6   :  { %24766 = vrcp.f32 %v7753_v62 }
 0xaa7   :  { %v7750_v31 = vpop.xlane.xlu0 %7749 }
 0xaa8   :  { %24768 = vrcp.f32 %v7750_v31 }
 0xab3   :  { %v24767_v20 = vpop.eup %24766 }
 0xab4   :  { %v7757_v57 = vmul.f32 %v24767_v20, %v24763_v11 }
 0xab5   :  { %v24769_v44 = vpop.eup %24768 }
 0xab6   :  { %v7755_v29 = vmul.f32 %v24769_v44, %v24765_v23  ;;  %v7762_v2 = vsel %vm2079_vm1, %v7757_v57, 0  ;;  %v6109_v57 = vadd.f32 %v26586_v55, %v26584_v3 }
 0xab7   :  { %v7841_v22 = vand.u32 4294901760, %v7762_v2 }
 0xab8   :  { %v7759_v14 = vsel %vm2079_vm1, %v7755_v29, 0  ;;  %v6217_v44 = vadd.f32 %v26591_v40, %v6109_v57 }
 0xab9   :  { %v7831_v43 = vand.u32 4294901760, %v7759_v14  ;;  %v7842_v54 = vsub.f32 %v7762_v2, %v7841_v22 }
 0xaba   :  { %v6321_v2 = vadd.f32 %v26593_v17, %v6217_v44  ;;  %v8786_v17 = vsel %vm2079_vm1, %v26598_v9, 0 }
 0xabb   :  { %23248 = vmatprep.mubr.f32.mxu1 %v7831_v43  ;;  %v7832_v32 = vsub.f32 %v7759_v14, %v7831_v43  ;;  %v7843_v18 = vand.u32 4294901760, %v7842_v54 }
 0xabc   :  { %23249 = vmatmul.mubr.f32.vlgmr.msra.gmra.mxu1 %v7841_v22 }
 0xabd   :  { %23259 = vmatpush3.msra.mxu1 %v26620_v46  ;;  %v7833_v38 = vand.u32 4294901760, %v7832_v32  ;;  %v7844_v59 = vsub.f32 %v7842_v54, %v7843_v18 }
 0xabe   :  { %23260 = vmatprep.subr.mxu1 %v26625_v12 }
 0xabf   :  { %23261 = vmatpush3.msra.mxu1 %v26625_v12  ;;  %23262 = vmatprep.mubr.f32.mxu1 %v7833_v38  ;;  %v7834_v49 = vsub.f32 %v7832_v32, %v7833_v38  ;;  %v7845_v42 = vand.u32 4294901760, %v7844_v59 }
 0xac0   :  { %23272 = vmatprep.subr.mxu1 %v26620_v46  ;;  %23263 = vmatmul.mubr.f32.vlgmr.msra.gmra.mxu1 %v7843_v18 }
 0xac1   :  { %23273 = vmatpush3.msra.mxu1 %v26620_v46  ;;  %23276 = vmatprep.mubr.f32.mxu1 %v7831_v43  ;;  %v7835_v7 = vand.u32 4294901760, %v7834_v49  ;;  %v20658_v46 = vld [vmem:[%s28871_s4 + $0x18] sm:$0xff] }
 0xac2   :  { %23274 = vmatprep.subr.mxu1 %v26625_v12 }
 0xac3   :  { %23275 = vmatpush3.msra.mxu1 %v26625_v12  ;;  %23241 = vmatprep.mubr.f32.mxu0 %v7835_v7  ;;  %v20657_v12 = vld [vmem:[%s28871_s4 + $0x10] sm:$0xff] }
 0xac4   :  { %23242 = vmatmul.mubr.f32.vlgmr.msra.gmra.mxu0 %v7845_v42  ;;  %23277 = vmatmul.mubr.f32.vlgmr.msra.gmra.mxu1 %v7841_v22 }
 0xac5   :  { %23252 = vmatpush3.msra.mxu0 %v26623_v53  ;;  %23255 = vmatprep.mubr.f32.mxu0 %v7832_v32  ;;  %v26679_v53 = vand.u32 4294901760, %v20658_v46 }
 0xac6   :  { %23253 = vmatprep.subr.mxu0 %v26632_v24 }
 0xac7   :  { %23254 = vmatpush3.msra.mxu0 %v26632_v24  ;;  %v26685_v24 = vsub.f32 %v20658_v46, %v26679_v53 }
 0xac8   :  { %23265 = vmatprep.subr.mxu0 %v26635_v4  ;;  %23256 = vmatmul.mubr.f32.vlgmr.msra.gmra.mxu0 %v7842_v54  ;;  %v5434_v54 = vadd.f32 %v26561_v10, %v26559_v0  ;;  %v26728_v10 = vand.u32 4294901760, %v8786_v17 }
 0xac9   :  { %23266 = vmatpush3.msra.mxu0 %v26635_v4  ;;  %23269 = vmatprep.mubr.f32.mxu0 %v7831_v43  ;;  %v26687_v4 = vand.u32 4294901760, %v20657_v12  ;;  %v6436_v43 = vadd.f32 %v26607_v15, %v6321_v2 }
 0xaca   :  { %23267 = vmatprep.subr.mxu0 %v26642_v39  ;;  %v5542_v38 = vadd.f32 %v26563_v58, %v5434_v54  ;;  %v26735_v2 = vsub.f32 %v8786_v17, %v26728_v10 }
 0xacb   :  { %23268 = vmatpush3.msra.mxu0 %v26642_v39  ;;  %v26692_v39 = vand.u32 4294901760, %v26685_v24  ;;  %v26695_v11 = vsub.f32 %v20657_v12, %v26687_v4  ;;  %v6533_v3 = vadd.f32 %v26605_v47, %v6436_v43 }
 0xacc   :  { %23270 = vmatmul.mubr.f32.vlgmr.msra.gmra.mxu0 %v7841_v22  ;;  %23279 = vmatprep.subr.mxu0 %v26679_v53  ;;  %v5646_v15 = vadd.f32 %v26565_v48, %v5542_v38  ;;  %v6784_v38 = vadd.f32 %v26612_v61, %v26614_v25 }
 0xacd   :  { %23280 = vmatpush3.msra.mxu0 %v26679_v53  ;;  %v8391_v6 = vsub.f32 %v26685_v24, %v26692_v39  ;;  %v26702_v23 = vand.u32 4294901760, %v26695_v11  ;;  %v8783_v58 = vsel %vm2079_vm1, %v6533_v3, 0 }
 0xace   :  { %23281 = vmatprep.subr.mxu0 %v26687_v4  ;;  %v5761_v47 = vadd.f32 %v26580_v26, %v5646_v15  ;;  %v6892_v61 = vadd.f32 %v26618_v37, %v6784_v38 }
 0xacf   :  { %23282 = vmatpush3.msra.mxu0 %v26687_v4  ;;  %v26705_v50 = vand.u32 4294901760, %v8391_v6  ;;  %v8398_v62 = vsub.f32 %v26695_v11, %v26702_v23 }
 0xad0   :  { %23293 = vmatprep.subr.mxu0 %v26685_v24 }
 0xad1   :  { %23286 = vmatprep.subr.mxu1 %v26705_v50  ;;  %v26710_v31 = vand.u32 4294901760, %v8398_v62 }
 0xad2   :  { %23287 = vmatpush3.msra.mxu1 %v26705_v50 }
 0xad3   :  { %23288 = vmatprep.subr.mxu1 %v26710_v31 }
 0xad4   :  { %23289 = vmatpush3.msra.mxu1 %v26710_v31 }
 0xad5   :  { %23300 = vmatprep.subr.mxu1 %v26679_v53 }
 0xb7c   :  { %v23250_v20 = vpop.f32.mrf.mxu1 }
 0xb7e   :  { %v7928_v29 = vpop.f32.mrf.mxu1 }
 0xb80   :  { %v23264_v22 = vpop.f32.mrf.mxu1 }
 0xb82   :  { %v8092_v59 = vpop.f32.mrf.mxu1 }
 0xb84   :  { %v23243_v14 = vpop.f32.mrf.mxu0  ;;  %v23278_v12 = vpop.f32.mrf.mxu1 }
 0xb85   :  { %v7935_v18 = vadd.f32 %v23250_v20, %v23243_v14  ;;  %v5858_v14 = vadd.f32 %v26582_v5, %v5761_v47 }
 0xb86   :  { %v7837_v32 = vpop.f32.mrf.mxu0  ;;  %v8256_v9 = vpop.f32.mrf.mxu1 }
 0xb87   :  { %v7929_v55 = vadd.f32 %v7928_v29, %v7837_v32  ;;  %v26732_v29 = vand.u32 4294901760, %v8783_v58 }
 0xb88   :  { %v23257_v49 = vpop.f32.mrf.mxu0 }
 0xb89   :  { %v8018_v40 = vadd.f32 %v23257_v49, %v7935_v18  ;;  %v26743_v26 = vsub.f32 %v8783_v58, %v26732_v29  ;;  %v8777_v49 = vsel %vm2079_vm1, %v5858_v14, 0 }
 0xb8a   :  { %v8010_v7 = vpop.f32.mrf.mxu0  ;;  %v26757_v17 = vand.u32 4294901760, %v8777_v49 }
 0xb8b   :  { %v8011_v42 = vadd.f32 %v8010_v7, %v7929_v55  ;;  %v8101_v46 = vadd.f32 %v23264_v22, %v8018_v40  ;;  %v26755_v40 = vand.u32 4294901760, %v26743_v26 }
 0xb8c   :  { %v23271_v0 = vpop.f32.mrf.mxu0 }
 0xb8d   :  { %v8184_v6 = vadd.f32 %v23271_v0, %v8101_v46  ;;  %v8093_v62 = vadd.f32 %v8092_v59, %v8011_v42  ;;  %v26749_v59 = vand.u32 4294901760, %v26735_v2  ;;  %v8780_v46 = vsel %vm2079_vm1, %v26573_v33, 0 }
 0xb8e   :  { %v8177_v20 = vpop.f32.mrf.mxu0  ;;  %v8914_v15 = vsub.f32 %v26743_v26, %v26755_v40  ;;  %v6996_v0 = vadd.f32 %v26616_v1, %v6892_v61 }
 0xb8f   :  { %v8263_v57 = vadd.f32 %v23278_v12, %v8184_v6  ;;  %v8178_v44 = vadd.f32 %v8177_v20, %v8093_v62  ;;  %v8907_v7 = vsub.f32 %v26735_v2, %v26749_v59  ;;  %v8856_v12 = vsub.f32 %v8777_v49, %v26757_v17 }
 0xb90   :  { %v26774_v62 = vand.u32 4294901760, %v8780_v46  ;;  %v8915_v33 = vand.u32 4294901760, %v8914_v15  ;;  %v7111_v47 = vadd.f32 %v26648_v34, %v6996_v0 }
 0xb91   :  { %v8270_v48 = vsel %vm2079_vm1, %v8263_v57, 0  ;;  %v8257_v22 = vadd.f32 %v8256_v9, %v8178_v44  ;;  %v8908_v6 = vand.u32 4294901760, %v8907_v7  ;;  %v8857_v1 = vand.u32 4294901760, %v8856_v12  ;;  %v20632_v7 = vld [vmem:[%s28872_s5] ss:$0 sm:$0xff] }
 0xb92   :  { %v26739_v43 = vand.u32 4294901760, %v8270_v48  ;;  %v8866_v20 = vsub.f32 %v8780_v46, %v26774_v62  ;;  %v26784_v57 = vand.u32 4294901760, %v26628_v30  ;;  %v7208_v34 = vadd.f32 %v26650_v13, %v7111_v47 }
 0xb93   :  { %v8267_v54 = vsel %vm2079_vm1, %v8257_v22, 0  ;;  %v8858_v44 = vsub.f32 %v8856_v12, %v8857_v1  ;;  %v3635_v15 = vadd.f32 %v20632_v7, %v25859_v28 }
 0xb94   :  { %v8350_v32 = vsub.f32 %v8270_v48, %v26739_v43  ;;  %v8339_v18 = vand.u32 4294901760, %v8267_v54  ;;  %v8867_v9 = vand.u32 4294901760, %v8866_v20  ;;  %v26794_v48 = vsub.f32 %v26628_v30, %v26784_v57 }
 0xb95   :  { %v26798_v13 = vand.u32 4294901760, %v7208_v34  ;;  %v8859_v22 = vand.u32 4294901760, %v8858_v44 }
 0xb96   :  { %v8351_v3 = vand.u32 4294901760, %v8350_v32  ;;  %v8340_v5 = vsub.f32 %v8267_v54, %v8339_v18  ;;  %23290 = vmatprep.mubr.f32.mxu1 %v8339_v18  ;;  %v8868_v14 = vsub.f32 %v8866_v20, %v8867_v9  ;;  %v26806_v30 = vand.u32 4294901760, %v26794_v48 }
 0xb97   :  { %23291 = vmatmul.mubr.f32.vlgmr.msra.gmra.mxu1 %v26739_v43  ;;  %v26809_v54 = vsub.f32 %v7208_v34, %v26798_v13 }
 0xb98   :  { %23301 = vmatpush3.msra.mxu1 %v26679_v53  ;;  %v8341_v55 = vand.u32 4294901760, %v8340_v5  ;;  %v8352_v25 = vsub.f32 %v8350_v32, %v8351_v3 }
 0xb99   :  { %23302 = vmatprep.subr.mxu1 %v26687_v4 }
 0xb9a   :  { %23303 = vmatpush3.msra.mxu1 %v26687_v4  ;;  %23304 = vmatprep.mubr.f32.mxu1 %v8341_v55  ;;  %v8342_v42 = vsub.f32 %v8340_v5, %v8341_v55  ;;  %v8353_v58 = vand.u32 4294901760, %v8352_v25 }
 0xb9b   :  { %23314 = vmatprep.subr.mxu1 %v26679_v53  ;;  %23305 = vmatmul.mubr.f32.vlgmr.msra.gmra.mxu1 %v8351_v3 }
 0xb9c   :  { %23315 = vmatpush3.msra.mxu1 %v26679_v53  ;;  %23318 = vmatprep.mubr.f32.mxu1 %v8339_v18  ;;  %v8343_v37 = vand.u32 4294901760, %v8342_v42 }
 0xb9d   :  { %23316 = vmatprep.subr.mxu1 %v26687_v4 }
 0xb9e   :  { %23317 = vmatpush3.msra.mxu1 %v26687_v4  ;;  %23283 = vmatprep.mubr.f32.mxu0 %v8343_v37 }
 0xb9f   :  { %23328 = vmatprep.subr.mxu1 %v8908_v6  ;;  %23284 = vmatmul.mubr.f32.vlgmr.msra.gmra.mxu0 %v8353_v58 }
 0xba0   :  { %23294 = vmatpush3.msra.mxu0 %v26685_v24  ;;  %23319 = vmatmul.mubr.f32.vlgmr.msra.gmra.mxu1 %v26739_v43 }
 0xba1   :  { %23329 = vmatpush3.xpose.msra.mxu1 %v8908_v6  ;;  %23295 = vmatprep.subr.mxu0 %v26695_v11 }
 0xba2   :  { %23297 = vmatprep.mubr.f32.mxu0 %v8340_v5  ;;  %23330 = vmatprep.subr.mxu1 %v8915_v33 }
 0xba3   :  { %23332 = vmatprep.mubr.f32.mxu1 %v26757_v17  ;;  %23296 = vmatpush3.msra.mxu0 %v26695_v11 }
 0xba4   :  { %23307 = vmatprep.subr.mxu0 %v26692_v39  ;;  %23298 = vmatmul.mubr.f32.vlgmr.msra.gmra.mxu0 %v8350_v32  ;;  %v9439_v32 = vsub.f32 %v26794_v48, %v26806_v30 }
 0xba5   :  { %23308 = vmatpush3.msra.mxu0 %v26692_v39  ;;  %23331 = vmatpush3.xpose.msra.mxu1 %v8915_v33 }
 0xba6   :  { %23309 = vmatprep.subr.mxu0 %v26702_v23  ;;  %23311 = vmatprep.mubr.f32.mxu0 %v8339_v18  ;;  %v26819_v18 = vand.u32 4294901760, %v26809_v54  ;;  %v9440_v38 = vand.u32 4294901760, %v9439_v32 }
 0xba7   :  { %23342 = vmatprep.subr.mxu1 %v26728_v10  ;;  %23310 = vmatpush3.msra.mxu0 %v26702_v23 }
 0xba8   :  { %23321 = vmatprep.subr.mxu0 %v26728_v10  ;;  %23333 = vmatmul.mubr.f32.vlgmr.msra.gmra.mxu1 %v26774_v62  ;;  %v9446_v49 = vsub.f32 %v26809_v54, %v26819_v18 }
 0xba9   :  { %23312 = vmatmul.mubr.f32.vlgmr.msra.gmra.mxu0 %v26739_v43  ;;  %23343 = vmatpush3.xpose.msra.mxu1 %v26728_v10  ;;  %v8869_v43 = vand.u32 4294901760, %v8868_v14 }
 0xbaa   :  { %23322 = vmatpush3.xpose.msra.mxu0 %v26728_v10  ;;  %23346 = vmatprep.mubr.f32.mxu1 %v8857_v1 }
 0xbab   :  { %23323 = vmatprep.subr.mxu0 %v26732_v29  ;;  %23325 = vmatprep.mubr.f32.mxu0 %v8859_v22 }
 0xbac   :  { %23344 = vmatprep.subr.mxu1 %v26732_v29 }
 0xbad   :  { %23345 = vmatpush3.xpose.msra.mxu1 %v26732_v29 }
 0xbae   :  { %23324 = vmatpush3.xpose.msra.mxu0 %v26732_v29  ;;  %23356 = vmatprep.subr.mxu1 %v26728_v10 }
 0xbaf   :  { %23335 = vmatprep.subr.mxu0 %v26735_v2 }
 0xbb0   :  { %23347 = vmatmul.mubr.f32.vlgmr.msra.gmra.mxu1 %v8867_v9 }
 0xbb1   :  { %23326 = vmatmul.mubr.f32.vlgmr.msra.gmra.mxu0 %v8869_v43  ;;  %23357 = vmatpush3.xpose.msra.mxu1 %v26728_v10  ;;  %v9447_v10 = vand.u32 4294901760, %v9446_v49 }
 0xbb2   :  { %23336 = vmatpush3.xpose.msra.mxu0 %v26735_v2  ;;  %23339 = vmatprep.mubr.f32.mxu0 %v8856_v12 }
 0xbb3   :  { %23360 = vmatprep.mubr.f32.mxu1 %v26757_v17  ;;  %23337 = vmatprep.subr.mxu0 %v26743_v26 }
 0xbb4   :  { %23358 = vmatprep.subr.mxu1 %v26732_v29 }
 0xbb5   :  { %23359 = vmatpush3.xpose.msra.mxu1 %v26732_v29 }
 0xbb6   :  { %23338 = vmatpush3.xpose.msra.mxu0 %v26743_v26  ;;  %23370 = vmatprep.subr.mxu1 %v9440_v38 }
 0xbb7   :  { %23349 = vmatprep.subr.mxu0 %v26749_v59 }
 0xbb8   :  { %23361 = vmatmul.mubr.f32.vlgmr.msra.gmra.mxu1 %v26774_v62 }
 0xbb9   :  { %23340 = vmatmul.mubr.f32.vlgmr.msra.gmra.mxu0 %v8866_v20  ;;  %23371 = vmatpush3.msra.mxu1 %v9440_v38 }
 0xbba   :  { %23350 = vmatpush3.xpose.msra.mxu0 %v26749_v59  ;;  %23353 = vmatprep.mubr.f32.mxu0 %v26757_v17 }
 0xbbb   :  { %23351 = vmatprep.subr.mxu0 %v26755_v40  ;;  %23372 = vmatprep.subr.mxu1 %v9447_v10 }
 0xbbc   :  { %23373 = vmatpush3.msra.mxu1 %v9447_v10 }
 0xbbd   :  { %23384 = vmatprep.subr.mxu1 %v26784_v57 }
 0xbbe   :  { %23352 = vmatpush3.xpose.msra.mxu0 %v26755_v40 }
 0xbbf   :  { %23363 = vmatprep.subr.mxu0 %v26784_v57 }
 0xbc1   :  { %23354 = vmatmul.mubr.f32.vlgmr.msra.gmra.mxu0 %v26774_v62 }
 0xbc2   :  { %23364 = vmatpush3.msra.mxu0 %v26784_v57 }
 0xbc3   :  { %23365 = vmatprep.subr.mxu0 %v26798_v13 }
 0xbc4   :  { %23366 = vmatpush3.msra.mxu0 %v26798_v13 }
 0xbc5   :  { %23377 = vmatprep.subr.mxu0 %v26794_v48 }
 0xc57   :  { %v23292_v29 = vpop.f32.mrf.mxu1 }
 0xc59   :  { %v26842_v2 = vpop.f32.mrf.mxu1 }
 0xc5a   :  { %28916 = vst [vmem:[#allocation22_spill] sm:$0xff] %v26842_v2 }
 0xc5b   :  { %v23306_v5 = vpop.f32.mrf.mxu1 }
 0xc5d   :  { %v26848_v61 = vpop.f32.mrf.mxu1 }
 0xc5e   :  { %28919 = vst [vmem:[#allocation25_spill] sm:$0xff] %v26848_v61 }
 0xc5f   :  { %v23285_v26 = vpop.f32.mrf.mxu0 }
 0xc60   :  { %v8443_v59 = vadd.f32 %v23292_v29, %v23285_v26  ;;  %v23320_v37 = vpop.f32.mrf.mxu1 }
 0xc61   :  { %v26844_v3 = vpop.f32.mrf.mxu0 }
 0xc62   :  { %28917 = vst [vmem:[#allocation23_spill] sm:$0xff] %v26844_v3  ;;  %v26858_v6 = vpop.f32.mrf.mxu1 }
 0xc63   :  { %28921 = vst [vmem:[#allocation27_spill] sm:$0xff] %v26858_v6 }
 0xc64   :  { %v23299_v55 = vpop.f32.mrf.mxu0 }
 0xc65   :  { %v8526_v40 = vadd.f32 %v23299_v55, %v8443_v59 }
 0xc66   :  { %v26846_v17 = vpop.f32.mrf.mxu0 }
 0xc67   :  { %28918 = vst [vmem:[#allocation24_spill] sm:$0xff] %v26846_v17  ;;  %v8609_v25 = vadd.f32 %v23306_v5, %v8526_v40 }
 0xc68   :  { %v23334_v33 = vpop.f32.mrf.mxu1 }
 0xc69   :  { %v23313_v42 = vpop.f32.mrf.mxu0 }
 0xc6a   :  { %v8692_v46 = vadd.f32 %v23313_v42, %v8609_v25  ;;  %v8952_v1 = vpop.f32.mrf.mxu1 }
 0xc6b   :  { %v26856_v58 = vpop.f32.mrf.mxu0 }
 0xc6c   :  { %v8771_v12 = vadd.f32 %v23320_v37, %v8692_v46  ;;  %28920 = vst [vmem:[#allocation26_spill] sm:$0xff] %v26856_v58 }
 0xc6e   :  { %v26854_v0 = vadd.f32 %v8771_v12, %v3635_v15 }
 0xc70   :  { %v23348_v44 = vpop.f32.mrf.mxu1 }
 0xc71   :  { %v23327_v62 = vpop.f32.mrf.mxu0 }
 0xc72   :  { %v8959_v34 = vadd.f32 %v23334_v33, %v23327_v62  ;;  %v9116_v32 = vpop.f32.mrf.mxu1 }
 0xc73   :  { %v8861_v47 = vpop.f32.mrf.mxu0 }
 0xc74   :  { %v8953_v22 = vadd.f32 %v8952_v1, %v8861_v47 }
 0xc78   :  { %v23362_v38 = vpop.f32.mrf.mxu1 }
 0xc79   :  { %v23341_v20 = vpop.f32.mrf.mxu0 }
 0xc7a   :  { %v9042_v14 = vadd.f32 %v23341_v20, %v8959_v34  ;;  %v9280_v55 = vpop.f32.mrf.mxu1 }
 0xc7b   :  { %v9034_v9 = vpop.f32.mrf.mxu0 }
 0xc7c   :  { %v9035_v43 = vadd.f32 %v9034_v9, %v8953_v22  ;;  %v9125_v28 = vadd.f32 %v23348_v44, %v9042_v14 }
 0xc7e   :  { %v9117_v29 = vadd.f32 %v9116_v32, %v9035_v43 }
 0xc81   :  { %v23355_v49 = vpop.f32.mrf.mxu0 }
 0xc82   :  { %v9208_v10 = vadd.f32 %v23355_v49, %v9125_v28 }
 0xc83   :  { %v9201_v26 = vpop.f32.mrf.mxu0 }
 0xc84   :  { %v9287_v59 = vadd.f32 %v23362_v38, %v9208_v10  ;;  %v9202_v5 = vadd.f32 %v9201_v26, %v9117_v29 }
 0xc86   :  { %v9291_v40 = vsel %vm25657_vm3, %v9287_v59, -inf  ;;  %v9281_v25 = vadd.f32 %v9280_v55, %v9202_v5 }
 0xc87   :  { %v9295_v7 = vsel %vm2079_vm1, %v9291_v40, -inf }
 0xc88   :  { %9296 = vmax.xlane.f32.xlu1 %v9295_v7  ;;  %v9290_v42 = vsel %vm25653_vm2, %v9281_v25, -inf }
 0xc89   :  { %v9292_v46 = vsel %vm2079_vm1, %v9290_v42, -inf }
 0xc8a   :  { %9293 = vmax.xlane.f32.xlu0 %v9292_v46 }
 0xd11   :  { %v9297_v37 = vpop.xlane.xlu1 %9296 }
 0xd12   :  { %v9299_v15 = vsub.f32 %v9291_v40, %v9297_v37 }
 0xd13   :  { %v9294_v12 = vpop.xlane.xlu0 %9293 }
 0xd14   :  { %v9302_v62 = vmul.f32 1.442695, %v9299_v15  ;;  %v9298_v33 = vsub.f32 %v9290_v42, %v9294_v12  ;;  %v20666_v12 = vld [vmem:[%s28868_s1 + $0xb8] sm:$0xff] }
 0xd16   :  { %24770 = vpow2.f32 %v9302_v62  ;;  %v9300_v47 = vmul.f32 1.442695, %v9298_v33 }
 0xd18   :  { %24772 = vpow2.f32 %v9300_v47 }
 0xd23   :  { %v24771_v1 = vpop.eup %24770 }
 0xd24   :  { %v9307_v20 = vsel %vm2079_vm1, %v24771_v1, 0.0 }
 0xd25   :  { %v24773_v34 = vpop.eup %24772  ;;  %9308 = vadd.xlane.f32.xlu1 %v9307_v20 }
 0xd26   :  { %v9304_v44 = vsel %vm2079_vm1, %v24773_v34, 0.0 }
 0xd27   :  { %9305 = vadd.xlane.f32.xlu0 %v9304_v44  ;;  %v26897_v44 = vand.u32 4294901760, %v20666_v12 }
 0xdae   :  { %v9309_v9 = vpop.xlane.xlu1 %9308 }
 0xdaf   :  { %24774 = vrcp.f32 %v9309_v9 }
 0xdb0   :  { %v9306_v22 = vpop.xlane.xlu0 %9305 }
 0xdb1   :  { %24776 = vrcp.f32 %v9306_v22  ;;  %v20665_v22 = vld [vmem:[%s28868_s1 + $0xb0] sm:$0xff] }
 0xdbc   :  { %v24775_v14 = vpop.eup %24774 }
 0xdbd   :  { %v9313_v43 = vmul.f32 %v24775_v14, %v24771_v1 }
 0xdbe   :  { %v24777_v32 = vpop.eup %24776 }
 0xdbf   :  { %v9311_v28 = vmul.f32 %v24777_v32, %v24773_v34  ;;  %v9318_v38 = vsel %vm2079_vm1, %v9313_v43, 0 }
 0xdc0   :  { %v9397_v49 = vand.u32 4294901760, %v9318_v38 }
 0xdc1   :  { %v9315_v10 = vsel %vm2079_vm1, %v9311_v28, 0 }
 0xdc2   :  { %v9387_v29 = vand.u32 4294901760, %v9315_v10  ;;  %v9398_v26 = vsub.f32 %v9318_v38, %v9397_v49 }
 0xdc4   :  { %23374 = vmatprep.mubr.f32.mxu1 %v9387_v29  ;;  %v9388_v59 = vsub.f32 %v9315_v10, %v9387_v29  ;;  %v9399_v5 = vand.u32 4294901760, %v9398_v26  ;;  %v26906_v10 = vand.u32 4294901760, %v20665_v22 }
 0xdc5   :  { %23375 = vmatmul.mubr.f32.vlgmr.msra.gmra.mxu1 %v9397_v49 }
 0xdc6   :  { %23385 = vmatpush3.msra.mxu1 %v26784_v57  ;;  %v9389_v55 = vand.u32 4294901760, %v9388_v59  ;;  %v9400_v40 = vsub.f32 %v9398_v26, %v9399_v5 }
 0xdc7   :  { %23386 = vmatprep.subr.mxu1 %v26798_v13 }
 0xdc8   :  { %23387 = vmatpush3.msra.mxu1 %v26798_v13  ;;  %23388 = vmatprep.mubr.f32.mxu1 %v9389_v55  ;;  %v9390_v25 = vsub.f32 %v9388_v59, %v9389_v55  ;;  %v9401_v42 = vand.u32 4294901760, %v9400_v40 }
 0xdc9   :  { %23398 = vmatprep.subr.mxu1 %v26784_v57  ;;  %23389 = vmatmul.mubr.f32.vlgmr.msra.gmra.mxu1 %v9399_v5  ;;  %v20663_v5 = vld [vmem:[%s28868_s1 + $0xa0] sm:$0xff] }
 0xdca   :  { %23399 = vmatpush3.msra.mxu1 %v26784_v57  ;;  %23402 = vmatprep.mubr.f32.mxu1 %v9387_v29  ;;  %v9391_v7 = vand.u32 4294901760, %v9390_v25 }
 0xdcb   :  { %23400 = vmatprep.subr.mxu1 %v26798_v13 }
 0xdcc   :  { %23401 = vmatpush3.msra.mxu1 %v26798_v13  ;;  %23367 = vmatprep.mubr.f32.mxu0 %v9391_v7 }
 0xdcd   :  { %23368 = vmatmul.mubr.f32.vlgmr.msra.gmra.mxu0 %v9401_v42  ;;  %23403 = vmatmul.mubr.f32.vlgmr.msra.gmra.mxu1 %v9397_v49  ;;  %v26924_v42 = vsub.f32 %v20665_v22, %v26906_v10 }
 0xdce   :  { %23378 = vmatpush3.msra.mxu0 %v26794_v48  ;;  %23381 = vmatprep.mubr.f32.mxu0 %v9388_v59 }
 0xdcf   :  { %23379 = vmatprep.subr.mxu0 %v26809_v54  ;;  %23412 = vmatprep.subr.mxu1 %v26705_v50 }
 0xdd0   :  { %23380 = vmatpush3.msra.mxu0 %v26809_v54  ;;  %23413 = vmatpush3.msra.mxu1 %v26705_v50 }
 0xdd1   :  { %23391 = vmatprep.subr.mxu0 %v26806_v30  ;;  %23382 = vmatmul.mubr.f32.vlgmr.msra.gmra.mxu0 %v9398_v26 }
 0xdd2   :  { %23392 = vmatpush3.msra.mxu0 %v26806_v30  ;;  %23395 = vmatprep.mubr.f32.mxu0 %v9387_v29  ;;  %v20664_v29 = vld [vmem:[%s28868_s1 + $0xa8] sm:$0xff] }
 0xdd3   :  { %23393 = vmatprep.subr.mxu0 %v26819_v18  ;;  %23414 = vmatprep.subr.mxu1 %v26710_v31  ;;  %v26918_v25 = vand.u32 4294901760, %v20664_v29 }
 0xdd4   :  { %23394 = vmatpush3.msra.mxu0 %v26819_v18  ;;  %23415 = vmatpush3.msra.mxu1 %v26710_v31 }
 0xdd5   :  { %23396 = vmatmul.mubr.f32.vlgmr.msra.gmra.mxu0 %v9397_v49  ;;  %23426 = vmatprep.subr.mxu1 %v26679_v53  ;;  %v26904_v49 = vsub.f32 %v20666_v12, %v26897_v44  ;;  %v20660_v12 = vld [vmem:[%s28868_s1 + $0x88] sm:$0xff] }
 0xdd6   :  { %23405 = vmatprep.subr.mxu0 %v26679_v53  ;;  %v26967_v22 = vand.u32 4294901760, %v20660_v12 }
 0xdd7   :  { %23406 = vmatpush3.msra.mxu0 %v26679_v53  ;;  %v26921_v7 = vand.u32 4294901760, %v26904_v49 }
 0xdd8   :  { %23407 = vmatprep.subr.mxu0 %v26687_v4 }
 0xdd9   :  { %23408 = vmatpush3.msra.mxu0 %v26687_v4 }
 0xdda   :  { %23419 = vmatprep.subr.mxu0 %v26685_v24 }
 0xe85   :  { %v23376_v50 = vpop.f32.mrf.mxu1 }
 0xe87   :  { %v9484_v57 = vpop.f32.mrf.mxu1 }
 0xe89   :  { %v23390_v48 = vpop.f32.mrf.mxu1 }
 0xe8b   :  { %v9648_v31 = vpop.f32.mrf.mxu1 }
 0xe8d   :  { %v23369_v13 = vpop.f32.mrf.mxu0  ;;  %v23404_v47 = vpop.f32.mrf.mxu1 }
 0xe8e   :  { %v9491_v54 = vadd.f32 %v23376_v50, %v23369_v13  ;;  %v20662_v50 = vld [vmem:[%s28868_s1 + $0x98] sm:$0xff]  ;;  %v26929_v13 = vand.u32 4294901760, %v20663_v5 }
 0xe8f   :  { %v9393_v30 = vpop.f32.mrf.mxu0  ;;  %v9812_v32 = vpop.f32.mrf.mxu1 }
 0xe90   :  { %v9485_v46 = vadd.f32 %v9484_v57, %v9393_v30  ;;  %v20661_v30 = vld [vmem:[%s28868_s1 + $0x90] sm:$0xff] }
 0xe91   :  { %v23383_v18 = vpop.f32.mrf.mxu0 }
 0xe92   :  { %v9574_v37 = vadd.f32 %v23383_v18, %v9491_v54  ;;  %v26939_v18 = vand.u32 4294901760, %v20662_v50 }
 0xe93   :  { %v9566_v15 = vpop.f32.mrf.mxu0 }
 0xe94   :  { %v9567_v62 = vadd.f32 %v9566_v15, %v9485_v46  ;;  %v9657_v33 = vadd.f32 %v23390_v48, %v9574_v37  ;;  %v10474_v37 = vsub.f32 %v26904_v49, %v26921_v7  ;;  %v26945_v15 = vand.u32 4294901760, %v26924_v42 }
 0xe95   :  { %v23397_v1 = vpop.f32.mrf.mxu0 }
 0xe96   :  { %v9740_v20 = vadd.f32 %v23397_v1, %v9657_v33  ;;  %v9649_v34 = vadd.f32 %v9648_v31, %v9567_v62  ;;  %v26937_v31 = vsub.f32 %v20664_v29, %v26918_v25  ;;  %v26952_v33 = vsub.f32 %v20663_v5, %v26929_v13  ;;  %v20659_v1 = vld [vmem:[%s28868_s1 + $0x80] sm:$0xff] }
 0xe97   :  { %v9733_v9 = vpop.f32.mrf.mxu0 }
 0xe98   :  { %v9819_v14 = vadd.f32 %v23404_v47, %v9740_v20  ;;  %v9734_v43 = vadd.f32 %v9733_v9, %v9649_v34  ;;  %v26954_v47 = vand.u32 4294901760, %v20661_v30  ;;  %v26962_v34 = vand.u32 4294901760, %v26937_v31 }
 0xe99   :  { %v26965_v9 = vsub.f32 %v20662_v50, %v26939_v18 }
 0xe9a   :  { %v9826_v28 = vsel %vm2079_vm1, %v9819_v14, 0  ;;  %v9813_v38 = vadd.f32 %v9812_v32, %v9734_v43  ;;  %v10475_v43 = vand.u32 4294901760, %v10474_v37  ;;  %v10481_v32 = vsub.f32 %v26924_v42, %v26945_v15 }
 0xe9b   :  { %v26911_v26 = vand.u32 4294901760, %v9826_v28  ;;  %v10488_v29 = vsub.f32 %v26937_v31, %v26962_v34 }
 0xe9c   :  { %v9823_v59 = vsel %vm2079_vm1, %v9813_v38, 0  ;;  %v26979_v38 = vand.u32 4294901760, %v20659_v1  ;;  %v10482_v5 = vand.u32 4294901760, %v10481_v32  ;;  %v20670_v32 = vld [vmem:[%s28869_s2 + $0x98] sm:$0xff] }
 0xe9d   :  { %v9906_v55 = vsub.f32 %v9826_v28, %v26911_v26  ;;  %v9895_v40 = vand.u32 4294901760, %v9823_v59  ;;  %v26977_v28 = vsub.f32 %v20661_v30, %v26954_v47 }
 0xe9f   :  { %v9907_v57 = vand.u32 4294901760, %v9906_v55  ;;  %v9896_v48 = vsub.f32 %v9823_v59, %v9895_v40  ;;  %23416 = vmatprep.mubr.f32.mxu1 %v9895_v40  ;;  %v26986_v59 = vand.u32 4294901760, %v26965_v9  ;;  %v26996_v50 = vand.u32 4294901760, %v26977_v28 }
 0xea0   :  { %23417 = vmatmul.mubr.f32.vlgmr.msra.gmra.mxu1 %v26911_v26 }
 0xea1   :  { %23427 = vmatpush3.msra.mxu1 %v26679_v53  ;;  %v9897_v54 = vand.u32 4294901760, %v9896_v48  ;;  %v9908_v46 = vsub.f32 %v9906_v55, %v9907_v57 }
 0xea2   :  { %23428 = vmatprep.subr.mxu1 %v26687_v4 }
 0xea3   :  { %23429 = vmatpush3.msra.mxu1 %v26687_v4  ;;  %23430 = vmatprep.mubr.f32.mxu1 %v9897_v54  ;;  %v9898_v62 = vsub.f32 %v9896_v48, %v9897_v54  ;;  %v9909_v14 = vand.u32 4294901760, %v9908_v46 }
 0xea4   :  { %23431 = vmatmul.mubr.f32.vlgmr.msra.gmra.mxu1 %v9907_v57  ;;  %23440 = vmatprep.subr.mxu1 %v26679_v53  ;;  %v26999_v57 = vsub.f32 %v20659_v1, %v26979_v38  ;;  %v20672_v1 = vld [vmem:[%s28869_s2 + $0xa8] sm:$0xff] }
 0xea5   :  { %23441 = vmatpush3.msra.mxu1 %v26679_v53  ;;  %23444 = vmatprep.mubr.f32.mxu1 %v9895_v40  ;;  %v9899_v20 = vand.u32 4294901760, %v9898_v62  ;;  %v26974_v53 = vand.u32 4294901760, %v26952_v33  ;;  %v28922_v62 = vld [vmem:[#allocation5_spill] sm:$0xff] }
 0xea6   :  { %23442 = vmatprep.subr.mxu1 %v26687_v4 }
 0xea7   :  { %23409 = vmatprep.mubr.f32.mxu0 %v9899_v20  ;;  %23443 = vmatpush3.msra.mxu1 %v26687_v4  ;;  %v26989_v4 = vsub.f32 %v20660_v12, %v26967_v22  ;;  %v28924_v20 = vld [vmem:[#allocation7_spill] sm:$0xff] }
 0xea8   :  { %23410 = vmatmul.mubr.f32.vlgmr.msra.gmra.mxu0 %v9909_v14  ;;  %23445 = vmatmul.mubr.f32.vlgmr.msra.gmra.mxu1 %v26911_v26  ;;  %v20671_v14 = vld [vmem:[%s28869_s2 + $0xa0] sm:$0xff] }
 0xea9   :  { %23420 = vmatpush3.msra.mxu0 %v26685_v24  ;;  %23423 = vmatprep.mubr.f32.mxu0 %v9896_v48  ;;  %v10495_v24 = vsub.f32 %v26952_v33, %v26974_v53  ;;  %v10489_v48 = vand.u32 4294901760, %v10488_v29  ;;  %v27006_v30 = vand.u32 4294901760, %v26989_v4 }
 0xeaa   :  { %23421 = vmatprep.subr.mxu0 %v26695_v11  ;;  %23469 = vmatprep.subr.mxu1 %v10475_v43 }
 0xeab   :  { %23422 = vmatpush3.msra.mxu0 %v26695_v11  ;;  %23470 = vmatpush3.msra.mxu1 %v10475_v43  ;;  %v10502_v11 = vsub.f32 %v26965_v9, %v26986_v59  ;;  %v10496_v54 = vand.u32 4294901760, %v10495_v24  ;;  %v10516_v46 = vsub.f32 %v26989_v4, %v27006_v30  ;;  %v20667_v24 = vld [vmem:[%s28869_s2 + $0x80] sm:$0xff] }
 0xeac   :  { %23433 = vmatprep.subr.mxu0 %v26692_v39  ;;  %23424 = vmatmul.mubr.f32.vlgmr.msra.gmra.mxu0 %v9906_v55  ;;  %v10509_v55 = vsub.f32 %v26977_v28, %v26996_v50 }
 0xead   :  { %23434 = vmatpush3.msra.mxu0 %v26692_v39  ;;  %23437 = vmatprep.mubr.f32.mxu0 %v9895_v40  ;;  %v27013_v39 = vand.u32 4294901760, %v26999_v57  ;;  %v10503_v40 = vand.u32 4294901760, %v10502_v11 }
 0xeae   :  { %23435 = vmatprep.subr.mxu0 %v26702_v23  ;;  %23471 = vmatprep.subr.mxu1 %v10482_v5 }
 0xeaf   :  { %23436 = vmatpush3.msra.mxu0 %v26702_v23  ;;  %23472 = vmatpush3.msra.mxu1 %v10482_v5  ;;  %v10510_v23 = vand.u32 4294901760, %v10509_v55  ;;  %v10523_v37 = vsub.f32 %v26999_v57, %v27013_v39 }
 0xeb0   :  { %23447 = vmatprep.subr.mxu0 %v26897_v44  ;;  %23438 = vmatmul.mubr.f32.vlgmr.msra.gmra.mxu0 %v26911_v26  ;;  %v10517_v26 = vand.u32 4294901760, %v10516_v46 }
 0xeb1   :  { %23448 = vmatpush3.msra.mxu0 %v26897_v44  ;;  %23473 = vmatprep.subr.mxu1 %v10489_v48  ;;  %v10524_v12 = vand.u32 4294901760, %v10523_v37 }
 0xeb2   :  { %23449 = vmatprep.subr.mxu0 %v26906_v10  ;;  %23474 = vmatpush3.msra.mxu1 %v10489_v48 }
 0xeb3   :  { %23450 = vmatpush3.msra.mxu0 %v26906_v10  ;;  %23475 = vmatprep.subr.mxu1 %v10496_v54 }
 0xeb4   :  { %23451 = vmatprep.subr.mxu0 %v26918_v25  ;;  %23476 = vmatpush3.msra.mxu1 %v10496_v54  ;;  %v27187_v54 = vand.u32 4294901760, %v20667_v24 }
 0xeb5   :  { %23452 = vmatpush3.msra.mxu0 %v26918_v25  ;;  %23477 = vmatprep.subr.mxu1 %v10503_v40 }
 0xeb6   :  { %23453 = vmatprep.subr.mxu0 %v26929_v13  ;;  %23478 = vmatpush3.msra.mxu1 %v10503_v40 }
 0xeb7   :  { %23454 = vmatpush3.msra.mxu0 %v26929_v13  ;;  %23479 = vmatprep.subr.mxu1 %v10510_v23 }
 0xeb8   :  { %23455 = vmatprep.subr.mxu0 %v26939_v18  ;;  %23480 = vmatpush3.msra.mxu1 %v10510_v23  ;;  %v27210_v23 = vsub.f32 %v20667_v24, %v27187_v54 }
 0xeb9   :  { %23456 = vmatpush3.msra.mxu0 %v26939_v18  ;;  %23481 = vmatprep.subr.mxu1 %v10517_v26 }
 0xeba   :  { %23457 = vmatprep.subr.mxu0 %v26954_v47  ;;  %23482 = vmatpush3.msra.mxu1 %v10517_v26 }
 0xebb   :  { %23458 = vmatpush3.msra.mxu0 %v26954_v47  ;;  %23483 = vmatprep.subr.mxu1 %v10524_v12 }
 0xebc   :  { %23459 = vmatprep.subr.mxu0 %v26967_v22  ;;  %23463 = vmatprep.mubr.f32.mxu0 %v25026_v60 }
 0xebd   :  { %23460 = vmatpush3.msra.mxu0 %v26967_v22  ;;  %23484 = vmatpush3.msra.mxu1 %v10524_v12 }
 0xebe   :  { %23461 = vmatprep.subr.mxu0 %v26979_v38  ;;  %23485 = vmatprep.mubr.f32.mxu1 %v24946_v27 }
 0xebf   :  { %23462 = vmatpush3.msra.mxu0 %v26979_v38  ;;  %23486 = vmatmul.mubr.f32.vlgmr.msra.gmra.mxu1 %v24970_v36 }
 0xec0   :  { %23464 = vmatmul.mubr.f32.vlgmr.msra.gmra.mxu0 %v25032_v63  ;;  %23491 = vmatprep.subr.mxu0 %v26904_v49 }
 0xec1   :  { %23513 = vmatprep.subr.mxu1 %v26897_v44  ;;  %23492 = vmatpush3.msra.mxu0 %v26904_v49  ;;  %v20674_v49 = vld [vmem:[%s28869_s2 + $0xb8] sm:$0xff] }
 0xec2   :  { %23514 = vmatpush3.msra.mxu1 %v26897_v44  ;;  %23493 = vmatprep.subr.mxu0 %v26924_v42 }
 0xec3   :  { %23515 = vmatprep.subr.mxu1 %v26906_v10  ;;  %23494 = vmatpush3.msra.mxu0 %v26924_v42  ;;  %v27084_v42 = vand.u32 4294901760, %v20674_v49 }
 0xec4   :  { %23516 = vmatpush3.msra.mxu1 %v26906_v10  ;;  %23495 = vmatprep.subr.mxu0 %v26937_v31 }
 0xec5   :  { %23517 = vmatprep.subr.mxu1 %v26918_v25  ;;  %23496 = vmatpush3.msra.mxu0 %v26937_v31  ;;  %v20673_v31 = vld [vmem:[%s28869_s2 + $0xb0] sm:$0xff] }
 0xec6   :  { %23518 = vmatpush3.msra.mxu1 %v26918_v25  ;;  %23497 = vmatprep.subr.mxu0 %v26952_v33 }
 0xec7   :  { %23519 = vmatprep.subr.mxu1 %v26929_v13  ;;  %23498 = vmatpush3.msra.mxu0 %v26952_v33  ;;  %v27095_v33 = vand.u32 4294901760, %v20673_v31 }
 0xec8   :  { %23520 = vmatpush3.msra.mxu1 %v26929_v13  ;;  %23499 = vmatprep.subr.mxu0 %v26965_v9 }
 0xec9   :  { %23521 = vmatprep.subr.mxu1 %v26939_v18  ;;  %23500 = vmatpush3.msra.mxu0 %v26965_v9  ;;  %v27109_v9 = vand.u32 4294901760, %v20672_v1 }
 0xeca   :  { %23522 = vmatpush3.msra.mxu1 %v26939_v18  ;;  %23466 = vmatprep.mubr.f32.mxu0 %v25063_v19 }
 0xecb   :  { %23488 = vmatprep.mubr.f32.mxu1 %v25008_v52  ;;  %23501 = vmatprep.subr.mxu0 %v26977_v28 }
 0xecc   :  { %23523 = vmatprep.subr.mxu1 %v26954_v47  ;;  %23467 = vmatmul.mubr.f32.gmra.mxu0 %v25069_v16 }
 0xecd   :  { %23489 = vmatmul.mubr.f32.gmra.mxu1 %v25015_v56  ;;  %23502 = vmatpush3.msra.mxu0 %v26977_v28  ;;  %v20669_v28 = vld [vmem:[%s28869_s2 + $0x90] sm:$0xff] }
 0xece   :  { %23524 = vmatpush3.msra.mxu1 %v26954_v47  ;;  %23503 = vmatprep.subr.mxu0 %v26989_v4  ;;  %v27158_v5 = vand.u32 4294901760, %v20669_v28 }
 0xecf   :  { %23525 = vmatprep.subr.mxu1 %v26967_v22  ;;  %23504 = vmatpush3.msra.mxu0 %v26989_v4  ;;  %v20668_v4 = vld [vmem:[%s28869_s2 + $0x88] sm:$0xff] }
 0xed0   :  { %23526 = vmatpush3.msra.mxu1 %v26967_v22  ;;  %23505 = vmatprep.subr.mxu0 %v26999_v57 }
 0xed1   :  { %23527 = vmatprep.subr.mxu1 %v26979_v38  ;;  %23506 = vmatpush3.msra.mxu0 %v26999_v57 }
 0xed2   :  { %23507 = vmatprep.mubr.f32.mxu0 %v24967_v35  ;;  %23528 = vmatpush3.msra.mxu1 %v26979_v38 }
 0xed3   :  { %23508 = vmatmul.mubr.f32.vlgmr.msra.gmra.mxu0 %v24989_v45  ;;  %23529 = vmatprep.mubr.f32.mxu1 %v24980_v41 }
 0xed4   :  { %23535 = vmatprep.subr.mxu0 %v26921_v7  ;;  %23557 = vmatprep.subr.mxu1 %v26897_v44 }
 0xed5   :  { %23530 = vmatmul.mubr.f32.vlgmr.msra.gmra.mxu1 %v25006_v51  ;;  %23536 = vmatpush3.msra.mxu0 %v26921_v7  ;;  %v27103_v7 = vsub.f32 %v20674_v49, %v27084_v42 }
 0xed6   :  { %23558 = vmatpush3.msra.mxu1 %v26897_v44  ;;  %23537 = vmatprep.subr.mxu0 %v26945_v15  ;;  %v28923_v44 = vld [vmem:[#allocation6_spill] sm:$0xff] }
 0xed7   :  { %23559 = vmatprep.subr.mxu1 %v26906_v10  ;;  %23510 = vmatprep.mubr.f32.mxu0 %v28922_v62  ;;  %v27122_v43 = vand.u32 4294901760, %v27103_v7 }
 0xed8   :  { %23538 = vmatpush3.msra.mxu0 %v26945_v15  ;;  %23560 = vmatpush3.msra.mxu1 %v26906_v10  ;;  %v27117_v10 = vsub.f32 %v20673_v31, %v27095_v33  ;;  %v28925_v15 = vld [vmem:[#allocation8_spill] sm:$0xff] }
 0xed9   :  { %23511 = vmatmul.mubr.f32.gmra.mxu0 %v28923_v44  ;;  %23539 = vmatprep.subr.mxu0 %v26962_v34 }
 0xeda   :  { %23561 = vmatprep.subr.mxu1 %v26918_v25  ;;  %23532 = vmatprep.mubr.f32.mxu1 %v28924_v20  ;;  %v27142_v29 = vand.u32 4294901760, %v27117_v10 }
 0xedb   :  { %23540 = vmatpush3.msra.mxu0 %v26962_v34  ;;  %23562 = vmatpush3.msra.mxu1 %v26918_v25  ;;  %v27129_v34 = vand.u32 4294901760, %v20671_v14  ;;  %v27134_v25 = vsub.f32 %v20672_v1, %v27109_v9  ;;  %v27225_v1 = vand.u32 4294901760, %v27210_v23 }
 0xedc   :  { %23533 = vmatmul.mubr.f32.gmra.mxu1 %v28925_v15  ;;  %23541 = vmatprep.subr.mxu0 %v26974_v53 }
 0xedd   :  { %23563 = vmatprep.subr.mxu1 %v26929_v13  ;;  %23542 = vmatpush3.msra.mxu0 %v26974_v53  ;;  %v27144_v53 = vand.u32 4294901760, %v20670_v32 }
 0xede   :  { %23564 = vmatpush3.msra.mxu1 %v26929_v13  ;;  %23543 = vmatprep.subr.mxu0 %v26986_v59  ;;  %v11149_v13 = vsub.f32 %v27103_v7, %v27122_v43 }
 0xedf   :  { %23565 = vmatprep.subr.mxu1 %v26939_v18  ;;  %23544 = vmatpush3.msra.mxu0 %v26986_v59  ;;  %v27156_v59 = vsub.f32 %v20671_v14, %v27129_v34  ;;  %v27173_v57 = vsub.f32 %v20670_v32, %v27144_v53 }
 0xee0   :  { %23566 = vmatpush3.msra.mxu1 %v26939_v18  ;;  %23545 = vmatprep.subr.mxu0 %v26996_v50  ;;  %v27163_v18 = vand.u32 4294901760, %v27134_v25  ;;  %v11150_v48 = vand.u32 4294901760, %v11149_v13  ;;  %v11198_v13 = vsub.f32 %v27210_v23, %v27225_v1 }
 0xee1   :  { %23567 = vmatprep.subr.mxu1 %v26954_v47  ;;  %23546 = vmatpush3.msra.mxu0 %v26996_v50  ;;  %v11156_v50 = vsub.f32 %v27117_v10, %v27142_v29  ;;  %v27182_v11 = vand.u32 4294901760, %v27156_v59 }
 0xee2   :  { %23568 = vmatpush3.msra.mxu1 %v26954_v47  ;;  %23547 = vmatprep.subr.mxu0 %v27006_v30  ;;  %v27175_v47 = vand.u32 4294901760, %v20668_v4  ;;  %v11199_v24 = vand.u32 4294901760, %v11198_v13 }
 0xee3   :  { %23569 = vmatprep.subr.mxu1 %v26967_v22  ;;  %23548 = vmatpush3.msra.mxu0 %v27006_v30  ;;  %v27185_v30 = vsub.f32 %v20669_v28, %v27158_v5  ;;  %v11157_v55 = vand.u32 4294901760, %v11156_v50  ;;  %v20680_v50 = vld [vmem:[%s28870_s3 + $0xa8] sm:$0xff] }
 0xee4   :  { %23570 = vmatpush3.msra.mxu1 %v26967_v22  ;;  %23549 = vmatprep.subr.mxu0 %v27013_v39  ;;  %v11163_v22 = vsub.f32 %v27134_v25, %v27163_v18  ;;  %v27199_v40 = vsub.f32 %v20668_v4, %v27175_v47 }
 0xee5   :  { %23571 = vmatprep.subr.mxu1 %v26979_v38  ;;  %23550 = vmatpush3.msra.mxu0 %v27013_v39  ;;  %v27196_v39 = vand.u32 4294901760, %v27173_v57  ;;  %v27207_v46 = vand.u32 4294901760, %v27185_v30 }
 0xee6   :  { %23551 = vmatprep.mubr.f32.mxu0 %v24946_v27  ;;  %23572 = vmatpush3.msra.mxu1 %v26979_v38  ;;  %v11170_v38 = vsub.f32 %v27156_v59, %v27182_v11  ;;  %v11164_v37 = vand.u32 4294901760, %v11163_v22  ;;  %v27217_v12 = vand.u32 4294901760, %v27199_v40 }
 0xee7   :  { %23552 = vmatmul.mubr.f32.vlgmr.msra.gmra.mxu0 %v24970_v36  ;;  %23573 = vmatprep.mubr.f32.mxu1 %v24946_v27  ;;  %v11177_v26 = vsub.f32 %v27173_v57, %v27196_v39  ;;  %v11184_v31 = vsub.f32 %v27185_v30, %v27207_v46 }
 0xee8   :  { %23579 = vmatprep.subr.mxu0 %v27084_v42  ;;  %23601 = vmatprep.subr.mxu1 %v11150_v48  ;;  %v11171_v49 = vand.u32 4294901760, %v11170_v38  ;;  %v11191_v32 = vsub.f32 %v27199_v40, %v27217_v12  ;;  %v20675_v38 = vld [vmem:[%s28870_s3 + $0x80] sm:$0xff] }
 0xee9   :  { %23574 = vmatmul.mubr.f32.vlgmr.msra.gmra.mxu1 %v24970_v36  ;;  %23580 = vmatpush3.msra.mxu0 %v27084_v42  ;;  %v11178_v14 = vand.u32 4294901760, %v11177_v26  ;;  %v11185_v28 = vand.u32 4294901760, %v11184_v31 }
 0xeea   :  { %23602 = vmatpush3.msra.mxu1 %v11150_v48  ;;  %23581 = vmatprep.subr.mxu0 %v27095_v33  ;;  %v11192_v4 = vand.u32 4294901760, %v11191_v32 }
 0xeeb   :  { %23603 = vmatprep.subr.mxu1 %v11157_v55  ;;  %23554 = vmatprep.mubr.f32.mxu0 %v25008_v52 }
 0xeec   :  { %23582 = vmatpush3.msra.mxu0 %v27095_v33  ;;  %23604 = vmatpush3.msra.mxu1 %v11157_v55  ;;  %v20676_v55 = vld [vmem:[%s28870_s3 + $0x88] sm:$0xff] }
 0xeed   :  { %23555 = vmatmul.mubr.f32.gmra.mxu0 %v25015_v56  ;;  %23583 = vmatprep.subr.mxu0 %v27109_v9 }
 0xeee   :  { %23605 = vmatprep.subr.mxu1 %v11164_v37  ;;  %23576 = vmatprep.mubr.f32.mxu1 %v25008_v52 }
 0xeef   :  { %23584 = vmatpush3.msra.mxu0 %v27109_v9  ;;  %23606 = vmatpush3.msra.mxu1 %v11164_v37  ;;  %v27379_v37 = vand.u32 4294901760, %v20676_v55 }
 0xef0   :  { %23577 = vmatmul.mubr.f32.gmra.mxu1 %v25015_v56  ;;  %23585 = vmatprep.subr.mxu0 %v27129_v34 }
 0xef1   :  { %23607 = vmatprep.subr.mxu1 %v11171_v49  ;;  %23586 = vmatpush3.msra.mxu0 %v27129_v34 }
 0xef2   :  { %23608 = vmatpush3.msra.mxu1 %v11171_v49  ;;  %23587 = vmatprep.subr.mxu0 %v27144_v53  ;;  %v27393_v49 = vand.u32 4294901760, %v20675_v38 }
 0xef3   :  { %23609 = vmatprep.subr.mxu1 %v11178_v14  ;;  %23588 = vmatpush3.msra.mxu0 %v27144_v53 }
 0xef4   :  { %23610 = vmatpush3.msra.mxu1 %v11178_v14  ;;  %23589 = vmatprep.subr.mxu0 %v27158_v5  ;;  %v27405_v14 = vsub.f32 %v20676_v55, %v27379_v37 }
 0xef5   :  { %23611 = vmatprep.subr.mxu1 %v11185_v28  ;;  %23590 = vmatpush3.msra.mxu0 %v27158_v5 }
 0xef6   :  { %23612 = vmatpush3.msra.mxu1 %v11185_v28  ;;  %23591 = vmatprep.subr.mxu0 %v27175_v47  ;;  %v27417_v28 = vsub.f32 %v20675_v38, %v27393_v49 }
 0xef7   :  { %23613 = vmatprep.subr.mxu1 %v11192_v4  ;;  %23592 = vmatpush3.msra.mxu0 %v27175_v47 }
 0xef8   :  { %23614 = vmatpush3.msra.mxu1 %v11192_v4  ;;  %23593 = vmatprep.subr.mxu0 %v27187_v54 }
 0xef9   :  { %23615 = vmatprep.subr.mxu1 %v11199_v24  ;;  %23594 = vmatpush3.msra.mxu0 %v27187_v54 }
 0xefa   :  { %23595 = vmatprep.mubr.f32.mxu0 %v25026_v60  ;;  %23616 = vmatpush3.msra.mxu1 %v11199_v24  ;;  %v27424_v24 = vand.u32 4294901760, %v27405_v14 }
 0xefb   :  { %23617 = vmatprep.mubr.f32.mxu1 %v24946_v27  ;;  %23596 = vmatmul.mubr.f32.vlgmr.msra.gmra.mxu0 %v25032_v63 }
 0xefc   :  { %23618 = vmatmul.mubr.f32.vlgmr.msra.gmra.mxu1 %v24970_v36  ;;  %23623 = vmatprep.subr.mxu0 %v27103_v7 }
 0xefd   :  { %23645 = vmatprep.subr.mxu1 %v27084_v42  ;;  %23624 = vmatpush3.msra.mxu0 %v27103_v7  ;;  %v20682_v7 = vld [vmem:[%s28870_s3 + $0xb8] sm:$0xff] }
 0xefe   :  { %23646 = vmatpush3.msra.mxu1 %v27084_v42  ;;  %23625 = vmatprep.subr.mxu0 %v27117_v10 }
 0xeff   :  { %23647 = vmatprep.subr.mxu1 %v27095_v33  ;;  %23626 = vmatpush3.msra.mxu0 %v27117_v10  ;;  %v20681_v10 = vld [vmem:[%s28870_s3 + $0xb0] sm:$0xff] }
 0xf00   :  { %23648 = vmatpush3.msra.mxu1 %v27095_v33  ;;  %23627 = vmatprep.subr.mxu0 %v27134_v25 }
 0xf01   :  { %23649 = vmatprep.subr.mxu1 %v27109_v9  ;;  %23628 = vmatpush3.msra.mxu0 %v27134_v25  ;;  %v27297_v25 = vand.u32 4294901760, %v20682_v7 }
 0xf02   :  { %23650 = vmatpush3.msra.mxu1 %v27109_v9  ;;  %23629 = vmatprep.subr.mxu0 %v27156_v59 }
 0xf03   :  { %23651 = vmatprep.subr.mxu1 %v27129_v34  ;;  %23630 = vmatpush3.msra.mxu0 %v27156_v59  ;;  %v27303_v59 = vand.u32 4294901760, %v20681_v10 }
 0xf04   :  { %23652 = vmatpush3.msra.mxu1 %v27129_v34  ;;  %23631 = vmatprep.subr.mxu0 %v27173_v57 }
 0xf05   :  { %23653 = vmatprep.subr.mxu1 %v27144_v53  ;;  %23632 = vmatpush3.msra.mxu0 %v27173_v57  ;;  %v27320_v57 = vand.u32 4294901760, %v20680_v50 }
 0xf06   :  { %23654 = vmatpush3.msra.mxu1 %v27144_v53  ;;  %23598 = vmatprep.mubr.f32.mxu0 %v25063_v19 }
 0xf07   :  { %23620 = vmatprep.mubr.f32.mxu1 %v25008_v52  ;;  %23633 = vmatprep.subr.mxu0 %v27185_v30 }
 0xf08   :  { %23655 = vmatprep.subr.mxu1 %v27158_v5  ;;  %23599 = vmatmul.mubr.f32.gmra.mxu0 %v25069_v16 }
 0xf09   :  { %23621 = vmatmul.mubr.f32.gmra.mxu1 %v25015_v56  ;;  %23634 = vmatpush3.msra.mxu0 %v27185_v30  ;;  %v27345_v30 = vsub.f32 %v20680_v50, %v27320_v57  ;;  %v27432_v50 = vand.u32 4294901760, %v27417_v28 }
 0xf0a   :  { %23656 = vmatpush3.msra.mxu1 %v27158_v5  ;;  %23635 = vmatprep.subr.mxu0 %v27199_v40 }
 0xf0b   :  { %23657 = vmatprep.subr.mxu1 %v27175_v47  ;;  %23636 = vmatpush3.msra.mxu0 %v27199_v40  ;;  %v11873_v55 = vsub.f32 %v27417_v28, %v27432_v50 }
 0xf0c   :  { %23658 = vmatpush3.msra.mxu1 %v27175_v47  ;;  %23637 = vmatprep.subr.mxu0 %v27210_v23 }
 0xf0d   :  { %23659 = vmatprep.subr.mxu1 %v27187_v54  ;;  %23638 = vmatpush3.msra.mxu0 %v27210_v23  ;;  %v11874_v38 = vand.u32 4294901760, %v11873_v55 }
 0xf0e   :  { %23639 = vmatprep.mubr.f32.mxu0 %v24967_v35  ;;  %23660 = vmatpush3.msra.mxu1 %v27187_v54 }
 0xf0f   :  { %23640 = vmatmul.mubr.f32.vlgmr.msra.gmra.mxu0 %v24989_v45  ;;  %23661 = vmatprep.mubr.f32.mxu1 %v24980_v41 }
 0xf10   :  { %23667 = vmatprep.subr.mxu0 %v27122_v43  ;;  %23689 = vmatprep.subr.mxu1 %v27084_v42 }
 0xf11   :  { %23662 = vmatmul.mubr.f32.vlgmr.msra.gmra.mxu1 %v25006_v51  ;;  %23668 = vmatpush3.msra.mxu0 %v27122_v43  ;;  %v20679_v43 = vld [vmem:[%s28870_s3 + $0xa0] sm:$0xff] }
 0xf12   :  { %23690 = vmatpush3.msra.mxu1 %v27084_v42  ;;  %23669 = vmatprep.subr.mxu0 %v27142_v29  ;;  %v27313_v42 = vsub.f32 %v20682_v7, %v27297_v25  ;;  %v27332_v48 = vand.u32 4294901760, %v20679_v43 }
 0xf13   :  { %23691 = vmatprep.subr.mxu1 %v27095_v33  ;;  %23642 = vmatprep.mubr.f32.mxu0 %v28922_v62 }
 0xf14   :  { %23670 = vmatpush3.msra.mxu0 %v27142_v29  ;;  %23692 = vmatpush3.msra.mxu1 %v27095_v33  ;;  %v27325_v33 = vsub.f32 %v20681_v10, %v27303_v59  ;;  %v20678_v29 = vld [vmem:[%s28870_s3 + $0x98] sm:$0xff] }
 0xf15   :  { %23643 = vmatmul.mubr.f32.gmra.mxu0 %v28923_v44  ;;  %23671 = vmatprep.subr.mxu0 %v27163_v18  ;;  %v27347_v22 = vand.u32 4294901760, %v20678_v29 }
 0xf16   :  { %23693 = vmatprep.subr.mxu1 %v27109_v9  ;;  %23664 = vmatprep.mubr.f32.mxu1 %v28924_v20 }
 0xf17   :  { %23672 = vmatpush3.msra.mxu0 %v27163_v18  ;;  %23694 = vmatpush3.msra.mxu1 %v27109_v9  ;;  %v27337_v18 = vand.u32 4294901760, %v27313_v42  ;;  %v20677_v9 = vld [vmem:[%s28870_s3 + $0x90] sm:$0xff]  ;;  %v27377_v23 = vsub.f32 %v20678_v29, %v27347_v22  ;;  %v11866_v29 = vsub.f32 %v27405_v14, %v27424_v24 }
 0xf18   :  { %23665 = vmatmul.mubr.f32.gmra.mxu1 %v28925_v15  ;;  %23673 = vmatprep.subr.mxu0 %v27182_v11  ;;  %v27362_v40 = vand.u32 4294901760, %v20677_v9 }
 0xf19   :  { %23695 = vmatprep.subr.mxu1 %v27129_v34  ;;  %23674 = vmatpush3.msra.mxu0 %v27182_v11  ;;  %v27352_v11 = vand.u32 4294901760, %v27325_v33  ;;  %v27402_v31 = vand.u32 4294901760, %v27377_v23 }
 0xf1a   :  { %23696 = vmatpush3.msra.mxu1 %v27129_v34  ;;  %23675 = vmatprep.subr.mxu0 %v27196_v39  ;;  %v27360_v34 = vsub.f32 %v20679_v43, %v27332_v48  ;;  %v27391_v26 = vsub.f32 %v20677_v9, %v27362_v40 }
 0xf1b   :  { %23697 = vmatprep.subr.mxu1 %v27144_v53  ;;  %23676 = vmatpush3.msra.mxu0 %v27196_v39  ;;  %v11824_v39 = vsub.f32 %v27313_v42, %v27337_v18  ;;  %v11852_v4 = vsub.f32 %v27377_v23, %v27402_v31 }
 0xf1c   :  { %23698 = vmatpush3.msra.mxu1 %v27144_v53  ;;  %23677 = vmatprep.subr.mxu0 %v27207_v46  ;;  %v27374_v53 = vand.u32 4294901760, %v27345_v30 }
 0xf1d   :  { %23699 = vmatprep.subr.mxu1 %v27158_v5  ;;  %23678 = vmatpush3.msra.mxu0 %v27207_v46  ;;  %v11831_v46 = vsub.f32 %v27325_v33, %v27352_v11  ;;  %v11853_v43 = vand.u32 4294901760, %v11852_v4 }
 0xf1e   :  { %23700 = vmatpush3.msra.mxu1 %v27158_v5  ;;  %23679 = vmatprep.subr.mxu0 %v27217_v12  ;;  %v27388_v5 = vand.u32 4294901760, %v27360_v34 }
 0xf1f   :  { %23701 = vmatprep.subr.mxu1 %v27175_v47  ;;  %23680 = vmatpush3.msra.mxu0 %v27217_v12  ;;  %v11825_v12 = vand.u32 4294901760, %v11824_v39  ;;  %v11832_v32 = vand.u32 4294901760, %v11831_v46  ;;  %v11867_v39 = vand.u32 4294901760, %v11866_v29  ;;  %v28930_v46 = vld [vmem:[#allocation19_spill] sm:$0xff] }
 0xf20   :  { %23702 = vmatpush3.msra.mxu1 %v27175_v47  ;;  %23681 = vmatprep.subr.mxu0 %v27225_v1  ;;  %v11838_v47 = vsub.f32 %v27345_v30, %v27374_v53 }
 0xf21   :  { %23703 = vmatprep.subr.mxu1 %v27187_v54  ;;  %23682 = vmatpush3.msra.mxu0 %v27225_v1  ;;  %v27414_v1 = vand.u32 4294901760, %v27391_v26 }
 0xf22   :  { %23683 = vmatprep.mubr.f32.mxu0 %v24946_v27  ;;  %23704 = vmatpush3.msra.mxu1 %v27187_v54  ;;  %v11845_v54 = vsub.f32 %v27360_v34, %v27388_v5  ;;  %v11839_v13 = vand.u32 4294901760, %v11838_v47 }
 0xf23   :  { %23705 = vmatprep.mubr.f32.mxu1 %v24946_v27  ;;  %23684 = vmatmul.mubr.f32.vlgmr.msra.gmra.mxu0 %v24970_v36  ;;  %v11859_v10 = vsub.f32 %v27391_v26, %v27414_v1 }
 0xf24   :  { %23706 = vmatmul.mubr.f32.vlgmr.msra.gmra.mxu1 %v24970_v36  ;;  %23686 = vmatprep.mubr.f32.mxu0 %v25008_v52  ;;  %v11846_v7 = vand.u32 4294901760, %v11845_v54 }
 0xf25   :  { %23708 = vmatprep.mubr.f32.mxu1 %v25008_v52  ;;  %23733 = vmatprep.subr.mxu1 %v11825_v12  ;;  %v11860_v9 = vand.u32 4294901760, %v11859_v10 }
 0xf26   :  { %23734 = vmatpush3.msra.mxu1 %v11825_v12  ;;  %23711 = vmatprep.subr.mxu0 %v27297_v25 }
 0xf27   :  { %23687 = vmatmul.mubr.f32.gmra.mxu0 %v25015_v56  ;;  %23735 = vmatprep.subr.mxu1 %v11832_v32 }
 0xf28   :  { %23709 = vmatmul.mubr.f32.gmra.mxu1 %v25015_v56  ;;  %23712 = vmatpush3.msra.mxu0 %v27297_v25 }
 0xf29   :  { %23736 = vmatpush3.msra.mxu1 %v11832_v32  ;;  %23713 = vmatprep.subr.mxu0 %v27303_v59 }
 0xf2a   :  { %23737 = vmatprep.subr.mxu1 %v11839_v13  ;;  %23714 = vmatpush3.msra.mxu0 %v27303_v59 }
 0xf2b   :  { %23738 = vmatpush3.msra.mxu1 %v11839_v13  ;;  %23715 = vmatprep.subr.mxu0 %v27320_v57 }
 0xf2c   :  { %23739 = vmatprep.subr.mxu1 %v11846_v7  ;;  %23716 = vmatpush3.msra.mxu0 %v27320_v57 }
 0xf2d   :  { %23740 = vmatpush3.msra.mxu1 %v11846_v7  ;;  %23717 = vmatprep.subr.mxu0 %v27332_v48 }
 0xf2e   :  { %23741 = vmatprep.subr.mxu1 %v11853_v43  ;;  %23718 = vmatpush3.msra.mxu0 %v27332_v48 }
 0xf2f   :  { %23742 = vmatpush3.msra.mxu1 %v11853_v43  ;;  %23719 = vmatprep.subr.mxu0 %v27347_v22 }
 0xf30   :  { %23743 = vmatprep.subr.mxu1 %v11860_v9  ;;  %23749 = vmatprep.mubr.f32.mxu1 %v24946_v27 }
 0xf31   :  { %23744 = vmatpush3.msra.mxu1 %v11860_v9  ;;  %23720 = vmatpush3.msra.mxu0 %v27347_v22 }
 0xf32   :  { %23745 = vmatprep.subr.mxu1 %v11867_v39  ;;  %23721 = vmatprep.subr.mxu0 %v27362_v40 }
 0xf33   :  { %23746 = vmatpush3.msra.mxu1 %v11867_v39  ;;  %23722 = vmatpush3.msra.mxu0 %v27362_v40 }
 0xf34   :  { %23747 = vmatprep.subr.mxu1 %v11874_v38  ;;  %23723 = vmatprep.subr.mxu0 %v27379_v37 }
 0xf35   :  { %23748 = vmatpush3.msra.mxu1 %v11874_v38  ;;  %23724 = vmatpush3.msra.mxu0 %v27379_v37 }
 0xf36   :  { %23777 = vmatprep.subr.mxu1 %v27297_v25  ;;  %23750 = vmatmul.mubr.f32.vlgmr.msra.gmra.mxu1 %v24970_v36 }
 0xf37   :  { %23778 = vmatpush3.msra.mxu1 %v27297_v25  ;;  %23725 = vmatprep.subr.mxu0 %v27393_v49 }
 0xf38   :  { %23779 = vmatprep.subr.mxu1 %v27303_v59  ;;  %23726 = vmatpush3.msra.mxu0 %v27393_v49 }
 0xf39   :  { %23780 = vmatpush3.msra.mxu1 %v27303_v59  ;;  %23727 = vmatprep.mubr.f32.mxu0 %v25026_v60 }
 0xf3a   :  { %23781 = vmatprep.subr.mxu1 %v27320_v57  ;;  %23755 = vmatprep.subr.mxu0 %v27313_v42 }
 0xf3b   :  { %23782 = vmatpush3.msra.mxu1 %v27320_v57  ;;  %23728 = vmatmul.mubr.f32.vlgmr.msra.gmra.mxu0 %v25032_v63 }
 0xf3c   :  { %23783 = vmatprep.subr.mxu1 %v27332_v48  ;;  %23756 = vmatpush3.msra.mxu0 %v27313_v42 }
 0xf3d   :  { %23784 = vmatpush3.msra.mxu1 %v27332_v48  ;;  %23757 = vmatprep.subr.mxu0 %v27325_v33 }
 0xf3e   :  { %23785 = vmatprep.subr.mxu1 %v27347_v22  ;;  %23758 = vmatpush3.msra.mxu0 %v27325_v33 }
 0xf3f   :  { %23786 = vmatpush3.msra.mxu1 %v27347_v22  ;;  %23752 = vmatprep.mubr.f32.mxu1 %v25008_v52 }
 0xf40   :  { %23787 = vmatprep.subr.mxu1 %v27362_v40  ;;  %23759 = vmatprep.subr.mxu0 %v27345_v30 }
 0xf41   :  { %23788 = vmatpush3.msra.mxu1 %v27362_v40  ;;  %23760 = vmatpush3.msra.mxu0 %v27345_v30 }
 0xf42   :  { %23789 = vmatprep.subr.mxu1 %v27379_v37  ;;  %23753 = vmatmul.mubr.f32.gmra.mxu1 %v25015_v56 }
 0xf43   :  { %23790 = vmatpush3.msra.mxu1 %v27379_v37  ;;  %23761 = vmatprep.subr.mxu0 %v27360_v34 }
 0xf44   :  { %23791 = vmatprep.subr.mxu1 %v27393_v49  ;;  %23762 = vmatpush3.msra.mxu0 %v27360_v34 }
 0xf45   :  { %23792 = vmatpush3.msra.mxu1 %v27393_v49  ;;  %23763 = vmatprep.subr.mxu0 %v27377_v23 }
 0xf46   :  { %23793 = vmatprep.mubr.f32.mxu1 %v24980_v41  ;;  %23821 = vmatprep.subr.mxu1 %v27297_v25 }
 0xf47   :  { %23764 = vmatpush3.msra.mxu0 %v27377_v23  ;;  %23794 = vmatmul.mubr.f32.vlgmr.msra.gmra.mxu1 %v25006_v51 }
 0xf48   :  { %23822 = vmatpush3.msra.mxu1 %v27297_v25  ;;  %23765 = vmatprep.subr.mxu0 %v27391_v26 }
 0xf49   :  { %23823 = vmatprep.subr.mxu1 %v27303_v59  ;;  %23766 = vmatpush3.msra.mxu0 %v27391_v26 }
 0xf4a   :  { %23824 = vmatpush3.msra.mxu1 %v27303_v59  ;;  %23730 = vmatprep.mubr.f32.mxu0 %v25063_v19 }
 0xf4b   :  { %23767 = vmatprep.subr.mxu0 %v27405_v14  ;;  %23825 = vmatprep.subr.mxu1 %v27320_v57 }
 0xf4c   :  { %23731 = vmatmul.mubr.f32.gmra.mxu0 %v25069_v16  ;;  %23826 = vmatpush3.msra.mxu1 %v27320_v57 }
 0xf4d   :  { %23768 = vmatpush3.msra.mxu0 %v27405_v14  ;;  %23827 = vmatprep.subr.mxu1 %v27332_v48 }
 0xf4e   :  { %23769 = vmatprep.subr.mxu0 %v27417_v28  ;;  %23828 = vmatpush3.msra.mxu1 %v27332_v48 }
 0xf4f   :  { %23770 = vmatpush3.msra.mxu0 %v27417_v28  ;;  %23771 = vmatprep.mubr.f32.mxu0 %v24967_v35 }
 0xf50   :  { %23799 = vmatprep.subr.mxu0 %v27337_v18  ;;  %23829 = vmatprep.subr.mxu1 %v27347_v22 }
 0xf51   :  { %23772 = vmatmul.mubr.f32.vlgmr.msra.gmra.mxu0 %v24989_v45  ;;  %23830 = vmatpush3.msra.mxu1 %v27347_v22 }
 0xf52   :  { %23800 = vmatpush3.msra.mxu0 %v27337_v18  ;;  %23831 = vmatprep.subr.mxu1 %v27362_v40 }
 0xf53   :  { %23801 = vmatprep.subr.mxu0 %v27352_v11  ;;  %23796 = vmatprep.mubr.f32.mxu1 %v28924_v20 }
 0xf54   :  { %23802 = vmatpush3.msra.mxu0 %v27352_v11  ;;  %23832 = vmatpush3.msra.mxu1 %v27362_v40 }
 0xf55   :  { %23797 = vmatmul.mubr.f32.gmra.mxu1 %v28925_v15  ;;  %23803 = vmatprep.subr.mxu0 %v27374_v53 }
 0xf56   :  { %23833 = vmatprep.subr.mxu1 %v27379_v37  ;;  %23804 = vmatpush3.msra.mxu0 %v27374_v53 }
 0xf57   :  { %23834 = vmatpush3.msra.mxu1 %v27379_v37  ;;  %23805 = vmatprep.subr.mxu0 %v27388_v5  ;;  %v24810_v37 = vld [vmem:[%s28872_s5] ss:$0 sm:$0xff] }
 0xf58   :  { %23835 = vmatprep.subr.mxu1 %v27393_v49  ;;  %23806 = vmatpush3.msra.mxu0 %v27388_v5  ;;  %v5191_v5 = vadd.f32 %v24810_v37, %v28930_v46 }
 0xf59   :  { %23836 = vmatpush3.msra.mxu1 %v27393_v49  ;;  %23837 = vmatprep.mubr.f32.mxu1 %v24946_v27 }
 0xf5a   :  { %23807 = vmatprep.subr.mxu0 %v27402_v31  ;;  %23838 = vmatmul.mubr.f32.vlgmr.msra.gmra.mxu1 %v24970_v36 }
 0xf5b   :  { %23808 = vmatpush3.msra.mxu0 %v27402_v31  ;;  %23774 = vmatprep.mubr.f32.mxu0 %v28922_v62 }
 0xf5c   :  { %23809 = vmatprep.subr.mxu0 %v27414_v1  ;;  %23840 = vmatprep.mubr.f32.mxu1 %v25008_v52 }
 0xf5d   :  { %23810 = vmatpush3.msra.mxu0 %v27414_v1 }
 0xf5e   :  { %23775 = vmatmul.mubr.f32.gmra.mxu0 %v28923_v44  ;;  %23811 = vmatprep.subr.mxu0 %v27424_v24 }
 0xf5f   :  { %23841 = vmatmul.mubr.f32.gmra.mxu1 %v25015_v56  ;;  %23812 = vmatpush3.msra.mxu0 %v27424_v24 }
 0xf60   :  { %23813 = vmatprep.subr.mxu0 %v27432_v50  ;;  %23815 = vmatprep.mubr.f32.mxu0 %v24946_v27  ;;  %v23418_v25 = vpop.f32.mrf.mxu1 }
 0xf61   :  { %23814 = vmatpush3.msra.mxu0 %v27432_v50 }
 0xf62   :  { %23816 = vmatmul.mubr.f32.vlgmr.msra.gmra.mxu0 %v24970_v36  ;;  %v27539_v59 = vpop.f32.mrf.mxu1 }
 0xf63   :  { %23818 = vmatprep.mubr.f32.mxu0 %v25008_v52  ;;  %28926 = vst [vmem:[#allocation28_spill] sm:$0xff] %v27539_v59 }
 0xf64   :  { %v23432_v33 = vpop.f32.mrf.mxu1 }
 0xf66   :  { %23819 = vmatmul.mubr.f32.gmra.mxu0 %v25015_v56  ;;  %v27544_v22 = vpop.f32.mrf.mxu1 }
 0xf67   :  { %28928 = vst [vmem:[#allocation30_spill] sm:$0xff] %v27544_v22 }
 0xf68   :  { %v23411_v42 = vpop.f32.mrf.mxu0  ;;  %v23446_v23 = vpop.f32.mrf.mxu1 }
 0xf69   :  { %v9999_v57 = vadd.f32 %v23418_v25, %v23411_v42 }
 0xf6a   :  { %v27542_v48 = vpop.f32.mrf.mxu0  ;;  %v27554_v12 = vpop.f32.mrf.mxu1 }
 0xf6b   :  { %28927 = vst [vmem:[#allocation29_spill] sm:$0xff] %v27542_v48  ;;  %28932 = vst [vmem:[#allocation32_spill] sm:$0xff] %v27554_v12 }
 0xf6c   :  { %v23425_v18 = vpop.f32.mrf.mxu0 }
 0xf6d   :  { %v10082_v30 = vadd.f32 %v23425_v18, %v9999_v57 }
 0xf6e   :  { %v27546_v11 = vpop.f32.mrf.mxu0 }
 0xf6f   :  { %28929 = vst [vmem:[#allocation31_spill] sm:$0xff] %v27546_v11  ;;  %v10165_v34 = vadd.f32 %v23432_v33, %v10082_v30 }
 0xf70   :  { %v23439_v40 = vpop.f32.mrf.mxu0 }
 0xf71   :  { %v10248_v53 = vadd.f32 %v23439_v40, %v10165_v34 }
 0xf72   :  { %v27556_v47 = vpop.f32.mrf.mxu0 }
 0xf73   :  { %v10327_v26 = vadd.f32 %v23446_v23, %v10248_v53  ;;  %28933 = vst [vmem:[#allocation33_spill] sm:$0xff] %v27556_v47 }
 0xf75   :  { %v27552_v49 = vadd.f32 %v10327_v26, %v5191_v5 }
 0xf77   :  { %28931 = vst [vmem:[#allocation19_spill] sm:$0xff] %v27552_v49 }
 0xf7f   :  { %v23487_v31 = vpop.f32.mrf.mxu1 }
 0xf80   :  { %v23465_v14 = vpop.f32.mrf.mxu0 }
 0xf81   :  { %v10568_v32 = vadd.f32 %v23487_v31, %v23465_v14  ;;  %v10561_v1 = vpop.f32.mrf.mxu1 }
 0xf82   :  { %v10420_v54 = vpop.f32.mrf.mxu0 }
 0xf83   :  { %v10562_v57 = vadd.f32 %v10561_v1, %v10420_v54 }
 0xf8c   :  { %v23468_v28 = vpop.f32.mrf.mxu0 }
 0xf8d   :  { %v23490_v13 = vpop.f32.mrf.mxu1 }
 0xf8e   :  { %v10580_v4 = vadd.f32 %v23490_v13, %v23468_v28  ;;  %v27558_v24 = vpop.f32.mrf.mxu0 }
 0xf8f   :  { %v27560_v7 = vpop.f32.mrf.mxu1 }
 0xf93   :  { %v23509_v10 = vpop.f32.mrf.mxu0 }
 0xf94   :  { %v10675_v50 = vadd.f32 %v23509_v10, %v10568_v32 }
 0xf95   :  { %v23531_v43 = vpop.f32.mrf.mxu1  ;;  %v10667_v29 = vpop.f32.mrf.mxu0 }
 0xf96   :  { %v10778_v9 = vadd.f32 %v23531_v43, %v10675_v50  ;;  %v10668_v33 = vadd.f32 %v10667_v29, %v10562_v57 }
 0xf97   :  { %v10769_v55 = vpop.f32.mrf.mxu1 }
 0xf98   :  { %v10770_v40 = vadd.f32 %v10769_v55, %v10668_v33 }
 0xf99   :  { %v23512_v39 = vpop.f32.mrf.mxu0 }
 0xf9a   :  { %v10689_v38 = vadd.f32 %v23512_v39, %v10580_v4 }
 0xf9b   :  { %v27562_v18 = vpop.f32.mrf.mxu0 }
 0xf9c   :  { %v23534_v25 = vpop.f32.mrf.mxu1 }
 0xf9d   :  { %v10794_v42 = vadd.f32 %v23534_v25, %v10689_v38 }
 0xf9e   :  { %v27564_v30 = vpop.f32.mrf.mxu1 }
 0xfa7   :  { %v23553_v34 = vpop.f32.mrf.mxu0 }
 0xfa9   :  { %v23575_v53 = vpop.f32.mrf.mxu1  ;;  %v10888_v23 = vpop.f32.mrf.mxu0 }
 0xfaa   :  { %v10889_v37 = vadd.f32 %v10888_v23, %v10770_v40 }
 0xfab   :  { %v10985_v46 = vpop.f32.mrf.mxu1 }
 0xfac   :  { %v10986_v5 = vadd.f32 %v10985_v46, %v10889_v37 }
 0xfad   :  { %v23556_v26 = vpop.f32.mrf.mxu0 }
 0xfae   :  { %v12361_v31 = vsel %vm2079_vm1, %v10986_v5, 0  ;;  %v10907_v14 = vadd.f32 %v23556_v26, %v10794_v42 }
 0xfaf   :  { %v27567_v32 = vand.u32 4294901760, %v12361_v31  ;;  %v27579_v50 = vpop.f32.mrf.mxu0 }
 0xfb0   :  { %v23578_v28 = vpop.f32.mrf.mxu1 }
 0xfb1   :  { %v27570_v54 = vsub.f32 %v12361_v31, %v27567_v32  ;;  %v27572_v1 = vadd.f32 %v23578_v28, %v10907_v14  ;;  %23854 = vmatprep.mubr.f32.mxu1 %v27567_v32  ;;  %v10895_v31 = vadd.f32 %v23553_v34, %v10778_v9 }
 0xfb2   :  { %v27581_v43 = vpop.f32.mrf.mxu1 }
 0xfb3   :  { %v28886_v13 = vand.u32 4294901760, %v27570_v54 }
 0xfb5   :  { %v12442_v4 = vsub.f32 %v27570_v54, %v28886_v13 }
 0xfb7   :  { %v12443_v10 = vand.u32 4294901760, %v12442_v4 }
 0xfb9   :  { %23847 = vmatprep.mubr.f32.mxu0 %v12443_v10  ;;  %v10992_v10 = vadd.f32 %v23575_v53, %v10895_v31 }
 0xfbb   :  { %v23597_v29 = vpop.f32.mrf.mxu0  ;;  %v12364_v12 = vsel %vm2079_vm1, %v10992_v10, 0 }
 0xfbc   :  { %v23619_v55 = vpop.f32.mrf.mxu1 }
 0xfbd   :  { %v11095_v39 = vpop.f32.mrf.mxu0  ;;  %v11243_v13 = vadd.f32 %v23619_v55, %v23597_v29 }
 0xfbe   :  { %v11236_v38 = vpop.f32.mrf.mxu1 }
 0xfbf   :  { %v11237_v47 = vadd.f32 %v11236_v38, %v11095_v39 }
 0xfc8   :  { %v23600_v25 = vpop.f32.mrf.mxu0 }
 0xfc9   :  { %v23622_v42 = vpop.f32.mrf.mxu1 }
 0xfca   :  { %v11255_v57 = vadd.f32 %v23622_v42, %v23600_v25  ;;  %v27583_v33 = vpop.f32.mrf.mxu0  ;;  %v27588_v42 = vand.u32 4294901760, %v12364_v12 }
 0xfcb   :  { %v27585_v40 = vpop.f32.mrf.mxu1 }
 0xfcf   :  { %v23641_v23 = vpop.f32.mrf.mxu0 }
 0xfd0   :  { %v11350_v22 = vadd.f32 %v23641_v23, %v11243_v13 }
 0xfd1   :  { %v23663_v37 = vpop.f32.mrf.mxu1  ;;  %v11342_v46 = vpop.f32.mrf.mxu0 }
 0xfd2   :  { %v11343_v25 = vadd.f32 %v11342_v46, %v11237_v47  ;;  %v11453_v59 = vadd.f32 %v23663_v37, %v11350_v22 }
 0xfd3   :  { %v11444_v5 = vpop.f32.mrf.mxu1 }
 0xfd4   :  { %v11445_v58 = vadd.f32 %v11444_v5, %v11343_v25 }
 0xfd5   :  { %v23644_v26 = vpop.f32.mrf.mxu0 }
 0xfd6   :  { %v11364_v14 = vadd.f32 %v23644_v26, %v11255_v57  ;;  %v12450_v57 = vsub.f32 %v12364_v12, %v27588_v42 }
 0xfd7   :  { %v27590_v11 = vpop.f32.mrf.mxu0 }
 0xfd8   :  { %v23666_v28 = vpop.f32.mrf.mxu1  ;;  %v12451_v46 = vand.u32 4294901760, %v12450_v57 }
 0xfd9   :  { %v11469_v4 = vadd.f32 %v23666_v28, %v11364_v14 }
 0xfda   :  { %v27592_v48 = vpop.f32.mrf.mxu1  ;;  %v12452_v12 = vsub.f32 %v12450_v57, %v12451_v46 }
 0xfdc   :  { %v12453_v10 = vand.u32 4294901760, %v12452_v12 }
 0xfe3   :  { %v23685_v6 = vpop.f32.mrf.mxu0 }
 0xfe4   :  { %v11570_v9 = vadd.f32 %v23685_v6, %v11453_v59  ;;  %v23707_v34 = vpop.f32.mrf.mxu1 }
 0xfe5   :  { %v11563_v53 = vpop.f32.mrf.mxu0 }
 0xfe6   :  { %v11667_v29 = vadd.f32 %v23707_v34, %v11570_v9  ;;  %v11564_v55 = vadd.f32 %v11563_v53, %v11445_v58  ;;  %v11660_v26 = vpop.f32.mrf.mxu1  ;;  %v28934_v34 = vand.u32 4294901760, %v27570_v54 }
 0xfe7   :  { %v23688_v39 = vpop.f32.mrf.mxu0 }
 0xfe8   :  { %v12370_v47 = vsel %vm2079_vm1, %v11667_v29, 0  ;;  %v11661_v13 = vadd.f32 %v11660_v26, %v11564_v55  ;;  %v11582_v38 = vadd.f32 %v23688_v39, %v11469_v4  ;;  %v23710_v23 = vpop.f32.mrf.mxu1 }
 0xfe9   :  { %v12401_v22 = vand.u32 4294901760, %v12370_v47  ;;  %v27606_v55 = vpop.f32.mrf.mxu0 }
 0xfea   :  { %v12367_v37 = vsel %vm2079_vm1, %v11661_v13, 0  ;;  %v27597_v31 = vadd.f32 %v23710_v23, %v11582_v38  ;;  %v27604_v53 = vpop.f32.mrf.mxu1 }
 0xfeb   :  { %v12489_v6 = vsub.f32 %v12370_v47, %v12401_v22  ;;  %v12404_v59 = vand.u32 4294901760, %v12367_v37  ;;  %23843 = vmatprep.subr.mxu0 %v12401_v22 }
 0xfec   :  { %23844 = vmatpush3.xpose.msra.mxu0 %v12401_v22 }
 0xfed   :  { %v12496_v5 = vsub.f32 %v12367_v37, %v12404_v59  ;;  %23845 = vmatprep.subr.mxu0 %v12404_v59  ;;  %v12490_v58 = vand.u32 4294901760, %v12489_v6 }
 0xfef   :  { %v12491_v14 = vsub.f32 %v12489_v6, %v12490_v58  ;;  %v12497_v28 = vand.u32 4294901760, %v12496_v5 }
 0xff0   :  { %23846 = vmatpush3.xpose.msra.mxu0 %v12404_v59 }
 0xff1   :  { %23857 = vmatprep.subr.mxu0 %v12489_v6  ;;  %v12492_v4 = vand.u32 4294901760, %v12491_v14  ;;  %v12498_v25 = vsub.f32 %v12496_v5, %v12497_v28 }
 0xff3   :  { %23848 = vmatmul.mubr.f32.vlgmr.msra.gmra.mxu0 %v12453_v10  ;;  %23850 = vmatprep.subr.mxu1 %v12492_v4  ;;  %v12499_v9 = vand.u32 4294901760, %v12498_v25 }
 0xff4   :  { %23851 = vmatpush3.xpose.msra.mxu1 %v12492_v4  ;;  %23858 = vmatpush3.xpose.msra.mxu0 %v12489_v6 }
 0xff5   :  { %23861 = vmatprep.mubr.f32.mxu0 %v27570_v54  ;;  %23852 = vmatprep.subr.mxu1 %v12499_v9 }
 0xff6   :  { %23859 = vmatprep.subr.mxu0 %v12496_v5  ;;  %v23751_v29 = vpop.f32.mrf.mxu1 }
 0xff8   :  { %23853 = vmatpush3.xpose.msra.mxu1 %v12499_v9  ;;  %23860 = vmatpush3.xpose.msra.mxu0 %v12496_v5  ;;  %v11911_v54 = vpop.f32.mrf.mxu1 }
 0xff9   :  { %23864 = vmatprep.subr.mxu1 %v12401_v22  ;;  %23871 = vmatprep.subr.mxu0 %v12490_v58 }
 0xffb   :  { %23855 = vmatmul.mubr.f32.vlgmr.msra.gmra.mxu1 %v27588_v42  ;;  %23862 = vmatmul.mubr.f32.vlgmr.msra.gmra.mxu0 %v12450_v57  ;;  %v23729_v57 = vpop.f32.mrf.mxu0 }
 0xffc   :  { %23865 = vmatpush3.xpose.msra.mxu1 %v12401_v22  ;;  %23868 = vmatprep.mubr.f32.mxu1 %v28934_v34 }
 0xffd   :  { %23872 = vmatpush3.xpose.msra.mxu0 %v12490_v58  ;;  %23875 = vmatprep.mubr.f32.mxu0 %v27567_v32  ;;  %v11770_v26 = vpop.f32.mrf.mxu0 }
 0xffe   :  { %23866 = vmatprep.subr.mxu1 %v12404_v59  ;;  %23873 = vmatprep.subr.mxu0 %v12497_v28  ;;  %v11912_v5 = vadd.f32 %v11911_v54, %v11770_v26 }
0x1000   :  { %23867 = vmatpush3.xpose.msra.mxu1 %v12404_v59 }
0x1001   :  { %23874 = vmatpush3.xpose.msra.mxu0 %v12497_v28  ;;  %23878 = vmatprep.subr.mxu1 %v12401_v22 }
0x1002   :  { %v23754_v39 = vpop.f32.mrf.mxu1 }
0x1003   :  { %23869 = vmatmul.mubr.f32.vlgmr.msra.gmra.mxu1 %v12451_v46 }
0x1004   :  { %23876 = vmatmul.mubr.f32.vlgmr.msra.gmra.mxu0 %v27588_v42  ;;  %23879 = vmatpush3.xpose.msra.mxu1 %v12401_v22  ;;  %v27611_v13 = vpop.f32.mrf.mxu1  ;;  %v11918_v22 = vadd.f32 %v23751_v29, %v23729_v57 }
0x1005   :  { %23882 = vmatprep.mubr.f32.mxu1 %v27567_v32  ;;  %23880 = vmatprep.subr.mxu1 %v12404_v59 }
0x1007   :  { %v23795_v23 = vpop.f32.mrf.mxu1 }
0x1008   :  { %23881 = vmatpush3.xpose.msra.mxu1 %v12404_v59 }
0x1009   :  { %v12119_v46 = vpop.f32.mrf.mxu1 }
0x100b   :  { %23883 = vmatmul.mubr.f32.vlgmr.msra.gmra.mxu1 %v27588_v42 }
0x100c   :  { %v23732_v47 = vpop.f32.mrf.mxu0 }
0x100d   :  { %v11930_v38 = vadd.f32 %v23754_v39, %v23732_v47 }
0x100e   :  { %v27613_v37 = vpop.f32.mrf.mxu0 }
0x1011   :  { %v23773_v6 = vpop.f32.mrf.mxu0 }
0x1012   :  { %v12025_v32 = vadd.f32 %v23773_v6, %v11918_v22 }
0x1013   :  { %v12017_v58 = vpop.f32.mrf.mxu0 }
0x1014   :  { %v12018_v59 = vadd.f32 %v12017_v58, %v11912_v5  ;;  %v12128_v10 = vadd.f32 %v23795_v23, %v12025_v32 }
0x1015   :  { %v23798_v12 = vpop.f32.mrf.mxu1 }
0x1016   :  { %v12120_v9 = vadd.f32 %v12119_v46, %v12018_v59 }
0x1017   :  { %v27615_v14 = vpop.f32.mrf.mxu1 }
0x101a   :  { %v23839_v25 = vpop.f32.mrf.mxu1 }
0x101c   :  { %v12335_v17 = vpop.f32.mrf.mxu1 }
0x101e   :  { %v23776_v28 = vpop.f32.mrf.mxu0 }
0x101f   :  { %v12039_v42 = vadd.f32 %v23776_v28, %v11930_v38  ;;  %v23842_v5 = vpop.f32.mrf.mxu1 }
0x1020   :  { %v27617_v4 = vpop.f32.mrf.mxu0 }
0x1021   :  { %v12144_v34 = vadd.f32 %v23798_v12, %v12039_v42  ;;  %v27649_v42 = vpop.f32.mrf.mxu1 }
0x1022   :  { %v23817_v39 = vpop.f32.mrf.mxu0 }
0x1023   :  { %v12245_v47 = vadd.f32 %v23817_v39, %v12128_v10 }
0x1024   :  { %v12238_v61 = vpop.f32.mrf.mxu0 }
0x1025   :  { %v12239_v29 = vadd.f32 %v12238_v61, %v12120_v9  ;;  %v12342_v57 = vadd.f32 %v23839_v25, %v12245_v47 }
0x1026   :  { %v23820_v54 = vpop.f32.mrf.mxu0 }
0x1027   :  { %v27619_v26 = vand.u32 4294901760, %v12342_v57  ;;  %v12336_v6 = vadd.f32 %v12335_v17, %v12239_v29  ;;  %v12257_v22 = vadd.f32 %v23820_v54, %v12144_v34 }
0x1028   :  { %v27647_v10 = vpop.f32.mrf.mxu0 }
0x1029   :  { %v27622_v23 = vsub.f32 %v12342_v57, %v27619_v26  ;;  %v27624_v38 = vand.u32 4294901760, %v12336_v6  ;;  %23885 = vmatprep.subr.mxu0 %v27619_v26  ;;  %v27627_v46 = vadd.f32 %v23842_v5, %v12257_v22 }
0x102a   :  { %23886 = vmatpush3.msra.mxu0 %v27619_v26 }
0x102b   :  { %v27631_v61 = vsub.f32 %v12336_v6, %v27624_v38  ;;  %v27634_v12 = vand.u32 4294901760, %v27622_v23  ;;  %23887 = vmatprep.subr.mxu0 %v27624_v38 }
0x102c   :  { %23888 = vmatpush3.msra.mxu0 %v27624_v38 }
0x102d   :  { %v13023_v17 = vsub.f32 %v27622_v23, %v27634_v12  ;;  %v27641_v58 = vand.u32 4294901760, %v27631_v61  ;;  %23899 = vmatprep.subr.mxu0 %v27622_v23 }
0x102f   :  { %v13024_v32 = vand.u32 4294901760, %v13023_v17  ;;  %v13030_v59 = vsub.f32 %v27631_v61, %v27641_v58 }
0x1031   :  { %23892 = vmatprep.subr.mxu1 %v13024_v32  ;;  %v13031_v28 = vand.u32 4294901760, %v13030_v59 }
0x1032   :  { %23893 = vmatpush3.msra.mxu1 %v13024_v32 }
0x1033   :  { %23894 = vmatprep.subr.mxu1 %v13031_v28 }
0x1034   :  { %23895 = vmatpush3.msra.mxu1 %v13031_v28 }
0x1035   :  { %23906 = vmatprep.subr.mxu1 %v27619_v26 }
0x10b3   :  { %v23849_v25 = vpop.f32.mrf.mxu0 }
0x10b5   :  { %v12445_v34 = vpop.f32.mrf.mxu0 }
0x10bb   :  { %v23856_v9 = vpop.f32.mrf.mxu1  ;;  %v23863_v29 = vpop.f32.mrf.mxu0 }
0x10bc   :  { %v12543_v47 = vadd.f32 %v23856_v9, %v23849_v25 }
0x10bd   :  { %v12536_v39 = vpop.f32.mrf.mxu1  ;;  %v12618_v22 = vpop.f32.mrf.mxu0 }
0x10be   :  { %v12537_v57 = vadd.f32 %v12536_v39, %v12445_v34  ;;  %v12626_v6 = vadd.f32 %v23863_v29, %v12543_v47 }
0x10c0   :  { %v12619_v17 = vadd.f32 %v12618_v22, %v12537_v57 }
0x10c3   :  { %v23870_v54 = vpop.f32.mrf.mxu1 }
0x10c4   :  { %v12709_v32 = vadd.f32 %v23870_v54, %v12626_v6  ;;  %v23877_v59 = vpop.f32.mrf.mxu0 }
0x10c5   :  { %v12700_v5 = vpop.f32.mrf.mxu1 }
0x10c6   :  { %v12701_v28 = vadd.f32 %v12700_v5, %v12619_v17  ;;  %v12792_v2 = vadd.f32 %v23877_v59, %v12709_v32  ;;  %v12785_v3 = vpop.f32.mrf.mxu0 }
0x10c8   :  { %v12786_v15 = vadd.f32 %v12785_v3, %v12701_v28 }
0x10cb   :  { %v23884_v49 = vpop.f32.mrf.mxu1 }
0x10cc   :  { %v12871_v20 = vadd.f32 %v23884_v49, %v12792_v2 }
0x10cd   :  { %v12864_v44 = vpop.f32.mrf.mxu1 }
0x10ce   :  { %v12865_v62 = vadd.f32 %v12864_v44, %v12786_v15  ;;  %v12875_v25 = vsel %vm25657_vm3, %v12871_v20, -inf }
0x10cf   :  { %v12879_v9 = vsel %vm2079_vm1, %v12875_v25, -inf }
0x10d0   :  { %12880 = vmax.xlane.f32.xlu1 %v12879_v9  ;;  %v12874_v34 = vsel %vm25653_vm2, %v12865_v62, -inf }
0x10d1   :  { %v12876_v39 = vsel %vm2079_vm1, %v12874_v34, -inf }
0x10d2   :  { %12877 = vmax.xlane.f32.xlu0 %v12876_v39 }
0x1159   :  { %v12881_v47 = vpop.xlane.xlu1 %12880 }
0x115a   :  { %v12883_v29 = vsub.f32 %v12875_v25, %v12881_v47 }
0x115b   :  { %v12878_v57 = vpop.xlane.xlu0 %12877 }
0x115c   :  { %v12886_v54 = vmul.f32 1.442695, %v12883_v29  ;;  %v12882_v3 = vsub.f32 %v12874_v34, %v12878_v57 }
0x115e   :  { %24778 = vpow2.f32 %v12886_v54  ;;  %v12884_v2 = vmul.f32 1.442695, %v12882_v3 }
0x1160   :  { %24780 = vpow2.f32 %v12884_v2 }
0x116b   :  { %v24779_v44 = vpop.eup %24778 }
0x116c   :  { %v12891_v20 = vsel %vm2079_vm1, %v24779_v44, 0.0 }
0x116d   :  { %v24781_v15 = vpop.eup %24780  ;;  %12892 = vadd.xlane.f32.xlu1 %v12891_v20 }
0x116e   :  { %v12888_v49 = vsel %vm2079_vm1, %v24781_v15, 0.0 }
0x116f   :  { %12889 = vadd.xlane.f32.xlu0 %v12888_v49 }
0x11f6   :  { %v12893_v62 = vpop.xlane.xlu1 %12892 }
0x11f7   :  { %24782 = vrcp.f32 %v12893_v62 }
0x11f8   :  { %v12890_v6 = vpop.xlane.xlu0 %12889 }
0x11f9   :  { %24784 = vrcp.f32 %v12890_v6 }
0x1204   :  { %v24783_v22 = vpop.eup %24782 }
0x1205   :  { %v12897_v5 = vmul.f32 %v24783_v22, %v24779_v44 }
0x1206   :  { %v24785_v17 = vpop.eup %24784 }
0x1207   :  { %v12895_v32 = vmul.f32 %v24785_v17, %v24781_v15  ;;  %v12902_v59 = vsel %vm2079_vm1, %v12897_v5, 0  ;;  %v11249_v5 = vadd.f32 %v27585_v40, %v27583_v33 }
0x1208   :  { %v12981_v28 = vand.u32 4294901760, %v12902_v59 }
0x1209   :  { %v12899_v25 = vsel %vm2079_vm1, %v12895_v32, 0  ;;  %v11357_v17 = vadd.f32 %v27590_v11, %v11249_v5 }
0x120a   :  { %v12971_v9 = vand.u32 4294901760, %v12899_v25  ;;  %v12982_v34 = vsub.f32 %v12902_v59, %v12981_v28 }
0x120b   :  { %v11461_v59 = vadd.f32 %v27592_v48, %v11357_v17  ;;  %v13926_v48 = vsel %vm2079_vm1, %v27597_v31, 0 }
0x120c   :  { %23896 = vmatprep.mubr.f32.mxu1 %v12971_v9  ;;  %v12972_v39 = vsub.f32 %v12899_v25, %v12971_v9  ;;  %v12983_v47 = vand.u32 4294901760, %v12982_v34 }
0x120d   :  { %23897 = vmatmul.mubr.f32.vlgmr.msra.gmra.mxu1 %v12981_v28 }
0x120e   :  { %23907 = vmatpush3.msra.mxu1 %v27619_v26  ;;  %v12973_v29 = vand.u32 4294901760, %v12972_v39  ;;  %v12984_v57 = vsub.f32 %v12982_v34, %v12983_v47 }
0x120f   :  { %23908 = vmatprep.subr.mxu1 %v27624_v38 }
0x1210   :  { %23909 = vmatpush3.msra.mxu1 %v27624_v38  ;;  %23910 = vmatprep.mubr.f32.mxu1 %v12973_v29  ;;  %v12974_v54 = vsub.f32 %v12972_v39, %v12973_v29  ;;  %v12985_v2 = vand.u32 4294901760, %v12984_v57 }
0x1211   :  { %23920 = vmatprep.subr.mxu1 %v27619_v26  ;;  %23911 = vmatmul.mubr.f32.vlgmr.msra.gmra.mxu1 %v12983_v47 }
0x1212   :  { %23921 = vmatpush3.msra.mxu1 %v27619_v26  ;;  %23924 = vmatprep.mubr.f32.mxu1 %v12971_v9  ;;  %v12975_v3 = vand.u32 4294901760, %v12974_v54  ;;  %v20684_v26 = vld [vmem:[%s28871_s4 + $0x28] sm:$0xff] }
0x1213   :  { %23922 = vmatprep.subr.mxu1 %v27624_v38 }
0x1214   :  { %23923 = vmatpush3.msra.mxu1 %v27624_v38  ;;  %23889 = vmatprep.mubr.f32.mxu0 %v12975_v3  ;;  %v20683_v38 = vld [vmem:[%s28871_s4 + $0x20] sm:$0xff] }
0x1215   :  { %23890 = vmatmul.mubr.f32.vlgmr.msra.gmra.mxu0 %v12985_v2  ;;  %23925 = vmatmul.mubr.f32.vlgmr.msra.gmra.mxu1 %v12981_v28 }
0x1216   :  { %23900 = vmatpush3.msra.mxu0 %v27622_v23  ;;  %23903 = vmatprep.mubr.f32.mxu0 %v12972_v39  ;;  %v27678_v23 = vand.u32 4294901760, %v20684_v26 }
0x1217   :  { %23901 = vmatprep.subr.mxu0 %v27631_v61 }
0x1218   :  { %23902 = vmatpush3.msra.mxu0 %v27631_v61  ;;  %v27684_v61 = vsub.f32 %v20684_v26, %v27678_v23 }
0x1219   :  { %23913 = vmatprep.subr.mxu0 %v27634_v12  ;;  %23904 = vmatmul.mubr.f32.vlgmr.msra.gmra.mxu0 %v12982_v34  ;;  %v10574_v34 = vadd.f32 %v27560_v7, %v27558_v24  ;;  %v27727_v7 = vand.u32 4294901760, %v13926_v48 }
0x121a   :  { %23914 = vmatpush3.msra.mxu0 %v27634_v12  ;;  %23917 = vmatprep.mubr.f32.mxu0 %v12971_v9  ;;  %v27686_v12 = vand.u32 4294901760, %v20683_v38  ;;  %v11576_v9 = vadd.f32 %v27606_v55, %v11461_v59 }
0x121b   :  { %23915 = vmatprep.subr.mxu0 %v27641_v58  ;;  %v10682_v29 = vadd.f32 %v27562_v18, %v10574_v34  ;;  %v27734_v59 = vsub.f32 %v13926_v48, %v27727_v7 }
0x121c   :  { %23916 = vmatpush3.msra.mxu0 %v27641_v58  ;;  %v27691_v58 = vand.u32 4294901760, %v27684_v61  ;;  %v27694_v44 = vsub.f32 %v20683_v38, %v27686_v12  ;;  %v11673_v33 = vadd.f32 %v27604_v53, %v11576_v9 }
0x121d   :  { %23918 = vmatmul.mubr.f32.vlgmr.msra.gmra.mxu0 %v12981_v28  ;;  %23927 = vmatprep.subr.mxu0 %v27678_v23  ;;  %v10786_v55 = vadd.f32 %v27564_v30, %v10682_v29  ;;  %v11924_v29 = vadd.f32 %v27611_v13, %v27613_v37 }
0x121e   :  { %23928 = vmatpush3.msra.mxu0 %v27678_v23  ;;  %v13531_v20 = vsub.f32 %v27684_v61, %v27691_v58  ;;  %v27701_v15 = vand.u32 4294901760, %v27694_v44  ;;  %v13923_v18 = vsel %vm2079_vm1, %v11673_v33, 0 }
0x121f   :  { %23929 = vmatprep.subr.mxu0 %v27686_v12  ;;  %v10901_v53 = vadd.f32 %v27579_v50, %v10786_v55  ;;  %v12032_v13 = vadd.f32 %v27617_v4, %v11924_v29 }
0x1220   :  { %23930 = vmatpush3.msra.mxu0 %v27686_v12  ;;  %v27704_v49 = vand.u32 4294901760, %v13531_v20  ;;  %v13538_v62 = vsub.f32 %v27694_v44, %v27701_v15 }
0x1221   :  { %23941 = vmatprep.subr.mxu0 %v27684_v61 }
0x1222   :  { %23934 = vmatprep.subr.mxu1 %v27704_v49  ;;  %v27709_v6 = vand.u32 4294901760, %v13538_v62 }
0x1223   :  { %23935 = vmatpush3.msra.mxu1 %v27704_v49 }
0x1224   :  { %23936 = vmatprep.subr.mxu1 %v27709_v6 }
0x1225   :  { %23937 = vmatpush3.msra.mxu1 %v27709_v6 }
0x1226   :  { %23948 = vmatprep.subr.mxu1 %v27678_v23 }
0x12cd   :  { %v23898_v22 = vpop.f32.mrf.mxu1 }
0x12cf   :  { %v13068_v32 = vpop.f32.mrf.mxu1 }
0x12d1   :  { %v23912_v28 = vpop.f32.mrf.mxu1 }
0x12d3   :  { %v13232_v57 = vpop.f32.mrf.mxu1 }
0x12d5   :  { %v23891_v25 = vpop.f32.mrf.mxu0  ;;  %v23926_v38 = vpop.f32.mrf.mxu1 }
0x12d6   :  { %v13075_v47 = vadd.f32 %v23898_v22, %v23891_v25  ;;  %v10998_v25 = vadd.f32 %v27581_v43, %v10901_v53 }
0x12d7   :  { %v12977_v39 = vpop.f32.mrf.mxu0  ;;  %v13396_v31 = vpop.f32.mrf.mxu1 }
0x12d8   :  { %v13069_v40 = vadd.f32 %v13068_v32, %v12977_v39  ;;  %v27731_v32 = vand.u32 4294901760, %v13923_v18 }
0x12d9   :  { %v23905_v54 = vpop.f32.mrf.mxu0 }
0x12da   :  { %v13158_v11 = vadd.f32 %v23905_v54, %v13075_v47  ;;  %v27742_v50 = vsub.f32 %v13923_v18, %v27731_v32  ;;  %v13917_v54 = vsel %vm2079_vm1, %v10998_v25, 0 }
0x12db   :  { %v13150_v3 = vpop.f32.mrf.mxu0  ;;  %v27756_v48 = vand.u32 4294901760, %v13917_v54 }
0x12dc   :  { %v13151_v2 = vadd.f32 %v13150_v3, %v13069_v40  ;;  %v13241_v26 = vadd.f32 %v23912_v28, %v13158_v11  ;;  %v27754_v11 = vand.u32 4294901760, %v27742_v50 }
0x12dd   :  { %v23919_v24 = vpop.f32.mrf.mxu0 }
0x12de   :  { %v13324_v20 = vadd.f32 %v23919_v24, %v13241_v26  ;;  %v13233_v62 = vadd.f32 %v13232_v57, %v13151_v2  ;;  %v27748_v57 = vand.u32 4294901760, %v27734_v59  ;;  %v13920_v26 = vsel %vm2079_vm1, %v27572_v1, 0 }
0x12df   :  { %v13317_v22 = vpop.f32.mrf.mxu0  ;;  %v14054_v55 = vsub.f32 %v27742_v50, %v27754_v11  ;;  %v12136_v24 = vadd.f32 %v27615_v14, %v12032_v13 }
0x12e0   :  { %v13403_v5 = vadd.f32 %v23926_v38, %v13324_v20  ;;  %v13318_v17 = vadd.f32 %v13317_v22, %v13233_v62  ;;  %v14047_v3 = vsub.f32 %v27734_v59, %v27748_v57  ;;  %v13996_v38 = vsub.f32 %v13917_v54, %v27756_v48 }
0x12e1   :  { %v27773_v62 = vand.u32 4294901760, %v13920_v26  ;;  %v14055_v1 = vand.u32 4294901760, %v14054_v55  ;;  %v12251_v53 = vadd.f32 %v27647_v10, %v12136_v24 }
0x12e2   :  { %v13410_v30 = vsel %vm2079_vm1, %v13403_v5, 0  ;;  %v13397_v28 = vadd.f32 %v13396_v31, %v13318_v17  ;;  %v14048_v20 = vand.u32 4294901760, %v14047_v3  ;;  %v13997_v14 = vand.u32 4294901760, %v13996_v38 }
0x12e3   :  { %v27738_v9 = vand.u32 4294901760, %v13410_v30  ;;  %v14006_v22 = vsub.f32 %v13920_v26, %v27773_v62  ;;  %v27783_v5 = vand.u32 4294901760, %v27627_v46  ;;  %v12348_v10 = vadd.f32 %v27649_v42, %v12251_v53 }
0x12e4   :  { %v13407_v34 = vsel %vm2079_vm1, %v13397_v28, 0  ;;  %v13998_v17 = vsub.f32 %v13996_v38, %v13997_v14 }
0x12e5   :  { %v13490_v39 = vsub.f32 %v13410_v30, %v27738_v9  ;;  %v13479_v47 = vand.u32 4294901760, %v13407_v34  ;;  %v14007_v31 = vand.u32 4294901760, %v14006_v22  ;;  %v27793_v30 = vsub.f32 %v27627_v46, %v27783_v5 }
0x12e6   :  { %v27797_v42 = vand.u32 4294901760, %v12348_v10  ;;  %v13999_v28 = vand.u32 4294901760, %v13998_v17 }
0x12e7   :  { %v13491_v33 = vand.u32 4294901760, %v13490_v39  ;;  %v13480_v43 = vsub.f32 %v13407_v34, %v13479_v47  ;;  %23938 = vmatprep.mubr.f32.mxu1 %v13479_v47  ;;  %v14008_v25 = vsub.f32 %v14006_v22, %v14007_v31  ;;  %v27805_v46 = vand.u32 4294901760, %v27793_v30 }
0x12e8   :  { %23939 = vmatmul.mubr.f32.vlgmr.msra.gmra.mxu1 %v27738_v9  ;;  %v27808_v34 = vsub.f32 %v12348_v10, %v27797_v42 }
0x12e9   :  { %23949 = vmatpush3.msra.mxu1 %v27678_v23  ;;  %v13481_v40 = vand.u32 4294901760, %v13480_v43  ;;  %v13492_v37 = vsub.f32 %v13490_v39, %v13491_v33 }
0x12ea   :  { %23950 = vmatprep.subr.mxu1 %v27686_v12 }
0x12eb   :  { %23951 = vmatpush3.msra.mxu1 %v27686_v12  ;;  %23952 = vmatprep.mubr.f32.mxu1 %v13481_v40  ;;  %v13482_v2 = vsub.f32 %v13480_v43, %v13481_v40  ;;  %v13493_v18 = vand.u32 4294901760, %v13492_v37 }
0x12ec   :  { %23962 = vmatprep.subr.mxu1 %v27678_v23  ;;  %23953 = vmatmul.mubr.f32.vlgmr.msra.gmra.mxu1 %v13491_v33 }
0x12ed   :  { %23963 = vmatpush3.msra.mxu1 %v27678_v23  ;;  %23966 = vmatprep.mubr.f32.mxu1 %v13479_v47  ;;  %v13483_v4 = vand.u32 4294901760, %v13482_v2 }
0x12ee   :  { %23964 = vmatprep.subr.mxu1 %v27686_v12 }
0x12ef   :  { %23965 = vmatpush3.msra.mxu1 %v27686_v12  ;;  %23931 = vmatprep.mubr.f32.mxu0 %v13483_v4 }
0x12f0   :  { %23976 = vmatprep.subr.mxu1 %v14048_v20  ;;  %23932 = vmatmul.mubr.f32.vlgmr.msra.gmra.mxu0 %v13493_v18 }
0x12f1   :  { %23942 = vmatpush3.msra.mxu0 %v27684_v61  ;;  %23967 = vmatmul.mubr.f32.vlgmr.msra.gmra.mxu1 %v27738_v9 }
0x12f2   :  { %23977 = vmatpush3.xpose.msra.mxu1 %v14048_v20  ;;  %23943 = vmatprep.subr.mxu0 %v27694_v44 }
0x12f3   :  { %23945 = vmatprep.mubr.f32.mxu0 %v13480_v43  ;;  %23978 = vmatprep.subr.mxu1 %v14055_v1 }
0x12f4   :  { %23980 = vmatprep.mubr.f32.mxu1 %v27756_v48  ;;  %23944 = vmatpush3.msra.mxu0 %v27694_v44 }
0x12f5   :  { %23955 = vmatprep.subr.mxu0 %v27691_v58  ;;  %23946 = vmatmul.mubr.f32.vlgmr.msra.gmra.mxu0 %v13490_v39  ;;  %v14579_v39 = vsub.f32 %v27793_v30, %v27805_v46 }
0x12f6   :  { %23956 = vmatpush3.msra.mxu0 %v27691_v58  ;;  %23979 = vmatpush3.xpose.msra.mxu1 %v14055_v1 }
0x12f7   :  { %23957 = vmatprep.subr.mxu0 %v27701_v15  ;;  %23959 = vmatprep.mubr.f32.mxu0 %v13479_v47  ;;  %v27818_v47 = vand.u32 4294901760, %v27808_v34  ;;  %v14580_v29 = vand.u32 4294901760, %v14579_v39 }
0x12f8   :  { %23990 = vmatprep.subr.mxu1 %v27727_v7  ;;  %23958 = vmatpush3.msra.mxu0 %v27701_v15 }
0x12f9   :  { %23969 = vmatprep.subr.mxu0 %v27727_v7  ;;  %23981 = vmatmul.mubr.f32.vlgmr.msra.gmra.mxu1 %v27773_v62  ;;  %v14586_v54 = vsub.f32 %v27808_v34, %v27818_v47 }
0x12fa   :  { %23960 = vmatmul.mubr.f32.vlgmr.msra.gmra.mxu0 %v27738_v9  ;;  %23991 = vmatpush3.xpose.msra.mxu1 %v27727_v7  ;;  %v14009_v9 = vand.u32 4294901760, %v14008_v25 }
0x12fb   :  { %23970 = vmatpush3.xpose.msra.mxu0 %v27727_v7  ;;  %23994 = vmatprep.mubr.f32.mxu1 %v13997_v14 }
0x12fc   :  { %23971 = vmatprep.subr.mxu0 %v27731_v32  ;;  %23973 = vmatprep.mubr.f32.mxu0 %v13999_v28 }
0x12fd   :  { %23992 = vmatprep.subr.mxu1 %v27731_v32 }
0x12fe   :  { %23993 = vmatpush3.xpose.msra.mxu1 %v27731_v32 }
0x12ff   :  { %23972 = vmatpush3.xpose.msra.mxu0 %v27731_v32  ;;  %24004 = vmatprep.subr.mxu1 %v27727_v7 }
0x1300   :  { %23983 = vmatprep.subr.mxu0 %v27734_v59 }
0x1301   :  { %23995 = vmatmul.mubr.f32.vlgmr.msra.gmra.mxu1 %v14007_v31 }
0x1302   :  { %23974 = vmatmul.mubr.f32.vlgmr.msra.gmra.mxu0 %v14009_v9  ;;  %24005 = vmatpush3.xpose.msra.mxu1 %v27727_v7  ;;  %v14587_v7 = vand.u32 4294901760, %v14586_v54 }
0x1303   :  { %23984 = vmatpush3.xpose.msra.mxu0 %v27734_v59  ;;  %23987 = vmatprep.mubr.f32.mxu0 %v13996_v38 }
0x1304   :  { %24008 = vmatprep.mubr.f32.mxu1 %v27756_v48  ;;  %23985 = vmatprep.subr.mxu0 %v27742_v50 }
0x1305   :  { %24006 = vmatprep.subr.mxu1 %v27731_v32 }
0x1306   :  { %24007 = vmatpush3.xpose.msra.mxu1 %v27731_v32 }
0x1307   :  { %23986 = vmatpush3.xpose.msra.mxu0 %v27742_v50  ;;  %24018 = vmatprep.subr.mxu1 %v14580_v29 }
0x1308   :  { %23997 = vmatprep.subr.mxu0 %v27748_v57 }
0x1309   :  { %24009 = vmatmul.mubr.f32.vlgmr.msra.gmra.mxu1 %v27773_v62 }
0x130a   :  { %23988 = vmatmul.mubr.f32.vlgmr.msra.gmra.mxu0 %v14006_v22  ;;  %24019 = vmatpush3.msra.mxu1 %v14580_v29 }
0x130b   :  { %23998 = vmatpush3.xpose.msra.mxu0 %v27748_v57  ;;  %24001 = vmatprep.mubr.f32.mxu0 %v27756_v48 }
0x130c   :  { %23999 = vmatprep.subr.mxu0 %v27754_v11  ;;  %24020 = vmatprep.subr.mxu1 %v14587_v7 }
0x130d   :  { %24021 = vmatpush3.msra.mxu1 %v14587_v7 }
0x130e   :  { %24032 = vmatprep.subr.mxu1 %v27783_v5 }
0x130f   :  { %24000 = vmatpush3.xpose.msra.mxu0 %v27754_v11 }
0x1310   :  { %24011 = vmatprep.subr.mxu0 %v27783_v5 }
0x1312   :  { %24002 = vmatmul.mubr.f32.vlgmr.msra.gmra.mxu0 %v27773_v62 }
0x1313   :  { %24012 = vmatpush3.msra.mxu0 %v27783_v5 }
0x1314   :  { %24013 = vmatprep.subr.mxu0 %v27797_v42 }
0x1315   :  { %24014 = vmatpush3.msra.mxu0 %v27797_v42 }
0x1316   :  { %24025 = vmatprep.subr.mxu0 %v27793_v30 }
0x13a8   :  { %v23940_v32 = vpop.f32.mrf.mxu1 }
0x13aa   :  { %v13576_v59 = vpop.f32.mrf.mxu1 }
0x13ac   :  { %v23954_v33 = vpop.f32.mrf.mxu1 }
0x13ae   :  { %v13740_v48 = vpop.f32.mrf.mxu1 }
0x13b0   :  { %v23933_v50 = vpop.f32.mrf.mxu0 }
0x13b1   :  { %v13583_v57 = vadd.f32 %v23940_v32, %v23933_v50  ;;  %v23968_v26 = vpop.f32.mrf.mxu1 }
0x13b2   :  { %v13485_v43 = vpop.f32.mrf.mxu0 }
0x13b3   :  { %v13577_v40 = vadd.f32 %v13576_v59, %v13485_v43  ;;  %v13904_v62 = vpop.f32.mrf.mxu1 }
0x13b5   :  { %v23947_v11 = vpop.f32.mrf.mxu0 }
0x13b6   :  { %v13666_v13 = vadd.f32 %v23947_v11, %v13583_v57 }
0x13b7   :  { %v13658_v37 = vpop.f32.mrf.mxu0 }
0x13b8   :  { %v13659_v3 = vadd.f32 %v13658_v37, %v13577_v40  ;;  %v13749_v2 = vadd.f32 %v23954_v33, %v13666_v13 }
0x13b9   :  { %v23982_v22 = vpop.f32.mrf.mxu1 }
0x13ba   :  { %v23961_v4 = vpop.f32.mrf.mxu0  ;;  %v13741_v55 = vadd.f32 %v13740_v48, %v13659_v3 }
0x13bb   :  { %v13832_v38 = vadd.f32 %v23961_v4, %v13749_v2  ;;  %v14092_v17 = vpop.f32.mrf.mxu1 }
0x13bc   :  { %v13825_v24 = vpop.f32.mrf.mxu0 }
0x13bd   :  { %v13911_v18 = vadd.f32 %v23968_v26, %v13832_v38  ;;  %v13826_v20 = vadd.f32 %v13825_v24, %v13741_v55 }
0x13bf   :  { %v27842_v1 = vadd.f32 %v13911_v18, %v26854_v0  ;;  %v27844_v53 = vadd.f32 %v13904_v62, %v13826_v20 }
0x13c1   :  { %v23996_v25 = vpop.f32.mrf.mxu1 }
0x13c2   :  { %v23975_v14 = vpop.f32.mrf.mxu0 }
0x13c3   :  { %v14099_v28 = vadd.f32 %v23982_v22, %v23975_v14  ;;  %v14256_v7 = vpop.f32.mrf.mxu1 }
0x13c4   :  { %v14001_v10 = vpop.f32.mrf.mxu0 }
0x13c5   :  { %v14093_v39 = vadd.f32 %v14092_v17, %v14001_v10 }
0x13c9   :  { %v24010_v59 = vpop.f32.mrf.mxu1 }
0x13ca   :  { %v23989_v31 = vpop.f32.mrf.mxu0 }
0x13cb   :  { %v14182_v29 = vadd.f32 %v23989_v31, %v14099_v28  ;;  %v14420_v11 = vpop.f32.mrf.mxu1 }
0x13cc   :  { %v14174_v9 = vpop.f32.mrf.mxu0 }
0x13cd   :  { %v14175_v54 = vadd.f32 %v14174_v9, %v14093_v39  ;;  %v14265_v32 = vadd.f32 %v23996_v25, %v14182_v29 }
0x13cf   :  { %v14257_v0 = vadd.f32 %v14256_v7, %v14175_v54 }
0x13d2   :  { %v24003_v50 = vpop.f32.mrf.mxu0 }
0x13d3   :  { %v14348_v57 = vadd.f32 %v24003_v50, %v14265_v32 }
0x13d4   :  { %v14341_v33 = vpop.f32.mrf.mxu0 }
0x13d5   :  { %v14427_v43 = vadd.f32 %v24010_v59, %v14348_v57  ;;  %v14342_v40 = vadd.f32 %v14341_v33, %v14257_v0 }
0x13d7   :  { %v14421_v48 = vadd.f32 %v14420_v11, %v14342_v40  ;;  %v14431_v13 = vsel %vm25657_vm3, %v14427_v43, -inf }
0x13d8   :  { %v14435_v37 = vsel %vm2079_vm1, %v14431_v13, -inf }
0x13d9   :  { %14436 = vmax.xlane.f32.xlu1 %v14435_v37  ;;  %v14430_v3 = vsel %vm25653_vm2, %v14421_v48, -inf  ;;  %v20692_v37 = vld [vmem:[%s28868_s1 + $0xf8] sm:$0xff] }
0x13da   :  { %v14432_v2 = vsel %vm2079_vm1, %v14430_v3, -inf }
0x13db   :  { %14433 = vmax.xlane.f32.xlu0 %v14432_v2 }
0x1462   :  { %v14437_v26 = vpop.xlane.xlu1 %14436 }
0x1463   :  { %v14439_v4 = vsub.f32 %v14431_v13, %v14437_v26 }
0x1464   :  { %v14434_v55 = vpop.xlane.xlu0 %14433 }
0x1465   :  { %v14442_v38 = vmul.f32 1.442695, %v14439_v4  ;;  %v14438_v24 = vsub.f32 %v14430_v3, %v14434_v55 }
0x1467   :  { %24786 = vpow2.f32 %v14442_v38  ;;  %v14440_v18 = vmul.f32 1.442695, %v14438_v24  ;;  %v27883_v24 = vand.u32 4294901760, %v20692_v37 }
0x1469   :  { %24788 = vpow2.f32 %v14440_v18 }
0x1474   :  { %v24787_v20 = vpop.eup %24786 }
0x1475   :  { %v14447_v62 = vsel %vm2079_vm1, %v24787_v20, 0.0 }
0x1476   :  { %v24789_v14 = vpop.eup %24788  ;;  %14448 = vadd.xlane.f32.xlu1 %v14447_v62 }
0x1477   :  { %v14444_v22 = vsel %vm2079_vm1, %v24789_v14, 0.0 }
0x1478   :  { %14445 = vadd.xlane.f32.xlu0 %v14444_v22 }
0x14ff   :  { %v14449_v10 = vpop.xlane.xlu1 %14448 }
0x1500   :  { %24790 = vrcp.f32 %v14449_v10 }
0x1501   :  { %v14446_v17 = vpop.xlane.xlu0 %14445 }
0x1502   :  { %24792 = vrcp.f32 %v14446_v17 }
0x150d   :  { %v24791_v31 = vpop.eup %24790 }
0x150e   :  { %v14453_v28 = vmul.f32 %v24791_v31, %v24787_v20  ;;  %v20691_v20 = vld [vmem:[%s28868_s1 + $0xf0] sm:$0xff]  ;;  %v27890_v31 = vsub.f32 %v20692_v37, %v27883_v24 }
0x150f   :  { %v24793_v25 = vpop.eup %24792 }
0x1510   :  { %v14451_v9 = vmul.f32 %v24793_v25, %v24789_v14  ;;  %v14458_v39 = vsel %vm2079_vm1, %v14453_v28, 0  ;;  %v27892_v28 = vand.u32 4294901760, %v20691_v20  ;;  %v20690_v25 = vld [vmem:[%s28868_s1 + $0xe8] sm:$0xff] }
0x1511   :  { %v14537_v29 = vand.u32 4294901760, %v14458_v39 }
0x1512   :  { %v14455_v54 = vsel %vm2079_vm1, %v14451_v9, 0 }
0x1513   :  { %v14527_v7 = vand.u32 4294901760, %v14455_v54  ;;  %v14538_v32 = vsub.f32 %v14458_v39, %v14537_v29 }
0x1515   :  { %24022 = vmatprep.mubr.f32.mxu1 %v14527_v7  ;;  %v14528_v59 = vsub.f32 %v14455_v54, %v14527_v7  ;;  %v14539_v50 = vand.u32 4294901760, %v14538_v32 }
0x1516   :  { %24023 = vmatmul.mubr.f32.vlgmr.msra.gmra.mxu1 %v14537_v29 }
0x1517   :  { %24033 = vmatpush3.msra.mxu1 %v27783_v5  ;;  %v14529_v57 = vand.u32 4294901760, %v14528_v59  ;;  %v14540_v0 = vsub.f32 %v14538_v32, %v14539_v50 }
0x1518   :  { %24034 = vmatprep.subr.mxu1 %v27797_v42 }
0x1519   :  { %24035 = vmatpush3.msra.mxu1 %v27797_v42  ;;  %24036 = vmatprep.mubr.f32.mxu1 %v14529_v57  ;;  %v14530_v33 = vsub.f32 %v14528_v59, %v14529_v57  ;;  %v14541_v40 = vand.u32 4294901760, %v14540_v0  ;;  %v20688_v57 = vld [vmem:[%s28868_s1 + $0xd8] sm:$0xff] }
0x151a   :  { %24046 = vmatprep.subr.mxu1 %v27783_v5  ;;  %24037 = vmatmul.mubr.f32.vlgmr.msra.gmra.mxu1 %v14539_v50  ;;  %v27910_v50 = vsub.f32 %v20691_v20, %v27892_v28 }
0x151b   :  { %24047 = vmatpush3.msra.mxu1 %v27783_v5  ;;  %24050 = vmatprep.mubr.f32.mxu1 %v14527_v7  ;;  %v14531_v43 = vand.u32 4294901760, %v14530_v33 }
0x151c   :  { %24048 = vmatprep.subr.mxu1 %v27797_v42 }
0x151d   :  { %24049 = vmatpush3.msra.mxu1 %v27797_v42  ;;  %24015 = vmatprep.mubr.f32.mxu0 %v14531_v43 }
0x151e   :  { %24016 = vmatmul.mubr.f32.vlgmr.msra.gmra.mxu0 %v14541_v40  ;;  %24051 = vmatmul.mubr.f32.vlgmr.msra.gmra.mxu1 %v14537_v29  ;;  %v20687_v40 = vld [vmem:[%s28868_s1 + $0xd0] sm:$0xff] }
0x151f   :  { %24026 = vmatpush3.msra.mxu0 %v27793_v30  ;;  %24029 = vmatprep.mubr.f32.mxu0 %v14528_v59  ;;  %v27907_v59 = vand.u32 4294901760, %v27890_v31 }
0x1520   :  { %24027 = vmatprep.subr.mxu0 %v27808_v34  ;;  %24060 = vmatprep.subr.mxu1 %v27704_v49 }
0x1521   :  { %24028 = vmatpush3.msra.mxu0 %v27808_v34  ;;  %24061 = vmatpush3.msra.mxu1 %v27704_v49 }
0x1522   :  { %24039 = vmatprep.subr.mxu0 %v27805_v46  ;;  %24030 = vmatmul.mubr.f32.vlgmr.msra.gmra.mxu0 %v14538_v32  ;;  %v27904_v32 = vand.u32 4294901760, %v20690_v25 }
0x1523   :  { %24040 = vmatpush3.msra.mxu0 %v27805_v46  ;;  %24043 = vmatprep.mubr.f32.mxu0 %v14527_v7 }
0x1524   :  { %24041 = vmatprep.subr.mxu0 %v27818_v47  ;;  %24062 = vmatprep.subr.mxu1 %v27709_v6 }
0x1525   :  { %24042 = vmatpush3.msra.mxu0 %v27818_v47  ;;  %24063 = vmatpush3.msra.mxu1 %v27709_v6 }
0x1526   :  { %24044 = vmatmul.mubr.f32.vlgmr.msra.gmra.mxu0 %v14537_v29  ;;  %24074 = vmatprep.subr.mxu1 %v27678_v23  ;;  %v20689_v29 = vld [vmem:[%s28868_s1 + $0xe0] sm:$0xff] }
0x1527   :  { %24053 = vmatprep.subr.mxu0 %v27678_v23  ;;  %v27915_v43 = vand.u32 4294901760, %v20689_v29 }
0x1528   :  { %24054 = vmatpush3.msra.mxu0 %v27678_v23 }
0x1529   :  { %24055 = vmatprep.subr.mxu0 %v27686_v12 }
0x152a   :  { %24056 = vmatpush3.msra.mxu0 %v27686_v12 }
0x152b   :  { %24067 = vmatprep.subr.mxu0 %v27684_v61 }
0x15d6   :  { %v24024_v49 = vpop.f32.mrf.mxu1 }
0x15d8   :  { %v14624_v5 = vpop.f32.mrf.mxu1 }
0x15da   :  { %v24038_v30 = vpop.f32.mrf.mxu1 }
0x15dc   :  { %v14788_v6 = vpop.f32.mrf.mxu1 }
0x15de   :  { %v24017_v42 = vpop.f32.mrf.mxu0  ;;  %v24052_v26 = vpop.f32.mrf.mxu1 }
0x15df   :  { %v14631_v34 = vadd.f32 %v24024_v49, %v24017_v42 }
0x15e0   :  { %v14533_v46 = vpop.f32.mrf.mxu0  ;;  %v14952_v22 = vpop.f32.mrf.mxu1 }
0x15e1   :  { %v14625_v11 = vadd.f32 %v14624_v5, %v14533_v46  ;;  %v27923_v5 = vsub.f32 %v20690_v25, %v27904_v32  ;;  %v15614_v46 = vsub.f32 %v27890_v31, %v27907_v59 }
0x15e2   :  { %v24031_v47 = vpop.f32.mrf.mxu0 }
0x15e3   :  { %v14714_v48 = vadd.f32 %v24031_v47, %v14631_v34  ;;  %v27931_v34 = vand.u32 4294901760, %v27910_v50 }
0x15e4   :  { %v14706_v13 = vpop.f32.mrf.mxu0 }
0x15e5   :  { %v14707_v3 = vadd.f32 %v14706_v13, %v14625_v11  ;;  %v14797_v2 = vadd.f32 %v24038_v30, %v14714_v48  ;;  %v27925_v30 = vand.u32 4294901760, %v20688_v57  ;;  %v27938_v11 = vsub.f32 %v20689_v29, %v27915_v43  ;;  %v20685_v13 = vld [vmem:[%s28868_s1 + $0xc0] sm:$0xff] }
0x15e6   :  { %v24045_v4 = vpop.f32.mrf.mxu0  ;;  %v27940_v48 = vand.u32 4294901760, %v20687_v40  ;;  %v27965_v20 = vand.u32 4294901760, %v20685_v13 }
0x15e7   :  { %v14880_v55 = vadd.f32 %v24045_v4, %v14797_v2  ;;  %v14789_v38 = vadd.f32 %v14788_v6, %v14707_v3  ;;  %v20686_v6 = vld [vmem:[%s28868_s1 + $0xc8] sm:$0xff]  ;;  %v27948_v3 = vand.u32 4294901760, %v27923_v5  ;;  %v27951_v2 = vsub.f32 %v20688_v57, %v27925_v30 }
0x15e8   :  { %v14873_v18 = vpop.f32.mrf.mxu0 }
0x15e9   :  { %v14959_v62 = vadd.f32 %v24052_v26, %v14880_v55  ;;  %v14874_v14 = vadd.f32 %v14873_v18, %v14789_v38  ;;  %v27953_v26 = vand.u32 4294901760, %v20686_v6  ;;  %v15615_v55 = vand.u32 4294901760, %v15614_v46  ;;  %v28937_v46 = vld [vmem:[#allocation7_spill] sm:$0xff] }
0x15ea   :  { %v15621_v38 = vsub.f32 %v27910_v50, %v27931_v34  ;;  %v27963_v18 = vsub.f32 %v20687_v40, %v27940_v48  ;;  %v20699_v40 = vld [vmem:[%s28869_s2 + $0xf0] sm:$0xff] }
0x15eb   :  { %v14966_v10 = vsel %vm2079_vm1, %v14959_v62, 0  ;;  %v14953_v17 = vadd.f32 %v14952_v22, %v14874_v14  ;;  %v15628_v62 = vsub.f32 %v27923_v5, %v27948_v3  ;;  %v27972_v14 = vand.u32 4294901760, %v27951_v2 }
0x15ec   :  { %v27897_v9 = vand.u32 4294901760, %v14966_v10  ;;  %v15622_v22 = vand.u32 4294901760, %v15621_v38 }
0x15ed   :  { %v14963_v39 = vsel %vm2079_vm1, %v14953_v17, 0  ;;  %v27985_v17 = vsub.f32 %v20685_v13, %v27965_v20  ;;  %v15629_v25 = vand.u32 4294901760, %v15628_v62  ;;  %v20696_v13 = vld [vmem:[%s28869_s2 + $0xd8] sm:$0xff] }
0x15ee   :  { %v15046_v54 = vsub.f32 %v14966_v10, %v27897_v9  ;;  %v15035_v7 = vand.u32 4294901760, %v14963_v39  ;;  %v27982_v10 = vand.u32 4294901760, %v27963_v18 }
0x15f0   :  { %v15047_v0 = vand.u32 4294901760, %v15046_v54  ;;  %v15036_v33 = vsub.f32 %v14963_v39, %v15035_v7  ;;  %24064 = vmatprep.mubr.f32.mxu1 %v15035_v7 }
0x15f1   :  { %24065 = vmatmul.mubr.f32.vlgmr.msra.gmra.mxu1 %v27897_v9 }
0x15f2   :  { %24075 = vmatpush3.msra.mxu1 %v27678_v23  ;;  %v15037_v49 = vand.u32 4294901760, %v15036_v33  ;;  %v15048_v42 = vsub.f32 %v15046_v54, %v15047_v0 }
0x15f3   :  { %24076 = vmatprep.subr.mxu1 %v27686_v12 }
0x15f4   :  { %24077 = vmatpush3.msra.mxu1 %v27686_v12  ;;  %24078 = vmatprep.mubr.f32.mxu1 %v15037_v49  ;;  %v15038_v47 = vsub.f32 %v15036_v33, %v15037_v49  ;;  %v15049_v4 = vand.u32 4294901760, %v15048_v42  ;;  %v28935_v49 = vld [vmem:[#allocation5_spill] sm:$0xff]  ;;  %v20698_v42 = vld [vmem:[%s28869_s2 + $0xe8] sm:$0xff] }
0x15f5   :  { %24079 = vmatmul.mubr.f32.vlgmr.msra.gmra.mxu1 %v15047_v0  ;;  %24088 = vmatprep.subr.mxu1 %v27678_v23 }
0x15f6   :  { %24089 = vmatpush3.msra.mxu1 %v27678_v23  ;;  %24092 = vmatprep.mubr.f32.mxu1 %v15035_v7  ;;  %v15039_v37 = vand.u32 4294901760, %v15038_v47  ;;  %v27960_v23 = vand.u32 4294901760, %v27938_v11  ;;  %v20697_v47 = vld [vmem:[%s28869_s2 + $0xe0] sm:$0xff] }
0x15f7   :  { %24090 = vmatprep.subr.mxu1 %v27686_v12 }
0x15f8   :  { %24057 = vmatprep.mubr.f32.mxu0 %v15039_v37  ;;  %24091 = vmatpush3.msra.mxu1 %v27686_v12  ;;  %v27975_v12 = vsub.f32 %v20686_v6, %v27953_v26  ;;  %v28095_v6 = vand.u32 4294901760, %v20698_v42  ;;  %v28115_v37 = vand.u32 4294901760, %v20697_v47 }
0x15f9   :  { %24058 = vmatmul.mubr.f32.vlgmr.msra.gmra.mxu0 %v15049_v4  ;;  %24093 = vmatmul.mubr.f32.vlgmr.msra.gmra.mxu1 %v27897_v9  ;;  %v28130_v4 = vand.u32 4294901760, %v20696_v13 }
0x15fa   :  { %24068 = vmatpush3.msra.mxu0 %v27684_v61  ;;  %24071 = vmatprep.mubr.f32.mxu0 %v15036_v33  ;;  %v15635_v61 = vsub.f32 %v27938_v11, %v27960_v23  ;;  %v27992_v39 = vand.u32 4294901760, %v27975_v12  ;;  %v28142_v38 = vsub.f32 %v20697_v47, %v28115_v37 }
0x15fb   :  { %24069 = vmatprep.subr.mxu0 %v27694_v44  ;;  %24117 = vmatprep.subr.mxu1 %v15615_v55 }
0x15fc   :  { %24070 = vmatpush3.msra.mxu0 %v27694_v44  ;;  %24118 = vmatpush3.msra.mxu1 %v15615_v55  ;;  %v15642_v44 = vsub.f32 %v27951_v2, %v27972_v14  ;;  %v15636_v29 = vand.u32 4294901760, %v15635_v61  ;;  %v15656_v57 = vsub.f32 %v27975_v12, %v27992_v39  ;;  %v20694_v55 = vld [vmem:[%s28869_s2 + $0xc8] sm:$0xff] }
0x15fd   :  { %24081 = vmatprep.subr.mxu0 %v27691_v58  ;;  %24072 = vmatmul.mubr.f32.vlgmr.msra.gmra.mxu0 %v15046_v54  ;;  %v15649_v54 = vsub.f32 %v27963_v18, %v27982_v10 }
0x15fe   :  { %24082 = vmatpush3.msra.mxu0 %v27691_v58  ;;  %24085 = vmatprep.mubr.f32.mxu0 %v15035_v7  ;;  %v27999_v58 = vand.u32 4294901760, %v27985_v17  ;;  %v15643_v7 = vand.u32 4294901760, %v15642_v44 }
0x15ff   :  { %24083 = vmatprep.subr.mxu0 %v27701_v15  ;;  %24119 = vmatprep.subr.mxu1 %v15622_v22 }
0x1600   :  { %24084 = vmatpush3.msra.mxu0 %v27701_v15  ;;  %24120 = vmatpush3.msra.mxu1 %v15622_v22  ;;  %v15650_v15 = vand.u32 4294901760, %v15649_v54  ;;  %v15663_v0 = vsub.f32 %v27985_v17, %v27999_v58  ;;  %v28168_v22 = vand.u32 4294901760, %v28142_v38 }
0x1601   :  { %24095 = vmatprep.subr.mxu0 %v27883_v24  ;;  %24086 = vmatmul.mubr.f32.vlgmr.msra.gmra.mxu0 %v27897_v9  ;;  %v15657_v9 = vand.u32 4294901760, %v15656_v57 }
0x1602   :  { %24096 = vmatpush3.msra.mxu0 %v27883_v24  ;;  %24121 = vmatprep.subr.mxu1 %v15629_v25  ;;  %v15664_v33 = vand.u32 4294901760, %v15663_v0 }
0x1603   :  { %24097 = vmatprep.subr.mxu0 %v27892_v28  ;;  %24122 = vmatpush3.msra.mxu1 %v15629_v25 }
0x1604   :  { %24098 = vmatpush3.msra.mxu0 %v27892_v28  ;;  %24123 = vmatprep.subr.mxu1 %v15636_v29 }
0x1605   :  { %24099 = vmatprep.subr.mxu0 %v27904_v32  ;;  %24124 = vmatpush3.msra.mxu1 %v15636_v29 }
0x1606   :  { %24100 = vmatpush3.msra.mxu0 %v27904_v32  ;;  %24125 = vmatprep.subr.mxu1 %v15643_v7 }
0x1607   :  { %24101 = vmatprep.subr.mxu0 %v27915_v43  ;;  %24126 = vmatpush3.msra.mxu1 %v15643_v7 }
0x1608   :  { %24102 = vmatpush3.msra.mxu0 %v27915_v43  ;;  %24127 = vmatprep.subr.mxu1 %v15650_v15 }
0x1609   :  { %24103 = vmatprep.subr.mxu0 %v27925_v30  ;;  %24128 = vmatpush3.msra.mxu1 %v15650_v15 }
0x160a   :  { %24104 = vmatpush3.msra.mxu0 %v27925_v30  ;;  %24129 = vmatprep.subr.mxu1 %v15657_v9 }
0x160b   :  { %24105 = vmatprep.subr.mxu0 %v27940_v48  ;;  %24130 = vmatpush3.msra.mxu1 %v15657_v9 }
0x160c   :  { %24106 = vmatpush3.msra.mxu0 %v27940_v48  ;;  %24131 = vmatprep.subr.mxu1 %v15664_v33 }
0x160d   :  { %24107 = vmatprep.subr.mxu0 %v27953_v26  ;;  %24111 = vmatprep.mubr.f32.mxu0 %v25026_v60 }
0x160e   :  { %24108 = vmatpush3.msra.mxu0 %v27953_v26  ;;  %24132 = vmatpush3.msra.mxu1 %v15664_v33 }
0x160f   :  { %24109 = vmatprep.subr.mxu0 %v27965_v20  ;;  %24133 = vmatprep.mubr.f32.mxu1 %v24946_v27 }
0x1610   :  { %24110 = vmatpush3.msra.mxu0 %v27965_v20  ;;  %24134 = vmatmul.mubr.f32.vlgmr.msra.gmra.mxu1 %v24970_v36 }
0x1611   :  { %24112 = vmatmul.mubr.f32.vlgmr.msra.gmra.mxu0 %v25032_v63  ;;  %24139 = vmatprep.subr.mxu0 %v27890_v31 }
0x1612   :  { %24161 = vmatprep.subr.mxu1 %v27883_v24  ;;  %24140 = vmatpush3.msra.mxu0 %v27890_v31  ;;  %v20700_v31 = vld [vmem:[%s28869_s2 + $0xf8] sm:$0xff] }
0x1613   :  { %24162 = vmatpush3.msra.mxu1 %v27883_v24  ;;  %24141 = vmatprep.subr.mxu0 %v27910_v50 }
0x1614   :  { %24163 = vmatprep.subr.mxu1 %v27892_v28  ;;  %24142 = vmatpush3.msra.mxu0 %v27910_v50  ;;  %v28070_v50 = vand.u32 4294901760, %v20700_v31 }
0x1615   :  { %24164 = vmatpush3.msra.mxu1 %v27892_v28  ;;  %24143 = vmatprep.subr.mxu0 %v27923_v5 }
0x1616   :  { %24165 = vmatprep.subr.mxu1 %v27904_v32  ;;  %24144 = vmatpush3.msra.mxu0 %v27923_v5  ;;  %v28081_v5 = vand.u32 4294901760, %v20699_v40 }
0x1617   :  { %24166 = vmatpush3.msra.mxu1 %v27904_v32  ;;  %24145 = vmatprep.subr.mxu0 %v27938_v11 }
0x1618   :  { %24167 = vmatprep.subr.mxu1 %v27915_v43  ;;  %24146 = vmatpush3.msra.mxu0 %v27938_v11 }
0x1619   :  { %24168 = vmatpush3.msra.mxu1 %v27915_v43  ;;  %24147 = vmatprep.subr.mxu0 %v27951_v2 }
0x161a   :  { %24169 = vmatprep.subr.mxu1 %v27925_v30  ;;  %24148 = vmatpush3.msra.mxu0 %v27951_v2 }
0x161b   :  { %24170 = vmatpush3.msra.mxu1 %v27925_v30  ;;  %24114 = vmatprep.mubr.f32.mxu0 %v25063_v19 }
0x161c   :  { %24136 = vmatprep.mubr.f32.mxu1 %v25008_v52  ;;  %24149 = vmatprep.subr.mxu0 %v27963_v18 }
0x161d   :  { %24171 = vmatprep.subr.mxu1 %v27940_v48  ;;  %24115 = vmatmul.mubr.f32.gmra.mxu0 %v25069_v16 }
0x161e   :  { %24137 = vmatmul.mubr.f32.gmra.mxu1 %v25015_v56  ;;  %24150 = vmatpush3.msra.mxu0 %v27963_v18  ;;  %v20693_v18 = vld [vmem:[%s28869_s2 + $0xc0] sm:$0xff] }
0x161f   :  { %24172 = vmatpush3.msra.mxu1 %v27940_v48  ;;  %24151 = vmatprep.subr.mxu0 %v27975_v12 }
0x1620   :  { %24173 = vmatprep.subr.mxu1 %v27953_v26  ;;  %24152 = vmatpush3.msra.mxu0 %v27975_v12 }
0x1621   :  { %24174 = vmatpush3.msra.mxu1 %v27953_v26  ;;  %24153 = vmatprep.subr.mxu0 %v27985_v17 }
0x1622   :  { %24175 = vmatprep.subr.mxu1 %v27965_v20  ;;  %24154 = vmatpush3.msra.mxu0 %v27985_v17 }
0x1623   :  { %24155 = vmatprep.mubr.f32.mxu0 %v24967_v35  ;;  %24176 = vmatpush3.msra.mxu1 %v27965_v20 }
0x1624   :  { %24156 = vmatmul.mubr.f32.vlgmr.msra.gmra.mxu0 %v24989_v45  ;;  %24177 = vmatprep.mubr.f32.mxu1 %v24980_v41 }
0x1625   :  { %24183 = vmatprep.subr.mxu0 %v27907_v59  ;;  %24205 = vmatprep.subr.mxu1 %v27883_v24 }
0x1626   :  { %24178 = vmatmul.mubr.f32.vlgmr.msra.gmra.mxu1 %v25006_v51  ;;  %24184 = vmatpush3.msra.mxu0 %v27907_v59  ;;  %v28089_v59 = vsub.f32 %v20700_v31, %v28070_v50 }
0x1627   :  { %24206 = vmatpush3.msra.mxu1 %v27883_v24  ;;  %24185 = vmatprep.subr.mxu0 %v27931_v34  ;;  %v28936_v24 = vld [vmem:[#allocation6_spill] sm:$0xff] }
0x1628   :  { %24207 = vmatprep.subr.mxu1 %v27892_v28  ;;  %24158 = vmatprep.mubr.f32.mxu0 %v28935_v49  ;;  %v28108_v11 = vand.u32 4294901760, %v28089_v59 }
0x1629   :  { %24186 = vmatpush3.msra.mxu0 %v27931_v34  ;;  %24208 = vmatpush3.msra.mxu1 %v27892_v28  ;;  %v28103_v28 = vsub.f32 %v20699_v40, %v28081_v5  ;;  %v28938_v34 = vld [vmem:[#allocation8_spill] sm:$0xff] }
0x162a   :  { %24159 = vmatmul.mubr.f32.gmra.mxu0 %v28936_v24  ;;  %24187 = vmatprep.subr.mxu0 %v27948_v3 }
0x162b   :  { %24209 = vmatprep.subr.mxu1 %v27904_v32  ;;  %24180 = vmatprep.mubr.f32.mxu1 %v28937_v46  ;;  %v28128_v2 = vand.u32 4294901760, %v28103_v28 }
0x162c   :  { %24188 = vmatpush3.msra.mxu0 %v27948_v3  ;;  %24210 = vmatpush3.msra.mxu1 %v27904_v32  ;;  %v28120_v32 = vsub.f32 %v20698_v42, %v28095_v6  ;;  %v20695_v3 = vld [vmem:[%s28869_s2 + $0xd0] sm:$0xff] }
0x162d   :  { %24181 = vmatmul.mubr.f32.gmra.mxu1 %v28938_v34  ;;  %24189 = vmatprep.subr.mxu0 %v27960_v23  ;;  %v16296_v62 = vsub.f32 %v28103_v28, %v28128_v2 }
0x162e   :  { %24211 = vmatprep.subr.mxu1 %v27915_v43  ;;  %24190 = vmatpush3.msra.mxu0 %v27960_v23  ;;  %v28144_v23 = vand.u32 4294901760, %v20695_v3 }
0x162f   :  { %24212 = vmatpush3.msra.mxu1 %v27915_v43  ;;  %24191 = vmatprep.subr.mxu0 %v27972_v14  ;;  %v16289_v43 = vsub.f32 %v28089_v59, %v28108_v11  ;;  %v16297_v17 = vand.u32 4294901760, %v16296_v62 }
0x1630   :  { %24213 = vmatprep.subr.mxu1 %v27925_v30  ;;  %24192 = vmatpush3.msra.mxu0 %v27972_v14  ;;  %v28159_v14 = vsub.f32 %v20696_v13, %v28130_v4  ;;  %v28171_v61 = vsub.f32 %v20695_v3, %v28144_v23  ;;  %v20706_v3 = vld [vmem:[%s28870_s3 + $0xe8] sm:$0xff] }
0x1631   :  { %24214 = vmatpush3.msra.mxu1 %v27925_v30  ;;  %24193 = vmatprep.subr.mxu0 %v27982_v10  ;;  %v28149_v30 = vand.u32 4294901760, %v28120_v32  ;;  %v16290_v12 = vand.u32 4294901760, %v16289_v43  ;;  %v28306_v43 = vand.u32 4294901760, %v20706_v3 }
0x1632   :  { %24215 = vmatprep.subr.mxu1 %v27940_v48  ;;  %24194 = vmatpush3.msra.mxu0 %v27982_v10  ;;  %v28173_v10 = vand.u32 4294901760, %v20693_v18  ;;  %v28182_v25 = vand.u32 4294901760, %v28159_v14 }
0x1633   :  { %24216 = vmatpush3.msra.mxu1 %v27940_v48  ;;  %24195 = vmatprep.subr.mxu0 %v27992_v39  ;;  %v28161_v48 = vand.u32 4294901760, %v20694_v55 }
0x1634   :  { %24217 = vmatprep.subr.mxu1 %v27953_v26  ;;  %24196 = vmatpush3.msra.mxu0 %v27992_v39  ;;  %v28193_v39 = vand.u32 4294901760, %v28171_v61  ;;  %v28196_v29 = vsub.f32 %v20693_v18, %v28173_v10 }
0x1635   :  { %24218 = vmatpush3.msra.mxu1 %v27953_v26  ;;  %24197 = vmatprep.subr.mxu0 %v27999_v58  ;;  %v16303_v26 = vsub.f32 %v28120_v32, %v28149_v30  ;;  %v28185_v44 = vsub.f32 %v20694_v55, %v28161_v48 }
0x1636   :  { %24219 = vmatprep.subr.mxu1 %v27965_v20  ;;  %24198 = vmatpush3.msra.mxu0 %v27999_v58  ;;  %v16317_v58 = vsub.f32 %v28159_v14, %v28182_v25  ;;  %v16324_v15 = vsub.f32 %v28171_v61, %v28193_v39  ;;  %v28211_v0 = vand.u32 4294901760, %v28196_v29 }
0x1637   :  { %24199 = vmatprep.mubr.f32.mxu0 %v24946_v27  ;;  %24220 = vmatpush3.msra.mxu1 %v27965_v20  ;;  %v16310_v20 = vsub.f32 %v28142_v38, %v28168_v22  ;;  %v16304_v54 = vand.u32 4294901760, %v16303_v26  ;;  %v28203_v7 = vand.u32 4294901760, %v28185_v44 }
0x1638   :  { %24200 = vmatmul.mubr.f32.vlgmr.msra.gmra.mxu0 %v24970_v36  ;;  %24221 = vmatprep.mubr.f32.mxu1 %v24946_v27  ;;  %v16318_v9 = vand.u32 4294901760, %v16317_v58  ;;  %v16325_v31 = vand.u32 4294901760, %v16324_v15  ;;  %v16338_v40 = vsub.f32 %v28196_v29, %v28211_v0 }
0x1639   :  { %24227 = vmatprep.subr.mxu0 %v28070_v50  ;;  %24249 = vmatprep.subr.mxu1 %v16290_v12  ;;  %v16311_v57 = vand.u32 4294901760, %v16310_v20  ;;  %v16331_v33 = vsub.f32 %v28185_v44, %v28203_v7 }
0x163a   :  { %24222 = vmatmul.mubr.f32.vlgmr.msra.gmra.mxu1 %v24970_v36  ;;  %24228 = vmatpush3.msra.mxu0 %v28070_v50  ;;  %v16339_v47 = vand.u32 4294901760, %v16338_v40 }
0x163b   :  { %24250 = vmatpush3.msra.mxu1 %v16290_v12  ;;  %24229 = vmatprep.subr.mxu0 %v28081_v5  ;;  %v16332_v42 = vand.u32 4294901760, %v16331_v33 }
0x163c   :  { %24251 = vmatprep.subr.mxu1 %v16297_v17  ;;  %24202 = vmatprep.mubr.f32.mxu0 %v25008_v52 }
0x163d   :  { %24230 = vmatpush3.msra.mxu0 %v28081_v5  ;;  %24252 = vmatpush3.msra.mxu1 %v16297_v17 }
0x163e   :  { %24203 = vmatmul.mubr.f32.gmra.mxu0 %v25015_v56  ;;  %24231 = vmatprep.subr.mxu0 %v28095_v6 }
0x163f   :  { %24253 = vmatprep.subr.mxu1 %v16304_v54  ;;  %24224 = vmatprep.mubr.f32.mxu1 %v25008_v52 }
0x1640   :  { %24232 = vmatpush3.msra.mxu0 %v28095_v6  ;;  %24254 = vmatpush3.msra.mxu1 %v16304_v54 }
0x1641   :  { %24225 = vmatmul.mubr.f32.gmra.mxu1 %v25015_v56  ;;  %24233 = vmatprep.subr.mxu0 %v28115_v37 }
0x1642   :  { %24255 = vmatprep.subr.mxu1 %v16311_v57  ;;  %24234 = vmatpush3.msra.mxu0 %v28115_v37 }
0x1643   :  { %24256 = vmatpush3.msra.mxu1 %v16311_v57  ;;  %24235 = vmatprep.subr.mxu0 %v28130_v4 }
0x1644   :  { %24257 = vmatprep.subr.mxu1 %v16318_v9  ;;  %24236 = vmatpush3.msra.mxu0 %v28130_v4 }
0x1645   :  { %24258 = vmatpush3.msra.mxu1 %v16318_v9  ;;  %24237 = vmatprep.subr.mxu0 %v28144_v23 }
0x1646   :  { %24259 = vmatprep.subr.mxu1 %v16325_v31  ;;  %24238 = vmatpush3.msra.mxu0 %v28144_v23 }
0x1647   :  { %24260 = vmatpush3.msra.mxu1 %v16325_v31  ;;  %24239 = vmatprep.subr.mxu0 %v28161_v48 }
0x1648   :  { %24261 = vmatprep.subr.mxu1 %v16332_v42  ;;  %24240 = vmatpush3.msra.mxu0 %v28161_v48 }
0x1649   :  { %24262 = vmatpush3.msra.mxu1 %v16332_v42  ;;  %24241 = vmatprep.subr.mxu0 %v28173_v10 }
0x164a   :  { %24263 = vmatprep.subr.mxu1 %v16339_v47  ;;  %24242 = vmatpush3.msra.mxu0 %v28173_v10 }
0x164b   :  { %24243 = vmatprep.mubr.f32.mxu0 %v25026_v60  ;;  %24264 = vmatpush3.msra.mxu1 %v16339_v47 }
0x164c   :  { %24265 = vmatprep.mubr.f32.mxu1 %v24946_v27  ;;  %24244 = vmatmul.mubr.f32.vlgmr.msra.gmra.mxu0 %v25032_v63 }
0x164d   :  { %24266 = vmatmul.mubr.f32.vlgmr.msra.gmra.mxu1 %v24970_v36  ;;  %24271 = vmatprep.subr.mxu0 %v28089_v59 }
0x164e   :  { %24293 = vmatprep.subr.mxu1 %v28070_v50  ;;  %24272 = vmatpush3.msra.mxu0 %v28089_v59  ;;  %v20708_v59 = vld [vmem:[%s28870_s3 + $0xf8] sm:$0xff] }
0x164f   :  { %24294 = vmatpush3.msra.mxu1 %v28070_v50  ;;  %24273 = vmatprep.subr.mxu0 %v28103_v28  ;;  %v28283_v13 = vand.u32 4294901760, %v20708_v59 }
0x1650   :  { %24295 = vmatprep.subr.mxu1 %v28081_v5  ;;  %24274 = vmatpush3.msra.mxu0 %v28103_v28  ;;  %v20707_v28 = vld [vmem:[%s28870_s3 + $0xf0] sm:$0xff] }
0x1651   :  { %24296 = vmatpush3.msra.mxu1 %v28081_v5  ;;  %24275 = vmatprep.subr.mxu0 %v28120_v32 }
0x1652   :  { %24297 = vmatprep.subr.mxu1 %v28095_v6  ;;  %24276 = vmatpush3.msra.mxu0 %v28120_v32  ;;  %v28289_v32 = vand.u32 4294901760, %v20707_v28 }
0x1653   :  { %24298 = vmatpush3.msra.mxu1 %v28095_v6  ;;  %24277 = vmatprep.subr.mxu0 %v28142_v38 }
0x1654   :  { %24299 = vmatprep.subr.mxu1 %v28115_v37  ;;  %24278 = vmatpush3.msra.mxu0 %v28142_v38 }
0x1655   :  { %24300 = vmatpush3.msra.mxu1 %v28115_v37  ;;  %24279 = vmatprep.subr.mxu0 %v28159_v14 }
0x1656   :  { %24301 = vmatprep.subr.mxu1 %v28130_v4  ;;  %24280 = vmatpush3.msra.mxu0 %v28159_v14  ;;  %v20702_v14 = vld [vmem:[%s28870_s3 + $0xc8] sm:$0xff] }
0x1657   :  { %24302 = vmatpush3.msra.mxu1 %v28130_v4  ;;  %24246 = vmatprep.mubr.f32.mxu0 %v25063_v19  ;;  %v28365_v17 = vand.u32 4294901760, %v20702_v14 }
0x1658   :  { %24268 = vmatprep.mubr.f32.mxu1 %v25008_v52  ;;  %24281 = vmatprep.subr.mxu0 %v28171_v61 }
0x1659   :  { %24303 = vmatprep.subr.mxu1 %v28144_v23  ;;  %24247 = vmatmul.mubr.f32.gmra.mxu0 %v25069_v16  ;;  %v28391_v54 = vsub.f32 %v20702_v14, %v28365_v17 }
0x165a   :  { %24269 = vmatmul.mubr.f32.gmra.mxu1 %v25015_v56  ;;  %24282 = vmatpush3.msra.mxu0 %v28171_v61  ;;  %v20701_v61 = vld [vmem:[%s28870_s3 + $0xc0] sm:$0xff] }
0x165b   :  { %24304 = vmatpush3.msra.mxu1 %v28144_v23  ;;  %24283 = vmatprep.subr.mxu0 %v28185_v44  ;;  %v28379_v20 = vand.u32 4294901760, %v20701_v61  ;;  %v28410_v9 = vand.u32 4294901760, %v28391_v54 }
0x165c   :  { %24305 = vmatprep.subr.mxu1 %v28161_v48  ;;  %24284 = vmatpush3.msra.mxu0 %v28185_v44 }
0x165d   :  { %24306 = vmatpush3.msra.mxu1 %v28161_v48  ;;  %24285 = vmatprep.subr.mxu0 %v28196_v29  ;;  %v28403_v57 = vsub.f32 %v20701_v61, %v28379_v20  ;;  %v17006_v47 = vsub.f32 %v28391_v54, %v28410_v9 }
0x165e   :  { %24307 = vmatprep.subr.mxu1 %v28173_v10  ;;  %24286 = vmatpush3.msra.mxu0 %v28196_v29 }
0x165f   :  { %24287 = vmatprep.mubr.f32.mxu0 %v24967_v35  ;;  %24308 = vmatpush3.msra.mxu1 %v28173_v10  ;;  %v28418_v40 = vand.u32 4294901760, %v28403_v57 }
0x1660   :  { %24288 = vmatmul.mubr.f32.vlgmr.msra.gmra.mxu0 %v24989_v45  ;;  %24309 = vmatprep.mubr.f32.mxu1 %v24980_v41 }
0x1661   :  { %24315 = vmatprep.subr.mxu0 %v28108_v11  ;;  %24337 = vmatprep.subr.mxu1 %v28070_v50 }
0x1662   :  { %24310 = vmatmul.mubr.f32.vlgmr.msra.gmra.mxu1 %v25006_v51  ;;  %24316 = vmatpush3.msra.mxu0 %v28108_v11  ;;  %v20705_v11 = vld [vmem:[%s28870_s3 + $0xe0] sm:$0xff] }
0x1663   :  { %24338 = vmatpush3.msra.mxu1 %v28070_v50  ;;  %24317 = vmatprep.subr.mxu0 %v28128_v2  ;;  %v28299_v50 = vsub.f32 %v20708_v59, %v28283_v13  ;;  %v28318_v55 = vand.u32 4294901760, %v20705_v11 }
0x1664   :  { %24339 = vmatprep.subr.mxu1 %v28081_v5  ;;  %24290 = vmatprep.mubr.f32.mxu0 %v28935_v49 }
0x1665   :  { %24318 = vmatpush3.msra.mxu0 %v28128_v2  ;;  %24340 = vmatpush3.msra.mxu1 %v28081_v5  ;;  %v28311_v5 = vsub.f32 %v20707_v28, %v28289_v32  ;;  %v20704_v2 = vld [vmem:[%s28870_s3 + $0xd8] sm:$0xff]  ;;  %v28323_v38 = vand.u32 4294901760, %v28299_v50  ;;  %v17013_v28 = vsub.f32 %v28403_v57, %v28418_v40 }
0x1666   :  { %24291 = vmatmul.mubr.f32.gmra.mxu0 %v28936_v24  ;;  %24319 = vmatprep.subr.mxu0 %v28149_v30  ;;  %v28333_v18 = vand.u32 4294901760, %v20704_v2 }
0x1667   :  { %24341 = vmatprep.subr.mxu1 %v28095_v6  ;;  %24312 = vmatprep.mubr.f32.mxu1 %v28937_v46  ;;  %v28338_v62 = vand.u32 4294901760, %v28311_v5 }
0x1668   :  { %24320 = vmatpush3.msra.mxu0 %v28149_v30  ;;  %24342 = vmatpush3.msra.mxu1 %v28095_v6  ;;  %v20703_v6 = vld [vmem:[%s28870_s3 + $0xd0] sm:$0xff]  ;;  %v28331_v30 = vsub.f32 %v20706_v3, %v28306_v43  ;;  %v28363_v26 = vsub.f32 %v20704_v2, %v28333_v18  ;;  %v17007_v3 = vand.u32 4294901760, %v17006_v47 }
0x1669   :  { %24313 = vmatmul.mubr.f32.gmra.mxu1 %v28938_v34  ;;  %24321 = vmatprep.subr.mxu0 %v28168_v22  ;;  %v28348_v12 = vand.u32 4294901760, %v20703_v6 }
0x166a   :  { %24343 = vmatprep.subr.mxu1 %v28115_v37  ;;  %24322 = vmatpush3.msra.mxu0 %v28168_v22  ;;  %v16964_v22 = vsub.f32 %v28299_v50, %v28323_v38  ;;  %v28388_v29 = vand.u32 4294901760, %v28363_v26 }
0x166b   :  { %24344 = vmatpush3.msra.mxu1 %v28115_v37  ;;  %24323 = vmatprep.subr.mxu0 %v28182_v25  ;;  %v28346_v37 = vsub.f32 %v20705_v11, %v28318_v55  ;;  %v28377_v44 = vsub.f32 %v20703_v6, %v28348_v12  ;;  %v17014_v11 = vand.u32 4294901760, %v17013_v28 }
0x166c   :  { %24345 = vmatprep.subr.mxu1 %v28130_v4  ;;  %24324 = vmatpush3.msra.mxu0 %v28182_v25  ;;  %v16971_v25 = vsub.f32 %v28311_v5, %v28338_v62 }
0x166d   :  { %24346 = vmatpush3.msra.mxu1 %v28130_v4  ;;  %24325 = vmatprep.subr.mxu0 %v28193_v39  ;;  %v28360_v4 = vand.u32 4294901760, %v28331_v30 }
0x166e   :  { %24347 = vmatprep.subr.mxu1 %v28144_v23  ;;  %24326 = vmatpush3.msra.mxu0 %v28193_v39  ;;  %v16965_v39 = vand.u32 4294901760, %v16964_v22  ;;  %v16972_v58 = vand.u32 4294901760, %v16971_v25 }
0x166f   :  { %24348 = vmatpush3.msra.mxu1 %v28144_v23  ;;  %24327 = vmatprep.subr.mxu0 %v28203_v7  ;;  %v28374_v23 = vand.u32 4294901760, %v28346_v37 }
0x1670   :  { %24349 = vmatprep.subr.mxu1 %v28161_v48  ;;  %24328 = vmatpush3.msra.mxu0 %v28203_v7  ;;  %v28400_v7 = vand.u32 4294901760, %v28377_v44 }
0x1671   :  { %24350 = vmatpush3.msra.mxu1 %v28161_v48  ;;  %24329 = vmatprep.subr.mxu0 %v28211_v0  ;;  %v16978_v48 = vsub.f32 %v28331_v30, %v28360_v4 }
0x1672   :  { %24351 = vmatprep.subr.mxu1 %v28173_v10  ;;  %24330 = vmatpush3.msra.mxu0 %v28211_v0  ;;  %v16992_v0 = vsub.f32 %v28363_v26, %v28388_v29  ;;  %v16999_v31 = vsub.f32 %v28377_v44, %v28400_v7 }
0x1673   :  { %24331 = vmatprep.mubr.f32.mxu0 %v24946_v27  ;;  %24352 = vmatpush3.msra.mxu1 %v28173_v10  ;;  %v16985_v10 = vsub.f32 %v28346_v37, %v28374_v23  ;;  %v16979_v15 = vand.u32 4294901760, %v16978_v48 }
0x1674   :  { %24353 = vmatprep.mubr.f32.mxu1 %v24946_v27  ;;  %24332 = vmatmul.mubr.f32.vlgmr.msra.gmra.mxu0 %v24970_v36  ;;  %v16993_v42 = vand.u32 4294901760, %v16992_v0  ;;  %v17000_v59 = vand.u32 4294901760, %v16999_v31 }
0x1675   :  { %24354 = vmatmul.mubr.f32.vlgmr.msra.gmra.mxu1 %v24970_v36  ;;  %24334 = vmatprep.mubr.f32.mxu0 %v25008_v52  ;;  %v16986_v33 = vand.u32 4294901760, %v16985_v10 }
0x1676   :  { %24356 = vmatprep.mubr.f32.mxu1 %v25008_v52  ;;  %24381 = vmatprep.subr.mxu1 %v16965_v39 }
0x1677   :  { %24382 = vmatpush3.msra.mxu1 %v16965_v39  ;;  %24359 = vmatprep.subr.mxu0 %v28283_v13 }
0x1678   :  { %24335 = vmatmul.mubr.f32.gmra.mxu0 %v25015_v56  ;;  %24383 = vmatprep.subr.mxu1 %v16972_v58 }
0x1679   :  { %24357 = vmatmul.mubr.f32.gmra.mxu1 %v25015_v56  ;;  %24360 = vmatpush3.msra.mxu0 %v28283_v13 }
0x167a   :  { %24384 = vmatpush3.msra.mxu1 %v16972_v58  ;;  %24361 = vmatprep.subr.mxu0 %v28289_v32 }
0x167b   :  { %24385 = vmatprep.subr.mxu1 %v16979_v15  ;;  %24362 = vmatpush3.msra.mxu0 %v28289_v32 }
0x167c   :  { %24386 = vmatpush3.msra.mxu1 %v16979_v15  ;;  %24363 = vmatprep.subr.mxu0 %v28306_v43 }
0x167d   :  { %24387 = vmatprep.subr.mxu1 %v16986_v33  ;;  %24364 = vmatpush3.msra.mxu0 %v28306_v43 }
0x167e   :  { %24388 = vmatpush3.msra.mxu1 %v16986_v33  ;;  %24365 = vmatprep.subr.mxu0 %v28318_v55 }
0x167f   :  { %24389 = vmatprep.subr.mxu1 %v16993_v42  ;;  %24366 = vmatpush3.msra.mxu0 %v28318_v55 }
0x1680   :  { %24390 = vmatpush3.msra.mxu1 %v16993_v42  ;;  %24367 = vmatprep.subr.mxu0 %v28333_v18 }
0x1681   :  { %24391 = vmatprep.subr.mxu1 %v17000_v59  ;;  %24397 = vmatprep.mubr.f32.mxu1 %v24946_v27 }
0x1682   :  { %24392 = vmatpush3.msra.mxu1 %v17000_v59  ;;  %24368 = vmatpush3.msra.mxu0 %v28333_v18 }
0x1683   :  { %24393 = vmatprep.subr.mxu1 %v17007_v3  ;;  %24369 = vmatprep.subr.mxu0 %v28348_v12 }
0x1684   :  { %24394 = vmatpush3.msra.mxu1 %v17007_v3  ;;  %24370 = vmatpush3.msra.mxu0 %v28348_v12 }
0x1685   :  { %24395 = vmatprep.subr.mxu1 %v17014_v11  ;;  %24371 = vmatprep.subr.mxu0 %v28365_v17 }
0x1686   :  { %24396 = vmatpush3.msra.mxu1 %v17014_v11  ;;  %24372 = vmatpush3.msra.mxu0 %v28365_v17 }
0x1687   :  { %24425 = vmatprep.subr.mxu1 %v28283_v13  ;;  %24398 = vmatmul.mubr.f32.vlgmr.msra.gmra.mxu1 %v24970_v36 }
0x1688   :  { %24426 = vmatpush3.msra.mxu1 %v28283_v13  ;;  %24373 = vmatprep.subr.mxu0 %v28379_v20 }
0x1689   :  { %24427 = vmatprep.subr.mxu1 %v28289_v32  ;;  %24374 = vmatpush3.msra.mxu0 %v28379_v20 }
0x168a   :  { %24428 = vmatpush3.msra.mxu1 %v28289_v32  ;;  %24375 = vmatprep.mubr.f32.mxu0 %v25026_v60 }
0x168b   :  { %24429 = vmatprep.subr.mxu1 %v28306_v43  ;;  %24403 = vmatprep.subr.mxu0 %v28299_v50 }
0x168c   :  { %24430 = vmatpush3.msra.mxu1 %v28306_v43  ;;  %24376 = vmatmul.mubr.f32.vlgmr.msra.gmra.mxu0 %v25032_v63 }
0x168d   :  { %24431 = vmatprep.subr.mxu1 %v28318_v55  ;;  %24404 = vmatpush3.msra.mxu0 %v28299_v50 }
0x168e   :  { %24432 = vmatpush3.msra.mxu1 %v28318_v55  ;;  %24405 = vmatprep.subr.mxu0 %v28311_v5 }
0x168f   :  { %24433 = vmatprep.subr.mxu1 %v28333_v18  ;;  %24406 = vmatpush3.msra.mxu0 %v28311_v5 }
0x1690   :  { %24434 = vmatpush3.msra.mxu1 %v28333_v18  ;;  %24400 = vmatprep.mubr.f32.mxu1 %v25008_v52 }
0x1691   :  { %24435 = vmatprep.subr.mxu1 %v28348_v12  ;;  %24407 = vmatprep.subr.mxu0 %v28331_v30 }
0x1692   :  { %24436 = vmatpush3.msra.mxu1 %v28348_v12  ;;  %24408 = vmatpush3.msra.mxu0 %v28331_v30 }
0x1693   :  { %24437 = vmatprep.subr.mxu1 %v28365_v17  ;;  %24401 = vmatmul.mubr.f32.gmra.mxu1 %v25015_v56 }
0x1694   :  { %24438 = vmatpush3.msra.mxu1 %v28365_v17  ;;  %24409 = vmatprep.subr.mxu0 %v28346_v37 }
0x1695   :  { %24439 = vmatprep.subr.mxu1 %v28379_v20  ;;  %24410 = vmatpush3.msra.mxu0 %v28346_v37 }
0x1696   :  { %24440 = vmatpush3.msra.mxu1 %v28379_v20  ;;  %24411 = vmatprep.subr.mxu0 %v28363_v26 }
0x1697   :  { %24441 = vmatprep.mubr.f32.mxu1 %v24980_v41  ;;  %24469 = vmatprep.subr.mxu1 %v28283_v13 }
0x1698   :  { %24412 = vmatpush3.msra.mxu0 %v28363_v26  ;;  %24442 = vmatmul.mubr.f32.vlgmr.msra.gmra.mxu1 %v25006_v51 }
0x1699   :  { %24470 = vmatpush3.msra.mxu1 %v28283_v13  ;;  %24413 = vmatprep.subr.mxu0 %v28377_v44 }
0x169a   :  { %24471 = vmatprep.subr.mxu1 %v28289_v32  ;;  %24414 = vmatpush3.msra.mxu0 %v28377_v44 }
0x169b   :  { %24472 = vmatpush3.msra.mxu1 %v28289_v32  ;;  %24378 = vmatprep.mubr.f32.mxu0 %v25063_v19 }
0x169c   :  { %24415 = vmatprep.subr.mxu0 %v28391_v54  ;;  %24473 = vmatprep.subr.mxu1 %v28306_v43 }
0x169d   :  { %24379 = vmatmul.mubr.f32.gmra.mxu0 %v25069_v16  ;;  %24474 = vmatpush3.msra.mxu1 %v28306_v43 }
0x169e   :  { %24416 = vmatpush3.msra.mxu0 %v28391_v54  ;;  %24475 = vmatprep.subr.mxu1 %v28318_v55 }
0x169f   :  { %24417 = vmatprep.subr.mxu0 %v28403_v57  ;;  %24476 = vmatpush3.msra.mxu1 %v28318_v55 }
0x16a0   :  { %24418 = vmatpush3.msra.mxu0 %v28403_v57  ;;  %24419 = vmatprep.mubr.f32.mxu0 %v24967_v35 }
0x16a1   :  { %24447 = vmatprep.subr.mxu0 %v28323_v38  ;;  %24477 = vmatprep.subr.mxu1 %v28333_v18 }
0x16a2   :  { %24420 = vmatmul.mubr.f32.vlgmr.msra.gmra.mxu0 %v24989_v45  ;;  %24478 = vmatpush3.msra.mxu1 %v28333_v18 }
0x16a3   :  { %24448 = vmatpush3.msra.mxu0 %v28323_v38  ;;  %24479 = vmatprep.subr.mxu1 %v28348_v12 }
0x16a4   :  { %24449 = vmatprep.subr.mxu0 %v28338_v62  ;;  %24444 = vmatprep.mubr.f32.mxu1 %v28937_v46 }
0x16a5   :  { %24450 = vmatpush3.msra.mxu0 %v28338_v62  ;;  %24480 = vmatpush3.msra.mxu1 %v28348_v12 }
0x16a6   :  { %24445 = vmatmul.mubr.f32.gmra.mxu1 %v28938_v34  ;;  %24451 = vmatprep.subr.mxu0 %v28360_v4 }
0x16a7   :  { %24481 = vmatprep.subr.mxu1 %v28365_v17  ;;  %24452 = vmatpush3.msra.mxu0 %v28360_v4 }
0x16a8   :  { %24482 = vmatpush3.msra.mxu1 %v28365_v17  ;;  %24453 = vmatprep.subr.mxu0 %v28374_v23 }
0x16a9   :  { %24483 = vmatprep.subr.mxu1 %v28379_v20  ;;  %24454 = vmatpush3.msra.mxu0 %v28374_v23 }
0x16aa   :  { %24484 = vmatpush3.msra.mxu1 %v28379_v20  ;;  %24485 = vmatprep.mubr.f32.mxu1 %v24946_v27 }
0x16ab   :  { %24455 = vmatprep.subr.mxu0 %v28388_v29  ;;  %24486 = vmatmul.mubr.f32.vlgmr.msra.gmra.mxu1 %v24970_v36 }
0x16ac   :  { %24456 = vmatpush3.msra.mxu0 %v28388_v29  ;;  %24422 = vmatprep.mubr.f32.mxu0 %v28935_v49 }
0x16ad   :  { %24457 = vmatprep.subr.mxu0 %v28400_v7  ;;  %24488 = vmatprep.mubr.f32.mxu1 %v25008_v52 }
0x16ae   :  { %24458 = vmatpush3.msra.mxu0 %v28400_v7 }
0x16af   :  { %24423 = vmatmul.mubr.f32.gmra.mxu0 %v28936_v24  ;;  %24459 = vmatprep.subr.mxu0 %v28410_v9 }
0x16b0   :  { %24489 = vmatmul.mubr.f32.gmra.mxu1 %v25015_v56  ;;  %24460 = vmatpush3.msra.mxu0 %v28410_v9 }
0x16b1   :  { %v24066_v35 = vpop.f32.mrf.mxu1  ;;  %24461 = vmatprep.subr.mxu0 %v28418_v40  ;;  %24463 = vmatprep.mubr.f32.mxu0 %v24946_v27 }
0x16b2   :  { %24462 = vmatpush3.msra.mxu0 %v28418_v40 }
0x16b3   :  { %24464 = vmatmul.mubr.f32.vlgmr.msra.gmra.mxu0 %v24970_v36  ;;  %v15132_v41 = vpop.f32.mrf.mxu1 }
0x16b4   :  { %24466 = vmatprep.mubr.f32.mxu0 %v25008_v52 }
0x16b5   :  { %v24080_v45 = vpop.f32.mrf.mxu1 }
0x16b7   :  { %24467 = vmatmul.mubr.f32.gmra.mxu0 %v25015_v56  ;;  %v15296_v16 = vpop.f32.mrf.mxu1  ;;  %v28939_v56 = vld [vmem:[#allocation19_spill] sm:$0xff] }
0x16b9   :  { %v24059_v51 = vpop.f32.mrf.mxu0  ;;  %v24094_v13 = vpop.f32.mrf.mxu1 }
0x16ba   :  { %v15139_v60 = vadd.f32 %v24066_v35, %v24059_v51 }
0x16bb   :  { %v15041_v63 = vpop.f32.mrf.mxu0  ;;  %v15460_v2 = vpop.f32.mrf.mxu1 }
0x16bc   :  { %v15133_v19 = vadd.f32 %v15132_v41, %v15041_v63 }
0x16bd   :  { %v24073_v49 = vpop.f32.mrf.mxu0 }
0x16be   :  { %v15222_v24 = vadd.f32 %v24073_v49, %v15139_v60 }
0x16bf   :  { %v15214_v46 = vpop.f32.mrf.mxu0 }
0x16c0   :  { %v15215_v34 = vadd.f32 %v15214_v46, %v15133_v19  ;;  %v15305_v27 = vadd.f32 %v24080_v45, %v15222_v24 }
0x16c1   :  { %v24087_v32 = vpop.f32.mrf.mxu0 }
0x16c2   :  { %v15388_v50 = vadd.f32 %v24087_v32, %v15305_v27  ;;  %v15297_v36 = vadd.f32 %v15296_v16, %v15215_v34 }
0x16c3   :  { %v15381_v43 = vpop.f32.mrf.mxu0 }
0x16c4   :  { %v15467_v52 = vadd.f32 %v24094_v13, %v15388_v50  ;;  %v15382_v5 = vadd.f32 %v15381_v43, %v15297_v36 }
0x16c6   :  { %v28527_v55 = vadd.f32 %v15467_v52, %v28939_v56  ;;  %v28529_v38 = vadd.f32 %v15460_v2, %v15382_v5 }
0x16d0   :  { %v24135_v6 = vpop.f32.mrf.mxu1 }
0x16d1   :  { %v24113_v30 = vpop.f32.mrf.mxu0 }
0x16d2   :  { %v15708_v18 = vadd.f32 %v24135_v6, %v24113_v30  ;;  %v15701_v14 = vpop.f32.mrf.mxu1 }
0x16d3   :  { %v15560_v62 = vpop.f32.mrf.mxu0 }
0x16d4   :  { %v15702_v0 = vadd.f32 %v15701_v14, %v15560_v62 }
0x16dd   :  { %v24116_v37 = vpop.f32.mrf.mxu0 }
0x16de   :  { %v24138_v12 = vpop.f32.mrf.mxu1 }
0x16df   :  { %v15720_v22 = vadd.f32 %v24138_v12, %v24116_v37  ;;  %v15580_v61 = vpop.f32.mrf.mxu0 }
0x16e0   :  { %v15713_v4 = vpop.f32.mrf.mxu1 }
0x16e1   :  { %v15714_v26 = vadd.f32 %v15713_v4, %v15580_v61 }
0x16e4   :  { %v24157_v17 = vpop.f32.mrf.mxu0 }
0x16e5   :  { %v15815_v25 = vadd.f32 %v24157_v17, %v15708_v18 }
0x16e6   :  { %v24179_v23 = vpop.f32.mrf.mxu1  ;;  %v15807_v44 = vpop.f32.mrf.mxu0 }
0x16e7   :  { %v15918_v20 = vadd.f32 %v24179_v23, %v15815_v25  ;;  %v15808_v9 = vadd.f32 %v15807_v44, %v15702_v0 }
0x16e8   :  { %v15909_v39 = vpop.f32.mrf.mxu1 }
0x16e9   :  { %v15910_v31 = vadd.f32 %v15909_v39, %v15808_v9 }
0x16ea   :  { %v24160_v48 = vpop.f32.mrf.mxu0 }
0x16eb   :  { %v15829_v29 = vadd.f32 %v24160_v48, %v15720_v22 }
0x16ec   :  { %v15821_v54 = vpop.f32.mrf.mxu0 }
0x16ed   :  { %v15822_v58 = vadd.f32 %v15821_v54, %v15714_v26  ;;  %v24182_v10 = vpop.f32.mrf.mxu1 }
0x16ee   :  { %v15934_v7 = vadd.f32 %v24182_v10, %v15829_v29 }
0x16ef   :  { %v15925_v57 = vpop.f32.mrf.mxu1 }
0x16f0   :  { %v15926_v15 = vadd.f32 %v15925_v57, %v15822_v58 }
0x16f8   :  { %v24201_v33 = vpop.f32.mrf.mxu0 }
0x16f9   :  { %v16035_v37 = vadd.f32 %v24201_v33, %v15918_v20 }
0x16fa   :  { %v24223_v40 = vpop.f32.mrf.mxu1  ;;  %v16028_v42 = vpop.f32.mrf.mxu0 }
0x16fb   :  { %v16029_v47 = vadd.f32 %v16028_v42, %v15910_v31  ;;  %v16132_v17 = vadd.f32 %v24223_v40, %v16035_v37 }
0x16fc   :  { %v16125_v59 = vpop.f32.mrf.mxu1 }
0x16fd   :  { %v16126_v28 = vadd.f32 %v16125_v59, %v16029_v47  ;;  %v17504_v39 = vsel %vm2079_vm1, %v16132_v17, 0 }
0x16fe   :  { %v24204_v3 = vpop.f32.mrf.mxu0  ;;  %v28547_v58 = vand.u32 4294901760, %v17504_v39 }
0x16ff   :  { %v17501_v11 = vsel %vm2079_vm1, %v16126_v28, 0  ;;  %v16047_v35 = vadd.f32 %v24204_v3, %v15934_v7 }
0x1700   :  { %v28532_v41 = vand.u32 4294901760, %v17501_v11  ;;  %v16040_v45 = vpop.f32.mrf.mxu0  ;;  %v17590_v0 = vsub.f32 %v17504_v39, %v28547_v58 }
0x1701   :  { %v16041_v51 = vadd.f32 %v16040_v45, %v15926_v15  ;;  %v24226_v60 = vpop.f32.mrf.mxu1 }
0x1702   :  { %v28535_v63 = vsub.f32 %v17501_v11, %v28532_v41  ;;  %v28537_v19 = vadd.f32 %v24226_v60, %v16047_v35  ;;  %24502 = vmatprep.mubr.f32.mxu1 %v28532_v41  ;;  %v17591_v11 = vand.u32 4294901760, %v17590_v0 }
0x1703   :  { %v16137_v16 = vpop.f32.mrf.mxu1 }
0x1704   :  { %v28540_v49 = vadd.f32 %v16137_v16, %v16041_v51  ;;  %v17581_v24 = vand.u32 4294901760, %v28535_v63 }
0x1706   :  { %v17582_v46 = vsub.f32 %v28535_v63, %v17581_v24 }
0x1708   :  { %v17583_v34 = vand.u32 4294901760, %v17582_v46 }
0x170a   :  { %24495 = vmatprep.mubr.f32.mxu0 %v17583_v34 }
0x170c   :  { %v24245_v27 = vpop.f32.mrf.mxu0 }
0x170d   :  { %v24267_v13 = vpop.f32.mrf.mxu1 }
0x170e   :  { %v16235_v32 = vpop.f32.mrf.mxu0  ;;  %v16383_v44 = vadd.f32 %v24267_v13, %v24245_v27 }
0x170f   :  { %v16376_v50 = vpop.f32.mrf.mxu1 }
0x1710   :  { %v16377_v48 = vadd.f32 %v16376_v50, %v16235_v32  ;;  %v17592_v32 = vsub.f32 %v17590_v0, %v17591_v11 }
0x1719   :  { %v24248_v36 = vpop.f32.mrf.mxu0 }
0x171a   :  { %v24270_v43 = vpop.f32.mrf.mxu1 }
0x171b   :  { %v16395_v52 = vadd.f32 %v24270_v43, %v24248_v36  ;;  %v16255_v5 = vpop.f32.mrf.mxu0 }
0x171c   :  { %v16388_v2 = vpop.f32.mrf.mxu1 }
0x171d   :  { %v16389_v56 = vadd.f32 %v16388_v2, %v16255_v5  ;;  %v17593_v5 = vand.u32 4294901760, %v17592_v32 }
0x1720   :  { %v24289_v6 = vpop.f32.mrf.mxu0 }
0x1721   :  { %v16490_v29 = vadd.f32 %v24289_v6, %v16383_v44 }
0x1722   :  { %v24311_v30 = vpop.f32.mrf.mxu1  ;;  %v16482_v18 = vpop.f32.mrf.mxu0 }
0x1723   :  { %v16483_v54 = vadd.f32 %v16482_v18, %v16377_v48  ;;  %v16593_v10 = vadd.f32 %v24311_v30, %v16490_v29 }
0x1724   :  { %v16584_v62 = vpop.f32.mrf.mxu1 }
0x1725   :  { %v16585_v57 = vadd.f32 %v16584_v62, %v16483_v54 }
0x1726   :  { %v24292_v14 = vpop.f32.mrf.mxu0 }
0x1727   :  { %v16504_v12 = vadd.f32 %v24292_v14, %v16395_v52 }
0x1728   :  { %v16496_v22 = vpop.f32.mrf.mxu0 }
0x1729   :  { %v16497_v61 = vadd.f32 %v16496_v22, %v16389_v56  ;;  %v24314_v4 = vpop.f32.mrf.mxu1 }
0x172a   :  { %v16609_v26 = vadd.f32 %v24314_v4, %v16504_v12 }
0x172b   :  { %v16600_v25 = vpop.f32.mrf.mxu1 }
0x172c   :  { %v16601_v23 = vadd.f32 %v16600_v25, %v16497_v61 }
0x1734   :  { %v24333_v7 = vpop.f32.mrf.mxu0 }
0x1735   :  { %v16710_v20 = vadd.f32 %v24333_v7, %v16593_v10  ;;  %v24355_v15 = vpop.f32.mrf.mxu1 }
0x1736   :  { %v16703_v9 = vpop.f32.mrf.mxu0 }
0x1737   :  { %v16807_v33 = vadd.f32 %v24355_v15, %v16710_v20  ;;  %v16704_v31 = vadd.f32 %v16703_v9, %v16585_v57  ;;  %v16800_v40 = vpop.f32.mrf.mxu1 }
0x1738   :  { %v24336_v42 = vpop.f32.mrf.mxu0 }
0x1739   :  { %v17510_v47 = vsel %vm2079_vm1, %v16807_v33, 0  ;;  %v16801_v59 = vadd.f32 %v16800_v40, %v16704_v31  ;;  %v16722_v28 = vadd.f32 %v24336_v42, %v16609_v26  ;;  %v24358_v3 = vpop.f32.mrf.mxu1 }
0x173a   :  { %v17541_v35 = vand.u32 4294901760, %v17510_v47  ;;  %v16715_v45 = vpop.f32.mrf.mxu0 }
0x173b   :  { %v17507_v51 = vsel %vm2079_vm1, %v16801_v59, 0  ;;  %v16716_v60 = vadd.f32 %v16715_v45, %v16601_v23  ;;  %v28552_v16 = vadd.f32 %v24358_v3, %v16722_v28  ;;  %v16812_v46 = vpop.f32.mrf.mxu1 }
0x173c   :  { %v17629_v34 = vsub.f32 %v17510_v47, %v17541_v35  ;;  %v17544_v27 = vand.u32 4294901760, %v17507_v51  ;;  %24491 = vmatprep.subr.mxu0 %v17541_v35 }
0x173d   :  { %v28554_v13 = vadd.f32 %v16812_v46, %v16716_v60  ;;  %24492 = vmatpush3.xpose.msra.mxu0 %v17541_v35 }
0x173e   :  { %v17636_v50 = vsub.f32 %v17507_v51, %v17544_v27  ;;  %24493 = vmatprep.subr.mxu0 %v17544_v27  ;;  %v17630_v36 = vand.u32 4294901760, %v17629_v34 }
0x1740   :  { %v17631_v43 = vsub.f32 %v17629_v34, %v17630_v36  ;;  %v17637_v52 = vand.u32 4294901760, %v17636_v50 }
0x1741   :  { %24494 = vmatpush3.xpose.msra.mxu0 %v17544_v27 }
0x1742   :  { %24505 = vmatprep.subr.mxu0 %v17629_v34  ;;  %v17632_v2 = vand.u32 4294901760, %v17631_v43  ;;  %v17638_v56 = vsub.f32 %v17636_v50, %v17637_v52 }
0x1744   :  { %24496 = vmatmul.mubr.f32.vlgmr.msra.gmra.mxu0 %v17593_v5  ;;  %24498 = vmatprep.subr.mxu1 %v17632_v2  ;;  %v17639_v6 = vand.u32 4294901760, %v17638_v56 }
0x1745   :  { %24499 = vmatpush3.xpose.msra.mxu1 %v17632_v2  ;;  %24506 = vmatpush3.xpose.msra.mxu0 %v17629_v34 }
0x1746   :  { %24509 = vmatprep.mubr.f32.mxu0 %v28535_v63  ;;  %24500 = vmatprep.subr.mxu1 %v17639_v6 }
0x1747   :  { %24507 = vmatprep.subr.mxu0 %v17636_v50  ;;  %v24399_v30 = vpop.f32.mrf.mxu1 }
0x1749   :  { %24501 = vmatpush3.xpose.msra.mxu1 %v17639_v6  ;;  %24508 = vmatpush3.xpose.msra.mxu0 %v17636_v50  ;;  %v17051_v62 = vpop.f32.mrf.mxu1 }
0x174a   :  { %24512 = vmatprep.subr.mxu1 %v17541_v35  ;;  %24519 = vmatprep.subr.mxu0 %v17630_v36 }
0x174c   :  { %24503 = vmatmul.mubr.f32.vlgmr.msra.gmra.mxu1 %v28547_v58  ;;  %24510 = vmatmul.mubr.f32.vlgmr.msra.gmra.mxu0 %v17590_v0  ;;  %v24377_v18 = vpop.f32.mrf.mxu0 }
0x174d   :  { %24513 = vmatpush3.xpose.msra.mxu1 %v17541_v35  ;;  %24516 = vmatprep.mubr.f32.mxu1 %v17581_v24  ;;  %v17058_v25 = vadd.f32 %v24399_v30, %v24377_v18 }
0x174e   :  { %24520 = vmatpush3.xpose.msra.mxu0 %v17630_v36  ;;  %24523 = vmatprep.mubr.f32.mxu0 %v28532_v41  ;;  %v16910_v63 = vpop.f32.mrf.mxu0 }
0x174f   :  { %24514 = vmatprep.subr.mxu1 %v17544_v27  ;;  %24521 = vmatprep.subr.mxu0 %v17637_v52  ;;  %v17052_v44 = vadd.f32 %v17051_v62, %v16910_v63 }
0x1751   :  { %24515 = vmatpush3.xpose.msra.mxu1 %v17544_v27 }
0x1752   :  { %24522 = vmatpush3.xpose.msra.mxu0 %v17637_v52  ;;  %24526 = vmatprep.subr.mxu1 %v17541_v35 }
0x1753   :  { %v24402_v24 = vpop.f32.mrf.mxu1 }
0x1754   :  { %24517 = vmatmul.mubr.f32.vlgmr.msra.gmra.mxu1 %v17591_v11 }
0x1755   :  { %24524 = vmatmul.mubr.f32.vlgmr.msra.gmra.mxu0 %v28547_v58  ;;  %24527 = vmatpush3.xpose.msra.mxu1 %v17541_v35  ;;  %v17063_v37 = vpop.f32.mrf.mxu1 }
0x1756   :  { %24530 = vmatprep.mubr.f32.mxu1 %v28532_v41  ;;  %24528 = vmatprep.subr.mxu1 %v17544_v27 }
0x1758   :  { %v24443_v4 = vpop.f32.mrf.mxu1 }
0x1759   :  { %24529 = vmatpush3.xpose.msra.mxu1 %v17544_v27 }
0x175a   :  { %v17259_v26 = vpop.f32.mrf.mxu1 }
0x175c   :  { %24531 = vmatmul.mubr.f32.vlgmr.msra.gmra.mxu1 %v28547_v58 }
0x175d   :  { %v24380_v14 = vpop.f32.mrf.mxu0 }
0x175e   :  { %v17070_v12 = vadd.f32 %v24402_v24, %v24380_v14 }
0x175f   :  { %v16930_v22 = vpop.f32.mrf.mxu0 }
0x1760   :  { %v17064_v61 = vadd.f32 %v17063_v37, %v16930_v22 }
0x1762   :  { %v24421_v17 = vpop.f32.mrf.mxu0 }
0x1763   :  { %v17165_v48 = vadd.f32 %v24421_v17, %v17058_v25 }
0x1764   :  { %v17157_v39 = vpop.f32.mrf.mxu0 }
0x1765   :  { %v17158_v29 = vadd.f32 %v17157_v39, %v17052_v44  ;;  %v17268_v10 = vadd.f32 %v24443_v4, %v17165_v48 }
0x1766   :  { %v24446_v23 = vpop.f32.mrf.mxu1 }
0x1767   :  { %v17260_v20 = vadd.f32 %v17259_v26, %v17158_v29 }
0x1768   :  { %v17275_v41 = vpop.f32.mrf.mxu1 }
0x176b   :  { %v24487_v58 = vpop.f32.mrf.mxu1 }
0x176d   :  { %v17475_v42 = vpop.f32.mrf.mxu1 }
0x176f   :  { %v24424_v54 = vpop.f32.mrf.mxu0 }
0x1770   :  { %v17179_v7 = vadd.f32 %v24424_v54, %v17070_v12  ;;  %v24490_v45 = vpop.f32.mrf.mxu1 }
0x1771   :  { %v17171_v57 = vpop.f32.mrf.mxu0 }
0x1772   :  { %v17172_v15 = vadd.f32 %v17171_v57, %v17064_v61  ;;  %v17284_v0 = vadd.f32 %v24446_v23, %v17179_v7  ;;  %v28596_v2 = vpop.f32.mrf.mxu1 }
0x1773   :  { %v24465_v9 = vpop.f32.mrf.mxu0 }
0x1774   :  { %v28564_v33 = vadd.f32 %v17275_v41, %v17172_v15  ;;  %v17385_v31 = vadd.f32 %v24465_v9, %v17268_v10 }
0x1775   :  { %v17378_v40 = vpop.f32.mrf.mxu0 }
0x1776   :  { %v17379_v47 = vadd.f32 %v17378_v40, %v17260_v20  ;;  %v17482_v59 = vadd.f32 %v24487_v58, %v17385_v31 }
0x1777   :  { %v24468_v28 = vpop.f32.mrf.mxu0 }
0x1778   :  { %v28566_v3 = vand.u32 4294901760, %v17482_v59  ;;  %v17476_v11 = vadd.f32 %v17475_v42, %v17379_v47  ;;  %v17397_v35 = vadd.f32 %v24468_v28, %v17284_v0 }
0x1779   :  { %v28594_v5 = vpop.f32.mrf.mxu0 }
0x177a   :  { %v28569_v51 = vsub.f32 %v17482_v59, %v28566_v3  ;;  %v28571_v60 = vand.u32 4294901760, %v17476_v11  ;;  %24533 = vmatprep.subr.mxu0 %v28566_v3  ;;  %v28574_v46 = vadd.f32 %v24490_v45, %v17397_v35 }
0x177b   :  { %24534 = vmatpush3.msra.mxu0 %v28566_v3 }
0x177c   :  { %v28578_v34 = vsub.f32 %v17476_v11, %v28571_v60  ;;  %v28581_v27 = vand.u32 4294901760, %v28569_v51  ;;  %24535 = vmatprep.subr.mxu0 %v28571_v60 }
0x177d   :  { %24536 = vmatpush3.msra.mxu0 %v28571_v60 }
0x177e   :  { %v18163_v32 = vsub.f32 %v28569_v51, %v28581_v27  ;;  %v28588_v50 = vand.u32 4294901760, %v28578_v34  ;;  %24547 = vmatprep.subr.mxu0 %v28569_v51 }
0x1780   :  { %v18164_v36 = vand.u32 4294901760, %v18163_v32  ;;  %v18170_v43 = vsub.f32 %v28578_v34, %v28588_v50 }
0x1782   :  { %24540 = vmatprep.subr.mxu1 %v18164_v36  ;;  %v18171_v52 = vand.u32 4294901760, %v18170_v43 }
0x1783   :  { %24541 = vmatpush3.msra.mxu1 %v18164_v36 }
0x1784   :  { %24542 = vmatprep.subr.mxu1 %v18171_v52 }
0x1785   :  { %24543 = vmatpush3.msra.mxu1 %v18171_v52 }
0x1786   :  { %24554 = vmatprep.subr.mxu1 %v28566_v3 }
0x1804   :  { %v24497_v56 = vpop.f32.mrf.mxu0 }
0x1806   :  { %v17585_v30 = vpop.f32.mrf.mxu0 }
0x180c   :  { %v24504_v6 = vpop.f32.mrf.mxu1  ;;  %v24511_v63 = vpop.f32.mrf.mxu0 }
0x180d   :  { %v17683_v62 = vadd.f32 %v24504_v6, %v24497_v56 }
0x180e   :  { %v17676_v18 = vpop.f32.mrf.mxu1  ;;  %v17758_v12 = vpop.f32.mrf.mxu0 }
0x180f   :  { %v17677_v24 = vadd.f32 %v17676_v18, %v17585_v30  ;;  %v17766_v37 = vadd.f32 %v24511_v63, %v17683_v62 }
0x1811   :  { %v17759_v61 = vadd.f32 %v17758_v12, %v17677_v24 }
0x1814   :  { %v24518_v14 = vpop.f32.mrf.mxu1 }
0x1815   :  { %v17849_v4 = vadd.f32 %v24518_v14, %v17766_v37  ;;  %v24525_v26 = vpop.f32.mrf.mxu0 }
0x1816   :  { %v17840_v22 = vpop.f32.mrf.mxu1 }
0x1817   :  { %v17841_v17 = vadd.f32 %v17840_v22, %v17759_v61  ;;  %v17932_v25 = vadd.f32 %v24525_v26, %v17849_v4  ;;  %v17925_v23 = vpop.f32.mrf.mxu0 }
0x1819   :  { %v17926_v39 = vadd.f32 %v17925_v23, %v17841_v17 }
0x181c   :  { %v24532_v44 = vpop.f32.mrf.mxu1 }
0x181d   :  { %v18011_v48 = vadd.f32 %v24532_v44, %v17932_v25 }
0x181e   :  { %v18004_v41 = vpop.f32.mrf.mxu1 }
0x181f   :  { %v18005_v29 = vadd.f32 %v18004_v41, %v17926_v39  ;;  %v18015_v54 = vsel %vm25657_vm3, %v18011_v48, -inf }
0x1820   :  { %v18019_v10 = vsel %vm2079_vm1, %v18015_v54, -inf }
0x1821   :  { %18020 = vmax.xlane.f32.xlu1 %v18019_v10  ;;  %v18014_v7 = vsel %vm25653_vm2, %v18005_v29, -inf }
0x1822   :  { %v18016_v57 = vsel %vm2079_vm1, %v18014_v7, -inf }
0x1823   :  { %18017 = vmax.xlane.f32.xlu0 %v18016_v57 }
0x18aa   :  { %v18021_v58 = vpop.xlane.xlu1 %18020 }
0x18ab   :  { %v18023_v20 = vsub.f32 %v18015_v54, %v18021_v58  ;;  %v19066_v58 = vsel %vm2079_vm1, %v28552_v16, 0 }
0x18ac   :  { %v18018_v15 = vpop.xlane.xlu0 %18017 }
0x18ad   :  { %v18026_v0 = vmul.f32 1.442695, %v18023_v20  ;;  %v18022_v9 = vsub.f32 %v18014_v7, %v18018_v15 }
0x18af   :  { %24794 = vpow2.f32 %v18026_v0  ;;  %v18024_v31 = vmul.f32 1.442695, %v18022_v9 }
0x18b1   :  { %24796 = vpow2.f32 %v18024_v31 }
0x18bc   :  { %v24795_v40 = vpop.eup %24794 }
0x18bd   :  { %v18031_v42 = vsel %vm2079_vm1, %v24795_v40, 0.0 }
0x18be   :  { %v24797_v47 = vpop.eup %24796  ;;  %18032 = vadd.xlane.f32.xlu1 %v18031_v42  ;;  %v19063_v42 = vsel %vm2079_vm1, %v28554_v13, 0 }
0x18bf   :  { %v18028_v59 = vsel %vm2079_vm1, %v24797_v47, 0.0 }
0x18c0   :  { %18029 = vadd.xlane.f32.xlu0 %v18028_v59 }
0x1947   :  { %v18033_v28 = vpop.xlane.xlu1 %18032 }
0x1948   :  { %24798 = vrcp.f32 %v18033_v28 }
0x1949   :  { %v18030_v11 = vpop.xlane.xlu0 %18029 }
0x194a   :  { %24800 = vrcp.f32 %v18030_v11 }
0x1955   :  { %v24799_v35 = vpop.eup %24798 }
0x1956   :  { %v18037_v45 = vmul.f32 %v24799_v35, %v24795_v40  ;;  %v28664_v40 = vand.u32 4294901760, %v19066_v58 }
0x1957   :  { %v24801_v32 = vpop.eup %24800 }
0x1958   :  { %v18035_v36 = vmul.f32 %v24801_v32, %v24797_v47  ;;  %v18042_v43 = vsel %vm2079_vm1, %v18037_v45, 0  ;;  %v28668_v45 = vand.u32 4294901760, %v19063_v42  ;;  %v28671_v16 = vsub.f32 %v19066_v58, %v28664_v40 }
0x1959   :  { %v18121_v52 = vand.u32 4294901760, %v18042_v43 }
0x195a   :  { %v18039_v56 = vsel %vm2079_vm1, %v18035_v36, 0  ;;  %v28678_v13 = vsub.f32 %v19063_v42, %v28668_v45 }
0x195b   :  { %v18111_v6 = vand.u32 4294901760, %v18039_v56  ;;  %v18122_v30 = vsub.f32 %v18042_v43, %v18121_v52 }
0x195d   :  { %24544 = vmatprep.mubr.f32.mxu1 %v18111_v6  ;;  %v18112_v18 = vsub.f32 %v18039_v56, %v18111_v6  ;;  %v18123_v62 = vand.u32 4294901760, %v18122_v30 }
0x195e   :  { %24545 = vmatmul.mubr.f32.vlgmr.msra.gmra.mxu1 %v18121_v52 }
0x195f   :  { %24555 = vmatpush3.msra.mxu1 %v28566_v3  ;;  %v18113_v63 = vand.u32 4294901760, %v18112_v18  ;;  %v18124_v24 = vsub.f32 %v18122_v30, %v18123_v62 }
0x1960   :  { %24556 = vmatprep.subr.mxu1 %v28571_v60 }
0x1961   :  { %24557 = vmatpush3.msra.mxu1 %v28571_v60  ;;  %24558 = vmatprep.mubr.f32.mxu1 %v18113_v63  ;;  %v18114_v14 = vsub.f32 %v18112_v18, %v18113_v63  ;;  %v18125_v12 = vand.u32 4294901760, %v18124_v24 }
0x1962   :  { %24568 = vmatprep.subr.mxu1 %v28566_v3  ;;  %24559 = vmatmul.mubr.f32.vlgmr.msra.gmra.mxu1 %v18123_v62  ;;  %v19057_v62 = vsel %vm2079_vm1, %v28540_v49, 0 }
0x1963   :  { %24569 = vmatpush3.msra.mxu1 %v28566_v3  ;;  %24572 = vmatprep.mubr.f32.mxu1 %v18111_v6  ;;  %v18115_v37 = vand.u32 4294901760, %v18114_v14  ;;  %v20710_v3 = vld [vmem:[%s28871_s4 + $0x38] sm:$0xff] }
0x1964   :  { %24570 = vmatprep.subr.mxu1 %v28571_v60 }
0x1965   :  { %24571 = vmatpush3.msra.mxu1 %v28571_v60  ;;  %24537 = vmatprep.mubr.f32.mxu0 %v18115_v37  ;;  %v20709_v60 = vld [vmem:[%s28871_s4 + $0x30] sm:$0xff]  ;;  %v28689_v37 = vand.u32 4294901760, %v28678_v13 }
0x1966   :  { %24538 = vmatmul.mubr.f32.vlgmr.msra.gmra.mxu0 %v18125_v12  ;;  %24573 = vmatmul.mubr.f32.vlgmr.msra.gmra.mxu1 %v18121_v52  ;;  %v28691_v12 = vand.u32 4294901760, %v19057_v62 }
0x1967   :  { %24548 = vmatpush3.msra.mxu0 %v28569_v51  ;;  %24551 = vmatprep.mubr.f32.mxu0 %v18112_v18  ;;  %v28625_v51 = vand.u32 4294901760, %v20710_v3  ;;  %v28682_v18 = vand.u32 4294901760, %v28671_v16 }
0x1968   :  { %24549 = vmatprep.subr.mxu0 %v28578_v34 }
0x1969   :  { %24550 = vmatpush3.msra.mxu0 %v28578_v34  ;;  %v28631_v34 = vsub.f32 %v20710_v3, %v28625_v51 }
0x196a   :  { %24561 = vmatprep.subr.mxu0 %v28581_v27  ;;  %24552 = vmatmul.mubr.f32.vlgmr.msra.gmra.mxu0 %v18122_v30 }
0x196b   :  { %24562 = vmatpush3.msra.mxu0 %v28581_v27  ;;  %24565 = vmatprep.mubr.f32.mxu0 %v18111_v6  ;;  %v28633_v27 = vand.u32 4294901760, %v20709_v60 }
0x196c   :  { %24563 = vmatprep.subr.mxu0 %v28588_v50 }
0x196d   :  { %24564 = vmatpush3.msra.mxu0 %v28588_v50  ;;  %v28638_v50 = vand.u32 4294901760, %v28631_v34  ;;  %v28641_v22 = vsub.f32 %v20709_v60, %v28633_v27  ;;  %v19187_v60 = vsub.f32 %v28671_v16, %v28682_v18 }
0x196e   :  { %24566 = vmatmul.mubr.f32.vlgmr.msra.gmra.mxu0 %v18121_v52  ;;  %24575 = vmatprep.subr.mxu0 %v28625_v51 }
0x196f   :  { %24576 = vmatpush3.msra.mxu0 %v28625_v51  ;;  %v18671_v61 = vsub.f32 %v28631_v34, %v28638_v50  ;;  %v28648_v4 = vand.u32 4294901760, %v28641_v22 }
0x1970   :  { %24577 = vmatprep.subr.mxu0 %v28633_v27 }
0x1971   :  { %24578 = vmatpush3.msra.mxu0 %v28633_v27  ;;  %v28651_v26 = vand.u32 4294901760, %v18671_v61  ;;  %v18678_v17 = vsub.f32 %v28641_v22, %v28648_v4  ;;  %v19060_v61 = vsel %vm2079_vm1, %v28537_v19, 0 }
0x1972   :  { %24589 = vmatprep.subr.mxu0 %v28631_v34 }
0x1973   :  { %24582 = vmatprep.subr.mxu1 %v28651_v26  ;;  %v28656_v25 = vand.u32 4294901760, %v18678_v17 }
0x1974   :  { %24583 = vmatpush3.msra.mxu1 %v28651_v26 }
0x1975   :  { %24584 = vmatprep.subr.mxu1 %v28656_v25 }
0x1976   :  { %24585 = vmatpush3.msra.mxu1 %v28656_v25 }
0x1977   :  { %24596 = vmatprep.subr.mxu1 %v28625_v51 }
0x1a1e   :  { %v24546_v23 = vpop.f32.mrf.mxu1 }
0x1a20   :  { %v18208_v44 = vpop.f32.mrf.mxu1 }
0x1a22   :  { %v24560_v39 = vpop.f32.mrf.mxu1 }
0x1a24   :  { %v18372_v54 = vpop.f32.mrf.mxu1 }
0x1a26   :  { %v24539_v48 = vpop.f32.mrf.mxu0  ;;  %v24574_v9 = vpop.f32.mrf.mxu1 }
0x1a27   :  { %v18215_v29 = vadd.f32 %v24546_v23, %v24539_v48  ;;  %v19194_v23 = vsub.f32 %v28678_v13, %v28689_v37  ;;  %v19188_v48 = vand.u32 4294901760, %v19187_v60 }
0x1a28   :  { %v18117_v41 = vpop.f32.mrf.mxu0  ;;  %v18536_v32 = vpop.f32.mrf.mxu1 }
0x1a29   :  { %v18209_v7 = vadd.f32 %v18208_v44, %v18117_v41  ;;  %v19136_v44 = vsub.f32 %v19057_v62, %v28691_v12  ;;  %v28706_v41 = vand.u32 4294901760, %v19060_v61  ;;  %v19195_v19 = vand.u32 4294901760, %v19194_v23 }
0x1a2a   :  { %v24553_v10 = vpop.f32.mrf.mxu0 }
0x1a2b   :  { %v18298_v57 = vadd.f32 %v24553_v10, %v18215_v29  ;;  %v17391_v29 = vadd.f32 %v28594_v5, %v28564_v33  ;;  %v19146_v10 = vsub.f32 %v19060_v61, %v28706_v41 }
0x1a2c   :  { %v18290_v20 = vpop.f32.mrf.mxu0 }
0x1a2d   :  { %v18291_v15 = vadd.f32 %v18290_v20, %v18209_v7  ;;  %v18381_v0 = vadd.f32 %v24560_v39, %v18298_v57  ;;  %v28717_v7 = vand.u32 4294901760, %v28574_v46  ;;  %v17488_v33 = vadd.f32 %v28596_v2, %v17391_v29 }
0x1a2e   :  { %v24567_v31 = vpop.f32.mrf.mxu0  ;;  %v19147_v57 = vand.u32 4294901760, %v19146_v10 }
0x1a2f   :  { %v18464_v47 = vadd.f32 %v24567_v31, %v18381_v0  ;;  %v18373_v59 = vadd.f32 %v18372_v54, %v18291_v15  ;;  %v19137_v54 = vand.u32 4294901760, %v19136_v44  ;;  %v28727_v58 = vsub.f32 %v28574_v46, %v28717_v7 }
0x1a30   :  { %v18457_v28 = vpop.f32.mrf.mxu0  ;;  %v28731_v2 = vand.u32 4294901760, %v17488_v33  ;;  %v19148_v15 = vsub.f32 %v19146_v10, %v19147_v57 }
0x1a31   :  { %v18543_v11 = vadd.f32 %v24574_v9, %v18464_v47  ;;  %v18458_v35 = vadd.f32 %v18457_v28, %v18373_v59  ;;  %v19138_v5 = vsub.f32 %v19136_v44, %v19137_v54  ;;  %v28739_v46 = vand.u32 4294901760, %v28727_v58  ;;  %v28940_v28 = vld [vmem:[#allocation10_spill] sm:$0xff] }
0x1a32   :  { %v28742_v0 = vsub.f32 %v17488_v33, %v28731_v2  ;;  %v19149_v9 = vand.u32 4294901760, %v19148_v15  ;;  %v28790_v15 = vld [vmem:[%s28872_s5] ss:$0 sm:$0xff]  ;;  %s24834_s5 = smov [#allocation2]  }
0x1a33   :  { %v18550_v36 = vsel %vm2079_vm1, %v18543_v11, 0  ;;  %v18537_v43 = vadd.f32 %v18536_v32, %v18458_v35  ;;  %v19139_v20 = vand.u32 4294901760, %v19138_v5  ;;  %v19719_v31 = vsub.f32 %v28727_v58, %v28739_v46  ;;  %v28941_v11 = vld [vmem:[#allocation9_spill] sm:$0xff]  ;;  %v28942_v32 = vld [vmem:[#allocation11_spill] sm:$0xff]  ;;  %s20621_s14 = sshll.u32 %s24834_s5, 4  ;;  %s20622_s14 = int_to_ptr.vmem [resolvable:$true] %s20621_s14 }
0x1a34   :  { %v28674_v52 = vand.u32 4294901760, %v18550_v36  ;;  %v28752_v42 = vand.u32 4294901760, %v28742_v0  ;;  %v3297_v35 = vadd.f32 %v28941_v11, %v28940_v28  ;;  %s24812_s15 = scalar_lea.vmem %s20622_s14, 512  ;;  %p24817_p1 = scmp.lt.s32.totalorder %s20622_s14, %s20622_s14 }
0x1a35   :  { %v18547_v56 = vsel %vm2079_vm1, %v18537_v43, 0  ;;  %v19720_v47 = vand.u32 4294901760, %v19719_v31  ;;  %v28944_v43 = vld [vmem:[#allocation22_spill] sm:$0xff]  ;;  %p24813_p0 = scmp.ne.s32.totalorder %s20622_s14, %s24812_s15  ;;  %p24818_p2 = scmp.lt.s32.totalorder %s24812_s15, %s24812_s15 }
0x1a36   :  { %v18630_v6 = vsub.f32 %v18550_v36, %v28674_v52  ;;  %v18619_v30 = vand.u32 4294901760, %v18547_v56  ;;  %v19726_v59 = vsub.f32 %v28742_v0, %v28752_v42  ;;  %v28943_v36 = vld [vmem:[#allocation23_spill] sm:$0xff] }
0x1a37   :  { %p24819_p3 = por %p24818_p2, %p24817_p1 }
0x1a38   :  { %v18631_v63 = vand.u32 4294901760, %v18630_v6  ;;  %v18620_v24 = vsub.f32 %v18547_v56, %v18619_v30  ;;  %24586 = vmatprep.mubr.f32.mxu1 %v18619_v30  ;;  %v28945_v56 = vld [vmem:[#allocation24_spill] sm:$0xff] }
0x1a39   :  { %24587 = vmatmul.mubr.f32.vlgmr.msra.gmra.mxu1 %v28674_v52  ;;  %p24820_p4 = pnand %p24819_p3, %p24813_p0 }
0x1a3a   :  { %24597 = vmatpush3.msra.mxu1 %v28625_v51  ;;  %v18621_v14 = vand.u32 4294901760, %v18620_v24  ;;  %v18632_v3 = vsub.f32 %v18630_v6, %v18631_v63 }
0x1a3b   :  { %24598 = vmatprep.subr.mxu1 %v28633_v27 }
0x1a3c   :  { %24599 = vmatpush3.msra.mxu1 %v28633_v27  ;;  %24600 = vmatprep.mubr.f32.mxu1 %v18621_v14  ;;  %v18622_v49 = vsub.f32 %v18620_v24, %v18621_v14  ;;  %v18633_v39 = vand.u32 4294901760, %v18632_v3 }
0x1a3d   :  { %24610 = vmatprep.subr.mxu1 %v28625_v51  ;;  %24601 = vmatmul.mubr.f32.vlgmr.msra.gmra.mxu1 %v18631_v63  ;;  %v28947_v63 = vld [vmem:[#allocation25_spill] sm:$0xff] }
0x1a3e   :  { %24611 = vmatpush3.msra.mxu1 %v28625_v51  ;;  %24614 = vmatprep.mubr.f32.mxu1 %v18619_v30  ;;  %v18623_v17 = vand.u32 4294901760, %v18622_v49  ;;  %v28949_v49 = vld [vmem:[#allocation26_spill] sm:$0xff] }
0x1a3f   :  { %24612 = vmatprep.subr.mxu1 %v28633_v27 }
0x1a40   :  { %24613 = vmatpush3.msra.mxu1 %v28633_v27  ;;  %24579 = vmatprep.mubr.f32.mxu0 %v18623_v17 }
0x1a41   :  { %24624 = vmatprep.subr.mxu1 %v19188_v48  ;;  %24580 = vmatmul.mubr.f32.vlgmr.msra.gmra.mxu0 %v18633_v39 }
0x1a42   :  { %24590 = vmatpush3.msra.mxu0 %v28631_v34  ;;  %24615 = vmatmul.mubr.f32.vlgmr.msra.gmra.mxu1 %v28674_v52 }
0x1a43   :  { %24625 = vmatpush3.xpose.msra.mxu1 %v19188_v48  ;;  %24591 = vmatprep.subr.mxu0 %v28641_v22  ;;  %v28950_v48 = vld [vmem:[#allocation14_spill] sm:$0xff] }
0x1a44   :  { %24593 = vmatprep.mubr.f32.mxu0 %v18620_v24  ;;  %24626 = vmatprep.subr.mxu1 %v19195_v19 }
0x1a45   :  { %24628 = vmatprep.mubr.f32.mxu1 %v28691_v12  ;;  %24592 = vmatpush3.msra.mxu0 %v28641_v22 }
0x1a46   :  { %24603 = vmatprep.subr.mxu0 %v28638_v50  ;;  %24594 = vmatmul.mubr.f32.vlgmr.msra.gmra.mxu0 %v18630_v6 }
0x1a47   :  { %24604 = vmatpush3.msra.mxu0 %v28638_v50  ;;  %24627 = vmatpush3.xpose.msra.mxu1 %v19195_v19 }
0x1a48   :  { %24605 = vmatprep.subr.mxu0 %v28648_v4  ;;  %24607 = vmatprep.mubr.f32.mxu0 %v18619_v30  ;;  %v28946_v30 = vld [vmem:[#allocation12_spill] sm:$0xff] }
0x1a49   :  { %24638 = vmatprep.subr.mxu1 %v28664_v40  ;;  %24606 = vmatpush3.msra.mxu0 %v28648_v4 }
0x1a4a   :  { %24617 = vmatprep.subr.mxu0 %v28664_v40  ;;  %24629 = vmatmul.mubr.f32.vlgmr.msra.gmra.mxu1 %v28706_v41 }
0x1a4b   :  { %24608 = vmatmul.mubr.f32.vlgmr.msra.gmra.mxu0 %v28674_v52  ;;  %24639 = vmatpush3.xpose.msra.mxu1 %v28664_v40  ;;  %v8437_v52 = vadd.f32 %v28944_v43, %v28943_v36 }
0x1a4c   :  { %24618 = vmatpush3.xpose.msra.mxu0 %v28664_v40  ;;  %24642 = vmatprep.mubr.f32.mxu1 %v19137_v54 }
0x1a4d   :  { %24619 = vmatprep.subr.mxu0 %v28668_v45  ;;  %24621 = vmatprep.mubr.f32.mxu0 %v19139_v20 }
0x1a4e   :  { %24640 = vmatprep.subr.mxu1 %v28668_v45 }
0x1a4f   :  { %24641 = vmatpush3.xpose.msra.mxu1 %v28668_v45 }
0x1a50   :  { %24620 = vmatpush3.xpose.msra.mxu0 %v28668_v45  ;;  %24652 = vmatprep.subr.mxu1 %v28664_v40 }
0x1a51   :  { %24631 = vmatprep.subr.mxu0 %v28671_v16 }
0x1a52   :  { %24643 = vmatmul.mubr.f32.vlgmr.msra.gmra.mxu1 %v19147_v57 }
0x1a53   :  { %24622 = vmatmul.mubr.f32.vlgmr.msra.gmra.mxu0 %v19149_v9  ;;  %24653 = vmatpush3.xpose.msra.mxu1 %v28664_v40  ;;  %v19727_v40 = vand.u32 4294901760, %v19726_v59 }
0x1a54   :  { %24632 = vmatpush3.xpose.msra.mxu0 %v28671_v16  ;;  %24635 = vmatprep.mubr.f32.mxu0 %v19136_v44  ;;  %v3379_v16 = vadd.f32 %v28942_v32, %v3297_v35 }
0x1a55   :  { %24656 = vmatprep.mubr.f32.mxu1 %v28691_v12  ;;  %24633 = vmatprep.subr.mxu0 %v28678_v13 }
0x1a56   :  { %24654 = vmatprep.subr.mxu1 %v28668_v45 }
0x1a57   :  { %24655 = vmatpush3.xpose.msra.mxu1 %v28668_v45 }
0x1a58   :  { %24634 = vmatpush3.xpose.msra.mxu0 %v28678_v13  ;;  %24666 = vmatprep.subr.mxu1 %v19720_v47  ;;  %v8519_v13 = vadd.f32 %v28945_v56, %v8437_v52 }
0x1a59   :  { %24645 = vmatprep.subr.mxu0 %v28682_v18 }
0x1a5a   :  { %24657 = vmatmul.mubr.f32.vlgmr.msra.gmra.mxu1 %v28706_v41  ;;  %v8601_v24 = vadd.f32 %v28947_v63, %v8519_v13 }
0x1a5b   :  { %24636 = vmatmul.mubr.f32.vlgmr.msra.gmra.mxu0 %v19146_v10  ;;  %24667 = vmatpush3.msra.mxu1 %v19720_v47  ;;  %v28951_v10 = vld [vmem:[#allocation27_spill] sm:$0xff] }
0x1a5c   :  { %24646 = vmatpush3.xpose.msra.mxu0 %v28682_v18  ;;  %24649 = vmatprep.mubr.f32.mxu0 %v28691_v12  ;;  %v3461_v18 = vadd.f32 %v28946_v30, %v3379_v16  ;;  %v28948_v12 = vld [vmem:[#allocation13_spill] sm:$0xff]  ;;  %v8686_v61 = vadd.f32 %v28949_v49, %v8601_v24 }
0x1a5d   :  { %24647 = vmatprep.subr.mxu0 %v28689_v37  ;;  %24668 = vmatprep.subr.mxu1 %v19727_v40 }
0x1a5e   :  { %24669 = vmatpush3.msra.mxu1 %v19727_v40  ;;  %v3546_v3 = vadd.f32 %v28948_v12, %v3461_v18  ;;  %v8765_v33 = vadd.f32 %v28951_v10, %v8686_v61 }
0x1a5f   :  { %24680 = vmatprep.subr.mxu1 %v28717_v7 }
0x1a60   :  { %24648 = vmatpush3.xpose.msra.mxu0 %v28689_v37 }
0x1a61   :  { %24659 = vmatprep.subr.mxu0 %v28717_v7 }
0x1a63   :  { %24650 = vmatmul.mubr.f32.vlgmr.msra.gmra.mxu0 %v28706_v41  ;;  %v3625_v41 = vadd.f32 %v28950_v48, %v3546_v3 }
0x1a64   :  { %24660 = vmatpush3.msra.mxu0 %v28717_v7 }
0x1a65   :  { %24661 = vmatprep.subr.mxu0 %v28731_v2  ;;  %v3634_v9 = vadd.f32 %v28790_v15, %v3625_v41 }
0x1a66   :  { %24662 = vmatpush3.msra.mxu0 %v28731_v2 }
0x1a67   :  { %24673 = vmatprep.subr.mxu0 %v28727_v58  ;;  %v8774_v59 = vadd.f32 %v8765_v33, %v3634_v9 }
0x1a69   :  { %v13914_v35 = vadd.f32 %v27844_v53, %v8774_v59 }
0x1af9   :  { %v24588_v45 = vpop.f32.mrf.mxu1 }
0x1afb   :  { %v18716_v6 = vpop.f32.mrf.mxu1 }
0x1afd   :  { %v24602_v14 = vpop.f32.mrf.mxu1 }
0x1aff   :  { %v18880_v23 = vpop.f32.mrf.mxu1 }
0x1b01   :  { %v24581_v62 = vpop.f32.mrf.mxu0 }
0x1b02   :  { %v18723_v60 = vadd.f32 %v24588_v45, %v24581_v62  ;;  %v24616_v5 = vpop.f32.mrf.mxu1 }
0x1b03   :  { %v18625_v37 = vpop.f32.mrf.mxu0 }
0x1b04   :  { %v18717_v44 = vadd.f32 %v18716_v6, %v18625_v37  ;;  %v19044_v11 = vpop.f32.mrf.mxu1 }
0x1b06   :  { %v24595_v17 = vpop.f32.mrf.mxu0 }
0x1b07   :  { %v18806_v39 = vadd.f32 %v24595_v17, %v18723_v60 }
0x1b08   :  { %v18798_v19 = vpop.f32.mrf.mxu0 }
0x1b09   :  { %v18799_v29 = vadd.f32 %v18798_v19, %v18717_v44  ;;  %v18889_v54 = vadd.f32 %v24602_v14, %v18806_v39 }
0x1b0a   :  { %v24630_v43 = vpop.f32.mrf.mxu1 }
0x1b0b   :  { %v24609_v57 = vpop.f32.mrf.mxu0  ;;  %v18881_v20 = vadd.f32 %v18880_v23, %v18799_v29 }
0x1b0c   :  { %v18972_v31 = vadd.f32 %v24609_v57, %v18889_v54  ;;  %v19232_v56 = vpop.f32.mrf.mxu1 }
0x1b0d   :  { %v18965_v47 = vpop.f32.mrf.mxu0 }
0x1b0e   :  { %v19051_v40 = vadd.f32 %v24616_v5, %v18972_v31  ;;  %v18966_v28 = vadd.f32 %v18965_v47, %v18881_v20 }
0x1b10   :  { %v19055_v45 = vadd.f32 %v19051_v40, %v27842_v1  ;;  %v19045_v32 = vadd.f32 %v19044_v11, %v18966_v28 }
0x1b12   :  { %20613 = vst.msk [vmem:[#allocation2 + $0x8] sm:$0xff] %vm50_vm0, %v19055_v45  ;;  %v19054_v16 = vadd.f32 %v19045_v32, %v13914_v35  ;;  %v24644_v30 = vpop.f32.mrf.mxu1 }
0x1b13   :  { %v24623_v36 = vpop.f32.mrf.mxu0 }
0x1b14   :  { %20612 = vst.msk [vmem:[#allocation2] sm:$0xff] %vm50_vm0, %v19054_v16  ;;  %v19239_v6 = vadd.f32 %v24630_v43, %v24623_v36  ;;  %v19396_v53 = vpop.f32.mrf.mxu1 }
0x1b15   :  { %v19141_v52 = vpop.f32.mrf.mxu0 }
0x1b16   :  { %v19233_v62 = vadd.f32 %v19232_v56, %v19141_v52 }
0x1b1a   :  { %v24658_v1 = vpop.f32.mrf.mxu1 }
0x1b1b   :  { %v24637_v13 = vpop.f32.mrf.mxu0 }
0x1b1c   :  { %v19322_v63 = vadd.f32 %v24637_v13, %v19239_v6  ;;  %v19560_v17 = vpop.f32.mrf.mxu1 }
0x1b1d   :  { %v19314_v18 = vpop.f32.mrf.mxu0 }
0x1b1e   :  { %v19315_v24 = vadd.f32 %v19314_v18, %v19233_v62  ;;  %v19405_v14 = vadd.f32 %v24644_v30, %v19322_v63 }
0x1b20   :  { %v19397_v3 = vadd.f32 %v19396_v53, %v19315_v24 }
0x1b23   :  { %v24651_v37 = vpop.f32.mrf.mxu0 }
0x1b24   :  { %v19488_v12 = vadd.f32 %v24651_v37, %v19405_v14 }
0x1b25   :  { %v19481_v60 = vpop.f32.mrf.mxu0 }
0x1b26   :  { %v19567_v49 = vadd.f32 %v24658_v1, %v19488_v12  ;;  %v19482_v61 = vadd.f32 %v19481_v60, %v19397_v3 }
0x1b28   :  { %v19561_v23 = vadd.f32 %v19560_v17, %v19482_v61  ;;  %v19571_v44 = vsel %vm25657_vm3, %v19567_v49, -inf }
0x1b29   :  { %v19575_v39 = vsel %vm2079_vm1, %v19571_v44, -inf }
0x1b2a   :  { %19576 = vmax.xlane.f32.xlu1 %v19575_v39  ;;  %v19570_v48 = vsel %vm25653_vm2, %v19561_v23, -inf }
0x1b2b   :  { %v19572_v41 = vsel %vm2079_vm1, %v19570_v48, -inf }
0x1b2c   :  { %19573 = vmax.xlane.f32.xlu0 %v19572_v41 }
0x1bb3   :  { %v19577_v19 = vpop.xlane.xlu1 %19576 }
0x1bb4   :  { %v19579_v29 = vsub.f32 %v19571_v44, %v19577_v19 }
0x1bb5   :  { %v19574_v54 = vpop.xlane.xlu0 %19573 }
0x1bb6   :  { %v19582_v10 = vmul.f32 1.442695, %v19579_v29  ;;  %v19578_v33 = vsub.f32 %v19570_v48, %v19574_v54 }
0x1bb8   :  { %24802 = vpow2.f32 %v19582_v10  ;;  %v19580_v5 = vmul.f32 1.442695, %v19578_v33 }
0x1bba   :  { %24804 = vpow2.f32 %v19580_v5 }
0x1bc5   :  { %v24803_v57 = vpop.eup %24802 }
0x1bc6   :  { %v19587_v21 = vsel %vm2079_vm1, %v24803_v57, 0.0 }
0x1bc7   :  { %v24805_v20 = vpop.eup %24804  ;;  %19588 = vadd.xlane.f32.xlu1 %v19587_v21 }
0x1bc8   :  { %v19584_v9 = vsel %vm2079_vm1, %v24805_v20, 0.0 }
0x1bc9   :  { %19585 = vadd.xlane.f32.xlu0 %v19584_v9 }
0x1c50   :  { %v19589_v8 = vpop.xlane.xlu1 %19588 }
0x1c51   :  { %24806 = vrcp.f32 %v19589_v8  ;;  %v28955_v8 = vld [vmem:[#allocation29_spill] sm:$0xff] }
0x1c52   :  { %v19586_v31 = vpop.xlane.xlu0 %19585 }
0x1c53   :  { %24808 = vrcp.f32 %v19586_v31  ;;  %v28956_v31 = vld [vmem:[#allocation28_spill] sm:$0xff] }
0x1c5e   :  { %v24807_v47 = vpop.eup %24806 }
0x1c5f   :  { %v19593_v59 = vmul.f32 %v24807_v47, %v24803_v57  ;;  %v28957_v47 = vld [vmem:[#allocation31_spill] sm:$0xff] }
0x1c60   :  { %v24809_v40 = vpop.eup %24808 }
0x1c61   :  { %v19591_v28 = vmul.f32 %v24809_v40, %v24805_v20  ;;  %v19598_v11 = vsel %vm2079_vm1, %v19593_v59, 0  ;;  %v28954_v20 = vld [vmem:[#allocation18_spill] sm:$0xff] }
0x1c62   :  { %v19677_v35 = vand.u32 4294901760, %v19598_v11 }
0x1c63   :  { %v19595_v45 = vsel %vm2079_vm1, %v19591_v28, 0  ;;  %v28958_v28 = vld [vmem:[#allocation17_spill] sm:$0xff] }
0x1c64   :  { %v19667_v32 = vand.u32 4294901760, %v19595_v45  ;;  %v19678_v16 = vsub.f32 %v19598_v11, %v19677_v35  ;;  %v28959_v11 = vld [vmem:[#allocation30_spill] sm:$0xff] }
0x1c66   :  { %24670 = vmatprep.mubr.f32.mxu1 %v19667_v32  ;;  %v19668_v36 = vsub.f32 %v19595_v45, %v19667_v32  ;;  %v19679_v43 = vand.u32 4294901760, %v19678_v16 }
0x1c67   :  { %24671 = vmatmul.mubr.f32.vlgmr.msra.gmra.mxu1 %v19677_v35 }
0x1c68   :  { %24681 = vmatpush3.msra.mxu1 %v28717_v7  ;;  %v19669_v52 = vand.u32 4294901760, %v19668_v36  ;;  %v19680_v56 = vsub.f32 %v19678_v16, %v19679_v43 }
0x1c69   :  { %24682 = vmatprep.subr.mxu1 %v28731_v2 }
0x1c6a   :  { %24683 = vmatpush3.msra.mxu1 %v28731_v2  ;;  %24684 = vmatprep.mubr.f32.mxu1 %v19669_v52  ;;  %v19670_v13 = vsub.f32 %v19668_v36, %v19669_v52  ;;  %v19681_v30 = vand.u32 4294901760, %v19680_v56 }
0x1c6b   :  { %24694 = vmatprep.subr.mxu1 %v28717_v7  ;;  %24685 = vmatmul.mubr.f32.vlgmr.msra.gmra.mxu1 %v19679_v43  ;;  %v28961_v43 = vld [vmem:[#allocation33_spill] sm:$0xff] }
0x1c6c   :  { %24695 = vmatpush3.msra.mxu1 %v28717_v7  ;;  %24698 = vmatprep.mubr.f32.mxu1 %v19667_v32  ;;  %v19671_v6 = vand.u32 4294901760, %v19670_v13 }
0x1c6d   :  { %24696 = vmatprep.subr.mxu1 %v28731_v2 }
0x1c6e   :  { %24697 = vmatpush3.msra.mxu1 %v28731_v2  ;;  %24663 = vmatprep.mubr.f32.mxu0 %v19671_v6 }
0x1c6f   :  { %24664 = vmatmul.mubr.f32.vlgmr.msra.gmra.mxu0 %v19681_v30  ;;  %24699 = vmatmul.mubr.f32.vlgmr.msra.gmra.mxu1 %v19677_v35  ;;  %v28962_v30 = vld [vmem:[#allocation20_spill] sm:$0xff] }
0x1c70   :  { %24674 = vmatpush3.msra.mxu0 %v28727_v58  ;;  %24677 = vmatprep.mubr.f32.mxu0 %v19668_v36 }
0x1c71   :  { %24675 = vmatprep.subr.mxu0 %v28742_v0  ;;  %24708 = vmatprep.subr.mxu1 %v28651_v26 }
0x1c72   :  { %24676 = vmatpush3.msra.mxu0 %v28742_v0  ;;  %24709 = vmatpush3.msra.mxu1 %v28651_v26 }
0x1c73   :  { %24687 = vmatprep.subr.mxu0 %v28739_v46  ;;  %24678 = vmatmul.mubr.f32.vlgmr.msra.gmra.mxu0 %v19678_v16 }
0x1c74   :  { %24688 = vmatpush3.msra.mxu0 %v28739_v46  ;;  %24691 = vmatprep.mubr.f32.mxu0 %v19667_v32 }
0x1c75   :  { %24689 = vmatprep.subr.mxu0 %v28752_v42  ;;  %24710 = vmatprep.subr.mxu1 %v28656_v25 }
0x1c76   :  { %24690 = vmatpush3.msra.mxu0 %v28752_v42  ;;  %24711 = vmatpush3.msra.mxu1 %v28656_v25 }
0x1c77   :  { %24692 = vmatmul.mubr.f32.vlgmr.msra.gmra.mxu0 %v19677_v35  ;;  %24722 = vmatprep.subr.mxu1 %v28625_v51 }
0x1c78   :  { %24701 = vmatprep.subr.mxu0 %v28625_v51 }
0x1c79   :  { %24702 = vmatpush3.msra.mxu0 %v28625_v51 }
0x1c7a   :  { %24703 = vmatprep.subr.mxu0 %v28633_v27 }
0x1c7b   :  { %24704 = vmatpush3.msra.mxu0 %v28633_v27 }
0x1c7c   :  { %24715 = vmatprep.subr.mxu0 %v28631_v34 }
0x1d27   :  { %v24672_v26 = vpop.f32.mrf.mxu1 }
0x1d29   :  { %v19764_v7 = vpop.f32.mrf.mxu1 }
0x1d2b   :  { %v24686_v58 = vpop.f32.mrf.mxu1 }
0x1d2d   :  { %v19928_v25 = vpop.f32.mrf.mxu1 }
0x1d2f   :  { %v24665_v2 = vpop.f32.mrf.mxu0  ;;  %v24700_v14 = vpop.f32.mrf.mxu1 }
0x1d30   :  { %v19771_v0 = vadd.f32 %v24672_v26, %v24665_v2 }
0x1d31   :  { %v19673_v46 = vpop.f32.mrf.mxu0  ;;  %v20092_v61 = vpop.f32.mrf.mxu1 }
0x1d32   :  { %v19765_v18 = vadd.f32 %v19764_v7, %v19673_v46  ;;  %v28963_v46 = vld [vmem:[#allocation32_spill] sm:$0xff] }
0x1d33   :  { %v24679_v42 = vpop.f32.mrf.mxu0 }
0x1d34   :  { %v19854_v62 = vadd.f32 %v24679_v42, %v19771_v0 }
0x1d35   :  { %v19846_v63 = vpop.f32.mrf.mxu0 }
0x1d36   :  { %v19847_v24 = vadd.f32 %v19846_v63, %v19765_v18  ;;  %v19937_v53 = vadd.f32 %v24686_v58, %v19854_v62 }
0x1d37   :  { %v24693_v1 = vpop.f32.mrf.mxu0 }
0x1d38   :  { %v20020_v37 = vadd.f32 %v24693_v1, %v19937_v53  ;;  %v19929_v12 = vadd.f32 %v19928_v25, %v19847_v24 }
0x1d39   :  { %v20013_v3 = vpop.f32.mrf.mxu0 }
0x1d3a   :  { %v20099_v60 = vadd.f32 %v24700_v14, %v20020_v37  ;;  %v20014_v49 = vadd.f32 %v20013_v3, %v19929_v12 }
0x1d3c   :  { %v20106_v17 = vsel %vm2079_vm1, %v20099_v60, 0  ;;  %v20093_v23 = vadd.f32 %v20092_v61, %v20014_v49 }
0x1d3d   :  { %v20185_v44 = vand.u32 4294901760, %v20106_v17 }
0x1d3e   :  { %v20103_v39 = vsel %vm2079_vm1, %v20093_v23, 0 }
0x1d3f   :  { %v20186_v48 = vsub.f32 %v20106_v17, %v20185_v44  ;;  %v20175_v41 = vand.u32 4294901760, %v20103_v39 }
0x1d41   :  { %v20187_v19 = vand.u32 4294901760, %v20186_v48  ;;  %v20176_v29 = vsub.f32 %v20103_v39, %v20175_v41  ;;  %24712 = vmatprep.mubr.f32.mxu1 %v20175_v41 }
0x1d42   :  { %24713 = vmatmul.mubr.f32.vlgmr.msra.gmra.mxu1 %v20185_v44 }
0x1d43   :  { %24723 = vmatpush3.msra.mxu1 %v28625_v51  ;;  %v20177_v54 = vand.u32 4294901760, %v20176_v29  ;;  %v20188_v10 = vsub.f32 %v20186_v48, %v20187_v19 }
0x1d44   :  { %24724 = vmatprep.subr.mxu1 %v28633_v27 }
0x1d45   :  { %24725 = vmatpush3.msra.mxu1 %v28633_v27  ;;  %24726 = vmatprep.mubr.f32.mxu1 %v20177_v54  ;;  %v20178_v33 = vsub.f32 %v20176_v29, %v20177_v54  ;;  %v20189_v57 = vand.u32 4294901760, %v20188_v10 }
0x1d46   :  { %24727 = vmatmul.mubr.f32.vlgmr.msra.gmra.mxu1 %v20187_v19  ;;  %24736 = vmatprep.subr.mxu1 %v28625_v51 }
0x1d47   :  { %24737 = vmatpush3.msra.mxu1 %v28625_v51  ;;  %24740 = vmatprep.mubr.f32.mxu1 %v20175_v41  ;;  %v20179_v5 = vand.u32 4294901760, %v20178_v33  ;;  %v28952_v51 = vld [vmem:[#allocation16_spill] sm:$0xff] }
0x1d48   :  { %24738 = vmatprep.subr.mxu1 %v28633_v27 }
0x1d49   :  { %24705 = vmatprep.mubr.f32.mxu0 %v20179_v5  ;;  %24739 = vmatpush3.msra.mxu1 %v28633_v27  ;;  %v28953_v27 = vld [vmem:[#allocation15_spill] sm:$0xff] }
0x1d4a   :  { %24706 = vmatmul.mubr.f32.vlgmr.msra.gmra.mxu0 %v20189_v57  ;;  %24741 = vmatmul.mubr.f32.vlgmr.msra.gmra.mxu1 %v20185_v44  ;;  %v4853_v21 = vadd.f32 %v28953_v27, %v28952_v51 }
0x1d4b   :  { %24716 = vmatpush3.msra.mxu0 %v28631_v34  ;;  %24719 = vmatprep.mubr.f32.mxu0 %v20176_v29 }
0x1d4c   :  { %24717 = vmatprep.subr.mxu0 %v28641_v22  ;;  %v4935_v9 = vadd.f32 %v28954_v20, %v4853_v21 }
0x1d4d   :  { %24718 = vmatpush3.msra.mxu0 %v28641_v22  ;;  %v9993_v22 = vadd.f32 %v28956_v31, %v28955_v8 }
0x1d4e   :  { %24729 = vmatprep.subr.mxu0 %v28638_v50  ;;  %24720 = vmatmul.mubr.f32.vlgmr.msra.gmra.mxu0 %v20186_v48 }
0x1d4f   :  { %24730 = vmatpush3.msra.mxu0 %v28638_v50  ;;  %24733 = vmatprep.mubr.f32.mxu0 %v20175_v41  ;;  %v10075_v59 = vadd.f32 %v28957_v47, %v9993_v22  ;;  %v5017_v50 = vadd.f32 %v28958_v28, %v4935_v9 }
0x1d50   :  { %24731 = vmatprep.subr.mxu0 %v28648_v4 }
0x1d51   :  { %24732 = vmatpush3.msra.mxu0 %v28648_v4  ;;  %v10157_v35 = vadd.f32 %v28959_v11, %v10075_v59  ;;  %v28960_v4 = vld [vmem:[#allocation21_spill] sm:$0xff] }
0x1d52   :  { %24734 = vmatmul.mubr.f32.vlgmr.msra.gmra.mxu0 %v20185_v44  ;;  %v5102_v16 = vadd.f32 %v28960_v4, %v5017_v50 }
0x1d53   :  { %v10242_v52 = vadd.f32 %v28961_v43, %v10157_v35 }
0x1d54   :  { %v5181_v26 = vadd.f32 %v28962_v30, %v5102_v16 }
0x1d55   :  { %v10321_v0 = vadd.f32 %v28963_v46, %v10242_v52 }
0x1d56   :  { %v5190_v63 = vadd.f32 %v28790_v15, %v5181_v26 }
0x1d58   :  { %v10330_v1 = vadd.f32 %v10321_v0, %v5190_v63 }
0x1d5a   :  { %v15470_v60 = vadd.f32 %v28529_v38, %v10330_v1 }
0x1e02   :  { %v24714_v34 = vpop.f32.mrf.mxu1 }
0x1e04   :  { %v20272_v40 = vpop.f32.mrf.mxu1 }
0x1e06   :  { %v24728_v45 = vpop.f32.mrf.mxu1 }
0x1e08   :  { %v20436_v13 = vpop.f32.mrf.mxu1 }
0x1e0a   :  { %v24707_v32 = vpop.f32.mrf.mxu0  ;;  %v24742_v18 = vpop.f32.mrf.mxu1 }
0x1e0b   :  { %v20279_v56 = vadd.f32 %v24714_v34, %v24707_v32 }
0x1e0c   :  { %v20181_v36 = vpop.f32.mrf.mxu0  ;;  %v20600_v3 = vpop.f32.mrf.mxu1 }
0x1e0d   :  { %v20273_v7 = vadd.f32 %v20272_v40, %v20181_v36 }
0x1e0e   :  { %v24721_v6 = vpop.f32.mrf.mxu0 }
0x1e0f   :  { %v20362_v58 = vadd.f32 %v24721_v6, %v20279_v56 }
0x1e10   :  { %v20354_v2 = vpop.f32.mrf.mxu0 }
0x1e11   :  { %v20355_v25 = vadd.f32 %v20354_v2, %v20273_v7  ;;  %v20445_v42 = vadd.f32 %v24728_v45, %v20362_v58 }
0x1e12   :  { %v24735_v62 = vpop.f32.mrf.mxu0 }
0x1e13   :  { %v20528_v24 = vadd.f32 %v24735_v62, %v20445_v42  ;;  %v20437_v53 = vadd.f32 %v20436_v13, %v20355_v25 }
0x1e14   :  { %v20521_v14 = vpop.f32.mrf.mxu0 }
0x1e15   :  { %v20607_v37 = vadd.f32 %v24742_v18, %v20528_v24  ;;  %v20522_v12 = vadd.f32 %v20521_v14, %v20437_v53 }
0x1e17   :  { %v20611_v49 = vadd.f32 %v20607_v37, %v28527_v55  ;;  %v20601_v61 = vadd.f32 %v20600_v3, %v20522_v12 }
0x1e19   :  { %20615 = vst.msk [vmem:[#allocation2 + $0x18] sm:$0xff] %vm50_vm0, %v20611_v49  ;;  %v20610_v17 = vadd.f32 %v20601_v61, %v15470_v60 }
0x1e1b   :  { %20614 = vst.msk [vmem:[#allocation2 + $0x10] sm:$0xff] %vm50_vm0, %v20610_v17 }
0x1e1c   :  { %24823 = shalt.err (!%p24820_p4)
}
0x1e1d   :  { %s24835_s16 = smov 128   ;;  %s24836_s17 = smov 8  }
0x1e1e   :  { %20627 = dma.vmem_to_hbm [thread:$0]  %s20622_s14, 512, %s28873_s6, [#allocation3], %s24835_s16, %s24835_s16, %s24836_s17  }
0x1e1f   :  { %24832 = dma.done.wait [#allocation3], 512  }
0x1e20   :  { %24833 = vsyncadd [#allocation3], 4294966784 }
0x1e21   :  { %20631 = vsyncpa [#allocation3], 1 }

</bundles_post_ra>
